<compile_context>
chip_gen: v5e
topology: v5e:2x2
jax: 0.10.0
libtpu: 0.0.40
codegen_flags: <defaults>
</compile_context>

<pallas_src>
import math
import jax
import jax.numpy as jnp
from jax.experimental import pallas as pl
from jax.experimental.pallas import tpu as pltpu

# Model hyperparameters (match the PyTorch module's globals)
EMSIZE = 200          # d_model
NHEAD = 5
D_HID = 250
NLAYERS = 3
HEAD_DIM = EMSIZE // NHEAD   # 40
LANE = 128

_SELU_ALPHA = 1.6732632423543772
_SELU_SCALE = 1.0507009873554805
# Finite stand-in for -inf: after max-subtraction the fully-masked (cross-batch /
# non-causal) entries underflow to exp(...) == 0 instead of producing NaNs.
_MASK_NEG = -1e9


def _layer_norm(v, w, b, eps=1e-5):
    mu = jnp.mean(v, axis=-1, keepdims=True)
    var = jnp.mean((v - mu) ** 2, axis=-1, keepdims=True)
    return (v - mu) * jax.lax.rsqrt(var + eps) * w + b


def _selu(x):
    pos = jnp.maximum(x, 0.0)
    neg = _SELU_ALPHA * (jnp.exp(jnp.minimum(x, 0.0)) - 1.0)
    return _SELU_SCALE * (pos + neg)


def fused_transformer_kernel(x_ref, mask_ref,
                             wq_ref, bq_ref, wk_ref, bk_ref, wv_ref, bv_ref,
                             wo_ref, bo_ref, ln1w_ref, ln1b_ref,
                             w1_ref, b1_ref, w2_ref, b2_ref,
                             ln2w_ref, ln2b_ref,
                             dec_w_ref, dec_b_ref,
                             o_ref):
    """All encoder layers + decoder projection for TB batch rows (grid axis = batch blocks)."""
    TB, S, E = x_ref.shape
    M = TB * S
    L = wq_ref.shape[0]
    H, Dh = NHEAD, E // NHEAD
    scale = 1.0 / math.sqrt(Dh)

    # Flatten TB batch rows into one (M, E) residual stream so every projection / FFN /
    # decoder matmul sees a large MXU M-dim (S=8 alone is only a few % of one MXU pass).
    x = x_ref[...].reshape(M, E)
    mask = mask_ref[...]          # (M, M) block-diagonal additive mask -> attention stays batch-local

    # Per-head column masks, built ONCE and reused by every layer (not re-emitted L*H times).
    col = jax.lax.broadcasted_iota(jnp.int32, (1, E), 1)
    head_cols = [(col >= h * Dh) & (col < (h + 1) * Dh) for h in range(H)]

    for l in range(L):            # static unroll over layers; weights stay resident in VMEM
        xb = x.astype(jnp.bfloat16)

        # --- full-width Q/K/V projections: bf16 operands, f32 accumulation ---
        q = jnp.dot(xb, wq_ref[l], preferred_element_type=jnp.float32) + bq_ref[l]
        k = jnp.dot(xb, wk_ref[l], preferred_element_type=jnp.float32) + bk_ref[l]
        v = jnp.dot(xb, wv_ref[l], preferred_element_type=jnp.float32) + bv_ref[l]

        # Fold 1/sqrt(Dh) into Q (as PyTorch MHA does), cast MXU operands to bf16 once,
        # and hoist the K transpose out of the head loop (done once per layer).
        qb = (q * scale).astype(jnp.bfloat16)      # (M, E)
        ktb = k.T.astype(jnp.bfloat16)             # (E, M)
        vb = v.astype(jnp.bfloat16)                # (M, E)

        # --- multi-head attention via per-head column masks (no lane-splitting reshape):
        #     masking Q's columns restricts the E-wide score contraction to head h;
        #     masking V's columns scatters the per-head context directly into its output
        #     columns, so c_flat needs no post-mask — just a running sum.
        c_flat = jnp.zeros((M, E), dtype=jnp.float32)
        for h in range(H):
            qm = jnp.where(head_cols[h], qb, 0.0)                        # bf16
            s = jnp.dot(qm, ktb, preferred_element_type=jnp.float32)     # (M, M) f32
            s = s + mask
            s = s - jnp.max(s, axis=-1, keepdims=True)
            p = jnp.exp(s)
            p = p * pl.reciprocal(jnp.sum(p, axis=-1, keepdims=True), approx=True)
            vm = jnp.where(head_cols[h], vb, 0.0)                        # bf16
            c_flat = c_flat + jnp.dot(p.astype(jnp.bfloat16), vm,
                                      preferred_element_type=jnp.float32)

        # --- output projection + post-norm residual ---
        attn = jnp.dot(c_flat.astype(jnp.bfloat16), wo_ref[l],
                       preferred_element_type=jnp.float32) + bo_ref[l]
        y = _layer_norm(x + attn, ln1w_ref[l], ln1b_ref[l])

        # --- feed-forward with SELU activation ---
        h1 = _selu(jnp.dot(y.astype(jnp.bfloat16), w1_ref[l],
                           preferred_element_type=jnp.float32) + b1_ref[l])
        h2 = jnp.dot(h1.astype(jnp.bfloat16), w2_ref[l],
                     preferred_element_type=jnp.float32) + b2_ref[l]
        x = _layer_norm(y + h2, ln2w_ref[l], ln2b_ref[l])

    # --- decoder projection: vocab pre-padded to a 128-lane multiple (unmasked vst),
    #     logits written back in bf16 (halves the dominant HBM store) ---
    logits = jnp.dot(x.astype(jnp.bfloat16), dec_w_ref[...],
                     preferred_element_type=jnp.float32) + dec_b_ref[...]
    for t in range(TB):                              # per-row static-slice stores
        o_ref[t] = logits[t * S:(t + 1) * S, :].astype(o_ref.dtype)


def _resident_spec(shape):
    """Whole-array block whose index never changes -> loaded once, kept in VMEM."""
    nd = len(shape)
    return pl.BlockSpec(shape, lambda b, nd=nd: (0,) * nd)


def _pick_batch_tile(B, S, target_rows=256):
    """Largest divisor of B whose flattened row count TB*S stays <= target_rows
    (~ one full MXU pass on v6e/v7x, two on v5e)."""
    tb = 1
    for cand in range(1, B + 1):
        if B % cand == 0 and cand * S <= target_rows:
            tb = cand
    return tb


def _vmem_limit_bytes(weight_bytes, block_bytes):
    """Size the scoped-VMEM cap from the actual footprint, clamped per chip generation."""
    try:
        physical = int(pltpu.get_tpu_info().vmem_capacity_bytes)
    except Exception:
        physical = 64 * 1024 * 1024          # v7x has the smallest per-core VMEM
    # double-buffered resident weights + a few activation blocks + slack for temporaries
    need = 2 * weight_bytes + 3 * block_bytes + (16 << 20)
    return int(min(max(need, 32 << 20), int(physical * 0.75)))


def transformer_pallas_forward(packed, x_bse, src_mask):
    """x_bse: (B, S, E) f32.  Returns lane-padded logits (B, S, Vpad) bf16."""
    B, S, E = x_bse.shape
    Vpad = packed['dec_w'].shape[1]

    tb = _pick_batch_tile(B, S)
    M = tb * S
    steps = B // tb

    # Block-diagonal additive mask: causal mask on each batch row's diagonal block,
    # a large finite negative everywhere else (keeps attention batch-local, NaN-free).
    blk = jnp.arange(M, dtype=jnp.int32) // S
    same = blk[:, None] == blk[None, :]
    big_mask = jnp.where(same, jnp.tile(src_mask.astype(jnp.float32), (tb, tb)), _MASK_NEG)

    weight_args = (packed['wq'], packed['bq'], packed['wk'], packed['bk'],
                   packed['wv'], packed['bv'], packed['wo'], packed['bo'],
                   packed['ln1w'], packed['ln1b'],
                   packed['w1'], packed['b1'], packed['w2'], packed['b2'],
                   packed['ln2w'], packed['ln2b'],
                   packed['dec_w'], packed['dec_b'])
    args = (x_bse, big_mask) + weight_args

    weight_bytes = int(sum(int(a.size) * a.dtype.itemsize for a in weight_args))
    block_bytes = int(tb * S * E * 4 + big_mask.size * 4 + tb * S * Vpad * 2)

    # Advisory cost estimate for XLA's scheduler.
    flops_layer = (4 * 2 * M * E * E                 # Q, K, V, O projections
                   + NHEAD * 2 * (2 * M * M * E)     # masked full-width scores + context
                   + 2 * (2 * M * E * D_HID))        # FFN
    flops = steps * (NLAYERS * flops_layer + 2 * M * E * Vpad)
    transcendentals = steps * NLAYERS * (NHEAD * M * M + M * D_HID)
    bytes_accessed = int(weight_bytes + x_bse.size * 4 + big_mask.size * 4
                         + B * S * Vpad * 2)

    in_specs = [pl.BlockSpec((tb, S, E), lambda b: (b, 0, 0)),
                _resident_spec(big_mask.shape)]
    in_specs += [_resident_spec(a.shape) for a in weight_args]

    return pl.pallas_call(
        fused_transformer_kernel,
        out_shape=jax.ShapeDtypeStruct((B, S, Vpad), jnp.bfloat16),
        grid=(steps,),
        in_specs=in_specs,
        out_specs=pl.BlockSpec((tb, S, Vpad), lambda b: (b, 0, 0)),
        compiler_params=pltpu.CompilerParams(
            dimension_semantics=("parallel",),
            vmem_limit_bytes=_vmem_limit_bytes(weight_bytes, block_bytes)),
        cost_estimate=pl.CostEstimate(flops=int(flops),
                                      transcendentals=int(transcendentals),
                                      bytes_accessed=bytes_accessed),
    )(*args)


def positional_encoding(max_len, d_model):
    position = jnp.arange(max_len, dtype=jnp.float32)[:, None]
    div_term = jnp.exp(jnp.arange(0, d_model, 2, dtype=jnp.float32)
                       * (-math.log(10000.0) / d_model))
    pe = jnp.zeros((max_len, 1, d_model), jnp.float32)
    pe = pe.at[:, 0, 0::2].set(jnp.sin(position * div_term))
    pe = pe.at[:, 0, 1::2].set(jnp.cos(position * div_term))
    return pe


def init_params(key, ntoken, d_model=EMSIZE, nhead=NHEAD, d_hid=D_HID, nlayers=NLAYERS):
    keys = jax.random.split(key, 2 + nlayers)
    params = {'ntoken': ntoken}
    # nn.Embedding weight ~ N(0, 1/sqrt(emsize))
    params['embedding'] = (1.0 / math.sqrt(d_model)) * jax.random.normal(
        keys[0], (ntoken, d_model), jnp.float32)
    # decoder: uniform(+-sqrt(6)/sqrt(emsize+d_hid)), zero bias
    r = math.sqrt(6.0) / math.sqrt(d_model + d_hid)
    dec_w = jax.random.uniform(keys[1], (ntoken, d_model), jnp.float32, -r, r)
    params['dec_w_t'] = dec_w.T                               # (E, V) for right-multiply
    params['dec_b'] = jnp.zeros((ntoken,), jnp.float32)

    def xavier_uniform(kk, shape):
        fan_out, fan_in = shape
        lim = math.sqrt(6.0 / (fan_in + fan_out))
        return jax.random.uniform(kk, shape, jnp.float32, -lim, lim)

    layers = []
    for l in range(nlayers):
        k = jax.random.split(keys[2 + l], 6)
        in_proj_w = xavier_uniform(k[0], (3 * d_model, d_model))
        in_proj_b = jnp.zeros((3 * d_model,), jnp.float32)
        out_proj_w = xavier_uniform(k[1], (d_model, d_model))
        out_proj_b = jnp.zeros((d_model,), jnp.float32)
        w1 = xavier_uniform(k[2], (d_hid, d_model))
        b1 = 0.01 * jax.random.normal(k[3], (d_hid,), jnp.float32)
        w2 = xavier_uniform(k[4], (d_model, d_hid))
        b2 = 0.01 * jax.random.normal(k[5], (d_model,), jnp.float32)

        layers.append(dict(
            # full-width, pre-transposed for right-multiply (x @ W)
            wq=in_proj_w[:d_model].T,                 bq=in_proj_b[:d_model].reshape(1, d_model),
            wk=in_proj_w[d_model:2 * d_model].T,      bk=in_proj_b[d_model:2 * d_model].reshape(1, d_model),
            wv=in_proj_w[2 * d_model:].T,             bv=in_proj_b[2 * d_model:].reshape(1, d_model),
            wo=out_proj_w.T,                          bo=out_proj_b.reshape(1, d_model),
            ln1w=jnp.ones((1, d_model), jnp.float32), ln1b=jnp.zeros((1, d_model), jnp.float32),
            w1=w1.T, b1=b1.reshape(1, d_hid),
            w2=w2.T, b2=b2.reshape(1, d_model),
            ln2w=jnp.ones((1, d_model), jnp.float32), ln2b=jnp.zeros((1, d_model), jnp.float32),
        ))
    params['layers'] = layers
    return params


def pack_params(params):
    """Stack per-layer weights into (L, ...) arrays, cast matmul operands to bf16
    (f32 accumulation in-kernel), and pad the decoder to a 128-lane multiple."""
    L = len(params['layers'])

    def stack(name, dtype):
        return jnp.stack([params['layers'][l][name] for l in range(L)]).astype(dtype)

    packed = {
        'wq': stack('wq', jnp.bfloat16), 'bq': stack('bq', jnp.float32),
        'wk': stack('wk', jnp.bfloat16), 'bk': stack('bk', jnp.float32),
        'wv': stack('wv', jnp.bfloat16), 'bv': stack('bv', jnp.float32),
        'wo': stack('wo', jnp.bfloat16), 'bo': stack('bo', jnp.float32),
        'ln1w': stack('ln1w', jnp.float32), 'ln1b': stack('ln1b', jnp.float32),
        'w1': stack('w1', jnp.bfloat16), 'b1': stack('b1', jnp.float32),
        'w2': stack('w2', jnp.bfloat16), 'b2': stack('b2', jnp.float32),
        'ln2w': stack('ln2w', jnp.float32), 'ln2b': stack('ln2b', jnp.float32),
    }
    ntoken = params['ntoken']
    d_model = params['dec_w_t'].shape[0]
    vpad = ((ntoken + LANE - 1) // LANE) * LANE
    dec_w = jnp.zeros((d_model, vpad), jnp.float32).at[:, :ntoken].set(params['dec_w_t'])
    dec_b = jnp.zeros((1, vpad), jnp.float32).at[:, :ntoken].set(params['dec_b'][None, :])
    packed['dec_w'] = dec_w.astype(jnp.bfloat16)
    packed['dec_b'] = dec_b
    return packed


def transformer_forward(params, packed, src, src_mask, pe):
    """src: (S, B) int32 tokens; src_mask: (S, S) additive float mask.
    Returns logits of shape (S, B, ntoken), matching the PyTorch forward."""
    S, B = src.shape
    d_model = params['embedding'].shape[1]
    # Embedding gather + positional encoding: cheap glue in plain JAX.
    x = params['embedding'][src] * math.sqrt(d_model)          # (S, B, E)
    x = x + pe[:S]                                             # dropout == identity (eval)
    x_bse = jnp.transpose(x, (1, 0, 2)).astype(jnp.float32)    # -> (B, S, E) for the kernel
    logits_pad = transformer_pallas_forward(packed, x_bse, src_mask)   # (B, S, Vpad) bf16
    logits = logits_pad[..., :params['ntoken']].astype(jnp.float32)    # drop lane padding
    return jnp.transpose(logits, (1, 0, 2))                    # back to (S, B, V)


if __name__ == "__main__":
    key = jax.random.PRNGKey(0)
    ntoken, S, B = 64, 8, 2
    kp, ks = jax.random.split(key)
    params = init_params(kp, ntoken)
    packed = pack_params(params)
    pe = positional_encoding(64, EMSIZE)
    src = jax.random.randint(ks, (S, B), 0, ntoken, dtype=jnp.int32)
    # Causal additive mask (PyTorch uses -inf; a large finite negative is numerically safer).
    src_mask = jnp.where(jnp.arange(S)[None, :] <= jnp.arange(S)[:, None],
                         0.0, _MASK_NEG).astype(jnp.float32)

    out = transformer_forward(params, packed, src, src_mask, pe)
    out = jax.block_until_ready(out)
    assert out.shape == (S, B, ntoken)
    assert bool(jnp.all(jnp.isfinite(out)))
    print("KERNEL_OK")
</pallas_src>

<mosaic_0001>
module attributes {stable_mosaic.version = 11 : i64} {
  func.func @fused_transformer_kernel(%arg0: i32, %arg1: memref<2x8x200xf32, #tpu.memory_space<vmem>>, %arg2: memref<16x16xf32, #tpu.memory_space<vmem>>, %arg3: memref<3x200x200xbf16, #tpu.memory_space<vmem>>, %arg4: memref<3x1x200xf32, #tpu.memory_space<vmem>>, %arg5: memref<3x200x200xbf16, #tpu.memory_space<vmem>>, %arg6: memref<3x1x200xf32, #tpu.memory_space<vmem>>, %arg7: memref<3x200x200xbf16, #tpu.memory_space<vmem>>, %arg8: memref<3x1x200xf32, #tpu.memory_space<vmem>>, %arg9: memref<3x200x200xbf16, #tpu.memory_space<vmem>>, %arg10: memref<3x1x200xf32, #tpu.memory_space<vmem>>, %arg11: memref<3x1x200xf32, #tpu.memory_space<vmem>>, %arg12: memref<3x1x200xf32, #tpu.memory_space<vmem>>, %arg13: memref<3x200x250xbf16, #tpu.memory_space<vmem>>, %arg14: memref<3x1x250xf32, #tpu.memory_space<vmem>>, %arg15: memref<3x250x200xbf16, #tpu.memory_space<vmem>>, %arg16: memref<3x1x200xf32, #tpu.memory_space<vmem>>, %arg17: memref<3x1x200xf32, #tpu.memory_space<vmem>>, %arg18: memref<3x1x200xf32, #tpu.memory_space<vmem>>, %arg19: memref<200x128xbf16, #tpu.memory_space<vmem>>, %arg20: memref<1x128xf32, #tpu.memory_space<vmem>>, %arg21: memref<2x8x128xbf16, #tpu.memory_space<vmem>>) attributes {dimension_semantics = [#tpu.dimension_semantics<parallel>], iteration_bounds = array<i64: 1>, scalar_prefetch = 0 : i64, scratch_operands = 0 : i64, tpu.core_type = #tpu.core_type<tc>, window_params = [{transform_indices = @transform_0, window_bounds = array<i64: 2, 8, 200>}, {pipeline_mode = #tpu.pipeline_mode<synchronous>, transform_indices = @transform_1, window_bounds = array<i64: 16, 16>}, {pipeline_mode = #tpu.pipeline_mode<synchronous>, transform_indices = @transform_2, window_bounds = array<i64: 3, 200, 200>}, {pipeline_mode = #tpu.pipeline_mode<synchronous>, transform_indices = @transform_3, window_bounds = array<i64: 3, 1, 200>}, {pipeline_mode = #tpu.pipeline_mode<synchronous>, transform_indices = @transform_4, window_bounds = array<i64: 3, 200, 200>}, {pipeline_mode = #tpu.pipeline_mode<synchronous>, transform_indices = @transform_5, window_bounds = array<i64: 3, 1, 200>}, {pipeline_mode = #tpu.pipeline_mode<synchronous>, transform_indices = @transform_6, window_bounds = array<i64: 3, 200, 200>}, {pipeline_mode = #tpu.pipeline_mode<synchronous>, transform_indices = @transform_7, window_bounds = array<i64: 3, 1, 200>}, {pipeline_mode = #tpu.pipeline_mode<synchronous>, transform_indices = @transform_8, window_bounds = array<i64: 3, 200, 200>}, {pipeline_mode = #tpu.pipeline_mode<synchronous>, transform_indices = @transform_9, window_bounds = array<i64: 3, 1, 200>}, {pipeline_mode = #tpu.pipeline_mode<synchronous>, transform_indices = @transform_10, window_bounds = array<i64: 3, 1, 200>}, {pipeline_mode = #tpu.pipeline_mode<synchronous>, transform_indices = @transform_11, window_bounds = array<i64: 3, 1, 200>}, {pipeline_mode = #tpu.pipeline_mode<synchronous>, transform_indices = @transform_12, window_bounds = array<i64: 3, 200, 250>}, {pipeline_mode = #tpu.pipeline_mode<synchronous>, transform_indices = @transform_13, window_bounds = array<i64: 3, 1, 250>}, {pipeline_mode = #tpu.pipeline_mode<synchronous>, transform_indices = @transform_14, window_bounds = array<i64: 3, 250, 200>}, {pipeline_mode = #tpu.pipeline_mode<synchronous>, transform_indices = @transform_15, window_bounds = array<i64: 3, 1, 200>}, {pipeline_mode = #tpu.pipeline_mode<synchronous>, transform_indices = @transform_16, window_bounds = array<i64: 3, 1, 200>}, {pipeline_mode = #tpu.pipeline_mode<synchronous>, transform_indices = @transform_17, window_bounds = array<i64: 3, 1, 200>}, {pipeline_mode = #tpu.pipeline_mode<synchronous>, transform_indices = @transform_18, window_bounds = array<i64: 200, 128>}, {pipeline_mode = #tpu.pipeline_mode<synchronous>, transform_indices = @transform_19, window_bounds = array<i64: 1, 128>}, {transform_indices = @transform_20, window_bounds = array<i64: 2, 8, 128>}]} {
    %c0 = arith.constant 0 : index
    %c0_0 = arith.constant 0 : index
    %c0_1 = arith.constant 0 : index
    %0 = vector.load %arg1[%c0, %c0_0, %c0_1] : memref<2x8x200xf32, #tpu.memory_space<vmem>>, vector<2x8x200xf32>
    %1 = vector.shape_cast %0 : vector<2x8x200xf32> to vector<16x200xf32>
    %c0_2 = arith.constant 0 : index
    %c0_3 = arith.constant 0 : index
    %2 = vector.load %arg2[%c0_2, %c0_3] : memref<16x16xf32, #tpu.memory_space<vmem>>, vector<16x16xf32>
    %3 = tpu.iota {dimensions = array<i32: 1>} : vector<1x200xi32>
    %c0_i32 = arith.constant 0 : i32
    %4 = vector.broadcast %c0_i32 : i32 to vector<1x200xi32>
    %5 = arith.cmpi sge, %3, %4 : vector<1x200xi32>
    %c40_i32 = arith.constant 40 : i32
    %6 = vector.broadcast %c40_i32 : i32 to vector<1x200xi32>
    %7 = arith.cmpi slt, %3, %6 : vector<1x200xi32>
    %8 = arith.andi %5, %7 : vector<1x200xi1>
    %c40_i32_4 = arith.constant 40 : i32
    %9 = vector.broadcast %c40_i32_4 : i32 to vector<1x200xi32>
    %10 = arith.cmpi sge, %3, %9 : vector<1x200xi32>
    %c80_i32 = arith.constant 80 : i32
    %11 = vector.broadcast %c80_i32 : i32 to vector<1x200xi32>
    %12 = arith.cmpi slt, %3, %11 : vector<1x200xi32>
    %13 = arith.andi %10, %12 : vector<1x200xi1>
    %c80_i32_5 = arith.constant 80 : i32
    %14 = vector.broadcast %c80_i32_5 : i32 to vector<1x200xi32>
    %15 = arith.cmpi sge, %3, %14 : vector<1x200xi32>
    %c120_i32 = arith.constant 120 : i32
    %16 = vector.broadcast %c120_i32 : i32 to vector<1x200xi32>
    %17 = arith.cmpi slt, %3, %16 : vector<1x200xi32>
    %18 = arith.andi %15, %17 : vector<1x200xi1>
    %c120_i32_6 = arith.constant 120 : i32
    %19 = vector.broadcast %c120_i32_6 : i32 to vector<1x200xi32>
    %20 = arith.cmpi sge, %3, %19 : vector<1x200xi32>
    %c160_i32 = arith.constant 160 : i32
    %21 = vector.broadcast %c160_i32 : i32 to vector<1x200xi32>
    %22 = arith.cmpi slt, %3, %21 : vector<1x200xi32>
    %23 = arith.andi %20, %22 : vector<1x200xi1>
    %c160_i32_7 = arith.constant 160 : i32
    %24 = vector.broadcast %c160_i32_7 : i32 to vector<1x200xi32>
    %25 = arith.cmpi sge, %3, %24 : vector<1x200xi32>
    %c200_i32 = arith.constant 200 : i32
    %26 = vector.broadcast %c200_i32 : i32 to vector<1x200xi32>
    %27 = arith.cmpi slt, %3, %26 : vector<1x200xi32>
    %28 = arith.andi %25, %27 : vector<1x200xi1>
    %29 = arith.truncf %1 : vector<16x200xf32> to vector<16x200xbf16>
    %c0_8 = arith.constant 0 : index
    %c0_9 = arith.constant 0 : index
    %c0_10 = arith.constant 0 : index
    %30 = vector.load %arg3[%c0_8, %c0_9, %c0_10] : memref<3x200x200xbf16, #tpu.memory_space<vmem>>, vector<1x200x200xbf16>
    %31 = vector.shape_cast %30 : vector<1x200x200xbf16> to vector<200x200xbf16>
    %cst = arith.constant dense<0.000000e+00> : vector<16x200xf32>
    %32 = tpu.matmul %29, %31, %cst {dimension_numbers = #tpu.dot_dimension_numbers<[1], [0], [0], [1], [0, 0, 1, 1], [], []>} : vector<16x200xbf16>, vector<200x200xbf16>, vector<16x200xf32> -> vector<16x200xf32>
    %c0_11 = arith.constant 0 : index
    %c0_12 = arith.constant 0 : index
    %c0_13 = arith.constant 0 : index
    %33 = vector.load %arg4[%c0_11, %c0_12, %c0_13] : memref<3x1x200xf32, #tpu.memory_space<vmem>>, vector<1x1x200xf32>
    %34 = vector.shape_cast %33 : vector<1x1x200xf32> to vector<1x200xf32>
    %35 = vector.broadcast %34 : vector<1x200xf32> to vector<16x200xf32>
    %36 = arith.addf %32, %35 : vector<16x200xf32>
    %c0_14 = arith.constant 0 : index
    %c0_15 = arith.constant 0 : index
    %c0_16 = arith.constant 0 : index
    %37 = vector.load %arg5[%c0_14, %c0_15, %c0_16] : memref<3x200x200xbf16, #tpu.memory_space<vmem>>, vector<1x200x200xbf16>
    %38 = vector.shape_cast %37 : vector<1x200x200xbf16> to vector<200x200xbf16>
    %cst_17 = arith.constant dense<0.000000e+00> : vector<16x200xf32>
    %39 = tpu.matmul %29, %38, %cst_17 {dimension_numbers = #tpu.dot_dimension_numbers<[1], [0], [0], [1], [0, 0, 1, 1], [], []>} : vector<16x200xbf16>, vector<200x200xbf16>, vector<16x200xf32> -> vector<16x200xf32>
    %c0_18 = arith.constant 0 : index
    %c0_19 = arith.constant 0 : index
    %c0_20 = arith.constant 0 : index
    %40 = vector.load %arg6[%c0_18, %c0_19, %c0_20] : memref<3x1x200xf32, #tpu.memory_space<vmem>>, vector<1x1x200xf32>
    %41 = vector.shape_cast %40 : vector<1x1x200xf32> to vector<1x200xf32>
    %42 = vector.broadcast %41 : vector<1x200xf32> to vector<16x200xf32>
    %43 = arith.addf %39, %42 : vector<16x200xf32>
    %c0_21 = arith.constant 0 : index
    %c0_22 = arith.constant 0 : index
    %c0_23 = arith.constant 0 : index
    %44 = vector.load %arg7[%c0_21, %c0_22, %c0_23] : memref<3x200x200xbf16, #tpu.memory_space<vmem>>, vector<1x200x200xbf16>
    %45 = vector.shape_cast %44 : vector<1x200x200xbf16> to vector<200x200xbf16>
    %cst_24 = arith.constant dense<0.000000e+00> : vector<16x200xf32>
    %46 = tpu.matmul %29, %45, %cst_24 {dimension_numbers = #tpu.dot_dimension_numbers<[1], [0], [0], [1], [0, 0, 1, 1], [], []>} : vector<16x200xbf16>, vector<200x200xbf16>, vector<16x200xf32> -> vector<16x200xf32>
    %c0_25 = arith.constant 0 : index
    %c0_26 = arith.constant 0 : index
    %c0_27 = arith.constant 0 : index
    %47 = vector.load %arg8[%c0_25, %c0_26, %c0_27] : memref<3x1x200xf32, #tpu.memory_space<vmem>>, vector<1x1x200xf32>
    %48 = vector.shape_cast %47 : vector<1x1x200xf32> to vector<1x200xf32>
    %49 = vector.broadcast %48 : vector<1x200xf32> to vector<16x200xf32>
    %50 = arith.addf %46, %49 : vector<16x200xf32>
    %cst_28 = arith.constant 0.158113882 : f32
    %51 = vector.broadcast %cst_28 : f32 to vector<16x200xf32>
    %52 = arith.mulf %36, %51 : vector<16x200xf32>
    %53 = arith.truncf %52 : vector<16x200xf32> to vector<16x200xbf16>
    %54 = tpu.transpose %43, [1, 0] : vector<16x200xf32> -> vector<200x16xf32>
    %55 = arith.truncf %54 : vector<200x16xf32> to vector<200x16xbf16>
    %56 = arith.truncf %50 : vector<16x200xf32> to vector<16x200xbf16>
    %cst_29 = arith.constant 0.000000e+00 : f32
    %57 = vector.broadcast %cst_29 : f32 to vector<16x200xf32>
    %cst_30 = arith.constant 0.000000e+00 : f32
    %58 = arith.truncf %cst_30 : f32 to bf16
    %59 = vector.shape_cast %8 : vector<1x200xi1> to vector<1x200xi1>
    %60 = vector.broadcast %59 : vector<1x200xi1> to vector<16x200xi1>
    %61 = vector.broadcast %58 : bf16 to vector<16x200xbf16>
    %62 = arith.select %60, %53, %61 : vector<16x200xi1>, vector<16x200xbf16>
    %cst_31 = arith.constant dense<0.000000e+00> : vector<16x16xf32>
    %63 = tpu.matmul %62, %55, %cst_31 {dimension_numbers = #tpu.dot_dimension_numbers<[1], [0], [0], [1], [0, 0, 1, 1], [], []>} : vector<16x200xbf16>, vector<200x16xbf16>, vector<16x16xf32> -> vector<16x16xf32>
    %64 = arith.addf %63, %2 : vector<16x16xf32>
    %cst_32 = arith.constant dense<0xFF800000> : vector<16xf32>
    %65 = vector.multi_reduction <maximumf>, %64, %cst_32 [1] : vector<16x16xf32> to vector<16xf32>
    %66 = vector.shape_cast %65 : vector<16xf32> to vector<16x1xf32>
    %67 = vector.broadcast %66 : vector<16x1xf32> to vector<16x16xf32>
    %68 = arith.subf %64, %67 : vector<16x16xf32>
    %69 = math.exp %68 : vector<16x16xf32>
    %cst_33 = arith.constant dense<0.000000e+00> : vector<16xf32>
    %70 = vector.multi_reduction <add>, %69, %cst_33 [1] : vector<16x16xf32> to vector<16xf32>
    %71 = vector.shape_cast %70 : vector<16xf32> to vector<16x1xf32>
    %72 = tpu.reciprocal %71 {approx = true} : vector<16x1xf32> -> vector<16x1xf32>
    %73 = vector.broadcast %72 : vector<16x1xf32> to vector<16x16xf32>
    %74 = arith.mulf %69, %73 : vector<16x16xf32>
    %cst_34 = arith.constant 0.000000e+00 : f32
    %75 = arith.truncf %cst_34 : f32 to bf16
    %76 = vector.shape_cast %8 : vector<1x200xi1> to vector<1x200xi1>
    %77 = vector.broadcast %76 : vector<1x200xi1> to vector<16x200xi1>
    %78 = vector.broadcast %75 : bf16 to vector<16x200xbf16>
    %79 = arith.select %77, %56, %78 : vector<16x200xi1>, vector<16x200xbf16>
    %80 = arith.truncf %74 : vector<16x16xf32> to vector<16x16xbf16>
    %cst_35 = arith.constant dense<0.000000e+00> : vector<16x200xf32>
    %81 = tpu.matmul %80, %79, %cst_35 {dimension_numbers = #tpu.dot_dimension_numbers<[1], [0], [0], [1], [0, 0, 1, 1], [], []>} : vector<16x16xbf16>, vector<16x200xbf16>, vector<16x200xf32> -> vector<16x200xf32>
    %82 = arith.addf %57, %81 : vector<16x200xf32>
    %cst_36 = arith.constant 0.000000e+00 : f32
    %83 = arith.truncf %cst_36 : f32 to bf16
    %84 = vector.shape_cast %13 : vector<1x200xi1> to vector<1x200xi1>
    %85 = vector.broadcast %84 : vector<1x200xi1> to vector<16x200xi1>
    %86 = vector.broadcast %83 : bf16 to vector<16x200xbf16>
    %87 = arith.select %85, %53, %86 : vector<16x200xi1>, vector<16x200xbf16>
    %cst_37 = arith.constant dense<0.000000e+00> : vector<16x16xf32>
    %88 = tpu.matmul %87, %55, %cst_37 {dimension_numbers = #tpu.dot_dimension_numbers<[1], [0], [0], [1], [0, 0, 1, 1], [], []>} : vector<16x200xbf16>, vector<200x16xbf16>, vector<16x16xf32> -> vector<16x16xf32>
    %89 = arith.addf %88, %2 : vector<16x16xf32>
    %cst_38 = arith.constant dense<0xFF800000> : vector<16xf32>
    %90 = vector.multi_reduction <maximumf>, %89, %cst_38 [1] : vector<16x16xf32> to vector<16xf32>
    %91 = vector.shape_cast %90 : vector<16xf32> to vector<16x1xf32>
    %92 = vector.broadcast %91 : vector<16x1xf32> to vector<16x16xf32>
    %93 = arith.subf %89, %92 : vector<16x16xf32>
    %94 = math.exp %93 : vector<16x16xf32>
    %cst_39 = arith.constant dense<0.000000e+00> : vector<16xf32>
    %95 = vector.multi_reduction <add>, %94, %cst_39 [1] : vector<16x16xf32> to vector<16xf32>
    %96 = vector.shape_cast %95 : vector<16xf32> to vector<16x1xf32>
    %97 = tpu.reciprocal %96 {approx = true} : vector<16x1xf32> -> vector<16x1xf32>
    %98 = vector.broadcast %97 : vector<16x1xf32> to vector<16x16xf32>
    %99 = arith.mulf %94, %98 : vector<16x16xf32>
    %cst_40 = arith.constant 0.000000e+00 : f32
    %100 = arith.truncf %cst_40 : f32 to bf16
    %101 = vector.shape_cast %13 : vector<1x200xi1> to vector<1x200xi1>
    %102 = vector.broadcast %101 : vector<1x200xi1> to vector<16x200xi1>
    %103 = vector.broadcast %100 : bf16 to vector<16x200xbf16>
    %104 = arith.select %102, %56, %103 : vector<16x200xi1>, vector<16x200xbf16>
    %105 = arith.truncf %99 : vector<16x16xf32> to vector<16x16xbf16>
    %cst_41 = arith.constant dense<0.000000e+00> : vector<16x200xf32>
    %106 = tpu.matmul %105, %104, %cst_41 {dimension_numbers = #tpu.dot_dimension_numbers<[1], [0], [0], [1], [0, 0, 1, 1], [], []>} : vector<16x16xbf16>, vector<16x200xbf16>, vector<16x200xf32> -> vector<16x200xf32>
    %107 = arith.addf %82, %106 : vector<16x200xf32>
    %cst_42 = arith.constant 0.000000e+00 : f32
    %108 = arith.truncf %cst_42 : f32 to bf16
    %109 = vector.shape_cast %18 : vector<1x200xi1> to vector<1x200xi1>
    %110 = vector.broadcast %109 : vector<1x200xi1> to vector<16x200xi1>
    %111 = vector.broadcast %108 : bf16 to vector<16x200xbf16>
    %112 = arith.select %110, %53, %111 : vector<16x200xi1>, vector<16x200xbf16>
    %cst_43 = arith.constant dense<0.000000e+00> : vector<16x16xf32>
    %113 = tpu.matmul %112, %55, %cst_43 {dimension_numbers = #tpu.dot_dimension_numbers<[1], [0], [0], [1], [0, 0, 1, 1], [], []>} : vector<16x200xbf16>, vector<200x16xbf16>, vector<16x16xf32> -> vector<16x16xf32>
    %114 = arith.addf %113, %2 : vector<16x16xf32>
    %cst_44 = arith.constant dense<0xFF800000> : vector<16xf32>
    %115 = vector.multi_reduction <maximumf>, %114, %cst_44 [1] : vector<16x16xf32> to vector<16xf32>
    %116 = vector.shape_cast %115 : vector<16xf32> to vector<16x1xf32>
    %117 = vector.broadcast %116 : vector<16x1xf32> to vector<16x16xf32>
    %118 = arith.subf %114, %117 : vector<16x16xf32>
    %119 = math.exp %118 : vector<16x16xf32>
    %cst_45 = arith.constant dense<0.000000e+00> : vector<16xf32>
    %120 = vector.multi_reduction <add>, %119, %cst_45 [1] : vector<16x16xf32> to vector<16xf32>
    %121 = vector.shape_cast %120 : vector<16xf32> to vector<16x1xf32>
    %122 = tpu.reciprocal %121 {approx = true} : vector<16x1xf32> -> vector<16x1xf32>
    %123 = vector.broadcast %122 : vector<16x1xf32> to vector<16x16xf32>
    %124 = arith.mulf %119, %123 : vector<16x16xf32>
    %cst_46 = arith.constant 0.000000e+00 : f32
    %125 = arith.truncf %cst_46 : f32 to bf16
    %126 = vector.shape_cast %18 : vector<1x200xi1> to vector<1x200xi1>
    %127 = vector.broadcast %126 : vector<1x200xi1> to vector<16x200xi1>
    %128 = vector.broadcast %125 : bf16 to vector<16x200xbf16>
    %129 = arith.select %127, %56, %128 : vector<16x200xi1>, vector<16x200xbf16>
    %130 = arith.truncf %124 : vector<16x16xf32> to vector<16x16xbf16>
    %cst_47 = arith.constant dense<0.000000e+00> : vector<16x200xf32>
    %131 = tpu.matmul %130, %129, %cst_47 {dimension_numbers = #tpu.dot_dimension_numbers<[1], [0], [0], [1], [0, 0, 1, 1], [], []>} : vector<16x16xbf16>, vector<16x200xbf16>, vector<16x200xf32> -> vector<16x200xf32>
    %132 = arith.addf %107, %131 : vector<16x200xf32>
    %cst_48 = arith.constant 0.000000e+00 : f32
    %133 = arith.truncf %cst_48 : f32 to bf16
    %134 = vector.shape_cast %23 : vector<1x200xi1> to vector<1x200xi1>
    %135 = vector.broadcast %134 : vector<1x200xi1> to vector<16x200xi1>
    %136 = vector.broadcast %133 : bf16 to vector<16x200xbf16>
    %137 = arith.select %135, %53, %136 : vector<16x200xi1>, vector<16x200xbf16>
    %cst_49 = arith.constant dense<0.000000e+00> : vector<16x16xf32>
    %138 = tpu.matmul %137, %55, %cst_49 {dimension_numbers = #tpu.dot_dimension_numbers<[1], [0], [0], [1], [0, 0, 1, 1], [], []>} : vector<16x200xbf16>, vector<200x16xbf16>, vector<16x16xf32> -> vector<16x16xf32>
    %139 = arith.addf %138, %2 : vector<16x16xf32>
    %cst_50 = arith.constant dense<0xFF800000> : vector<16xf32>
    %140 = vector.multi_reduction <maximumf>, %139, %cst_50 [1] : vector<16x16xf32> to vector<16xf32>
    %141 = vector.shape_cast %140 : vector<16xf32> to vector<16x1xf32>
    %142 = vector.broadcast %141 : vector<16x1xf32> to vector<16x16xf32>
    %143 = arith.subf %139, %142 : vector<16x16xf32>
    %144 = math.exp %143 : vector<16x16xf32>
    %cst_51 = arith.constant dense<0.000000e+00> : vector<16xf32>
    %145 = vector.multi_reduction <add>, %144, %cst_51 [1] : vector<16x16xf32> to vector<16xf32>
    %146 = vector.shape_cast %145 : vector<16xf32> to vector<16x1xf32>
    %147 = tpu.reciprocal %146 {approx = true} : vector<16x1xf32> -> vector<16x1xf32>
    %148 = vector.broadcast %147 : vector<16x1xf32> to vector<16x16xf32>
    %149 = arith.mulf %144, %148 : vector<16x16xf32>
    %cst_52 = arith.constant 0.000000e+00 : f32
    %150 = arith.truncf %cst_52 : f32 to bf16
    %151 = vector.shape_cast %23 : vector<1x200xi1> to vector<1x200xi1>
    %152 = vector.broadcast %151 : vector<1x200xi1> to vector<16x200xi1>
    %153 = vector.broadcast %150 : bf16 to vector<16x200xbf16>
    %154 = arith.select %152, %56, %153 : vector<16x200xi1>, vector<16x200xbf16>
    %155 = arith.truncf %149 : vector<16x16xf32> to vector<16x16xbf16>
    %cst_53 = arith.constant dense<0.000000e+00> : vector<16x200xf32>
    %156 = tpu.matmul %155, %154, %cst_53 {dimension_numbers = #tpu.dot_dimension_numbers<[1], [0], [0], [1], [0, 0, 1, 1], [], []>} : vector<16x16xbf16>, vector<16x200xbf16>, vector<16x200xf32> -> vector<16x200xf32>
    %157 = arith.addf %132, %156 : vector<16x200xf32>
    %cst_54 = arith.constant 0.000000e+00 : f32
    %158 = arith.truncf %cst_54 : f32 to bf16
    %159 = vector.shape_cast %28 : vector<1x200xi1> to vector<1x200xi1>
    %160 = vector.broadcast %159 : vector<1x200xi1> to vector<16x200xi1>
    %161 = vector.broadcast %158 : bf16 to vector<16x200xbf16>
    %162 = arith.select %160, %53, %161 : vector<16x200xi1>, vector<16x200xbf16>
    %cst_55 = arith.constant dense<0.000000e+00> : vector<16x16xf32>
    %163 = tpu.matmul %162, %55, %cst_55 {dimension_numbers = #tpu.dot_dimension_numbers<[1], [0], [0], [1], [0, 0, 1, 1], [], []>} : vector<16x200xbf16>, vector<200x16xbf16>, vector<16x16xf32> -> vector<16x16xf32>
    %164 = arith.addf %163, %2 : vector<16x16xf32>
    %cst_56 = arith.constant dense<0xFF800000> : vector<16xf32>
    %165 = vector.multi_reduction <maximumf>, %164, %cst_56 [1] : vector<16x16xf32> to vector<16xf32>
    %166 = vector.shape_cast %165 : vector<16xf32> to vector<16x1xf32>
    %167 = vector.broadcast %166 : vector<16x1xf32> to vector<16x16xf32>
    %168 = arith.subf %164, %167 : vector<16x16xf32>
    %169 = math.exp %168 : vector<16x16xf32>
    %cst_57 = arith.constant dense<0.000000e+00> : vector<16xf32>
    %170 = vector.multi_reduction <add>, %169, %cst_57 [1] : vector<16x16xf32> to vector<16xf32>
    %171 = vector.shape_cast %170 : vector<16xf32> to vector<16x1xf32>
    %172 = tpu.reciprocal %171 {approx = true} : vector<16x1xf32> -> vector<16x1xf32>
    %173 = vector.broadcast %172 : vector<16x1xf32> to vector<16x16xf32>
    %174 = arith.mulf %169, %173 : vector<16x16xf32>
    %cst_58 = arith.constant 0.000000e+00 : f32
    %175 = arith.truncf %cst_58 : f32 to bf16
    %176 = vector.shape_cast %28 : vector<1x200xi1> to vector<1x200xi1>
    %177 = vector.broadcast %176 : vector<1x200xi1> to vector<16x200xi1>
    %178 = vector.broadcast %175 : bf16 to vector<16x200xbf16>
    %179 = arith.select %177, %56, %178 : vector<16x200xi1>, vector<16x200xbf16>
    %180 = arith.truncf %174 : vector<16x16xf32> to vector<16x16xbf16>
    %cst_59 = arith.constant dense<0.000000e+00> : vector<16x200xf32>
    %181 = tpu.matmul %180, %179, %cst_59 {dimension_numbers = #tpu.dot_dimension_numbers<[1], [0], [0], [1], [0, 0, 1, 1], [], []>} : vector<16x16xbf16>, vector<16x200xbf16>, vector<16x200xf32> -> vector<16x200xf32>
    %182 = arith.addf %157, %181 : vector<16x200xf32>
    %183 = arith.truncf %182 : vector<16x200xf32> to vector<16x200xbf16>
    %c0_60 = arith.constant 0 : index
    %c0_61 = arith.constant 0 : index
    %c0_62 = arith.constant 0 : index
    %184 = vector.load %arg9[%c0_60, %c0_61, %c0_62] : memref<3x200x200xbf16, #tpu.memory_space<vmem>>, vector<1x200x200xbf16>
    %185 = vector.shape_cast %184 : vector<1x200x200xbf16> to vector<200x200xbf16>
    %cst_63 = arith.constant dense<0.000000e+00> : vector<16x200xf32>
    %186 = tpu.matmul %183, %185, %cst_63 {dimension_numbers = #tpu.dot_dimension_numbers<[1], [0], [0], [1], [0, 0, 1, 1], [], []>} : vector<16x200xbf16>, vector<200x200xbf16>, vector<16x200xf32> -> vector<16x200xf32>
    %c0_64 = arith.constant 0 : index
    %c0_65 = arith.constant 0 : index
    %c0_66 = arith.constant 0 : index
    %187 = vector.load %arg10[%c0_64, %c0_65, %c0_66] : memref<3x1x200xf32, #tpu.memory_space<vmem>>, vector<1x1x200xf32>
    %188 = vector.shape_cast %187 : vector<1x1x200xf32> to vector<1x200xf32>
    %189 = vector.broadcast %188 : vector<1x200xf32> to vector<16x200xf32>
    %190 = arith.addf %186, %189 : vector<16x200xf32>
    %191 = arith.addf %1, %190 : vector<16x200xf32>
    %c0_67 = arith.constant 0 : index
    %c0_68 = arith.constant 0 : index
    %c0_69 = arith.constant 0 : index
    %192 = vector.load %arg11[%c0_67, %c0_68, %c0_69] : memref<3x1x200xf32, #tpu.memory_space<vmem>>, vector<1x1x200xf32>
    %193 = vector.shape_cast %192 : vector<1x1x200xf32> to vector<1x200xf32>
    %c0_70 = arith.constant 0 : index
    %c0_71 = arith.constant 0 : index
    %c0_72 = arith.constant 0 : index
    %194 = vector.load %arg12[%c0_70, %c0_71, %c0_72] : memref<3x1x200xf32, #tpu.memory_space<vmem>>, vector<1x1x200xf32>
    %195 = vector.shape_cast %194 : vector<1x1x200xf32> to vector<1x200xf32>
    %cst_73 = arith.constant dense<0.000000e+00> : vector<16xf32>
    %196 = vector.multi_reduction <add>, %191, %cst_73 [1] : vector<16x200xf32> to vector<16xf32>
    %197 = vector.shape_cast %196 : vector<16xf32> to vector<16x1xf32>
    %cst_74 = arith.constant 2.000000e+02 : f32
    %198 = vector.broadcast %cst_74 : f32 to vector<16x1xf32>
    %199 = arith.divf %197, %198 : vector<16x1xf32>
    %200 = vector.broadcast %199 : vector<16x1xf32> to vector<16x200xf32>
    %201 = arith.subf %191, %200 : vector<16x200xf32>
    %202 = arith.mulf %201, %201 : vector<16x200xf32>
    %cst_75 = arith.constant dense<0.000000e+00> : vector<16xf32>
    %203 = vector.multi_reduction <add>, %202, %cst_75 [1] : vector<16x200xf32> to vector<16xf32>
    %204 = vector.shape_cast %203 : vector<16xf32> to vector<16x1xf32>
    %cst_76 = arith.constant 2.000000e+02 : f32
    %205 = vector.broadcast %cst_76 : f32 to vector<16x1xf32>
    %206 = arith.divf %204, %205 : vector<16x1xf32>
    %207 = vector.broadcast %199 : vector<16x1xf32> to vector<16x200xf32>
    %208 = arith.subf %191, %207 : vector<16x200xf32>
    %cst_77 = arith.constant 9.99999974E-6 : f32
    %209 = vector.broadcast %cst_77 : f32 to vector<16x1xf32>
    %210 = arith.addf %206, %209 : vector<16x1xf32>
    %211 = math.rsqrt %210 : vector<16x1xf32>
    %212 = vector.broadcast %211 : vector<16x1xf32> to vector<16x200xf32>
    %213 = arith.mulf %208, %212 : vector<16x200xf32>
    %214 = vector.broadcast %193 : vector<1x200xf32> to vector<16x200xf32>
    %215 = arith.mulf %213, %214 : vector<16x200xf32>
    %216 = vector.broadcast %195 : vector<1x200xf32> to vector<16x200xf32>
    %217 = arith.addf %215, %216 : vector<16x200xf32>
    %218 = arith.truncf %217 : vector<16x200xf32> to vector<16x200xbf16>
    %c0_78 = arith.constant 0 : index
    %c0_79 = arith.constant 0 : index
    %c0_80 = arith.constant 0 : index
    %219 = vector.load %arg13[%c0_78, %c0_79, %c0_80] : memref<3x200x250xbf16, #tpu.memory_space<vmem>>, vector<1x200x250xbf16>
    %220 = vector.shape_cast %219 : vector<1x200x250xbf16> to vector<200x250xbf16>
    %cst_81 = arith.constant dense<0.000000e+00> : vector<16x250xf32>
    %221 = tpu.matmul %218, %220, %cst_81 {dimension_numbers = #tpu.dot_dimension_numbers<[1], [0], [0], [1], [0, 0, 1, 1], [], []>} : vector<16x200xbf16>, vector<200x250xbf16>, vector<16x250xf32> -> vector<16x250xf32>
    %c0_82 = arith.constant 0 : index
    %c0_83 = arith.constant 0 : index
    %c0_84 = arith.constant 0 : index
    %222 = vector.load %arg14[%c0_82, %c0_83, %c0_84] : memref<3x1x250xf32, #tpu.memory_space<vmem>>, vector<1x1x250xf32>
    %223 = vector.shape_cast %222 : vector<1x1x250xf32> to vector<1x250xf32>
    %224 = vector.broadcast %223 : vector<1x250xf32> to vector<16x250xf32>
    %225 = arith.addf %221, %224 : vector<16x250xf32>
    %cst_85 = arith.constant 0.000000e+00 : f32
    %226 = vector.broadcast %cst_85 : f32 to vector<16x250xf32>
    %227 = arith.maximumf %225, %226 : vector<16x250xf32>
    %cst_86 = arith.constant 0.000000e+00 : f32
    %228 = vector.broadcast %cst_86 : f32 to vector<16x250xf32>
    %229 = arith.minimumf %225, %228 : vector<16x250xf32>
    %230 = math.exp %229 : vector<16x250xf32>
    %cst_87 = arith.constant 1.000000e+00 : f32
    %231 = vector.broadcast %cst_87 : f32 to vector<16x250xf32>
    %232 = arith.subf %230, %231 : vector<16x250xf32>
    %cst_88 = arith.constant 1.67326319 : f32
    %233 = vector.broadcast %cst_88 : f32 to vector<16x250xf32>
    %234 = arith.mulf %233, %232 : vector<16x250xf32>
    %235 = arith.addf %227, %234 : vector<16x250xf32>
    %cst_89 = arith.constant 1.05070102 : f32
    %236 = vector.broadcast %cst_89 : f32 to vector<16x250xf32>
    %237 = arith.mulf %236, %235 : vector<16x250xf32>
    %238 = arith.truncf %237 : vector<16x250xf32> to vector<16x250xbf16>
    %c0_90 = arith.constant 0 : index
    %c0_91 = arith.constant 0 : index
    %c0_92 = arith.constant 0 : index
    %239 = vector.load %arg15[%c0_90, %c0_91, %c0_92] : memref<3x250x200xbf16, #tpu.memory_space<vmem>>, vector<1x250x200xbf16>
    %240 = vector.shape_cast %239 : vector<1x250x200xbf16> to vector<250x200xbf16>
    %cst_93 = arith.constant dense<0.000000e+00> : vector<16x200xf32>
    %241 = tpu.matmul %238, %240, %cst_93 {dimension_numbers = #tpu.dot_dimension_numbers<[1], [0], [0], [1], [0, 0, 1, 1], [], []>} : vector<16x250xbf16>, vector<250x200xbf16>, vector<16x200xf32> -> vector<16x200xf32>
    %c0_94 = arith.constant 0 : index
    %c0_95 = arith.constant 0 : index
    %c0_96 = arith.constant 0 : index
    %242 = vector.load %arg16[%c0_94, %c0_95, %c0_96] : memref<3x1x200xf32, #tpu.memory_space<vmem>>, vector<1x1x200xf32>
    %243 = vector.shape_cast %242 : vector<1x1x200xf32> to vector<1x200xf32>
    %244 = vector.broadcast %243 : vector<1x200xf32> to vector<16x200xf32>
    %245 = arith.addf %241, %244 : vector<16x200xf32>
    %246 = arith.addf %217, %245 : vector<16x200xf32>
    %c0_97 = arith.constant 0 : index
    %c0_98 = arith.constant 0 : index
    %c0_99 = arith.constant 0 : index
    %247 = vector.load %arg17[%c0_97, %c0_98, %c0_99] : memref<3x1x200xf32, #tpu.memory_space<vmem>>, vector<1x1x200xf32>
    %248 = vector.shape_cast %247 : vector<1x1x200xf32> to vector<1x200xf32>
    %c0_100 = arith.constant 0 : index
    %c0_101 = arith.constant 0 : index
    %c0_102 = arith.constant 0 : index
    %249 = vector.load %arg18[%c0_100, %c0_101, %c0_102] : memref<3x1x200xf32, #tpu.memory_space<vmem>>, vector<1x1x200xf32>
    %250 = vector.shape_cast %249 : vector<1x1x200xf32> to vector<1x200xf32>
    %cst_103 = arith.constant dense<0.000000e+00> : vector<16xf32>
    %251 = vector.multi_reduction <add>, %246, %cst_103 [1] : vector<16x200xf32> to vector<16xf32>
    %252 = vector.shape_cast %251 : vector<16xf32> to vector<16x1xf32>
    %cst_104 = arith.constant 2.000000e+02 : f32
    %253 = vector.broadcast %cst_104 : f32 to vector<16x1xf32>
    %254 = arith.divf %252, %253 : vector<16x1xf32>
    %255 = vector.broadcast %254 : vector<16x1xf32> to vector<16x200xf32>
    %256 = arith.subf %246, %255 : vector<16x200xf32>
    %257 = arith.mulf %256, %256 : vector<16x200xf32>
    %cst_105 = arith.constant dense<0.000000e+00> : vector<16xf32>
    %258 = vector.multi_reduction <add>, %257, %cst_105 [1] : vector<16x200xf32> to vector<16xf32>
    %259 = vector.shape_cast %258 : vector<16xf32> to vector<16x1xf32>
    %cst_106 = arith.constant 2.000000e+02 : f32
    %260 = vector.broadcast %cst_106 : f32 to vector<16x1xf32>
    %261 = arith.divf %259, %260 : vector<16x1xf32>
    %262 = vector.broadcast %254 : vector<16x1xf32> to vector<16x200xf32>
    %263 = arith.subf %246, %262 : vector<16x200xf32>
    %cst_107 = arith.constant 9.99999974E-6 : f32
    %264 = vector.broadcast %cst_107 : f32 to vector<16x1xf32>
    %265 = arith.addf %261, %264 : vector<16x1xf32>
    %266 = math.rsqrt %265 : vector<16x1xf32>
    %267 = vector.broadcast %266 : vector<16x1xf32> to vector<16x200xf32>
    %268 = arith.mulf %263, %267 : vector<16x200xf32>
    %269 = vector.broadcast %248 : vector<1x200xf32> to vector<16x200xf32>
    %270 = arith.mulf %268, %269 : vector<16x200xf32>
    %271 = vector.broadcast %250 : vector<1x200xf32> to vector<16x200xf32>
    %272 = arith.addf %270, %271 : vector<16x200xf32>
    %273 = arith.truncf %272 : vector<16x200xf32> to vector<16x200xbf16>
    %c1 = arith.constant 1 : index
    %c0_108 = arith.constant 0 : index
    %c0_109 = arith.constant 0 : index
    %274 = vector.load %arg3[%c1, %c0_108, %c0_109] : memref<3x200x200xbf16, #tpu.memory_space<vmem>>, vector<1x200x200xbf16>
    %275 = vector.shape_cast %274 : vector<1x200x200xbf16> to vector<200x200xbf16>
    %cst_110 = arith.constant dense<0.000000e+00> : vector<16x200xf32>
    %276 = tpu.matmul %273, %275, %cst_110 {dimension_numbers = #tpu.dot_dimension_numbers<[1], [0], [0], [1], [0, 0, 1, 1], [], []>} : vector<16x200xbf16>, vector<200x200xbf16>, vector<16x200xf32> -> vector<16x200xf32>
    %c1_111 = arith.constant 1 : index
    %c0_112 = arith.constant 0 : index
    %c0_113 = arith.constant 0 : index
    %277 = vector.load %arg4[%c1_111, %c0_112, %c0_113] : memref<3x1x200xf32, #tpu.memory_space<vmem>>, vector<1x1x200xf32>
    %278 = vector.shape_cast %277 : vector<1x1x200xf32> to vector<1x200xf32>
    %279 = vector.broadcast %278 : vector<1x200xf32> to vector<16x200xf32>
    %280 = arith.addf %276, %279 : vector<16x200xf32>
    %c1_114 = arith.constant 1 : index
    %c0_115 = arith.constant 0 : index
    %c0_116 = arith.constant 0 : index
    %281 = vector.load %arg5[%c1_114, %c0_115, %c0_116] : memref<3x200x200xbf16, #tpu.memory_space<vmem>>, vector<1x200x200xbf16>
    %282 = vector.shape_cast %281 : vector<1x200x200xbf16> to vector<200x200xbf16>
    %cst_117 = arith.constant dense<0.000000e+00> : vector<16x200xf32>
    %283 = tpu.matmul %273, %282, %cst_117 {dimension_numbers = #tpu.dot_dimension_numbers<[1], [0], [0], [1], [0, 0, 1, 1], [], []>} : vector<16x200xbf16>, vector<200x200xbf16>, vector<16x200xf32> -> vector<16x200xf32>
    %c1_118 = arith.constant 1 : index
    %c0_119 = arith.constant 0 : index
    %c0_120 = arith.constant 0 : index
    %284 = vector.load %arg6[%c1_118, %c0_119, %c0_120] : memref<3x1x200xf32, #tpu.memory_space<vmem>>, vector<1x1x200xf32>
    %285 = vector.shape_cast %284 : vector<1x1x200xf32> to vector<1x200xf32>
    %286 = vector.broadcast %285 : vector<1x200xf32> to vector<16x200xf32>
    %287 = arith.addf %283, %286 : vector<16x200xf32>
    %c1_121 = arith.constant 1 : index
    %c0_122 = arith.constant 0 : index
    %c0_123 = arith.constant 0 : index
    %288 = vector.load %arg7[%c1_121, %c0_122, %c0_123] : memref<3x200x200xbf16, #tpu.memory_space<vmem>>, vector<1x200x200xbf16>
    %289 = vector.shape_cast %288 : vector<1x200x200xbf16> to vector<200x200xbf16>
    %cst_124 = arith.constant dense<0.000000e+00> : vector<16x200xf32>
    %290 = tpu.matmul %273, %289, %cst_124 {dimension_numbers = #tpu.dot_dimension_numbers<[1], [0], [0], [1], [0, 0, 1, 1], [], []>} : vector<16x200xbf16>, vector<200x200xbf16>, vector<16x200xf32> -> vector<16x200xf32>
    %c1_125 = arith.constant 1 : index
    %c0_126 = arith.constant 0 : index
    %c0_127 = arith.constant 0 : index
    %291 = vector.load %arg8[%c1_125, %c0_126, %c0_127] : memref<3x1x200xf32, #tpu.memory_space<vmem>>, vector<1x1x200xf32>
    %292 = vector.shape_cast %291 : vector<1x1x200xf32> to vector<1x200xf32>
    %293 = vector.broadcast %292 : vector<1x200xf32> to vector<16x200xf32>
    %294 = arith.addf %290, %293 : vector<16x200xf32>
    %cst_128 = arith.constant 0.158113882 : f32
    %295 = vector.broadcast %cst_128 : f32 to vector<16x200xf32>
    %296 = arith.mulf %280, %295 : vector<16x200xf32>
    %297 = arith.truncf %296 : vector<16x200xf32> to vector<16x200xbf16>
    %298 = tpu.transpose %287, [1, 0] : vector<16x200xf32> -> vector<200x16xf32>
    %299 = arith.truncf %298 : vector<200x16xf32> to vector<200x16xbf16>
    %300 = arith.truncf %294 : vector<16x200xf32> to vector<16x200xbf16>
    %cst_129 = arith.constant 0.000000e+00 : f32
    %301 = vector.broadcast %cst_129 : f32 to vector<16x200xf32>
    %cst_130 = arith.constant 0.000000e+00 : f32
    %302 = arith.truncf %cst_130 : f32 to bf16
    %303 = vector.shape_cast %8 : vector<1x200xi1> to vector<1x200xi1>
    %304 = vector.broadcast %303 : vector<1x200xi1> to vector<16x200xi1>
    %305 = vector.broadcast %302 : bf16 to vector<16x200xbf16>
    %306 = arith.select %304, %297, %305 : vector<16x200xi1>, vector<16x200xbf16>
    %cst_131 = arith.constant dense<0.000000e+00> : vector<16x16xf32>
    %307 = tpu.matmul %306, %299, %cst_131 {dimension_numbers = #tpu.dot_dimension_numbers<[1], [0], [0], [1], [0, 0, 1, 1], [], []>} : vector<16x200xbf16>, vector<200x16xbf16>, vector<16x16xf32> -> vector<16x16xf32>
    %308 = arith.addf %307, %2 : vector<16x16xf32>
    %cst_132 = arith.constant dense<0xFF800000> : vector<16xf32>
    %309 = vector.multi_reduction <maximumf>, %308, %cst_132 [1] : vector<16x16xf32> to vector<16xf32>
    %310 = vector.shape_cast %309 : vector<16xf32> to vector<16x1xf32>
    %311 = vector.broadcast %310 : vector<16x1xf32> to vector<16x16xf32>
    %312 = arith.subf %308, %311 : vector<16x16xf32>
    %313 = math.exp %312 : vector<16x16xf32>
    %cst_133 = arith.constant dense<0.000000e+00> : vector<16xf32>
    %314 = vector.multi_reduction <add>, %313, %cst_133 [1] : vector<16x16xf32> to vector<16xf32>
    %315 = vector.shape_cast %314 : vector<16xf32> to vector<16x1xf32>
    %316 = tpu.reciprocal %315 {approx = true} : vector<16x1xf32> -> vector<16x1xf32>
    %317 = vector.broadcast %316 : vector<16x1xf32> to vector<16x16xf32>
    %318 = arith.mulf %313, %317 : vector<16x16xf32>
    %cst_134 = arith.constant 0.000000e+00 : f32
    %319 = arith.truncf %cst_134 : f32 to bf16
    %320 = vector.shape_cast %8 : vector<1x200xi1> to vector<1x200xi1>
    %321 = vector.broadcast %320 : vector<1x200xi1> to vector<16x200xi1>
    %322 = vector.broadcast %319 : bf16 to vector<16x200xbf16>
    %323 = arith.select %321, %300, %322 : vector<16x200xi1>, vector<16x200xbf16>
    %324 = arith.truncf %318 : vector<16x16xf32> to vector<16x16xbf16>
    %cst_135 = arith.constant dense<0.000000e+00> : vector<16x200xf32>
    %325 = tpu.matmul %324, %323, %cst_135 {dimension_numbers = #tpu.dot_dimension_numbers<[1], [0], [0], [1], [0, 0, 1, 1], [], []>} : vector<16x16xbf16>, vector<16x200xbf16>, vector<16x200xf32> -> vector<16x200xf32>
    %326 = arith.addf %301, %325 : vector<16x200xf32>
    %cst_136 = arith.constant 0.000000e+00 : f32
    %327 = arith.truncf %cst_136 : f32 to bf16
    %328 = vector.shape_cast %13 : vector<1x200xi1> to vector<1x200xi1>
    %329 = vector.broadcast %328 : vector<1x200xi1> to vector<16x200xi1>
    %330 = vector.broadcast %327 : bf16 to vector<16x200xbf16>
    %331 = arith.select %329, %297, %330 : vector<16x200xi1>, vector<16x200xbf16>
    %cst_137 = arith.constant dense<0.000000e+00> : vector<16x16xf32>
    %332 = tpu.matmul %331, %299, %cst_137 {dimension_numbers = #tpu.dot_dimension_numbers<[1], [0], [0], [1], [0, 0, 1, 1], [], []>} : vector<16x200xbf16>, vector<200x16xbf16>, vector<16x16xf32> -> vector<16x16xf32>
    %333 = arith.addf %332, %2 : vector<16x16xf32>
    %cst_138 = arith.constant dense<0xFF800000> : vector<16xf32>
    %334 = vector.multi_reduction <maximumf>, %333, %cst_138 [1] : vector<16x16xf32> to vector<16xf32>
    %335 = vector.shape_cast %334 : vector<16xf32> to vector<16x1xf32>
    %336 = vector.broadcast %335 : vector<16x1xf32> to vector<16x16xf32>
    %337 = arith.subf %333, %336 : vector<16x16xf32>
    %338 = math.exp %337 : vector<16x16xf32>
    %cst_139 = arith.constant dense<0.000000e+00> : vector<16xf32>
    %339 = vector.multi_reduction <add>, %338, %cst_139 [1] : vector<16x16xf32> to vector<16xf32>
    %340 = vector.shape_cast %339 : vector<16xf32> to vector<16x1xf32>
    %341 = tpu.reciprocal %340 {approx = true} : vector<16x1xf32> -> vector<16x1xf32>
    %342 = vector.broadcast %341 : vector<16x1xf32> to vector<16x16xf32>
    %343 = arith.mulf %338, %342 : vector<16x16xf32>
    %cst_140 = arith.constant 0.000000e+00 : f32
    %344 = arith.truncf %cst_140 : f32 to bf16
    %345 = vector.shape_cast %13 : vector<1x200xi1> to vector<1x200xi1>
    %346 = vector.broadcast %345 : vector<1x200xi1> to vector<16x200xi1>
    %347 = vector.broadcast %344 : bf16 to vector<16x200xbf16>
    %348 = arith.select %346, %300, %347 : vector<16x200xi1>, vector<16x200xbf16>
    %349 = arith.truncf %343 : vector<16x16xf32> to vector<16x16xbf16>
    %cst_141 = arith.constant dense<0.000000e+00> : vector<16x200xf32>
    %350 = tpu.matmul %349, %348, %cst_141 {dimension_numbers = #tpu.dot_dimension_numbers<[1], [0], [0], [1], [0, 0, 1, 1], [], []>} : vector<16x16xbf16>, vector<16x200xbf16>, vector<16x200xf32> -> vector<16x200xf32>
    %351 = arith.addf %326, %350 : vector<16x200xf32>
    %cst_142 = arith.constant 0.000000e+00 : f32
    %352 = arith.truncf %cst_142 : f32 to bf16
    %353 = vector.shape_cast %18 : vector<1x200xi1> to vector<1x200xi1>
    %354 = vector.broadcast %353 : vector<1x200xi1> to vector<16x200xi1>
    %355 = vector.broadcast %352 : bf16 to vector<16x200xbf16>
    %356 = arith.select %354, %297, %355 : vector<16x200xi1>, vector<16x200xbf16>
    %cst_143 = arith.constant dense<0.000000e+00> : vector<16x16xf32>
    %357 = tpu.matmul %356, %299, %cst_143 {dimension_numbers = #tpu.dot_dimension_numbers<[1], [0], [0], [1], [0, 0, 1, 1], [], []>} : vector<16x200xbf16>, vector<200x16xbf16>, vector<16x16xf32> -> vector<16x16xf32>
    %358 = arith.addf %357, %2 : vector<16x16xf32>
    %cst_144 = arith.constant dense<0xFF800000> : vector<16xf32>
    %359 = vector.multi_reduction <maximumf>, %358, %cst_144 [1] : vector<16x16xf32> to vector<16xf32>
    %360 = vector.shape_cast %359 : vector<16xf32> to vector<16x1xf32>
    %361 = vector.broadcast %360 : vector<16x1xf32> to vector<16x16xf32>
    %362 = arith.subf %358, %361 : vector<16x16xf32>
    %363 = math.exp %362 : vector<16x16xf32>
    %cst_145 = arith.constant dense<0.000000e+00> : vector<16xf32>
    %364 = vector.multi_reduction <add>, %363, %cst_145 [1] : vector<16x16xf32> to vector<16xf32>
    %365 = vector.shape_cast %364 : vector<16xf32> to vector<16x1xf32>
    %366 = tpu.reciprocal %365 {approx = true} : vector<16x1xf32> -> vector<16x1xf32>
    %367 = vector.broadcast %366 : vector<16x1xf32> to vector<16x16xf32>
    %368 = arith.mulf %363, %367 : vector<16x16xf32>
    %cst_146 = arith.constant 0.000000e+00 : f32
    %369 = arith.truncf %cst_146 : f32 to bf16
    %370 = vector.shape_cast %18 : vector<1x200xi1> to vector<1x200xi1>
    %371 = vector.broadcast %370 : vector<1x200xi1> to vector<16x200xi1>
    %372 = vector.broadcast %369 : bf16 to vector<16x200xbf16>
    %373 = arith.select %371, %300, %372 : vector<16x200xi1>, vector<16x200xbf16>
    %374 = arith.truncf %368 : vector<16x16xf32> to vector<16x16xbf16>
    %cst_147 = arith.constant dense<0.000000e+00> : vector<16x200xf32>
    %375 = tpu.matmul %374, %373, %cst_147 {dimension_numbers = #tpu.dot_dimension_numbers<[1], [0], [0], [1], [0, 0, 1, 1], [], []>} : vector<16x16xbf16>, vector<16x200xbf16>, vector<16x200xf32> -> vector<16x200xf32>
    %376 = arith.addf %351, %375 : vector<16x200xf32>
    %cst_148 = arith.constant 0.000000e+00 : f32
    %377 = arith.truncf %cst_148 : f32 to bf16
    %378 = vector.shape_cast %23 : vector<1x200xi1> to vector<1x200xi1>
    %379 = vector.broadcast %378 : vector<1x200xi1> to vector<16x200xi1>
    %380 = vector.broadcast %377 : bf16 to vector<16x200xbf16>
    %381 = arith.select %379, %297, %380 : vector<16x200xi1>, vector<16x200xbf16>
    %cst_149 = arith.constant dense<0.000000e+00> : vector<16x16xf32>
    %382 = tpu.matmul %381, %299, %cst_149 {dimension_numbers = #tpu.dot_dimension_numbers<[1], [0], [0], [1], [0, 0, 1, 1], [], []>} : vector<16x200xbf16>, vector<200x16xbf16>, vector<16x16xf32> -> vector<16x16xf32>
    %383 = arith.addf %382, %2 : vector<16x16xf32>
    %cst_150 = arith.constant dense<0xFF800000> : vector<16xf32>
    %384 = vector.multi_reduction <maximumf>, %383, %cst_150 [1] : vector<16x16xf32> to vector<16xf32>
    %385 = vector.shape_cast %384 : vector<16xf32> to vector<16x1xf32>
    %386 = vector.broadcast %385 : vector<16x1xf32> to vector<16x16xf32>
    %387 = arith.subf %383, %386 : vector<16x16xf32>
    %388 = math.exp %387 : vector<16x16xf32>
    %cst_151 = arith.constant dense<0.000000e+00> : vector<16xf32>
    %389 = vector.multi_reduction <add>, %388, %cst_151 [1] : vector<16x16xf32> to vector<16xf32>
    %390 = vector.shape_cast %389 : vector<16xf32> to vector<16x1xf32>
    %391 = tpu.reciprocal %390 {approx = true} : vector<16x1xf32> -> vector<16x1xf32>
    %392 = vector.broadcast %391 : vector<16x1xf32> to vector<16x16xf32>
    %393 = arith.mulf %388, %392 : vector<16x16xf32>
    %cst_152 = arith.constant 0.000000e+00 : f32
    %394 = arith.truncf %cst_152 : f32 to bf16
    %395 = vector.shape_cast %23 : vector<1x200xi1> to vector<1x200xi1>
    %396 = vector.broadcast %395 : vector<1x200xi1> to vector<16x200xi1>
    %397 = vector.broadcast %394 : bf16 to vector<16x200xbf16>
    %398 = arith.select %396, %300, %397 : vector<16x200xi1>, vector<16x200xbf16>
    %399 = arith.truncf %393 : vector<16x16xf32> to vector<16x16xbf16>
    %cst_153 = arith.constant dense<0.000000e+00> : vector<16x200xf32>
    %400 = tpu.matmul %399, %398, %cst_153 {dimension_numbers = #tpu.dot_dimension_numbers<[1], [0], [0], [1], [0, 0, 1, 1], [], []>} : vector<16x16xbf16>, vector<16x200xbf16>, vector<16x200xf32> -> vector<16x200xf32>
    %401 = arith.addf %376, %400 : vector<16x200xf32>
    %cst_154 = arith.constant 0.000000e+00 : f32
    %402 = arith.truncf %cst_154 : f32 to bf16
    %403 = vector.shape_cast %28 : vector<1x200xi1> to vector<1x200xi1>
    %404 = vector.broadcast %403 : vector<1x200xi1> to vector<16x200xi1>
    %405 = vector.broadcast %402 : bf16 to vector<16x200xbf16>
    %406 = arith.select %404, %297, %405 : vector<16x200xi1>, vector<16x200xbf16>
    %cst_155 = arith.constant dense<0.000000e+00> : vector<16x16xf32>
    %407 = tpu.matmul %406, %299, %cst_155 {dimension_numbers = #tpu.dot_dimension_numbers<[1], [0], [0], [1], [0, 0, 1, 1], [], []>} : vector<16x200xbf16>, vector<200x16xbf16>, vector<16x16xf32> -> vector<16x16xf32>
    %408 = arith.addf %407, %2 : vector<16x16xf32>
    %cst_156 = arith.constant dense<0xFF800000> : vector<16xf32>
    %409 = vector.multi_reduction <maximumf>, %408, %cst_156 [1] : vector<16x16xf32> to vector<16xf32>
    %410 = vector.shape_cast %409 : vector<16xf32> to vector<16x1xf32>
    %411 = vector.broadcast %410 : vector<16x1xf32> to vector<16x16xf32>
    %412 = arith.subf %408, %411 : vector<16x16xf32>
    %413 = math.exp %412 : vector<16x16xf32>
    %cst_157 = arith.constant dense<0.000000e+00> : vector<16xf32>
    %414 = vector.multi_reduction <add>, %413, %cst_157 [1] : vector<16x16xf32> to vector<16xf32>
    %415 = vector.shape_cast %414 : vector<16xf32> to vector<16x1xf32>
    %416 = tpu.reciprocal %415 {approx = true} : vector<16x1xf32> -> vector<16x1xf32>
    %417 = vector.broadcast %416 : vector<16x1xf32> to vector<16x16xf32>
    %418 = arith.mulf %413, %417 : vector<16x16xf32>
    %cst_158 = arith.constant 0.000000e+00 : f32
    %419 = arith.truncf %cst_158 : f32 to bf16
    %420 = vector.shape_cast %28 : vector<1x200xi1> to vector<1x200xi1>
    %421 = vector.broadcast %420 : vector<1x200xi1> to vector<16x200xi1>
    %422 = vector.broadcast %419 : bf16 to vector<16x200xbf16>
    %423 = arith.select %421, %300, %422 : vector<16x200xi1>, vector<16x200xbf16>
    %424 = arith.truncf %418 : vector<16x16xf32> to vector<16x16xbf16>
    %cst_159 = arith.constant dense<0.000000e+00> : vector<16x200xf32>
    %425 = tpu.matmul %424, %423, %cst_159 {dimension_numbers = #tpu.dot_dimension_numbers<[1], [0], [0], [1], [0, 0, 1, 1], [], []>} : vector<16x16xbf16>, vector<16x200xbf16>, vector<16x200xf32> -> vector<16x200xf32>
    %426 = arith.addf %401, %425 : vector<16x200xf32>
    %427 = arith.truncf %426 : vector<16x200xf32> to vector<16x200xbf16>
    %c1_160 = arith.constant 1 : index
    %c0_161 = arith.constant 0 : index
    %c0_162 = arith.constant 0 : index
    %428 = vector.load %arg9[%c1_160, %c0_161, %c0_162] : memref<3x200x200xbf16, #tpu.memory_space<vmem>>, vector<1x200x200xbf16>
    %429 = vector.shape_cast %428 : vector<1x200x200xbf16> to vector<200x200xbf16>
    %cst_163 = arith.constant dense<0.000000e+00> : vector<16x200xf32>
    %430 = tpu.matmul %427, %429, %cst_163 {dimension_numbers = #tpu.dot_dimension_numbers<[1], [0], [0], [1], [0, 0, 1, 1], [], []>} : vector<16x200xbf16>, vector<200x200xbf16>, vector<16x200xf32> -> vector<16x200xf32>
    %c1_164 = arith.constant 1 : index
    %c0_165 = arith.constant 0 : index
    %c0_166 = arith.constant 0 : index
    %431 = vector.load %arg10[%c1_164, %c0_165, %c0_166] : memref<3x1x200xf32, #tpu.memory_space<vmem>>, vector<1x1x200xf32>
    %432 = vector.shape_cast %431 : vector<1x1x200xf32> to vector<1x200xf32>
    %433 = vector.broadcast %432 : vector<1x200xf32> to vector<16x200xf32>
    %434 = arith.addf %430, %433 : vector<16x200xf32>
    %435 = arith.addf %272, %434 : vector<16x200xf32>
    %c1_167 = arith.constant 1 : index
    %c0_168 = arith.constant 0 : index
    %c0_169 = arith.constant 0 : index
    %436 = vector.load %arg11[%c1_167, %c0_168, %c0_169] : memref<3x1x200xf32, #tpu.memory_space<vmem>>, vector<1x1x200xf32>
    %437 = vector.shape_cast %436 : vector<1x1x200xf32> to vector<1x200xf32>
    %c1_170 = arith.constant 1 : index
    %c0_171 = arith.constant 0 : index
    %c0_172 = arith.constant 0 : index
    %438 = vector.load %arg12[%c1_170, %c0_171, %c0_172] : memref<3x1x200xf32, #tpu.memory_space<vmem>>, vector<1x1x200xf32>
    %439 = vector.shape_cast %438 : vector<1x1x200xf32> to vector<1x200xf32>
    %cst_173 = arith.constant dense<0.000000e+00> : vector<16xf32>
    %440 = vector.multi_reduction <add>, %435, %cst_173 [1] : vector<16x200xf32> to vector<16xf32>
    %441 = vector.shape_cast %440 : vector<16xf32> to vector<16x1xf32>
    %cst_174 = arith.constant 2.000000e+02 : f32
    %442 = vector.broadcast %cst_174 : f32 to vector<16x1xf32>
    %443 = arith.divf %441, %442 : vector<16x1xf32>
    %444 = vector.broadcast %443 : vector<16x1xf32> to vector<16x200xf32>
    %445 = arith.subf %435, %444 : vector<16x200xf32>
    %446 = arith.mulf %445, %445 : vector<16x200xf32>
    %cst_175 = arith.constant dense<0.000000e+00> : vector<16xf32>
    %447 = vector.multi_reduction <add>, %446, %cst_175 [1] : vector<16x200xf32> to vector<16xf32>
    %448 = vector.shape_cast %447 : vector<16xf32> to vector<16x1xf32>
    %cst_176 = arith.constant 2.000000e+02 : f32
    %449 = vector.broadcast %cst_176 : f32 to vector<16x1xf32>
    %450 = arith.divf %448, %449 : vector<16x1xf32>
    %451 = vector.broadcast %443 : vector<16x1xf32> to vector<16x200xf32>
    %452 = arith.subf %435, %451 : vector<16x200xf32>
    %cst_177 = arith.constant 9.99999974E-6 : f32
    %453 = vector.broadcast %cst_177 : f32 to vector<16x1xf32>
    %454 = arith.addf %450, %453 : vector<16x1xf32>
    %455 = math.rsqrt %454 : vector<16x1xf32>
    %456 = vector.broadcast %455 : vector<16x1xf32> to vector<16x200xf32>
    %457 = arith.mulf %452, %456 : vector<16x200xf32>
    %458 = vector.broadcast %437 : vector<1x200xf32> to vector<16x200xf32>
    %459 = arith.mulf %457, %458 : vector<16x200xf32>
    %460 = vector.broadcast %439 : vector<1x200xf32> to vector<16x200xf32>
    %461 = arith.addf %459, %460 : vector<16x200xf32>
    %462 = arith.truncf %461 : vector<16x200xf32> to vector<16x200xbf16>
    %c1_178 = arith.constant 1 : index
    %c0_179 = arith.constant 0 : index
    %c0_180 = arith.constant 0 : index
    %463 = vector.load %arg13[%c1_178, %c0_179, %c0_180] : memref<3x200x250xbf16, #tpu.memory_space<vmem>>, vector<1x200x250xbf16>
    %464 = vector.shape_cast %463 : vector<1x200x250xbf16> to vector<200x250xbf16>
    %cst_181 = arith.constant dense<0.000000e+00> : vector<16x250xf32>
    %465 = tpu.matmul %462, %464, %cst_181 {dimension_numbers = #tpu.dot_dimension_numbers<[1], [0], [0], [1], [0, 0, 1, 1], [], []>} : vector<16x200xbf16>, vector<200x250xbf16>, vector<16x250xf32> -> vector<16x250xf32>
    %c1_182 = arith.constant 1 : index
    %c0_183 = arith.constant 0 : index
    %c0_184 = arith.constant 0 : index
    %466 = vector.load %arg14[%c1_182, %c0_183, %c0_184] : memref<3x1x250xf32, #tpu.memory_space<vmem>>, vector<1x1x250xf32>
    %467 = vector.shape_cast %466 : vector<1x1x250xf32> to vector<1x250xf32>
    %468 = vector.broadcast %467 : vector<1x250xf32> to vector<16x250xf32>
    %469 = arith.addf %465, %468 : vector<16x250xf32>
    %cst_185 = arith.constant 0.000000e+00 : f32
    %470 = vector.broadcast %cst_185 : f32 to vector<16x250xf32>
    %471 = arith.maximumf %469, %470 : vector<16x250xf32>
    %cst_186 = arith.constant 0.000000e+00 : f32
    %472 = vector.broadcast %cst_186 : f32 to vector<16x250xf32>
    %473 = arith.minimumf %469, %472 : vector<16x250xf32>
    %474 = math.exp %473 : vector<16x250xf32>
    %cst_187 = arith.constant 1.000000e+00 : f32
    %475 = vector.broadcast %cst_187 : f32 to vector<16x250xf32>
    %476 = arith.subf %474, %475 : vector<16x250xf32>
    %cst_188 = arith.constant 1.67326319 : f32
    %477 = vector.broadcast %cst_188 : f32 to vector<16x250xf32>
    %478 = arith.mulf %477, %476 : vector<16x250xf32>
    %479 = arith.addf %471, %478 : vector<16x250xf32>
    %cst_189 = arith.constant 1.05070102 : f32
    %480 = vector.broadcast %cst_189 : f32 to vector<16x250xf32>
    %481 = arith.mulf %480, %479 : vector<16x250xf32>
    %482 = arith.truncf %481 : vector<16x250xf32> to vector<16x250xbf16>
    %c1_190 = arith.constant 1 : index
    %c0_191 = arith.constant 0 : index
    %c0_192 = arith.constant 0 : index
    %483 = vector.load %arg15[%c1_190, %c0_191, %c0_192] : memref<3x250x200xbf16, #tpu.memory_space<vmem>>, vector<1x250x200xbf16>
    %484 = vector.shape_cast %483 : vector<1x250x200xbf16> to vector<250x200xbf16>
    %cst_193 = arith.constant dense<0.000000e+00> : vector<16x200xf32>
    %485 = tpu.matmul %482, %484, %cst_193 {dimension_numbers = #tpu.dot_dimension_numbers<[1], [0], [0], [1], [0, 0, 1, 1], [], []>} : vector<16x250xbf16>, vector<250x200xbf16>, vector<16x200xf32> -> vector<16x200xf32>
    %c1_194 = arith.constant 1 : index
    %c0_195 = arith.constant 0 : index
    %c0_196 = arith.constant 0 : index
    %486 = vector.load %arg16[%c1_194, %c0_195, %c0_196] : memref<3x1x200xf32, #tpu.memory_space<vmem>>, vector<1x1x200xf32>
    %487 = vector.shape_cast %486 : vector<1x1x200xf32> to vector<1x200xf32>
    %488 = vector.broadcast %487 : vector<1x200xf32> to vector<16x200xf32>
    %489 = arith.addf %485, %488 : vector<16x200xf32>
    %490 = arith.addf %461, %489 : vector<16x200xf32>
    %c1_197 = arith.constant 1 : index
    %c0_198 = arith.constant 0 : index
    %c0_199 = arith.constant 0 : index
    %491 = vector.load %arg17[%c1_197, %c0_198, %c0_199] : memref<3x1x200xf32, #tpu.memory_space<vmem>>, vector<1x1x200xf32>
    %492 = vector.shape_cast %491 : vector<1x1x200xf32> to vector<1x200xf32>
    %c1_200 = arith.constant 1 : index
    %c0_201 = arith.constant 0 : index
    %c0_202 = arith.constant 0 : index
    %493 = vector.load %arg18[%c1_200, %c0_201, %c0_202] : memref<3x1x200xf32, #tpu.memory_space<vmem>>, vector<1x1x200xf32>
    %494 = vector.shape_cast %493 : vector<1x1x200xf32> to vector<1x200xf32>
    %cst_203 = arith.constant dense<0.000000e+00> : vector<16xf32>
    %495 = vector.multi_reduction <add>, %490, %cst_203 [1] : vector<16x200xf32> to vector<16xf32>
    %496 = vector.shape_cast %495 : vector<16xf32> to vector<16x1xf32>
    %cst_204 = arith.constant 2.000000e+02 : f32
    %497 = vector.broadcast %cst_204 : f32 to vector<16x1xf32>
    %498 = arith.divf %496, %497 : vector<16x1xf32>
    %499 = vector.broadcast %498 : vector<16x1xf32> to vector<16x200xf32>
    %500 = arith.subf %490, %499 : vector<16x200xf32>
    %501 = arith.mulf %500, %500 : vector<16x200xf32>
    %cst_205 = arith.constant dense<0.000000e+00> : vector<16xf32>
    %502 = vector.multi_reduction <add>, %501, %cst_205 [1] : vector<16x200xf32> to vector<16xf32>
    %503 = vector.shape_cast %502 : vector<16xf32> to vector<16x1xf32>
    %cst_206 = arith.constant 2.000000e+02 : f32
    %504 = vector.broadcast %cst_206 : f32 to vector<16x1xf32>
    %505 = arith.divf %503, %504 : vector<16x1xf32>
    %506 = vector.broadcast %498 : vector<16x1xf32> to vector<16x200xf32>
    %507 = arith.subf %490, %506 : vector<16x200xf32>
    %cst_207 = arith.constant 9.99999974E-6 : f32
    %508 = vector.broadcast %cst_207 : f32 to vector<16x1xf32>
    %509 = arith.addf %505, %508 : vector<16x1xf32>
    %510 = math.rsqrt %509 : vector<16x1xf32>
    %511 = vector.broadcast %510 : vector<16x1xf32> to vector<16x200xf32>
    %512 = arith.mulf %507, %511 : vector<16x200xf32>
    %513 = vector.broadcast %492 : vector<1x200xf32> to vector<16x200xf32>
    %514 = arith.mulf %512, %513 : vector<16x200xf32>
    %515 = vector.broadcast %494 : vector<1x200xf32> to vector<16x200xf32>
    %516 = arith.addf %514, %515 : vector<16x200xf32>
    %517 = arith.truncf %516 : vector<16x200xf32> to vector<16x200xbf16>
    %c2 = arith.constant 2 : index
    %c0_208 = arith.constant 0 : index
    %c0_209 = arith.constant 0 : index
    %518 = vector.load %arg3[%c2, %c0_208, %c0_209] : memref<3x200x200xbf16, #tpu.memory_space<vmem>>, vector<1x200x200xbf16>
    %519 = vector.shape_cast %518 : vector<1x200x200xbf16> to vector<200x200xbf16>
    %cst_210 = arith.constant dense<0.000000e+00> : vector<16x200xf32>
    %520 = tpu.matmul %517, %519, %cst_210 {dimension_numbers = #tpu.dot_dimension_numbers<[1], [0], [0], [1], [0, 0, 1, 1], [], []>} : vector<16x200xbf16>, vector<200x200xbf16>, vector<16x200xf32> -> vector<16x200xf32>
    %c2_211 = arith.constant 2 : index
    %c0_212 = arith.constant 0 : index
    %c0_213 = arith.constant 0 : index
    %521 = vector.load %arg4[%c2_211, %c0_212, %c0_213] : memref<3x1x200xf32, #tpu.memory_space<vmem>>, vector<1x1x200xf32>
    %522 = vector.shape_cast %521 : vector<1x1x200xf32> to vector<1x200xf32>
    %523 = vector.broadcast %522 : vector<1x200xf32> to vector<16x200xf32>
    %524 = arith.addf %520, %523 : vector<16x200xf32>
    %c2_214 = arith.constant 2 : index
    %c0_215 = arith.constant 0 : index
    %c0_216 = arith.constant 0 : index
    %525 = vector.load %arg5[%c2_214, %c0_215, %c0_216] : memref<3x200x200xbf16, #tpu.memory_space<vmem>>, vector<1x200x200xbf16>
    %526 = vector.shape_cast %525 : vector<1x200x200xbf16> to vector<200x200xbf16>
    %cst_217 = arith.constant dense<0.000000e+00> : vector<16x200xf32>
    %527 = tpu.matmul %517, %526, %cst_217 {dimension_numbers = #tpu.dot_dimension_numbers<[1], [0], [0], [1], [0, 0, 1, 1], [], []>} : vector<16x200xbf16>, vector<200x200xbf16>, vector<16x200xf32> -> vector<16x200xf32>
    %c2_218 = arith.constant 2 : index
    %c0_219 = arith.constant 0 : index
    %c0_220 = arith.constant 0 : index
    %528 = vector.load %arg6[%c2_218, %c0_219, %c0_220] : memref<3x1x200xf32, #tpu.memory_space<vmem>>, vector<1x1x200xf32>
    %529 = vector.shape_cast %528 : vector<1x1x200xf32> to vector<1x200xf32>
    %530 = vector.broadcast %529 : vector<1x200xf32> to vector<16x200xf32>
    %531 = arith.addf %527, %530 : vector<16x200xf32>
    %c2_221 = arith.constant 2 : index
    %c0_222 = arith.constant 0 : index
    %c0_223 = arith.constant 0 : index
    %532 = vector.load %arg7[%c2_221, %c0_222, %c0_223] : memref<3x200x200xbf16, #tpu.memory_space<vmem>>, vector<1x200x200xbf16>
    %533 = vector.shape_cast %532 : vector<1x200x200xbf16> to vector<200x200xbf16>
    %cst_224 = arith.constant dense<0.000000e+00> : vector<16x200xf32>
    %534 = tpu.matmul %517, %533, %cst_224 {dimension_numbers = #tpu.dot_dimension_numbers<[1], [0], [0], [1], [0, 0, 1, 1], [], []>} : vector<16x200xbf16>, vector<200x200xbf16>, vector<16x200xf32> -> vector<16x200xf32>
    %c2_225 = arith.constant 2 : index
    %c0_226 = arith.constant 0 : index
    %c0_227 = arith.constant 0 : index
    %535 = vector.load %arg8[%c2_225, %c0_226, %c0_227] : memref<3x1x200xf32, #tpu.memory_space<vmem>>, vector<1x1x200xf32>
    %536 = vector.shape_cast %535 : vector<1x1x200xf32> to vector<1x200xf32>
    %537 = vector.broadcast %536 : vector<1x200xf32> to vector<16x200xf32>
    %538 = arith.addf %534, %537 : vector<16x200xf32>
    %cst_228 = arith.constant 0.158113882 : f32
    %539 = vector.broadcast %cst_228 : f32 to vector<16x200xf32>
    %540 = arith.mulf %524, %539 : vector<16x200xf32>
    %541 = arith.truncf %540 : vector<16x200xf32> to vector<16x200xbf16>
    %542 = tpu.transpose %531, [1, 0] : vector<16x200xf32> -> vector<200x16xf32>
    %543 = arith.truncf %542 : vector<200x16xf32> to vector<200x16xbf16>
    %544 = arith.truncf %538 : vector<16x200xf32> to vector<16x200xbf16>
    %cst_229 = arith.constant 0.000000e+00 : f32
    %545 = vector.broadcast %cst_229 : f32 to vector<16x200xf32>
    %cst_230 = arith.constant 0.000000e+00 : f32
    %546 = arith.truncf %cst_230 : f32 to bf16
    %547 = vector.shape_cast %8 : vector<1x200xi1> to vector<1x200xi1>
    %548 = vector.broadcast %547 : vector<1x200xi1> to vector<16x200xi1>
    %549 = vector.broadcast %546 : bf16 to vector<16x200xbf16>
    %550 = arith.select %548, %541, %549 : vector<16x200xi1>, vector<16x200xbf16>
    %cst_231 = arith.constant dense<0.000000e+00> : vector<16x16xf32>
    %551 = tpu.matmul %550, %543, %cst_231 {dimension_numbers = #tpu.dot_dimension_numbers<[1], [0], [0], [1], [0, 0, 1, 1], [], []>} : vector<16x200xbf16>, vector<200x16xbf16>, vector<16x16xf32> -> vector<16x16xf32>
    %552 = arith.addf %551, %2 : vector<16x16xf32>
    %cst_232 = arith.constant dense<0xFF800000> : vector<16xf32>
    %553 = vector.multi_reduction <maximumf>, %552, %cst_232 [1] : vector<16x16xf32> to vector<16xf32>
    %554 = vector.shape_cast %553 : vector<16xf32> to vector<16x1xf32>
    %555 = vector.broadcast %554 : vector<16x1xf32> to vector<16x16xf32>
    %556 = arith.subf %552, %555 : vector<16x16xf32>
    %557 = math.exp %556 : vector<16x16xf32>
    %cst_233 = arith.constant dense<0.000000e+00> : vector<16xf32>
    %558 = vector.multi_reduction <add>, %557, %cst_233 [1] : vector<16x16xf32> to vector<16xf32>
    %559 = vector.shape_cast %558 : vector<16xf32> to vector<16x1xf32>
    %560 = tpu.reciprocal %559 {approx = true} : vector<16x1xf32> -> vector<16x1xf32>
    %561 = vector.broadcast %560 : vector<16x1xf32> to vector<16x16xf32>
    %562 = arith.mulf %557, %561 : vector<16x16xf32>
    %cst_234 = arith.constant 0.000000e+00 : f32
    %563 = arith.truncf %cst_234 : f32 to bf16
    %564 = vector.shape_cast %8 : vector<1x200xi1> to vector<1x200xi1>
    %565 = vector.broadcast %564 : vector<1x200xi1> to vector<16x200xi1>
    %566 = vector.broadcast %563 : bf16 to vector<16x200xbf16>
    %567 = arith.select %565, %544, %566 : vector<16x200xi1>, vector<16x200xbf16>
    %568 = arith.truncf %562 : vector<16x16xf32> to vector<16x16xbf16>
    %cst_235 = arith.constant dense<0.000000e+00> : vector<16x200xf32>
    %569 = tpu.matmul %568, %567, %cst_235 {dimension_numbers = #tpu.dot_dimension_numbers<[1], [0], [0], [1], [0, 0, 1, 1], [], []>} : vector<16x16xbf16>, vector<16x200xbf16>, vector<16x200xf32> -> vector<16x200xf32>
    %570 = arith.addf %545, %569 : vector<16x200xf32>
    %cst_236 = arith.constant 0.000000e+00 : f32
    %571 = arith.truncf %cst_236 : f32 to bf16
    %572 = vector.shape_cast %13 : vector<1x200xi1> to vector<1x200xi1>
    %573 = vector.broadcast %572 : vector<1x200xi1> to vector<16x200xi1>
    %574 = vector.broadcast %571 : bf16 to vector<16x200xbf16>
    %575 = arith.select %573, %541, %574 : vector<16x200xi1>, vector<16x200xbf16>
    %cst_237 = arith.constant dense<0.000000e+00> : vector<16x16xf32>
    %576 = tpu.matmul %575, %543, %cst_237 {dimension_numbers = #tpu.dot_dimension_numbers<[1], [0], [0], [1], [0, 0, 1, 1], [], []>} : vector<16x200xbf16>, vector<200x16xbf16>, vector<16x16xf32> -> vector<16x16xf32>
    %577 = arith.addf %576, %2 : vector<16x16xf32>
    %cst_238 = arith.constant dense<0xFF800000> : vector<16xf32>
    %578 = vector.multi_reduction <maximumf>, %577, %cst_238 [1] : vector<16x16xf32> to vector<16xf32>
    %579 = vector.shape_cast %578 : vector<16xf32> to vector<16x1xf32>
    %580 = vector.broadcast %579 : vector<16x1xf32> to vector<16x16xf32>
    %581 = arith.subf %577, %580 : vector<16x16xf32>
    %582 = math.exp %581 : vector<16x16xf32>
    %cst_239 = arith.constant dense<0.000000e+00> : vector<16xf32>
    %583 = vector.multi_reduction <add>, %582, %cst_239 [1] : vector<16x16xf32> to vector<16xf32>
    %584 = vector.shape_cast %583 : vector<16xf32> to vector<16x1xf32>
    %585 = tpu.reciprocal %584 {approx = true} : vector<16x1xf32> -> vector<16x1xf32>
    %586 = vector.broadcast %585 : vector<16x1xf32> to vector<16x16xf32>
    %587 = arith.mulf %582, %586 : vector<16x16xf32>
    %cst_240 = arith.constant 0.000000e+00 : f32
    %588 = arith.truncf %cst_240 : f32 to bf16
    %589 = vector.shape_cast %13 : vector<1x200xi1> to vector<1x200xi1>
    %590 = vector.broadcast %589 : vector<1x200xi1> to vector<16x200xi1>
    %591 = vector.broadcast %588 : bf16 to vector<16x200xbf16>
    %592 = arith.select %590, %544, %591 : vector<16x200xi1>, vector<16x200xbf16>
    %593 = arith.truncf %587 : vector<16x16xf32> to vector<16x16xbf16>
    %cst_241 = arith.constant dense<0.000000e+00> : vector<16x200xf32>
    %594 = tpu.matmul %593, %592, %cst_241 {dimension_numbers = #tpu.dot_dimension_numbers<[1], [0], [0], [1], [0, 0, 1, 1], [], []>} : vector<16x16xbf16>, vector<16x200xbf16>, vector<16x200xf32> -> vector<16x200xf32>
    %595 = arith.addf %570, %594 : vector<16x200xf32>
    %cst_242 = arith.constant 0.000000e+00 : f32
    %596 = arith.truncf %cst_242 : f32 to bf16
    %597 = vector.shape_cast %18 : vector<1x200xi1> to vector<1x200xi1>
    %598 = vector.broadcast %597 : vector<1x200xi1> to vector<16x200xi1>
    %599 = vector.broadcast %596 : bf16 to vector<16x200xbf16>
    %600 = arith.select %598, %541, %599 : vector<16x200xi1>, vector<16x200xbf16>
    %cst_243 = arith.constant dense<0.000000e+00> : vector<16x16xf32>
    %601 = tpu.matmul %600, %543, %cst_243 {dimension_numbers = #tpu.dot_dimension_numbers<[1], [0], [0], [1], [0, 0, 1, 1], [], []>} : vector<16x200xbf16>, vector<200x16xbf16>, vector<16x16xf32> -> vector<16x16xf32>
    %602 = arith.addf %601, %2 : vector<16x16xf32>
    %cst_244 = arith.constant dense<0xFF800000> : vector<16xf32>
    %603 = vector.multi_reduction <maximumf>, %602, %cst_244 [1] : vector<16x16xf32> to vector<16xf32>
    %604 = vector.shape_cast %603 : vector<16xf32> to vector<16x1xf32>
    %605 = vector.broadcast %604 : vector<16x1xf32> to vector<16x16xf32>
    %606 = arith.subf %602, %605 : vector<16x16xf32>
    %607 = math.exp %606 : vector<16x16xf32>
    %cst_245 = arith.constant dense<0.000000e+00> : vector<16xf32>
    %608 = vector.multi_reduction <add>, %607, %cst_245 [1] : vector<16x16xf32> to vector<16xf32>
    %609 = vector.shape_cast %608 : vector<16xf32> to vector<16x1xf32>
    %610 = tpu.reciprocal %609 {approx = true} : vector<16x1xf32> -> vector<16x1xf32>
    %611 = vector.broadcast %610 : vector<16x1xf32> to vector<16x16xf32>
    %612 = arith.mulf %607, %611 : vector<16x16xf32>
    %cst_246 = arith.constant 0.000000e+00 : f32
    %613 = arith.truncf %cst_246 : f32 to bf16
    %614 = vector.shape_cast %18 : vector<1x200xi1> to vector<1x200xi1>
    %615 = vector.broadcast %614 : vector<1x200xi1> to vector<16x200xi1>
    %616 = vector.broadcast %613 : bf16 to vector<16x200xbf16>
    %617 = arith.select %615, %544, %616 : vector<16x200xi1>, vector<16x200xbf16>
    %618 = arith.truncf %612 : vector<16x16xf32> to vector<16x16xbf16>
    %cst_247 = arith.constant dense<0.000000e+00> : vector<16x200xf32>
    %619 = tpu.matmul %618, %617, %cst_247 {dimension_numbers = #tpu.dot_dimension_numbers<[1], [0], [0], [1], [0, 0, 1, 1], [], []>} : vector<16x16xbf16>, vector<16x200xbf16>, vector<16x200xf32> -> vector<16x200xf32>
    %620 = arith.addf %595, %619 : vector<16x200xf32>
    %cst_248 = arith.constant 0.000000e+00 : f32
    %621 = arith.truncf %cst_248 : f32 to bf16
    %622 = vector.shape_cast %23 : vector<1x200xi1> to vector<1x200xi1>
    %623 = vector.broadcast %622 : vector<1x200xi1> to vector<16x200xi1>
    %624 = vector.broadcast %621 : bf16 to vector<16x200xbf16>
    %625 = arith.select %623, %541, %624 : vector<16x200xi1>, vector<16x200xbf16>
    %cst_249 = arith.constant dense<0.000000e+00> : vector<16x16xf32>
    %626 = tpu.matmul %625, %543, %cst_249 {dimension_numbers = #tpu.dot_dimension_numbers<[1], [0], [0], [1], [0, 0, 1, 1], [], []>} : vector<16x200xbf16>, vector<200x16xbf16>, vector<16x16xf32> -> vector<16x16xf32>
    %627 = arith.addf %626, %2 : vector<16x16xf32>
    %cst_250 = arith.constant dense<0xFF800000> : vector<16xf32>
    %628 = vector.multi_reduction <maximumf>, %627, %cst_250 [1] : vector<16x16xf32> to vector<16xf32>
    %629 = vector.shape_cast %628 : vector<16xf32> to vector<16x1xf32>
    %630 = vector.broadcast %629 : vector<16x1xf32> to vector<16x16xf32>
    %631 = arith.subf %627, %630 : vector<16x16xf32>
    %632 = math.exp %631 : vector<16x16xf32>
    %cst_251 = arith.constant dense<0.000000e+00> : vector<16xf32>
    %633 = vector.multi_reduction <add>, %632, %cst_251 [1] : vector<16x16xf32> to vector<16xf32>
    %634 = vector.shape_cast %633 : vector<16xf32> to vector<16x1xf32>
    %635 = tpu.reciprocal %634 {approx = true} : vector<16x1xf32> -> vector<16x1xf32>
    %636 = vector.broadcast %635 : vector<16x1xf32> to vector<16x16xf32>
    %637 = arith.mulf %632, %636 : vector<16x16xf32>
    %cst_252 = arith.constant 0.000000e+00 : f32
    %638 = arith.truncf %cst_252 : f32 to bf16
    %639 = vector.shape_cast %23 : vector<1x200xi1> to vector<1x200xi1>
    %640 = vector.broadcast %639 : vector<1x200xi1> to vector<16x200xi1>
    %641 = vector.broadcast %638 : bf16 to vector<16x200xbf16>
    %642 = arith.select %640, %544, %641 : vector<16x200xi1>, vector<16x200xbf16>
    %643 = arith.truncf %637 : vector<16x16xf32> to vector<16x16xbf16>
    %cst_253 = arith.constant dense<0.000000e+00> : vector<16x200xf32>
    %644 = tpu.matmul %643, %642, %cst_253 {dimension_numbers = #tpu.dot_dimension_numbers<[1], [0], [0], [1], [0, 0, 1, 1], [], []>} : vector<16x16xbf16>, vector<16x200xbf16>, vector<16x200xf32> -> vector<16x200xf32>
    %645 = arith.addf %620, %644 : vector<16x200xf32>
    %cst_254 = arith.constant 0.000000e+00 : f32
    %646 = arith.truncf %cst_254 : f32 to bf16
    %647 = vector.shape_cast %28 : vector<1x200xi1> to vector<1x200xi1>
    %648 = vector.broadcast %647 : vector<1x200xi1> to vector<16x200xi1>
    %649 = vector.broadcast %646 : bf16 to vector<16x200xbf16>
    %650 = arith.select %648, %541, %649 : vector<16x200xi1>, vector<16x200xbf16>
    %cst_255 = arith.constant dense<0.000000e+00> : vector<16x16xf32>
    %651 = tpu.matmul %650, %543, %cst_255 {dimension_numbers = #tpu.dot_dimension_numbers<[1], [0], [0], [1], [0, 0, 1, 1], [], []>} : vector<16x200xbf16>, vector<200x16xbf16>, vector<16x16xf32> -> vector<16x16xf32>
    %652 = arith.addf %651, %2 : vector<16x16xf32>
    %cst_256 = arith.constant dense<0xFF800000> : vector<16xf32>
    %653 = vector.multi_reduction <maximumf>, %652, %cst_256 [1] : vector<16x16xf32> to vector<16xf32>
    %654 = vector.shape_cast %653 : vector<16xf32> to vector<16x1xf32>
    %655 = vector.broadcast %654 : vector<16x1xf32> to vector<16x16xf32>
    %656 = arith.subf %652, %655 : vector<16x16xf32>
    %657 = math.exp %656 : vector<16x16xf32>
    %cst_257 = arith.constant dense<0.000000e+00> : vector<16xf32>
    %658 = vector.multi_reduction <add>, %657, %cst_257 [1] : vector<16x16xf32> to vector<16xf32>
    %659 = vector.shape_cast %658 : vector<16xf32> to vector<16x1xf32>
    %660 = tpu.reciprocal %659 {approx = true} : vector<16x1xf32> -> vector<16x1xf32>
    %661 = vector.broadcast %660 : vector<16x1xf32> to vector<16x16xf32>
    %662 = arith.mulf %657, %661 : vector<16x16xf32>
    %cst_258 = arith.constant 0.000000e+00 : f32
    %663 = arith.truncf %cst_258 : f32 to bf16
    %664 = vector.shape_cast %28 : vector<1x200xi1> to vector<1x200xi1>
    %665 = vector.broadcast %664 : vector<1x200xi1> to vector<16x200xi1>
    %666 = vector.broadcast %663 : bf16 to vector<16x200xbf16>
    %667 = arith.select %665, %544, %666 : vector<16x200xi1>, vector<16x200xbf16>
    %668 = arith.truncf %662 : vector<16x16xf32> to vector<16x16xbf16>
    %cst_259 = arith.constant dense<0.000000e+00> : vector<16x200xf32>
    %669 = tpu.matmul %668, %667, %cst_259 {dimension_numbers = #tpu.dot_dimension_numbers<[1], [0], [0], [1], [0, 0, 1, 1], [], []>} : vector<16x16xbf16>, vector<16x200xbf16>, vector<16x200xf32> -> vector<16x200xf32>
    %670 = arith.addf %645, %669 : vector<16x200xf32>
    %671 = arith.truncf %670 : vector<16x200xf32> to vector<16x200xbf16>
    %c2_260 = arith.constant 2 : index
    %c0_261 = arith.constant 0 : index
    %c0_262 = arith.constant 0 : index
    %672 = vector.load %arg9[%c2_260, %c0_261, %c0_262] : memref<3x200x200xbf16, #tpu.memory_space<vmem>>, vector<1x200x200xbf16>
    %673 = vector.shape_cast %672 : vector<1x200x200xbf16> to vector<200x200xbf16>
    %cst_263 = arith.constant dense<0.000000e+00> : vector<16x200xf32>
    %674 = tpu.matmul %671, %673, %cst_263 {dimension_numbers = #tpu.dot_dimension_numbers<[1], [0], [0], [1], [0, 0, 1, 1], [], []>} : vector<16x200xbf16>, vector<200x200xbf16>, vector<16x200xf32> -> vector<16x200xf32>
    %c2_264 = arith.constant 2 : index
    %c0_265 = arith.constant 0 : index
    %c0_266 = arith.constant 0 : index
    %675 = vector.load %arg10[%c2_264, %c0_265, %c0_266] : memref<3x1x200xf32, #tpu.memory_space<vmem>>, vector<1x1x200xf32>
    %676 = vector.shape_cast %675 : vector<1x1x200xf32> to vector<1x200xf32>
    %677 = vector.broadcast %676 : vector<1x200xf32> to vector<16x200xf32>
    %678 = arith.addf %674, %677 : vector<16x200xf32>
    %679 = arith.addf %516, %678 : vector<16x200xf32>
    %c2_267 = arith.constant 2 : index
    %c0_268 = arith.constant 0 : index
    %c0_269 = arith.constant 0 : index
    %680 = vector.load %arg11[%c2_267, %c0_268, %c0_269] : memref<3x1x200xf32, #tpu.memory_space<vmem>>, vector<1x1x200xf32>
    %681 = vector.shape_cast %680 : vector<1x1x200xf32> to vector<1x200xf32>
    %c2_270 = arith.constant 2 : index
    %c0_271 = arith.constant 0 : index
    %c0_272 = arith.constant 0 : index
    %682 = vector.load %arg12[%c2_270, %c0_271, %c0_272] : memref<3x1x200xf32, #tpu.memory_space<vmem>>, vector<1x1x200xf32>
    %683 = vector.shape_cast %682 : vector<1x1x200xf32> to vector<1x200xf32>
    %cst_273 = arith.constant dense<0.000000e+00> : vector<16xf32>
    %684 = vector.multi_reduction <add>, %679, %cst_273 [1] : vector<16x200xf32> to vector<16xf32>
    %685 = vector.shape_cast %684 : vector<16xf32> to vector<16x1xf32>
    %cst_274 = arith.constant 2.000000e+02 : f32
    %686 = vector.broadcast %cst_274 : f32 to vector<16x1xf32>
    %687 = arith.divf %685, %686 : vector<16x1xf32>
    %688 = vector.broadcast %687 : vector<16x1xf32> to vector<16x200xf32>
    %689 = arith.subf %679, %688 : vector<16x200xf32>
    %690 = arith.mulf %689, %689 : vector<16x200xf32>
    %cst_275 = arith.constant dense<0.000000e+00> : vector<16xf32>
    %691 = vector.multi_reduction <add>, %690, %cst_275 [1] : vector<16x200xf32> to vector<16xf32>
    %692 = vector.shape_cast %691 : vector<16xf32> to vector<16x1xf32>
    %cst_276 = arith.constant 2.000000e+02 : f32
    %693 = vector.broadcast %cst_276 : f32 to vector<16x1xf32>
    %694 = arith.divf %692, %693 : vector<16x1xf32>
    %695 = vector.broadcast %687 : vector<16x1xf32> to vector<16x200xf32>
    %696 = arith.subf %679, %695 : vector<16x200xf32>
    %cst_277 = arith.constant 9.99999974E-6 : f32
    %697 = vector.broadcast %cst_277 : f32 to vector<16x1xf32>
    %698 = arith.addf %694, %697 : vector<16x1xf32>
    %699 = math.rsqrt %698 : vector<16x1xf32>
    %700 = vector.broadcast %699 : vector<16x1xf32> to vector<16x200xf32>
    %701 = arith.mulf %696, %700 : vector<16x200xf32>
    %702 = vector.broadcast %681 : vector<1x200xf32> to vector<16x200xf32>
    %703 = arith.mulf %701, %702 : vector<16x200xf32>
    %704 = vector.broadcast %683 : vector<1x200xf32> to vector<16x200xf32>
    %705 = arith.addf %703, %704 : vector<16x200xf32>
    %706 = arith.truncf %705 : vector<16x200xf32> to vector<16x200xbf16>
    %c2_278 = arith.constant 2 : index
    %c0_279 = arith.constant 0 : index
    %c0_280 = arith.constant 0 : index
    %707 = vector.load %arg13[%c2_278, %c0_279, %c0_280] : memref<3x200x250xbf16, #tpu.memory_space<vmem>>, vector<1x200x250xbf16>
    %708 = vector.shape_cast %707 : vector<1x200x250xbf16> to vector<200x250xbf16>
    %cst_281 = arith.constant dense<0.000000e+00> : vector<16x250xf32>
    %709 = tpu.matmul %706, %708, %cst_281 {dimension_numbers = #tpu.dot_dimension_numbers<[1], [0], [0], [1], [0, 0, 1, 1], [], []>} : vector<16x200xbf16>, vector<200x250xbf16>, vector<16x250xf32> -> vector<16x250xf32>
    %c2_282 = arith.constant 2 : index
    %c0_283 = arith.constant 0 : index
    %c0_284 = arith.constant 0 : index
    %710 = vector.load %arg14[%c2_282, %c0_283, %c0_284] : memref<3x1x250xf32, #tpu.memory_space<vmem>>, vector<1x1x250xf32>
    %711 = vector.shape_cast %710 : vector<1x1x250xf32> to vector<1x250xf32>
    %712 = vector.broadcast %711 : vector<1x250xf32> to vector<16x250xf32>
    %713 = arith.addf %709, %712 : vector<16x250xf32>
    %cst_285 = arith.constant 0.000000e+00 : f32
    %714 = vector.broadcast %cst_285 : f32 to vector<16x250xf32>
    %715 = arith.maximumf %713, %714 : vector<16x250xf32>
    %cst_286 = arith.constant 0.000000e+00 : f32
    %716 = vector.broadcast %cst_286 : f32 to vector<16x250xf32>
    %717 = arith.minimumf %713, %716 : vector<16x250xf32>
    %718 = math.exp %717 : vector<16x250xf32>
    %cst_287 = arith.constant 1.000000e+00 : f32
    %719 = vector.broadcast %cst_287 : f32 to vector<16x250xf32>
    %720 = arith.subf %718, %719 : vector<16x250xf32>
    %cst_288 = arith.constant 1.67326319 : f32
    %721 = vector.broadcast %cst_288 : f32 to vector<16x250xf32>
    %722 = arith.mulf %721, %720 : vector<16x250xf32>
    %723 = arith.addf %715, %722 : vector<16x250xf32>
    %cst_289 = arith.constant 1.05070102 : f32
    %724 = vector.broadcast %cst_289 : f32 to vector<16x250xf32>
    %725 = arith.mulf %724, %723 : vector<16x250xf32>
    %726 = arith.truncf %725 : vector<16x250xf32> to vector<16x250xbf16>
    %c2_290 = arith.constant 2 : index
    %c0_291 = arith.constant 0 : index
    %c0_292 = arith.constant 0 : index
    %727 = vector.load %arg15[%c2_290, %c0_291, %c0_292] : memref<3x250x200xbf16, #tpu.memory_space<vmem>>, vector<1x250x200xbf16>
    %728 = vector.shape_cast %727 : vector<1x250x200xbf16> to vector<250x200xbf16>
    %cst_293 = arith.constant dense<0.000000e+00> : vector<16x200xf32>
    %729 = tpu.matmul %726, %728, %cst_293 {dimension_numbers = #tpu.dot_dimension_numbers<[1], [0], [0], [1], [0, 0, 1, 1], [], []>} : vector<16x250xbf16>, vector<250x200xbf16>, vector<16x200xf32> -> vector<16x200xf32>
    %c2_294 = arith.constant 2 : index
    %c0_295 = arith.constant 0 : index
    %c0_296 = arith.constant 0 : index
    %730 = vector.load %arg16[%c2_294, %c0_295, %c0_296] : memref<3x1x200xf32, #tpu.memory_space<vmem>>, vector<1x1x200xf32>
    %731 = vector.shape_cast %730 : vector<1x1x200xf32> to vector<1x200xf32>
    %732 = vector.broadcast %731 : vector<1x200xf32> to vector<16x200xf32>
    %733 = arith.addf %729, %732 : vector<16x200xf32>
    %734 = arith.addf %705, %733 : vector<16x200xf32>
    %c2_297 = arith.constant 2 : index
    %c0_298 = arith.constant 0 : index
    %c0_299 = arith.constant 0 : index
    %735 = vector.load %arg17[%c2_297, %c0_298, %c0_299] : memref<3x1x200xf32, #tpu.memory_space<vmem>>, vector<1x1x200xf32>
    %736 = vector.shape_cast %735 : vector<1x1x200xf32> to vector<1x200xf32>
    %c2_300 = arith.constant 2 : index
    %c0_301 = arith.constant 0 : index
    %c0_302 = arith.constant 0 : index
    %737 = vector.load %arg18[%c2_300, %c0_301, %c0_302] : memref<3x1x200xf32, #tpu.memory_space<vmem>>, vector<1x1x200xf32>
    %738 = vector.shape_cast %737 : vector<1x1x200xf32> to vector<1x200xf32>
    %cst_303 = arith.constant dense<0.000000e+00> : vector<16xf32>
    %739 = vector.multi_reduction <add>, %734, %cst_303 [1] : vector<16x200xf32> to vector<16xf32>
    %740 = vector.shape_cast %739 : vector<16xf32> to vector<16x1xf32>
    %cst_304 = arith.constant 2.000000e+02 : f32
    %741 = vector.broadcast %cst_304 : f32 to vector<16x1xf32>
    %742 = arith.divf %740, %741 : vector<16x1xf32>
    %743 = vector.broadcast %742 : vector<16x1xf32> to vector<16x200xf32>
    %744 = arith.subf %734, %743 : vector<16x200xf32>
    %745 = arith.mulf %744, %744 : vector<16x200xf32>
    %cst_305 = arith.constant dense<0.000000e+00> : vector<16xf32>
    %746 = vector.multi_reduction <add>, %745, %cst_305 [1] : vector<16x200xf32> to vector<16xf32>
    %747 = vector.shape_cast %746 : vector<16xf32> to vector<16x1xf32>
    %cst_306 = arith.constant 2.000000e+02 : f32
    %748 = vector.broadcast %cst_306 : f32 to vector<16x1xf32>
    %749 = arith.divf %747, %748 : vector<16x1xf32>
    %750 = vector.broadcast %742 : vector<16x1xf32> to vector<16x200xf32>
    %751 = arith.subf %734, %750 : vector<16x200xf32>
    %cst_307 = arith.constant 9.99999974E-6 : f32
    %752 = vector.broadcast %cst_307 : f32 to vector<16x1xf32>
    %753 = arith.addf %749, %752 : vector<16x1xf32>
    %754 = math.rsqrt %753 : vector<16x1xf32>
    %755 = vector.broadcast %754 : vector<16x1xf32> to vector<16x200xf32>
    %756 = arith.mulf %751, %755 : vector<16x200xf32>
    %757 = vector.broadcast %736 : vector<1x200xf32> to vector<16x200xf32>
    %758 = arith.mulf %756, %757 : vector<16x200xf32>
    %759 = vector.broadcast %738 : vector<1x200xf32> to vector<16x200xf32>
    %760 = arith.addf %758, %759 : vector<16x200xf32>
    %761 = arith.truncf %760 : vector<16x200xf32> to vector<16x200xbf16>
    %c0_308 = arith.constant 0 : index
    %c0_309 = arith.constant 0 : index
    %762 = vector.load %arg19[%c0_308, %c0_309] : memref<200x128xbf16, #tpu.memory_space<vmem>>, vector<200x128xbf16>
    %cst_310 = arith.constant dense<0.000000e+00> : vector<16x128xf32>
    %763 = tpu.matmul %761, %762, %cst_310 {dimension_numbers = #tpu.dot_dimension_numbers<[1], [0], [0], [1], [0, 0, 1, 1], [], []>} : vector<16x200xbf16>, vector<200x128xbf16>, vector<16x128xf32> -> vector<16x128xf32>
    %c0_311 = arith.constant 0 : index
    %c0_312 = arith.constant 0 : index
    %764 = vector.load %arg20[%c0_311, %c0_312] : memref<1x128xf32, #tpu.memory_space<vmem>>, vector<1x128xf32>
    %765 = vector.broadcast %764 : vector<1x128xf32> to vector<16x128xf32>
    %766 = arith.addf %763, %765 : vector<16x128xf32>
    %767 = vector.extract_strided_slice %766 {offsets = [0, 0], sizes = [8, 128], strides = [1, 1]} : vector<16x128xf32> to vector<8x128xf32>
    %768 = arith.truncf %767 : vector<8x128xf32> to vector<8x128xbf16>
    %c0_313 = arith.constant 0 : index
    %c0_314 = arith.constant 0 : index
    %c0_315 = arith.constant 0 : index
    %769 = vector.load %arg21[%c0_313, %c0_314, %c0_315] : memref<2x8x128xbf16, #tpu.memory_space<vmem>>, vector<1x8x128xbf16>
    %770 = vector.shape_cast %769 : vector<1x8x128xbf16> to vector<8x128xbf16>
    %771 = vector.shape_cast %768 : vector<8x128xbf16> to vector<1x8x128xbf16>
    tpu.vector_store %arg21[%c0_313, %c0_314, %c0_315], %771 {strides = array<i32>} : memref<2x8x128xbf16, #tpu.memory_space<vmem>>, vector<1x8x128xbf16>,
    %772 = vector.extract_strided_slice %766 {offsets = [8, 0], sizes = [8, 128], strides = [1, 1]} : vector<16x128xf32> to vector<8x128xf32>
    %773 = arith.truncf %772 : vector<8x128xf32> to vector<8x128xbf16>
    %c1_316 = arith.constant 1 : index
    %c0_317 = arith.constant 0 : index
    %c0_318 = arith.constant 0 : index
    %774 = vector.load %arg21[%c1_316, %c0_317, %c0_318] : memref<2x8x128xbf16, #tpu.memory_space<vmem>>, vector<1x8x128xbf16>
    %775 = vector.shape_cast %774 : vector<1x8x128xbf16> to vector<8x128xbf16>
    %776 = vector.shape_cast %773 : vector<8x128xbf16> to vector<1x8x128xbf16>
    tpu.vector_store %arg21[%c1_316, %c0_317, %c0_318], %776 {strides = array<i32>} : memref<2x8x128xbf16, #tpu.memory_space<vmem>>, vector<1x8x128xbf16>,
    return
  }
  func.func @transform_0(%arg0: i32) -> (i32, i32, i32) {
    %c0_i32 = arith.constant 0 : i32
    %c0_i32_0 = arith.constant 0 : i32
    %c0_i32_1 = arith.constant 0 : i32
    return %arg0, %c0_i32, %c0_i32_0 : i32, i32, i32
  }
  func.func @transform_1(%arg0: i32) -> (i32, i32) {
    %c0_i32 = arith.constant 0 : i32
    %c0_i32_0 = arith.constant 0 : i32
    %c0_i32_1 = arith.constant 0 : i32
    return %c0_i32, %c0_i32_0 : i32, i32
  }
  func.func @transform_2(%arg0: i32) -> (i32, i32, i32) {
    %c0_i32 = arith.constant 0 : i32
    %c0_i32_0 = arith.constant 0 : i32
    %c0_i32_1 = arith.constant 0 : i32
    %c0_i32_2 = arith.constant 0 : i32
    return %c0_i32, %c0_i32_0, %c0_i32_1 : i32, i32, i32
  }
  func.func @transform_3(%arg0: i32) -> (i32, i32, i32) {
    %c0_i32 = arith.constant 0 : i32
    %c0_i32_0 = arith.constant 0 : i32
    %c0_i32_1 = arith.constant 0 : i32
    %c0_i32_2 = arith.constant 0 : i32
    return %c0_i32, %c0_i32_0, %c0_i32_1 : i32, i32, i32
  }
  func.func @transform_4(%arg0: i32) -> (i32, i32, i32) {
    %c0_i32 = arith.constant 0 : i32
    %c0_i32_0 = arith.constant 0 : i32
    %c0_i32_1 = arith.constant 0 : i32
    %c0_i32_2 = arith.constant 0 : i32
    return %c0_i32, %c0_i32_0, %c0_i32_1 : i32, i32, i32
  }
  func.func @transform_5(%arg0: i32) -> (i32, i32, i32) {
    %c0_i32 = arith.constant 0 : i32
    %c0_i32_0 = arith.constant 0 : i32
    %c0_i32_1 = arith.constant 0 : i32
    %c0_i32_2 = arith.constant 0 : i32
    return %c0_i32, %c0_i32_0, %c0_i32_1 : i32, i32, i32
  }
  func.func @transform_6(%arg0: i32) -> (i32, i32, i32) {
    %c0_i32 = arith.constant 0 : i32
    %c0_i32_0 = arith.constant 0 : i32
    %c0_i32_1 = arith.constant 0 : i32
    %c0_i32_2 = arith.constant 0 : i32
    return %c0_i32, %c0_i32_0, %c0_i32_1 : i32, i32, i32
  }
  func.func @transform_7(%arg0: i32) -> (i32, i32, i32) {
    %c0_i32 = arith.constant 0 : i32
    %c0_i32_0 = arith.constant 0 : i32
    %c0_i32_1 = arith.constant 0 : i32
    %c0_i32_2 = arith.constant 0 : i32
    return %c0_i32, %c0_i32_0, %c0_i32_1 : i32, i32, i32
  }
  func.func @transform_8(%arg0: i32) -> (i32, i32, i32) {
    %c0_i32 = arith.constant 0 : i32
    %c0_i32_0 = arith.constant 0 : i32
    %c0_i32_1 = arith.constant 0 : i32
    %c0_i32_2 = arith.constant 0 : i32
    return %c0_i32, %c0_i32_0, %c0_i32_1 : i32, i32, i32
  }
  func.func @transform_9(%arg0: i32) -> (i32, i32, i32) {
    %c0_i32 = arith.constant 0 : i32
    %c0_i32_0 = arith.constant 0 : i32
    %c0_i32_1 = arith.constant 0 : i32
    %c0_i32_2 = arith.constant 0 : i32
    return %c0_i32, %c0_i32_0, %c0_i32_1 : i32, i32, i32
  }
  func.func @transform_10(%arg0: i32) -> (i32, i32, i32) {
    %c0_i32 = arith.constant 0 : i32
    %c0_i32_0 = arith.constant 0 : i32
    %c0_i32_1 = arith.constant 0 : i32
    %c0_i32_2 = arith.constant 0 : i32
    return %c0_i32, %c0_i32_0, %c0_i32_1 : i32, i32, i32
  }
  func.func @transform_11(%arg0: i32) -> (i32, i32, i32) {
    %c0_i32 = arith.constant 0 : i32
    %c0_i32_0 = arith.constant 0 : i32
    %c0_i32_1 = arith.constant 0 : i32
    %c0_i32_2 = arith.constant 0 : i32
    return %c0_i32, %c0_i32_0, %c0_i32_1 : i32, i32, i32
  }
  func.func @transform_12(%arg0: i32) -> (i32, i32, i32) {
    %c0_i32 = arith.constant 0 : i32
    %c0_i32_0 = arith.constant 0 : i32
    %c0_i32_1 = arith.constant 0 : i32
    %c0_i32_2 = arith.constant 0 : i32
    return %c0_i32, %c0_i32_0, %c0_i32_1 : i32, i32, i32
  }
  func.func @transform_13(%arg0: i32) -> (i32, i32, i32) {
    %c0_i32 = arith.constant 0 : i32
    %c0_i32_0 = arith.constant 0 : i32
    %c0_i32_1 = arith.constant 0 : i32
    %c0_i32_2 = arith.constant 0 : i32
    return %c0_i32, %c0_i32_0, %c0_i32_1 : i32, i32, i32
  }
  func.func @transform_14(%arg0: i32) -> (i32, i32, i32) {
    %c0_i32 = arith.constant 0 : i32
    %c0_i32_0 = arith.constant 0 : i32
    %c0_i32_1 = arith.constant 0 : i32
    %c0_i32_2 = arith.constant 0 : i32
    return %c0_i32, %c0_i32_0, %c0_i32_1 : i32, i32, i32
  }
  func.func @transform_15(%arg0: i32) -> (i32, i32, i32) {
    %c0_i32 = arith.constant 0 : i32
    %c0_i32_0 = arith.constant 0 : i32
    %c0_i32_1 = arith.constant 0 : i32
    %c0_i32_2 = arith.constant 0 : i32
    return %c0_i32, %c0_i32_0, %c0_i32_1 : i32, i32, i32
  }
  func.func @transform_16(%arg0: i32) -> (i32, i32, i32) {
    %c0_i32 = arith.constant 0 : i32
    %c0_i32_0 = arith.constant 0 : i32
    %c0_i32_1 = arith.constant 0 : i32
    %c0_i32_2 = arith.constant 0 : i32
    return %c0_i32, %c0_i32_0, %c0_i32_1 : i32, i32, i32
  }
  func.func @transform_17(%arg0: i32) -> (i32, i32, i32) {
    %c0_i32 = arith.constant 0 : i32
    %c0_i32_0 = arith.constant 0 : i32
    %c0_i32_1 = arith.constant 0 : i32
    %c0_i32_2 = arith.constant 0 : i32
    return %c0_i32, %c0_i32_0, %c0_i32_1 : i32, i32, i32
  }
  func.func @transform_18(%arg0: i32) -> (i32, i32) {
    %c0_i32 = arith.constant 0 : i32
    %c0_i32_0 = arith.constant 0 : i32
    %c0_i32_1 = arith.constant 0 : i32
    return %c0_i32, %c0_i32_0 : i32, i32
  }
  func.func @transform_19(%arg0: i32) -> (i32, i32) {
    %c0_i32 = arith.constant 0 : i32
    %c0_i32_0 = arith.constant 0 : i32
    %c0_i32_1 = arith.constant 0 : i32
    return %c0_i32, %c0_i32_0 : i32, i32
  }
  func.func @transform_20(%arg0: i32) -> (i32, i32, i32) {
    %c0_i32 = arith.constant 0 : i32
    %c0_i32_0 = arith.constant 0 : i32
    %c0_i32_1 = arith.constant 0 : i32
    return %arg0, %c0_i32, %c0_i32_0 : i32, i32, i32
  }
}

</mosaic_0001>

<bundles_post_ra>
// kernel: tpu_custom_call.1
= control target key start
LH: loop header
LB: loop body
LE: loop exit
PB: predicated region body
PF: predicated region fallthrough
CT: control target
= control target key end

     0   :  { %s13295_s0 = inlined_call_operand.vmem [shape: f32[2,8,200], index: 0, kind: input, shape index: {}]   ;;  %s13296_s1 = inlined_call_operand.vmem [shape: f32[16,16], index: 1, kind: input, shape index: {}]   ;;  %s13297_s2 = inlined_call_operand.vmem [shape: bf16[3,200,200], index: 2, kind: input, shape index: {}]   ;;  %s13298_s3 = inlined_call_operand.vmem [shape: f32[3,1,200], index: 3, kind: input, shape index: {}]   ;;  %s13299_s4 = inlined_call_operand.vmem [shape: bf16[3,200,200], index: 4, kind: input, shape index: {}]   ;;  %s13300_s5 = inlined_call_operand.vmem [shape: f32[3,1,200], index: 5, kind: input, shape index: {}]   ;;  %s13301_s6 = inlined_call_operand.hbm [shape: bf16[3,200,200], index: 6, kind: input, shape index: {}]   ;;  %s13302_s7 = inlined_call_operand.vmem [shape: f32[3,1,200], index: 7, kind: input, shape index: {}]   ;;  %s13303_s8 = inlined_call_operand.hbm [shape: bf16[3,200,200], index: 8, kind: input, shape index: {}]   ;;  %s13304_s9 = inlined_call_operand.hbm [shape: f32[3,1,200], index: 9, kind: input, shape index: {}]   ;;  %s13305_s10 = inlined_call_operand.hbm [shape: f32[3,1,200], index: 10, kind: input, shape index: {}]   ;;  %s13306_s11 = inlined_call_operand.hbm [shape: f32[3,1,200], index: 11, kind: input, shape index: {}]   ;;  %s13307_s12 = inlined_call_operand.hbm [shape: bf16[3,200,250], index: 12, kind: input, shape index: {}]   ;;  %s13308_s13 = inlined_call_operand.hbm [shape: f32[3,1,250], index: 13, kind: input, shape index: {}]   ;;  %s13309_s14 = inlined_call_operand.vmem [shape: bf16[3,250,200], index: 14, kind: input, shape index: {}]   ;;  %s13310_s15 = inlined_call_operand.vmem [shape: f32[3,1,200], index: 15, kind: input, shape index: {}]   ;;  %s13311_s16 = inlined_call_operand.vmem [shape: f32[3,1,200], index: 16, kind: input, shape index: {}]   ;;  %s13312_s17 = inlined_call_operand.hbm [shape: f32[3,1,200], index: 17, kind: input, shape index: {}]   ;;  %s13313_s18 = inlined_call_operand.vmem [shape: bf16[200,128], index: 18, kind: input, shape index: {}]   ;;  %s13314_s19 = inlined_call_operand.vmem [shape: f32[1,128], index: 19, kind: input, shape index: {}]   ;;  %s13315_s20 = inlined_call_operand.hbm [shape: bf16[2,8,128], index: 20, kind: output, shape index: {}]  }
   0x1   :  { %13321 = sst [smem:[#allocation23_spill]] %s13295_s0 }
   0x2   :  { %13322 = sst [smem:[#allocation24_spill]] %s13296_s1 }
   0x3   :  { %13323 = sst [smem:[#allocation25_spill]] %s13297_s2 }
   0x4   :  { %13324 = sst [smem:[#allocation26_spill]] %s13298_s3 }
   0x5   :  { %13325 = sst [smem:[#allocation27_spill]] %s13299_s4 }
   0x6   :  { %25 = vsyncpa [#allocation3], 0 }
   0x7   :  { %26 = vsyncpa [#allocation6], 0 }
   0x8   :  { %27 = vsyncpa [#allocation9], 0 }
   0x9   :  { %28 = vsyncpa [#allocation12], 0 }
   0xa   :  { %29 = vsyncpa [#allocation15], 0 }
   0xb   :  { %30 = vsyncpa [#allocation4], 0  ;;  %s62_s23 = sshll.u32 %s13303_s8, 4  ;;  %s10094_s24 = smov [#allocation5]   ;;  %s63_s23 = int_to_ptr.hbm [resolvable:$true] %s62_s23 }
   0xc   :  { %s64_s2 = sshll.u32 %s10094_s24, 4  ;;  %s10095_s25 = smov 128   ;;  %s65_s2 = int_to_ptr.vmem [resolvable:$true] %s64_s2 }
   0xd   :  { %s10096_s3 = smov 8   ;;  %s88_s28 = sshll.u32 %s13305_s10, 4  ;;  %s89_s28 = int_to_ptr.hbm [resolvable:$true] %s88_s28 }
   0xe   :  { %70 = dma.hbm_to_vmem [thread:$0]  %s63_s23, 9600, %s65_s2, [#allocation6], %s10095_s25, %s10095_s25, %s10096_s3  }
   0xf   :  { %s10097_s4 = smov [#allocation8]   ;;  %s114_s21 = sshll.u32 %s13307_s12, 4  ;;  %s115_s21 = int_to_ptr.hbm [resolvable:$true] %s114_s21 }
  0x10   :  { %s90_s29 = sshll.u32 %s10097_s4, 4  ;;  %s10098_s8 = smov 32   ;;  %s91_s29 = int_to_ptr.vmem [resolvable:$true] %s90_s29 }
  0x11   :  { %s10099_s1 = smov 2   ;;  %s47_s24 = sshll.u32 %s13301_s6, 4  ;;  %s48_s24 = int_to_ptr.hbm [resolvable:$true] %s47_s24 }
  0x12   :  { %96 = dma.hbm_to_vmem [thread:$0]  %s89_s28, 96, %s91_s29, [#allocation9], %s10098_s8, %s10098_s8, %s10099_s1  }
  0x13   :  { %s10100_s10 = smov [#allocation11]   ;;  %s10101_s26 = smov [#allocation2]  }
  0x14   :  { %s116_s2 = sshll.u32 %s10100_s10, 4  ;;  %s49_s27 = sshll.u32 %s10101_s26, 4  ;;  %s117_s2 = int_to_ptr.vmem [resolvable:$true] %s116_s2  ;;  %s50_s27 = int_to_ptr.vmem [resolvable:$true] %s49_s27 }
  0x15   :  { %122 = dma.hbm_to_vmem [thread:$0]  %s115_s21, 9600, %s117_s2, [#allocation12], %s10095_s25, %s10095_s25, %s10096_s3  }
  0x16   :  { %s75_s30 = sshll.u32 %s13304_s9, 4  ;;  %s101_s29 = sshll.u32 %s13306_s11, 4  ;;  %s76_s30 = int_to_ptr.hbm [resolvable:$true] %s75_s30  ;;  %s102_s29 = int_to_ptr.hbm [resolvable:$true] %s101_s29 }
  0x17   :  { %55 = dma.hbm_to_vmem [thread:$0]  %s48_s24, 9600, %s50_s27, [#allocation3], %s10095_s25, %s10095_s25, %s10096_s3  }
  0x18   :  { %s10102_s22 = smov [#allocation7]   ;;  %s10103_s21 = smov [#allocation10]  }
  0x19   :  { %s77_s6 = sshll.u32 %s10102_s22, 4  ;;  %s103_s23 = sshll.u32 %s10103_s21, 4  ;;  %s78_s6 = int_to_ptr.vmem [resolvable:$true] %s77_s6  ;;  %s104_s23 = int_to_ptr.vmem [resolvable:$true] %s103_s23 }
  0x1a   :  { %83 = dma.hbm_to_vmem [thread:$0]  %s76_s30, 96, %s78_s6, [#allocation6], %s10098_s8, %s10098_s8, %s10099_s1  }
  0x1b   :  { %s127_s9 = sshll.u32 %s13308_s13, 4  ;;  %s146_s3 = sshll.u32 %s13312_s17, 4  ;;  %s128_s9 = int_to_ptr.hbm [resolvable:$true] %s127_s9  ;;  %s147_s3 = int_to_ptr.hbm [resolvable:$true] %s146_s3 }
  0x1c   :  { %109 = dma.hbm_to_vmem [thread:$0]  %s102_s29, 96, %s104_s23, [#allocation9], %s10098_s8, %s10098_s8, %s10099_s1  }
  0x1d   :  { %s10104_s24 = smov [#allocation13]   ;;  %s10105_s27 = smov [#allocation14]  }
  0x1e   :  { %s129_s26 = sshll.u32 %s10104_s24, 4  ;;  %s148_s13 = sshll.u32 %s10105_s27, 4  ;;  %s130_s26 = int_to_ptr.vmem [resolvable:$true] %s129_s26  ;;  %s149_s13 = int_to_ptr.vmem [resolvable:$true] %s148_s13 }
  0x1f   :  { %135 = dma.hbm_to_vmem [thread:$0]  %s128_s9, 96, %s130_s26, [#allocation12], %s10098_s8, %s10098_s8, %s10099_s1  }
  0x20   :  { %154 = dma.hbm_to_vmem [thread:$0]  %s147_s3, 96, %s149_s13, [#allocation15], %s10098_s8, %s10098_s8, %s10099_s1  }
  0x21   :  { %10082 = dma.done.wait [#allocation3], 9600  }
  0x22   :  { %10083 = vsyncadd [#allocation3], 4294957696 }
  0x23   :  { %10084 = dma.done.wait [#allocation6], 9696  }
  0x24   :  { %10085 = vsyncadd [#allocation6], 4294957600 }
  0x25   :  { %10086 = dma.done.wait [#allocation9], 192  }
  0x26   :  { %10087 = vsyncadd [#allocation9], 4294967104 }
  0x27   :  { %10088 = dma.done.wait [#allocation12], 9696  }
  0x28   :  { %10089 = vsyncadd [#allocation12], 4294957600 }
  0x29   :  { %10090 = dma.done.wait [#allocation15], 96  }
  0x2a   :  { %10091 = vsyncadd [#allocation15], 4294967200  ;;  %s13326_s4 = sld [smem:[#allocation25_spill]]  ;;  %vm393_vm0 = vcmask 1043456   ;;  %vm389_vm1 = vcmask 588800   ;;  %vm10106_vm5 = vmmov 0  }
  0x2b   :  { %s13327_s30 = sld [smem:[#allocation27_spill]]  ;;  %s10108_s12 = smov [#allocation16]  }
  0x2c   :  { %s13328_s28 = sld [smem:[#allocation23_spill]]  ;;  %s7037_s0 = sshll.u32 %s10108_s12, 4  ;;  %s7038_s0 = int_to_ptr.vmem [resolvable:$true] %s7037_s0 }
  0x2d   :  { %s13331_s13 = sld [smem:[#allocation26_spill]]  ;;  %s7039_s29 = sshll.u32 %s13315_s20, 4  ;;  %s7040_s29 = int_to_ptr.hbm [resolvable:$true] %s7039_s29 }
  0x2e   :  { %s13340_s22 = sld [smem:[#allocation24_spill]]  ;;  %s10109_s6 = smov 64  }
  0x2f   :  { %s10110_s21 = smov 4  }
  0x30   :  { %v7114_v0 = vld [vmem:[%s13326_s4 + $0x70] sm:$0xf]  ;;  %v9211_v1 = vld [vmem:[%s13326_s4 + $0x74] sm:$0xf0]  ;;  %v9210_v2 = vld [vmem:[%s13326_s4 + $0x74] sm:$0xf] }
  0x31   :  { %v7115_v3 = vor.u32 %v9211_v1, %v7114_v0  ;;  %v7116_v4 = vld [vmem:[%s13326_s4 + $0x78] sm:$0xf0]  ;;  %v257_v5 = vld [vmem:[%s13326_s4 + $0xc0] sm:$0xff]  ;;  %v9209_v10 = vld [vmem:[%s13326_s4 + $0x64] sm:$0xf0] }
  0x32   :  { %v7106_v6 = vld [vmem:[%s13326_s4 + $0x60] sm:$0xf]  ;;  %v7119_v7 = vor.u32 %v9210_v2, %v7116_v4  ;;  %v337_v8 = vunpack.c.l.b16 %v257_v5  ;;  %v338_v9 = vunpack.c.h.b16 %v257_v5  ;;  %v9208_v11 = vld [vmem:[%s13326_s4 + $0x64] sm:$0xf]  ;;  %v7108_v12 = vld [vmem:[%s13326_s4 + $0x68] sm:$0xf0] }
  0x33   :  { %400 = vmatpush.bf16.msra.mxu0 %v7115_v3  ;;  %v7146_v13 = vld [vmem:[%s13326_s4 + $0xb0] sm:$0xf]  ;;  %v9219_v14 = vld [vmem:[%s13326_s4 + $0xb4] sm:$0xf0]  ;;  %v7107_v17 = vor.u32 %v9209_v10, %v7106_v6  ;;  %v7111_v18 = vor.u32 %v9208_v11, %v7108_v12  ;;  %v9218_v19 = vld [vmem:[%s13326_s4 + $0xb4] sm:$0xf] }
  0x34   :  { %428 = vmatpush.bf16.msra.mxu2 %v7119_v7  ;;  %v363_v15 = vpack.c.b16 %v337_v8, %v337_v8  ;;  %v364_v16 = vpack.c.b16 %v338_v9, %v338_v9  ;;  %v7148_v20 = vld [vmem:[%s13326_s4 + $0xb8] sm:$0xf0]  ;;  %v7098_v21 = vld [vmem:[%s13326_s4 + $0x50] sm:$0xf]  ;;  %v9207_v22 = vld [vmem:[%s13326_s4 + $0x54] sm:$0xf0]  ;;  %v7147_v27 = vor.u32 %v9219_v14, %v7146_v13 }
  0x35   :  { %v9206_v23 = vld [vmem:[%s13326_s4 + $0x54] sm:$0xf]  ;;  %v7100_v24 = vld [vmem:[%s13326_s4 + $0x58] sm:$0xf0]  ;;  %v7151_v28 = vor.u32 %v9218_v19, %v7148_v20  ;;  %v7138_v29 = vld [vmem:[%s13326_s4 + $0xa0] sm:$0xf]  ;;  %v7099_v31 = vor.u32 %v9207_v22, %v7098_v21 }
  0x36   :  { %v395_v25 = vsel %vm393_vm0, %v363_v15, 0  ;;  %v398_v26 = vsel %vm393_vm0, %v364_v16, 0  ;;  %v9217_v30 = vld [vmem:[%s13326_s4 + $0xa4] sm:$0xf0]  ;;  %v7103_v32 = vor.u32 %v9206_v23, %v7100_v24  ;;  %v9216_v33 = vld [vmem:[%s13326_s4 + $0xa4] sm:$0xf] }
  0x37   :  { %417 = vmatpush.bf16.msra.mxu1 %v395_v25  ;;  %445 = vmatpush.bf16.msra.mxu3 %v398_v26  ;;  %v7140_v34 = vld [vmem:[%s13326_s4 + $0xa8] sm:$0xf0]  ;;  %v7090_v35 = vld [vmem:[%s13326_s4 + $0x40] sm:$0xf]  ;;  %v9205_v36 = vld [vmem:[%s13326_s4 + $0x44] sm:$0xf0]  ;;  %v7139_v39 = vor.u32 %v9217_v30, %v7138_v29 }
  0x38   :  { %401 = vmatpush.bf16.msra.mxu0 %v7107_v17  ;;  %429 = vmatpush.bf16.msra.mxu2 %v7111_v18  ;;  %v9204_v37 = vld [vmem:[%s13326_s4 + $0x44] sm:$0xf]  ;;  %v7092_v38 = vld [vmem:[%s13326_s4 + $0x48] sm:$0xf0]  ;;  %v7143_v40 = vor.u32 %v9216_v33, %v7140_v34  ;;  %v7130_v41 = vld [vmem:[%s13326_s4 + $0x90] sm:$0xf]  ;;  %v7091_v43 = vor.u32 %v9205_v36, %v7090_v35 }
  0x39   :  { %v9215_v42 = vld [vmem:[%s13326_s4 + $0x94] sm:$0xf0]  ;;  %v7095_v44 = vor.u32 %v9204_v37, %v7092_v38  ;;  %v9214_v45 = vld [vmem:[%s13326_s4 + $0x94] sm:$0xf]  ;;  %v7132_v46 = vld [vmem:[%s13326_s4 + $0x98] sm:$0xf0] }
  0x3a   :  { %v7082_v47 = vld [vmem:[%s13326_s4 + $0x30] sm:$0xf]  ;;  %v9203_v48 = vld [vmem:[%s13326_s4 + $0x34] sm:$0xf0]  ;;  %v9202_v49 = vld [vmem:[%s13326_s4 + $0x34] sm:$0xf]  ;;  %v7131_v52 = vor.u32 %v9215_v42, %v7130_v41  ;;  %v7135_v53 = vor.u32 %v9214_v45, %v7132_v46 }
  0x3b   :  { %418 = vmatpush.bf16.msra.mxu1 %v7147_v27  ;;  %446 = vmatpush.bf16.msra.mxu3 %v7151_v28  ;;  %v7084_v50 = vld [vmem:[%s13326_s4 + $0x38] sm:$0xf0]  ;;  %v480_v51 = vld [vmem:[%s13327_s30 + $0xc0] sm:$0xff]  ;;  %v9213_v55 = vld [vmem:[%s13326_s4 + $0x84] sm:$0xf0]  ;;  %v7083_v57 = vor.u32 %v9203_v48, %v7082_v47 }
  0x3c   :  { %402 = vmatpush.bf16.msra.mxu0 %v7099_v31  ;;  %430 = vmatpush.bf16.msra.mxu2 %v7103_v32  ;;  %v7122_v54 = vld [vmem:[%s13326_s4 + $0x80] sm:$0xf]  ;;  %v560_v56 = vunpack.c.l.b16 %v480_v51  ;;  %v7087_v58 = vor.u32 %v9202_v49, %v7084_v50  ;;  %v9212_v59 = vld [vmem:[%s13326_s4 + $0x84] sm:$0xf]  ;;  %v7124_v60 = vld [vmem:[%s13326_s4 + $0x88] sm:$0xf0]  ;;  %v561_v17 = vunpack.c.h.b16 %v480_v51 }
  0x3d   :  { %v7074_v61 = vld [vmem:[%s13326_s4 + $0x20] sm:$0xf]  ;;  %v9201_v62 = vld [vmem:[%s13326_s4 + $0x24] sm:$0xf0]  ;;  %v9200_v63 = vld [vmem:[%s13326_s4 + $0x24] sm:$0xf]  ;;  %v7123_v4 = vor.u32 %v9213_v55, %v7122_v54  ;;  %v7127_v5 = vor.u32 %v9212_v59, %v7124_v60 }
  0x3e   :  { %v7076_v0 = vld [vmem:[%s13326_s4 + $0x28] sm:$0xf0]  ;;  %v7212_v1 = vld [vmem:[%s13327_s30 + $0x70] sm:$0xf]  ;;  %v9235_v2 = vld [vmem:[%s13327_s30 + $0x74] sm:$0xf0]  ;;  %v586_v3 = vpack.c.b16 %v560_v56, %v560_v56  ;;  %v7075_v8 = vor.u32 %v9201_v62, %v7074_v61  ;;  %v587_v31 = vpack.c.b16 %v561_v17, %v561_v17 }
  0x3f   :  { %419 = vmatpush.bf16.msra.mxu1 %v7139_v39  ;;  %447 = vmatpush.bf16.msra.mxu3 %v7143_v40  ;;  %v193_v6 = vld [vmem:[%s13328_s28 + $0x8] sm:$0xff]  ;;  %v195_v7 = vld [vmem:[%s13328_s28 + $0x18] sm:$0xff]  ;;  %v7079_v9 = vor.u32 %v9200_v63, %v7076_v0  ;;  %v7066_v10 = vld [vmem:[%s13326_s4 + $0x10] sm:$0xf]  ;;  %v7213_v13 = vor.u32 %v9235_v2, %v7212_v1 }
  0x40   :  { %403 = vmatpush.bf16.msra.mxu0 %v7091_v43  ;;  %431 = vmatpush.bf16.msra.mxu2 %v7095_v44  ;;  %v9199_v11 = vld [vmem:[%s13326_s4 + $0x14] sm:$0xf0]  ;;  %v9198_v12 = vld [vmem:[%s13326_s4 + $0x14] sm:$0xf]  ;;  %v7068_v14 = vld [vmem:[%s13326_s4 + $0x18] sm:$0xf0]  ;;  %v10414_v19 = vpack.c.bf16 %v195_v7, %v193_v6 }
  0x41   :  { %v7204_v15 = vld [vmem:[%s13327_s30 + $0x60] sm:$0xf]  ;;  %v9233_v16 = vld [vmem:[%s13327_s30 + $0x64] sm:$0xf0]  ;;  %v613_v18 = vsel %vm393_vm0, %v586_v3, 0  ;;  %v7067_v22 = vor.u32 %v9199_v11, %v7066_v10  ;;  %v7071_v23 = vor.u32 %v9198_v12, %v7068_v14  ;;  %v194_v40 = vld [vmem:[%s13328_s28 + $0x10] sm:$0xff] }
  0x42   :  { %v7244_v20 = vld [vmem:[%s13327_s30 + $0xb0] sm:$0xf]  ;;  %v9243_v21 = vld [vmem:[%s13327_s30 + $0xb4] sm:$0xf0]  ;;  %v7058_v24 = vld [vmem:[%s13326_s4] sm:$0xf]  ;;  %v7205_v26 = vor.u32 %v9233_v16, %v7204_v15 }
  0x43   :  { %420 = vmatpush.bf16.msra.mxu1 %v7131_v52  ;;  %448 = vmatpush.bf16.msra.mxu3 %v7135_v53  ;;  %v9197_v25 = vld [vmem:[%s13326_s4 + $0x4] sm:$0xf0]  ;;  %v7245_v27 = vor.u32 %v9243_v21, %v7244_v20  ;;  %v9196_v28 = vld [vmem:[%s13326_s4 + $0x4] sm:$0xf]  ;;  %v7060_v29 = vld [vmem:[%s13326_s4 + $0x8] sm:$0xf0] }
  0x44   :  { %404 = vmatpush.bf16.msra.mxu0 %v7083_v57  ;;  %432 = vmatpush.bf16.msra.mxu2 %v7087_v58  ;;  %v7196_v30 = vld [vmem:[%s13327_s30 + $0x50] sm:$0xf]  ;;  %v9231_v32 = vld [vmem:[%s13327_s30 + $0x54] sm:$0xf0]  ;;  %v7236_v33 = vld [vmem:[%s13327_s30 + $0xa0] sm:$0xf]  ;;  %v7059_v37 = vor.u32 %v9197_v25, %v7058_v24  ;;  %v7063_v38 = vor.u32 %v9196_v28, %v7060_v29 }
  0x45   :  { %v9241_v34 = vld [vmem:[%s13327_s30 + $0xa4] sm:$0xf0]  ;;  %v9234_v35 = vld [vmem:[%s13327_s30 + $0x74] sm:$0xf]  ;;  %v7214_v36 = vld [vmem:[%s13327_s30 + $0x78] sm:$0xf0]  ;;  %v7197_v41 = vor.u32 %v9231_v32, %v7196_v30 }
  0x46   :  { %v192_v39 = vld [vmem:[%s13328_s28] sm:$0xff]  ;;  %v7237_v42 = vor.u32 %v9241_v34, %v7236_v33  ;;  %v9229_v44 = vld [vmem:[%s13327_s30 + $0x44] sm:$0xf0]  ;;  %v616_v45 = vsel %vm393_vm0, %v587_v31, 0  ;;  %v7217_v46 = vor.u32 %v9234_v35, %v7214_v36  ;;  %v7228_v47 = vld [vmem:[%s13327_s30 + $0x90] sm:$0xf] }
  0x47   :  { %421 = vmatpush.bf16.msra.mxu1 %v7123_v4  ;;  %449 = vmatpush.bf16.msra.mxu3 %v7127_v5  ;;  %v7188_v43 = vld [vmem:[%s13327_s30 + $0x40] sm:$0xf]  ;;  %v9239_v48 = vld [vmem:[%s13327_s30 + $0x94] sm:$0xf0]  ;;  %v9232_v49 = vld [vmem:[%s13327_s30 + $0x64] sm:$0xf]  ;;  %v10478_v50 = vpack.c.bf16 %v194_v40, %v192_v39 }
  0x48   :  { %405 = vmatpush.bf16.msra.mxu0 %v7075_v8  ;;  %433 = vmatpush.bf16.msra.mxu2 %v7079_v9  ;;  %v7206_v51 = vld [vmem:[%s13327_s30 + $0x68] sm:$0xf0]  ;;  %v9242_v52 = vld [vmem:[%s13327_s30 + $0xb4] sm:$0xf]  ;;  %v7246_v53 = vld [vmem:[%s13327_s30 + $0xb8] sm:$0xf0]  ;;  %v7189_v54 = vor.u32 %v9229_v44, %v7188_v43  ;;  %v7229_v55 = vor.u32 %v9239_v48, %v7228_v47 }
  0x49   :  { %v7180_v56 = vld [vmem:[%s13327_s30 + $0x30] sm:$0xf]  ;;  %v9227_v57 = vld [vmem:[%s13327_s30 + $0x34] sm:$0xf0]  ;;  %v7220_v58 = vld [vmem:[%s13327_s30 + $0x80] sm:$0xf]  ;;  %v7209_v59 = vor.u32 %v9232_v49, %v7206_v51  ;;  %v7249_v62 = vor.u32 %v9242_v52, %v7246_v53 }
  0x4a   :  { %7153 = vmatmul.msk.bf16.vlgmr.msra.gmra.mxu3 %vm389_vm1, %v10414_v19  ;;  %7152 = vmatmul.msk.bf16.vlgmr.msra.gmra.mxu1 %vm389_vm1, %v10414_v19  ;;  %v9237_v60 = vld [vmem:[%s13327_s30 + $0x84] sm:$0xf0]  ;;  %v9230_v61 = vld [vmem:[%s13327_s30 + $0x54] sm:$0xf]  ;;  %v7198_v63 = vld [vmem:[%s13327_s30 + $0x58] sm:$0xf0]  ;;  %v7181_v2 = vor.u32 %v9227_v57, %v7180_v56 }
  0x4b   :  { %618 = vmatpush.bf16.msrb.mxu1 %v7213_v13  ;;  %635 = vmatpush.bf16.msrb.mxu3 %v613_v18  ;;  %v9240_v0 = vld [vmem:[%s13327_s30 + $0xa4] sm:$0xf]  ;;  %v7238_v1 = vld [vmem:[%s13327_s30 + $0xa8] sm:$0xf0]  ;;  %v7221_v3 = vor.u32 %v9237_v60, %v7220_v58  ;;  %v7201_v4 = vor.u32 %v9230_v61, %v7198_v63  ;;  %v7172_v5 = vld [vmem:[%s13327_s30 + $0x20] sm:$0xf] }
  0x4c   :  { %406 = vmatpush.bf16.msra.mxu0 %v7067_v22  ;;  %434 = vmatpush.bf16.msra.mxu2 %v7071_v23  ;;  %v9225_v6 = vld [vmem:[%s13327_s30 + $0x24] sm:$0xf0]  ;;  %v9228_v7 = vld [vmem:[%s13327_s30 + $0x44] sm:$0xf]  ;;  %v7241_v8 = vor.u32 %v9240_v0, %v7238_v1  ;;  %v7190_v9 = vld [vmem:[%s13327_s30 + $0x48] sm:$0xf0] }
  0x4d   :  { %v9238_v10 = vld [vmem:[%s13327_s30 + $0x94] sm:$0xf]  ;;  %v7230_v11 = vld [vmem:[%s13327_s30 + $0x98] sm:$0xf0]  ;;  %v7173_v12 = vor.u32 %v9225_v6, %v7172_v5  ;;  %v7193_v13 = vor.u32 %v9228_v7, %v7190_v9  ;;  %v7164_v14 = vld [vmem:[%s13327_s30 + $0x10] sm:$0xf] }
  0x4e   :  { %v9223_v15 = vld [vmem:[%s13327_s30 + $0x14] sm:$0xf0]  ;;  %v9226_v16 = vld [vmem:[%s13327_s30 + $0x34] sm:$0xf]  ;;  %v7233_v17 = vor.u32 %v9238_v10, %v7230_v11  ;;  %v7182_v18 = vld [vmem:[%s13327_s30 + $0x38] sm:$0xf0] }
  0x4f   :  { %619 = vmatpush.bf16.msrb.mxu1 %v7205_v26  ;;  %636 = vmatpush.bf16.msrb.mxu3 %v7245_v27  ;;  %v9236_v20 = vld [vmem:[%s13327_s30 + $0x84] sm:$0xf]  ;;  %v7222_v21 = vld [vmem:[%s13327_s30 + $0x88] sm:$0xf0]  ;;  %v7165_v22 = vor.u32 %v9223_v15, %v7164_v14  ;;  %v7185_v23 = vor.u32 %v9226_v16, %v7182_v18  ;;  %v7156_v24 = vld [vmem:[%s13327_s30] sm:$0xf] }
  0x50   :  { %407 = vmatpush.bf16.msra.mxu0 %v7059_v37  ;;  %435 = vmatpush.bf16.msra.mxu2 %v7063_v38  ;;  %v9221_v25 = vld [vmem:[%s13327_s30 + $0x4] sm:$0xf0]  ;;  %v7225_v26 = vor.u32 %v9236_v20, %v7222_v21  ;;  %v9224_v27 = vld [vmem:[%s13327_s30 + $0x24] sm:$0xf]  ;;  %v7174_v28 = vld [vmem:[%s13327_s30 + $0x28] sm:$0xf0]  ;;  %v198_v37 = vlaneseq }
  0x51   :  { %v7157_v29 = vor.u32 %v9221_v25, %v7156_v24  ;;  %v7177_v30 = vor.u32 %v9224_v27, %v7174_v28  ;;  %v9222_v31 = vld [vmem:[%s13327_s30 + $0x14] sm:$0xf]  ;;  %v7166_v32 = vld [vmem:[%s13327_s30 + $0x18] sm:$0xf0]  ;;  %v9220_v34 = vld [vmem:[%s13327_s30 + $0x4] sm:$0xf] }
  0x52   :  { %v7169_v33 = vor.u32 %v9222_v31, %v7166_v32  ;;  %v7158_v35 = vld [vmem:[%s13327_s30 + $0x8] sm:$0xf0]  ;;  %v10581_v38 = vand.u32 127, %v198_v37  ;;  %v7310_v58 = vld [vmem:[#allocation2 + $0x70] sm:$0xf]  ;;  %v698_v25 = vld [vmem:[#allocation2 + $0xc0] sm:$0xff] }
  0x53   :  { %620 = vmatpush.bf16.msrb.mxu1 %v7197_v41  ;;  %637 = vmatpush.bf16.msrb.mxu3 %v7237_v42  ;;  %v7161_v36 = vor.u32 %v9220_v34, %v7158_v35  ;;  %v258_v41 = vld [vmem:[%s13331_s13] sm:$0x3]  ;;  %v7312_v63 = vld [vmem:[#allocation2 + $0x78] sm:$0xf0]  ;;  %v9256_v5 = vld [vmem:[#allocation2 + $0x64] sm:$0xf] }
  0x54   :  { %646 = vmatpush.bf16.msrb.mxu0 %v7217_v46  ;;  %663 = vmatpush.bf16.msrb.mxu2 %v616_v45  ;;  %v10584_v39 = vadd.s32 128, %v10581_v38  ;;  %vm213_vm2 = vcmp.ge.s32.totalorder %v10581_v38, 80  ;;  %vm215_vm3 = vcmp.lt.s32.totalorder %v10581_v38, 120  ;;  %v260_v43 = vperm.slane %v258_v41, 0  ;;  %v7302_v0 = vld [vmem:[#allocation2 + $0x60] sm:$0xf] }
  0x55   :  { %408 = vmatmul.bf16.vlgmr.msra.gmra.mxu0 %v10478_v50  ;;  %436 = vmatmul.bf16.vlgmr.msra.gmra.mxu2 %v10478_v50  ;;  %vm217_vm4 = vmand %vm213_vm2, %vm215_vm3  ;;  %v261_v49 = vperm.slane %v258_v41, 1  ;;  %v10608_v10 = vld [vmem:[%s13300_s5] sm:$0x3]  ;;  %v9254_v15 = vld [vmem:[#allocation2 + $0x54] sm:$0xf]  ;;  %vm219_vm11 = vcmp.ge.s32.totalorder %v10581_v38, 120 }
  0x56   :  { %vm10589_vm6 = vmpackc.low %vm10106_vm5, %vm217_vm4  ;;  %vm226_vm7 = vcmp.ge.s32.totalorder %v10584_v39, 160  ;;  %vm228_vm8 = vcmp.lt.s32.totalorder %v10584_v39, 200  ;;  %v7296_v16 = vld [vmem:[#allocation2 + $0x58] sm:$0xf0]  ;;  %v483_v18 = vperm.slane %v10608_v10, 0  ;;  %vm222_vm12 = vcmp.lt.s32.totalorder %v10584_v39, 160 }
  0x57   :  { %621 = vmatpush.bf16.msrb.mxu1 %v7189_v54  ;;  %638 = vmatpush.bf16.msrb.mxu3 %v7229_v55  ;;  %vm230_vm9 = vmand %vm226_vm7, %vm228_vm8  ;;  %v7286_v21 = vld [vmem:[#allocation2 + $0x40] sm:$0xf]  ;;  %v9253_v24 = vld [vmem:[#allocation2 + $0x44] sm:$0xf0]  ;;  %vm207_vm14 = vcmp.ge.s32.totalorder %v10581_v38, 40  ;;  %vm209_vm15 = vcmp.lt.s32.totalorder %v10581_v38, 80 }
  0x58   :  { %647 = vmatpush.bf16.msrb.mxu0 %v7209_v59  ;;  %664 = vmatpush.bf16.msrb.mxu2 %v7249_v62  ;;  %vm10599_vm10 = vmpackc.low %vm230_vm9, %vm10106_vm5  ;;  %v9259_v59 = vld [vmem:[#allocation2 + $0x74] sm:$0xf0]  ;;  %v9258_v62 = vld [vmem:[#allocation2 + $0x74] sm:$0xf]  ;;  %v7287_v37 = vor.u32 %v9253_v24, %v7286_v21  ;;  %vm203_vm2 = vcmp.lt.s32.totalorder %v10581_v38, 40 }
  0x59   :  { %v7311_v61 = vor.u32 %v9259_v59, %v7310_v58  ;;  %v9252_v27 = vld [vmem:[#allocation2 + $0x44] sm:$0xf]  ;;  %v7288_v28 = vld [vmem:[#allocation2 + $0x48] sm:$0xf0]  ;;  %v9251_v34 = vld [vmem:[#allocation2 + $0x34] sm:$0xf0] }
  0x5a   :  { %v7342_v35 = vld [vmem:[#allocation2 + $0xb0] sm:$0xf]  ;;  %v7272_v58 = vld [vmem:[#allocation2 + $0x28] sm:$0xf0]  ;;  %vm10623_vm13 = vmpackc.low %vm222_vm12, %vm219_vm11 }
  0x5b   :  { %622 = vmatpush.bf16.msrb.mxu1 %v7181_v2  ;;  %639 = vmatpush.bf16.msrb.mxu3 %v7221_v3  ;;  %v7315_v3 = vor.u32 %v9258_v62, %v7312_v63  ;;  %v9265_v62 = vld [vmem:[#allocation2 + $0xa4] sm:$0xf0]  ;;  %v7262_v24 = vld [vmem:[#allocation2 + $0x10] sm:$0xf]  ;;  %vm211_vm3 = vmand %vm207_vm14, %vm209_vm15 }
  0x5c   :  { %648 = vmatpush.bf16.msrb.mxu0 %v7201_v4  ;;  %665 = vmatpush.bf16.msrb.mxu2 %v7241_v8  ;;  %v9257_v4 = vld [vmem:[#allocation2 + $0x64] sm:$0xf0]  ;;  %v7304_v8 = vld [vmem:[#allocation2 + $0x68] sm:$0xf0]  ;;  %vm10701_vm4 = vmpackc.low %vm10106_vm5, %vm203_vm2 }
  0x5d   :  { %v7303_v7 = vor.u32 %v9257_v4, %v7302_v0  ;;  %v7307_v11 = vor.u32 %v9256_v5, %v7304_v8  ;;  %vm10706_vm7 = vmpackc.low %vm10106_vm5, %vm211_vm3  ;;  %vm1027_vm5 = vcmask 130048   ;;  %vm2323_vm3 = vcmask 1044480  }
  0x5e   :  { %7250 = vmatmul.msk.bf16.vlgmr.msrb.gmra.mxu3 %vm389_vm1, %v10414_v19 }
  0x5f   :  { %623 = vmatpush.bf16.msrb.mxu1 %v7173_v12  ;;  %836 = vmatpush.bf16.msra.mxu3 %v7311_v61  ;;  %v7294_v12 = vld [vmem:[#allocation2 + $0x50] sm:$0xf]  ;;  %v7334_v61 = vld [vmem:[#allocation2 + $0xa0] sm:$0xf] }
  0x60   :  { %649 = vmatpush.bf16.msrb.mxu0 %v7193_v13  ;;  %666 = vmatpush.bf16.msrb.mxu2 %v7233_v17  ;;  %v9255_v13 = vld [vmem:[#allocation2 + $0x54] sm:$0xf0]  ;;  %v7335_v39 = vor.u32 %v9265_v62, %v7334_v61  ;;  %v7336_v62 = vld [vmem:[#allocation2 + $0xa8] sm:$0xf0] }
  0x61   :  { %v7295_v20 = vor.u32 %v9255_v13, %v7294_v12 }
  0x63   :  { %624 = vmatpush.bf16.msrb.mxu1 %v7165_v22  ;;  %837 = vmatpush.bf16.msra.mxu3 %v7303_v7 }
  0x64   :  { %650 = vmatpush.bf16.msrb.mxu0 %v7185_v23  ;;  %667 = vmatpush.bf16.msrb.mxu2 %v7225_v26  ;;  %v7299_v23 = vor.u32 %v9254_v15, %v7296_v16 }
  0x67   :  { %625 = vmatpush.bf16.msrb.mxu1 %v7157_v29  ;;  %7251 = vmatmul.msk.bf16.vlgmr.msrb.gmra.mxu2 %vm389_vm1, %v10414_v19  ;;  %v778_v29 = vunpack.c.l.b16 %v698_v25 }
  0x68   :  { %651 = vmatpush.bf16.msrb.mxu0 %v7177_v30  ;;  %864 = vmatpush.bf16.msra.mxu2 %v7315_v3  ;;  %v779_v30 = vunpack.c.h.b16 %v698_v25  ;;  %v9247_v25 = vld [vmem:[#allocation2 + $0x14] sm:$0xf0] }
  0x69   :  { %838 = vmatpush.bf16.msra.mxu3 %v7295_v20  ;;  %v804_v41 = vpack.c.b16 %v778_v29, %v778_v29  ;;  %v7264_v29 = vld [vmem:[#allocation2 + $0x18] sm:$0xf0] }
  0x6a   :  { %626 = vmatmul.bf16.vlgmr.msrb.gmra.mxu1 %v10478_v50 }
  0x6c   :  { %652 = vmatpush.bf16.msrb.mxu0 %v7169_v33  ;;  %865 = vmatpush.bf16.msra.mxu2 %v7307_v11  ;;  %v7278_v33 = vld [vmem:[#allocation2 + $0x30] sm:$0xf] }
  0x6d   :  { %839 = vmatpush.bf16.msra.mxu3 %v7287_v37  ;;  %v7279_v63 = vor.u32 %v9251_v34, %v7278_v33  ;;  %v7263_v37 = vor.u32 %v9247_v25, %v7262_v24 }
  0x70   :  { %653 = vmatpush.bf16.msrb.mxu0 %v7161_v36  ;;  %866 = vmatpush.bf16.msra.mxu2 %v7299_v23 }
  0x71   :  { %840 = vmatpush.bf16.msra.mxu3 %v7279_v63 }
  0x73   :  { %654 = vmatmul.bf16.vlgmr.msrb.gmra.mxu0 %v10478_v50 }
  0xc7   :  { %v423_v47 = vpop.f32.mrf.mxu1 }
  0xcd   :  { %v451_v45 = vpop.f32.mrf.mxu3 }
  0xcf   :  { %v425_v1 = vpop.f32.mrf.mxu1 }
  0xd2   :  { %v409_v44 = vpop.f32.mrf.mxu0 }
  0xd3   :  { %v410_v46 = vadd.f32 %v409_v44, %v260_v43  ;;  %v9267_v44 = vld [vmem:[#allocation2 + $0xb4] sm:$0xf0] }
  0xd4   :  { %v7343_v59 = vor.u32 %v9267_v44, %v7342_v35 }
  0xd5   :  { %v424_v48 = vadd.f32 %v423_v47, %v410_v46  ;;  %v453_v57 = vpop.f32.mrf.mxu3  ;;  %v7344_v46 = vld [vmem:[#allocation2 + $0xb8] sm:$0xf0] }
  0xd7   :  { %v892_v55 = vmul.f32 0.15811388, %v424_v48  ;;  %v7291_v48 = vor.u32 %v9252_v27, %v7288_v28  ;;  %v9246_v28 = vld [vmem:[#allocation2 + $0x14] sm:$0xf] }
  0xd8   :  { %v437_v51 = vpop.f32.mrf.mxu2 }
  0xd9   :  { %v438_v52 = vadd.f32 %v437_v51, %v261_v49  ;;  %v7280_v51 = vld [vmem:[#allocation2 + $0x38] sm:$0xf0]  ;;  %867 = vmatpush.bf16.msra.mxu2 %v7291_v48  ;;  %v9245_v48 = vld [vmem:[#allocation2 + $0x4] sm:$0xf0] }
  0xda   :  { %v411_v54 = vpop.f32.mrf.mxu0 }
  0xdb   :  { %v452_v53 = vadd.f32 %v451_v45, %v438_v52  ;;  %v412_v60 = vadd.f32 %v411_v54, %v260_v43  ;;  %v805_v43 = vpack.c.b16 %v779_v30, %v779_v30  ;;  %v9266_v45 = vld [vmem:[#allocation2 + $0xb4] sm:$0xf]  ;;  %v7270_v52 = vld [vmem:[#allocation2 + $0x20] sm:$0xf]  ;;  %v9249_v54 = vld [vmem:[#allocation2 + $0x24] sm:$0xf0] }
  0xdc   :  { %v7271_v7 = vor.u32 %v9249_v54, %v7270_v52 }
  0xdd   :  { %v893_v56 = vmul.f32 0.15811388, %v452_v53  ;;  %v426_v14 = vadd.f32 %v425_v1, %v412_v60  ;;  %v7347_v60 = vor.u32 %v9266_v45, %v7344_v46  ;;  %v484_v1 = vperm.slane %v10608_v10, 1  ;;  %v7254_v46 = vld [vmem:[#allocation2] sm:$0xf] }
  0xde   :  { %841 = vmatpush.bf16.msra.mxu3 %v7271_v7  ;;  %v7267_v45 = vor.u32 %v9246_v28, %v7264_v29  ;;  %v7328_v7 = vld [vmem:[#allocation2 + $0x98] sm:$0xf0] }
  0xdf   :  { %v10603_v2 = vpack.c.bf16 %v893_v56, %v892_v55  ;;  %v894_v26 = vmul.f32 0.15811388, %v426_v14  ;;  %v831_v55 = vsel %vm393_vm0, %v804_v41, 0  ;;  %v9248_v56 = vld [vmem:[#allocation2 + $0x24] sm:$0xf] }
  0xe0   :  { %v439_v6 = vpop.f32.mrf.mxu2  ;;  %853 = vmatpush.bf16.msra.mxu1 %v831_v55  ;;  %v7275_v8 = vor.u32 %v9248_v56, %v7272_v58  ;;  %v7255_v55 = vor.u32 %v9245_v48, %v7254_v46  ;;  %v9244_v58 = vld [vmem:[#allocation2 + $0x4] sm:$0xf] }
  0xe1   :  { %v440_v9 = vadd.f32 %v439_v6, %v261_v49  ;;  %v641_v31 = vpop.f32.mrf.mxu3  ;;  %v9250_v49 = vld [vmem:[#allocation2 + $0x34] sm:$0xf]  ;;  %v1212_v4 = vsel %vm10589_vm6, %v10603_v2, 0  ;;  %v1329_v13 = vsel %vm10623_vm13, %v10603_v2, 0  ;;  %v1446_v21 = vsel %vm10599_vm10, %v10603_v2, 0 }
  0xe2   :  { %v7283_v3 = vor.u32 %v9250_v49, %v7280_v51  ;;  %v1217_v11 = vunpack.c.h.b16 %v1212_v4  ;;  %v1333_v35 = vunpack.c.l.b16 %v1329_v13  ;;  %842 = vmatpush.bf16.msra.mxu3 %v7263_v37 }
  0xe3   :  { %v454_v17 = vadd.f32 %v453_v57, %v440_v9  ;;  %v834_v57 = vsel %vm393_vm0, %v805_v43, 0  ;;  %v1450_v43 = vunpack.c.l.b16 %v1446_v21 }
  0xe4   :  { %881 = vmatpush.bf16.msra.mxu0 %v834_v57  ;;  %854 = vmatpush.bf16.msra.mxu1 %v7343_v59  ;;  %v7256_v59 = vld [vmem:[#allocation2 + $0x8] sm:$0xf0] }
  0xe5   :  { %v895_v22 = vmul.f32 0.15811388, %v454_v17  ;;  %v1334_v17 = vunpack.c.h.b16 %v1329_v13  ;;  %868 = vmatpush.bf16.msra.mxu2 %v7283_v3  ;;  %v7259_v61 = vor.u32 %v9244_v58, %v7256_v59  ;;  %v7326_v3 = vld [vmem:[#allocation2 + $0x90] sm:$0xf] }
  0xe6   :  { %843 = vmatpush.bf16.msra.mxu3 %v7255_v55 }
  0xe7   :  { %v627_v32 = vpop.f32.mrf.mxu1  ;;  %v10615_v47 = vpack.c.bf16 %v895_v22, %v894_v26 }
  0xe8   :  { %v628_v36 = vadd.f32 %v627_v32, %v483_v18  ;;  %882 = vmatpush.bf16.msra.mxu0 %v7347_v60  ;;  %v1216_v32 = vunpack.c.l.b16 %v1212_v4  ;;  %855 = vmatpush.bf16.msra.mxu1 %v7335_v39  ;;  %v9264_v60 = vld [vmem:[#allocation2 + $0xa4] sm:$0xf]  ;;  %v9263_v4 = vld [vmem:[#allocation2 + $0x94] sm:$0xf0] }
  0xe9   :  { %v1213_v5 = vsel %vm10589_vm6, %v10615_v47, 0  ;;  %v1330_v14 = vsel %vm10623_vm13, %v10615_v47, 0  ;;  %v643_v22 = vpop.f32.mrf.mxu3  ;;  %v1447_v10 = vsel %vm10599_vm10, %v10615_v47, 0  ;;  %869 = vmatpush.bf16.msra.mxu2 %v7275_v8  ;;  %844 = vmatmul.bf16.vlgmr.msra.gmra.mxu3 %v10478_v50  ;;  %v7339_v63 = vor.u32 %v9264_v60, %v7336_v62  ;;  %v9261_v8 = vld [vmem:[#allocation2 + $0x84] sm:$0xf0] }
  0xea   :  { %v642_v53 = vadd.f32 %v641_v31, %v628_v36  ;;  %v669_v6 = vpop.f32.mrf.mxu2  ;;  %v1219_v12 = vunpack.c.h.b16 %v1213_v5  ;;  %v1336_v20 = vunpack.c.h.b16 %v1330_v14  ;;  %v1453_v31 = vunpack.c.h.b16 %v1447_v10 }
  0xeb   :  { %v1218_v34 = vunpack.c.l.b16 %v1213_v5  ;;  %v1335_v36 = vunpack.c.l.b16 %v1330_v14  ;;  %v1452_v44 = vunpack.c.l.b16 %v1447_v10  ;;  %v9262_v5 = vld [vmem:[#allocation2 + $0x94] sm:$0xf]  ;;  %v10715_v38 = vsel %vm10701_vm4, %v10615_v47, 0 }
  0xec   :  { %898 = vxpose.xlu0.b32.start [1/2] (short) %v642_v53, 128  ;;  %v10645_v26 = vpack.c.b16 %v1219_v12, %v1217_v11  ;;  %v10650_v30 = vpack.c.b16 %v1336_v20, %v1334_v17  ;;  %883 = vmatpush.bf16.msra.mxu0 %v7339_v63  ;;  %v7331_v39 = vor.u32 %v9262_v5, %v7328_v7  ;;  %v9260_v11 = vld [vmem:[#allocation2 + $0x84] sm:$0xf]  ;;  %v7320_v12 = vld [vmem:[#allocation2 + $0x88] sm:$0xf0]  ;;  %v989_v58 = vunpack.c.h.b16 %v10715_v38 }
  0xed   :  { %v10654_v49 = vpack.c.b16 %v1218_v34, %v1216_v32  ;;  %v10656_v51 = vpack.c.b16 %v1335_v36, %v1333_v35  ;;  %v10658_v52 = vpack.c.b16 %v1452_v44, %v1450_v43  ;;  %870 = vmatpush.bf16.msra.mxu2 %v7267_v45  ;;  %v7323_v13 = vor.u32 %v9260_v11, %v7320_v12 }
  0xef   :  { %v629_v9 = vpop.f32.mrf.mxu1 }
  0xf0   :  { %v630_v15 = vadd.f32 %v629_v9, %v483_v18  ;;  %v655_v16 = vpop.f32.mrf.mxu0  ;;  %v1451_v18 = vunpack.c.h.b16 %v1446_v21  ;;  %884 = vmatpush.bf16.msra.mxu0 %v7331_v39  ;;  %v699_v39 = vld [vmem:[%s13302_s7] sm:$0x3] }
  0xf1   :  { %v656_v23 = vadd.f32 %v655_v16, %v484_v1  ;;  %871 = vmatpush.bf16.msra.mxu2 %v7259_v61  ;;  %v701_v11 = vperm.slane %v699_v39, 0  ;;  %v702_v12 = vperm.slane %v699_v39, 1 }
  0xf2   :  { %v644_v27 = vadd.f32 %v643_v22, %v630_v15  ;;  %v10652_v41 = vpack.c.b16 %v1453_v31, %v1451_v18  ;;  %v671_v54 = vpop.f32.mrf.mxu2 }
  0xf3   :  { %v670_v33 = vadd.f32 %v669_v6, %v656_v23  ;;  %v7327_v6 = vor.u32 %v9263_v4, %v7326_v3 }
  0xf4   :  { %899 = vxpose.xlu0.b32.end [2/2] (short) %v644_v27, 128  ;;  %872 = vmatmul.bf16.vlgmr.msra.gmra.mxu2 %v10478_v50 }
  0xf5   :  { %930 = vxpose.xlu1.b32.start [1/2] (short) (narrow) %v670_v33, 72  ;;  %856 = vmatpush.bf16.msra.mxu1 %v7327_v6 }
  0xf6   :  { %885 = vmatpush.bf16.msra.mxu0 %v7323_v13 }
  0xf8   :  { %v657_v53 = vpop.f32.mrf.mxu0 }
  0xf9   :  { %v658_v56 = vadd.f32 %v657_v53, %v484_v1  ;;  %v7318_v1 = vld [vmem:[#allocation2 + $0x80] sm:$0xf]  ;;  %7349 = vmatmul.msk.bf16.vlgmr.msra.gmra.mxu0 %vm389_vm1, %v10414_v19 }
  0xfa   :  { %v7319_v9 = vor.u32 %v9261_v8, %v7318_v1 }
  0xfb   :  { %v672_v57 = vadd.f32 %v671_v54, %v658_v56  ;;  %v10720_v54 = vsel %vm10706_vm7, %v10615_v47, 0  ;;  %v10727_v56 = vsel %vm10701_vm4, %v10603_v2, 0 }
  0xfc   :  { %857 = vmatpush.bf16.msra.mxu1 %v7319_v9  ;;  %v1065_v47 = vunpack.c.h.b16 %v10720_v54  ;;  %v987_v59 = vunpack.c.h.b16 %v10727_v56 }
  0xfd   :  { %931 = vxpose.xlu1.b32.end [2/2] (short) (narrow) %v672_v57, 72  ;;  %v10732_v57 = vsel %vm10706_vm7, %v10603_v2, 0 }
  0xfe   :  { %v1063_v60 = vunpack.c.h.b16 %v10732_v57  ;;  %v991_v61 = vpack.c.b16 %v989_v58, %v987_v59  ;;  %v988_v59 = vunpack.c.l.b16 %v10715_v38 }
  0xff   :  { %7348 = vmatmul.msk.bf16.vlgmr.msra.gmra.mxu1 %vm389_vm1, %v10414_v19 }
 0x100   :  { %v1067_v62 = vpack.c.b16 %v1065_v47, %v1063_v60  ;;  %v1064_v60 = vunpack.c.l.b16 %v10720_v54 }
 0x16c   :  { %v845_v4 = vpop.f32.mrf.mxu3 }
 0x174   :  { %v847_v13 = vpop.f32.mrf.mxu3 }
 0x176   :  { %v887_v1 = vpop.f32.mrf.mxu0 }
 0x177   :  { %v873_v5 = vpop.f32.mrf.mxu2 }
 0x17c   :  { %v859_v6 = vpop.f32.mrf.mxu1 }
 0x190   :  { %v10666_v14 = vpop.trf.xlu0 }
 0x198   :  { %v10668_v15 = vpop.trf.xlu0 }
 0x199   :  { %v946_v16 = vpop.trf.xlu1 }
 0x1a0   :  { %v10670_v50 = vpop.trf.xlu0 }
 0x1a1   :  { %v947_v17 = vpop.trf.xlu1 }
 0x1a2   :  { %v10672_v20 = vpack.c.bf16 %v947_v17, %v946_v16  ;;  %v875_v16 = vpop.f32.mrf.mxu2 }
 0x1a8   :  { %v10674_v21 = vpop.trf.xlu0 }
 0x1a9   :  { %v948_v22 = vpop.trf.xlu1  ;;  %v10779_v47 = vpack.c.bf16 %v10674_v21, %v10670_v50 }
 0x1b0   :  { %v918_v23 = vpop.trf.xlu0 }
 0x1b1   :  { %v949_v24 = vpop.trf.xlu1 }
 0x1b2   :  { %v10710_v53 = vpack.c.bf16 %v949_v24, %v948_v22  ;;  %v846_v22 = vadd.f32 %v845_v4, %v701_v11  ;;  %v848_v24 = vadd.f32 %v847_v13, %v701_v11 }
 0x1b8   :  { %v919_v25 = vpop.trf.xlu0 }
 0x1b9   :  { %v10676_v10 = vpack.c.bf16 %v919_v25, %v918_v23  ;;  %v950_v18 = vpop.trf.xlu1  ;;  %v874_v23 = vadd.f32 %v873_v5, %v702_v12  ;;  %v876_v25 = vadd.f32 %v875_v16, %v702_v12 }
 0x1c0   :  { %v920_v19 = vpop.trf.xlu0 }
 0x1c1   :  { %v951_v27 = vpop.trf.xlu1 }
 0x1c2   :  { %v10693_v45 = vpack.c.bf16 %v951_v27, %v950_v18  ;;  %v861_v18 = vpop.f32.mrf.mxu1 }
 0x1c8   :  { %v921_v28 = vpop.trf.xlu0 }
 0x1c9   :  { %v10678_v29 = vpack.c.bf16 %v921_v28, %v920_v19  ;;  %v952_v31 = vpop.trf.xlu1  ;;  %v889_v19 = vpop.f32.mrf.mxu0  ;;  %v860_v28 = vadd.f32 %v859_v6, %v846_v22 }
 0x1d0   :  { %v10680_v32 = vpop.trf.xlu0 }
 0x1d1   :  { %v953_v33 = vpop.trf.xlu1 }
 0x1d2   :  { %v10687_v43 = vpack.c.bf16 %v953_v33, %v952_v31  ;;  %v888_v31 = vadd.f32 %v887_v1, %v874_v23  ;;  %v862_v33 = vadd.f32 %v861_v18, %v848_v24  ;;  %v10865_v18 = vld [vmem:[%s13340_s22] sm:$0xff] }
 0x1d8   :  { %v10682_v34 = vpop.trf.xlu0 }
 0x1d9   :  { %v954_v35 = vpop.trf.xlu1  ;;  %v10759_v27 = vpack.c.bf16 %v10682_v34, %v10680_v32 }
 0x1da   :  { %v974_v36 = vpack.c.bf16 %v954_v35, %v954_v35  ;;  %v890_v35 = vadd.f32 %v889_v19, %v876_v25 }
 0x1dc   :  { %v10685_v37 = vsel %vm393_vm0, %v974_v36, 0  ;;  %v10763_v36 = vpack.c.bf16 %v888_v31, %v860_v28 }
 0x1dd   :  { %1016 = vmatpush.bf16.msrb.mxu3 %v10685_v37  ;;  %1089 = vmatpush.bf16.msrb.mxu2 %v10685_v37 }
 0x1de   :  { %v1122_v32 = vsel %vm10706_vm7, %v10763_v36, 0  ;;  %v10847_v39 = vsel %vm10599_vm10, %v10763_v36, 0 }
 0x1df   :  { %v1516_v23 = vunpack.c.h.b16 %v10847_v39 }
 0x1e0   :  { %v924_v44 = vpop.trf.xlu0 }
 0x1e1   :  { %1017 = vmatpush.bf16.msrb.mxu3 %v10687_v43  ;;  %1090 = vmatpush.bf16.msrb.mxu2 %v10687_v43 }
 0x1e5   :  { %1018 = vmatpush.bf16.msrb.mxu3 %v10693_v45  ;;  %1091 = vmatpush.bf16.msrb.mxu2 %v10693_v45 }
 0x1e8   :  { %v925_v55 = vpop.trf.xlu0 }
 0x1e9   :  { %1019 = vmatpush.bf16.msrb.mxu3 %v10710_v53  ;;  %1092 = vmatpush.bf16.msrb.mxu2 %v10710_v53  ;;  %v10753_v17 = vpack.c.bf16 %v925_v55, %v924_v44  ;;  %v10765_v44 = vpack.c.bf16 %v890_v35, %v862_v33  ;;  %v1128_v55 = vunpack.c.h.b16 %v1122_v32 }
 0x1eb   :  { %v1123_v34 = vsel %vm10706_vm7, %v10765_v44, 0  ;;  %v10842_v6 = vsel %vm10623_vm13, %v10765_v44, 0  ;;  %v10852_v11 = vsel %vm10599_vm10, %v10765_v44, 0 }
 0x1ec   :  { %v1130_v58 = vunpack.c.h.b16 %v1123_v34  ;;  %v1400_v13 = vunpack.c.l.b16 %v10842_v6  ;;  %v1518_v24 = vunpack.c.h.b16 %v10852_v11 }
 0x1ed   :  { %1020 = vmatpush.bf16.msrb.mxu3 %v10672_v20  ;;  %1093 = vmatpush.bf16.msrb.mxu2 %v10672_v20 }
 0x1ee   :  { %v10860_v25 = vpack.c.b16 %v1518_v24, %v1516_v23 }
 0x1f0   :  { %v926_v63 = vpop.trf.xlu0  ;;  %7350 = vmatmul.msk.bf16.vlgmr.msrb.gmra.mxu3 %vm389_vm1, %v991_v61  ;;  %7351 = vmatmul.msk.bf16.vlgmr.msrb.gmra.mxu2 %vm389_vm1, %v1067_v62  ;;  %v1132_v61 = vpack.c.b16 %v1130_v58, %v1128_v55  ;;  %v10787_v62 = vpack.c.bf16 %v10668_v15, %v10666_v14  ;;  %v1129_v14 = vunpack.c.l.b16 %v1123_v34  ;;  %v1050_v15 = vsel %vm10701_vm4, %v10763_v36, 0 }
 0x1f1   :  { %v1168_v38 = vunpack.c.l.b16 %v1050_v15  ;;  %v1169_v54 = vunpack.c.h.b16 %v1050_v15 }
 0x1f8   :  { %v927_v2 = vpop.trf.xlu0 }
 0x1f9   :  { %v10749_v9 = vpack.c.bf16 %v927_v2, %v926_v63  ;;  %v986_v63 = vunpack.c.l.b16 %v10727_v56  ;;  %v1062_v2 = vunpack.c.l.b16 %v10732_v57 }
 0x1fb   :  { %v990_v50 = vpack.c.b16 %v988_v59, %v986_v63  ;;  %v1066_v21 = vpack.c.b16 %v1064_v60, %v1062_v2 }
 0x200   :  { %v928_v3 = vpop.trf.xlu0 }
 0x208   :  { %v929_v7 = vpop.trf.xlu0 }
 0x209   :  { %v10742_v8 = vpack.c.bf16 %v929_v7, %v928_v3 }
 0x20b   :  { %999 = vmatpush.bf16.msrb.mxu1 %v10742_v8  ;;  %1072 = vmatpush.bf16.msrb.mxu0 %v10742_v8 }
 0x20f   :  { %1000 = vmatpush.bf16.msrb.mxu1 %v10749_v9  ;;  %1073 = vmatpush.bf16.msrb.mxu0 %v10749_v9 }
 0x213   :  { %1001 = vmatpush.bf16.msrb.mxu1 %v10753_v17  ;;  %1074 = vmatpush.bf16.msrb.mxu0 %v10753_v17 }
 0x217   :  { %1002 = vmatpush.bf16.msrb.mxu1 %v10759_v27  ;;  %1075 = vmatpush.bf16.msrb.mxu0 %v10759_v27 }
 0x21b   :  { %1003 = vmatpush.bf16.msrb.mxu1 %v10678_v29  ;;  %1076 = vmatpush.bf16.msrb.mxu0 %v10678_v29 }
 0x21f   :  { %1004 = vmatpush.bf16.msrb.mxu1 %v10676_v10  ;;  %1077 = vmatpush.bf16.msrb.mxu0 %v10676_v10 }
 0x223   :  { %1005 = vmatpush.bf16.msrb.mxu1 %v10779_v47  ;;  %1078 = vmatpush.bf16.msrb.mxu0 %v10779_v47 }
 0x227   :  { %1006 = vmatpush.bf16.msrb.mxu1 %v10787_v62  ;;  %1079 = vmatpush.bf16.msrb.mxu0 %v10787_v62 }
 0x22a   :  { %1007 = vmatmul.bf16.vlgmr.msrb.gmra.mxu1 %v990_v50  ;;  %1080 = vmatmul.bf16.vlgmr.msrb.gmra.mxu0 %v1066_v21 }
 0x22b   :  { %1243 = vmatpush.bf16.msra.mxu1 %v10685_v37  ;;  %1159 = vmatpush.bf16.msra.mxu0 %v1132_v61 }
 0x22f   :  { %1226 = vmatpush.bf16.msrb.mxu0 %v10742_v8  ;;  %1244 = vmatpush.bf16.msra.mxu1 %v10687_v43 }
 0x233   :  { %1227 = vmatpush.bf16.msrb.mxu0 %v10749_v9  ;;  %1245 = vmatpush.bf16.msra.mxu1 %v10693_v45 }
 0x237   :  { %1228 = vmatpush.bf16.msrb.mxu0 %v10753_v17  ;;  %1246 = vmatpush.bf16.msra.mxu1 %v10710_v53 }
 0x23b   :  { %1229 = vmatpush.bf16.msrb.mxu0 %v10759_v27  ;;  %1247 = vmatpush.bf16.msra.mxu1 %v10672_v20 }
 0x23e   :  { %7356 = vmatmul.msk.bf16.vlgmr.msra.gmra.mxu1 %vm389_vm1, %v10645_v26  ;;  %v1127_v26 = vunpack.c.l.b16 %v1122_v32 }
 0x23f   :  { %1360 = vmatpush.bf16.msrb.mxu1 %v10685_v37  ;;  %1230 = vmatpush.bf16.msrb.mxu0 %v10678_v29 }
 0x243   :  { %1361 = vmatpush.bf16.msrb.mxu1 %v10687_v43  ;;  %1231 = vmatpush.bf16.msrb.mxu0 %v10676_v10 }
 0x247   :  { %1362 = vmatpush.bf16.msrb.mxu1 %v10693_v45  ;;  %1232 = vmatpush.bf16.msrb.mxu0 %v10779_v47 }
 0x24b   :  { %1363 = vmatpush.bf16.msrb.mxu1 %v10710_v53  ;;  %1233 = vmatpush.bf16.msrb.mxu0 %v10787_v62 }
 0x24f   :  { %1364 = vmatpush.bf16.msrb.mxu1 %v10672_v20 }
 0x252   :  { %7359 = vmatmul.msk.bf16.vlgmr.msrb.gmra.mxu1 %vm389_vm1, %v10650_v30 }
 0x253   :  { %1477 = vmatpush.bf16.msra.mxu1 %v10685_v37  ;;  %v1051_v37 = vsel %vm10701_vm4, %v10765_v44, 0 }
 0x254   :  { %v1170_v30 = vunpack.c.l.b16 %v1051_v37 }
 0x256   :  { %v1172_v56 = vpack.c.b16 %v1170_v30, %v1168_v38 }
 0x257   :  { %1478 = vmatpush.bf16.msra.mxu1 %v10687_v43  ;;  %v1171_v43 = vunpack.c.h.b16 %v1051_v37 }
 0x258   :  { %1186 = vmatpush.bf16.msra.mxu2 %v1172_v56 }
 0x259   :  { %v1173_v57 = vpack.c.b16 %v1171_v43, %v1169_v54 }
 0x25b   :  { %1479 = vmatpush.bf16.msra.mxu1 %v10693_v45  ;;  %v1131_v45 = vpack.c.b16 %v1129_v14, %v1127_v26 }
 0x25d   :  { %1145 = vmatpush.bf16.msra.mxu3 %v1131_v45 }
 0x25f   :  { %1480 = vmatpush.bf16.msra.mxu1 %v10710_v53  ;;  %v1277_v53 = vsel %vm10589_vm6, %v10765_v44, 0 }
 0x260   :  { %v1283_v4 = vunpack.c.l.b16 %v1277_v53  ;;  %v1284_v1 = vunpack.c.h.b16 %v1277_v53 }
 0x261   :  { %1200 = vmatpush.bf16.msrb.mxu3 %v1173_v57 }
 0x263   :  { %1481 = vmatpush.bf16.msra.mxu1 %v10672_v20  ;;  %v1276_v20 = vsel %vm10589_vm6, %v10763_v36, 0 }
 0x264   :  { %v1281_v3 = vunpack.c.l.b16 %v1276_v20  ;;  %v1282_v7 = vunpack.c.h.b16 %v1276_v20 }
 0x266   :  { %7362 = vmatmul.msk.bf16.vlgmr.msra.gmra.mxu1 %vm389_vm1, %v10652_v41  ;;  %v1285_v5 = vpack.c.b16 %v1283_v4, %v1281_v3  ;;  %v10837_v41 = vsel %vm10623_vm13, %v10763_v36, 0  ;;  %v1286_v16 = vpack.c.b16 %v1284_v1, %v1282_v7  ;;  %v10872_v36 = vld [vmem:[%s13340_s22 + $0x8] sm:$0xff] }
 0x267   :  { %v1398_v12 = vunpack.c.l.b16 %v10837_v41  ;;  %v1399_v1 = vunpack.c.h.b16 %v10837_v41 }
 0x268   :  { %1299 = vmatpush.bf16.msrb.mxu2 %v1285_v5 }
 0x269   :  { %v10856_v22 = vpack.c.b16 %v1400_v13, %v1398_v12  ;;  %v1401_v12 = vunpack.c.h.b16 %v10842_v6 }
 0x273   :  { %v1095_v19 = vpop.f32.mrf.mxu2  ;;  %v1022_v61 = vpop.f32.mrf.mxu3 }
 0x27b   :  { %v1097_v55 = vpop.f32.mrf.mxu2  ;;  %v1024_v26 = vpop.f32.mrf.mxu3 }
 0x2a7   :  { %v1081_v28 = vpop.f32.mrf.mxu0  ;;  %v1008_v44 = vpop.f32.mrf.mxu1 }
 0x2a8   :  { %v1082_v31 = vadd.f32 %v1081_v28, %v10865_v18  ;;  %v1009_v59 = vadd.f32 %v1008_v44, %v10865_v18  ;;  %v1515_v28 = vunpack.c.l.b16 %v10847_v39 }
 0x2aa   :  { %v1096_v33 = vadd.f32 %v1095_v19, %v1082_v31  ;;  %v1023_v63 = vadd.f32 %v1022_v61, %v1009_v59  ;;  %v1403_v19 = vpack.c.b16 %v1401_v12, %v1399_v1  ;;  %v1517_v31 = vunpack.c.l.b16 %v10852_v11 }
 0x2ac   :  { %v1100_v35 = vsel %vm1027_vm5, %v1096_v33, -inf  ;;  %v1028_v21 = vsel %vm1027_vm5, %v1023_v63, -inf }
 0x2ad   :  { %1101 = vmax.xlane.f32.xlu2 %v1100_v35 }
 0x2af   :  { %v1083_v32 = vpop.f32.mrf.mxu0  ;;  %v1010_v2 = vpop.f32.mrf.mxu1 }
 0x2b0   :  { %v1084_v34 = vadd.f32 %v1083_v32, %v10872_v36  ;;  %v1011_v50 = vadd.f32 %v1010_v2, %v10872_v36 }
 0x2b2   :  { %v1098_v58 = vadd.f32 %v1097_v55, %v1084_v34  ;;  %v1025_v14 = vadd.f32 %v1024_v26, %v1011_v50 }
 0x2b4   :  { %v1103_v60 = vsel %vm1027_vm5, %v1098_v58, -inf  ;;  %v1031_v15 = vsel %vm1027_vm5, %v1025_v14, -inf }
 0x2b5   :  { %1104 = vmax.xlane.f32.xlu2 %v1103_v60 }
 0x2bb   :  { %v1249_v44 = vpop.f32.mrf.mxu1 }
 0x2bd   :  { %1029 = vmax.xlane.f32.xlu2 %v1028_v21 }
 0x2c3   :  { %v1251_v60 = vpop.f32.mrf.mxu1 }
 0x2c5   :  { %1032 = vmax.xlane.f32.xlu2 %v1031_v15 }
 0x320   :  { %v1102_v37 = vpop.xlane.xlu2 %1101 }
 0x321   :  { %v1106_v38 = vsub.f32 %v1096_v33, %v1102_v37  ;;  %v1519_v33 = vpack.c.b16 %v1517_v31, %v1515_v28 }
 0x323   :  { %v1108_v30 = vmul.f32 1.442695, %v1106_v38 }
 0x325   :  { %9688 = vpow2.f32 %v1108_v30 }
 0x328   :  { %v1105_v54 = vpop.xlane.xlu2 %1104 }
 0x329   :  { %v1107_v43 = vsub.f32 %v1098_v58, %v1105_v54 }
 0x32b   :  { %v9689_v45 = vpop.eup %9688  ;;  %v1110_v20 = vmul.f32 1.442695, %v1107_v43 }
 0x32c   :  { %v1112_v53 = vsel %vm1027_vm5, %v9689_v45, 0.0 }
 0x32d   :  { %9690 = vpow2.f32 %v1110_v20  ;;  %1113 = vadd.xlane.f32.xlu0 %v1112_v53 }
 0x330   :  { %v1030_v35 = vpop.xlane.xlu2 %1029 }
 0x333   :  { %v9691_v56 = vpop.eup %9690 }
 0x334   :  { %v1115_v57 = vsel %vm1027_vm5, %v9691_v56, 0.0 }
 0x335   :  { %1116 = vadd.xlane.f32.xlu1 %v1115_v57 }
 0x338   :  { %v1033_v59 = vpop.xlane.xlu2 %1032 }
 0x339   :  { %v1035_v2 = vsub.f32 %v1025_v14, %v1033_v59 }
 0x33b   :  { %v1038_v21 = vmul.f32 1.442695, %v1035_v2 }
 0x3a0   :  { %v1114_v3 = vpop.xlane.xlu0 %1113 }
 0x3a1   :  { %9692 = vrcp.f32 %v1114_v3 }
 0x3a7   :  { %v9693_v5 = vpop.eup %9692 }
 0x3a8   :  { %v1117_v4 = vpop.xlane.xlu1 %1116  ;;  %v1120_v13 = vmul.f32 %v9693_v5, %v9689_v45 }
 0x3a9   :  { %9694 = vrcp.f32 %v1117_v4 }
 0x3af   :  { %v9695_v7 = vpop.eup %9694 }
 0x3b0   :  { %v1121_v23 = vmul.f32 %v9695_v7, %v9691_v56 }
 0x3b2   :  { %v1124_v24 = vpack.c.bf16 %v1121_v23, %v1120_v13 }
 0x3b4   :  { %7352 = vmatmul.msk.bf16.vlgmr.msra.gmra.mxu3 %vm1027_vm5, %v1124_v24  ;;  %7353 = vmatmul.msk.bf16.vlgmr.msra.gmra.mxu0 %vm1027_vm5, %v1124_v24 }
 0x3b5   :  { %1313 = vmatpush.bf16.msra.mxu3 %v1286_v16  ;;  %1430 = vmatpush.bf16.msra.mxu0 %v1403_v19  ;;  %v1034_v16 = vsub.f32 %v1023_v63, %v1030_v35 }
 0x3b7   :  { %v1036_v39 = vmul.f32 1.442695, %v1034_v16 }
 0x3b9   :  { %9696 = vpow2.f32 %v1036_v39 }
 0x3ba   :  { %9698 = vpow2.f32 %v1038_v21 }
 0x3bf   :  { %v9697_v26 = vpop.eup %9696 }
 0x3c0   :  { %v1040_v63 = vsel %vm1027_vm5, %v9697_v26, 0.0  ;;  %v9699_v15 = vpop.eup %9698 }
 0x3c1   :  { %v1043_v37 = vsel %vm1027_vm5, %v9699_v15, 0.0 }
 0x3c4   :  { %1234 = vmatmul.bf16.vlgmr.msrb.gmra.mxu0 %v10654_v49 }
 0x3c5   :  { %1533 = vmatpush.bf16.msrb.mxu0 %v1519_v33 }
 0x431   :  { %v10889_v41 = vpop.f32.mrf.mxu0 }
 0x437   :  { %v1147_v35 = vpop.f32.mrf.mxu3 }
 0x439   :  { %v10891_v6 = vpop.f32.mrf.mxu0 }
 0x441   :  { %v1235_v32 = vpop.f32.mrf.mxu0 }
 0x442   :  { %v1236_v34 = vadd.f32 %v1235_v32, %v10865_v18 }
 0x444   :  { %v1250_v55 = vadd.f32 %v1249_v44, %v1236_v34 }
 0x446   :  { %v1254_v58 = vsel %vm1027_vm5, %v1250_v55, -inf }
 0x447   :  { %1255 = vmax.xlane.f32.xlu2 %v1254_v58 }
 0x449   :  { %v1237_v11 = vpop.f32.mrf.mxu0 }
 0x44a   :  { %v1238_v49 = vadd.f32 %v1237_v11, %v10872_v36 }
 0x44c   :  { %v1252_v61 = vadd.f32 %v1251_v60, %v1238_v49 }
 0x44e   :  { %v1257_v50 = vsel %vm1027_vm5, %v1252_v61, -inf }
 0x44f   :  { %1258 = vmax.xlane.f32.xlu2 %v1257_v50 }
 0x457   :  { %1041 = vadd.xlane.f32.xlu2 %v1040_v63 }
 0x45f   :  { %1044 = vadd.xlane.f32.xlu2 %v1043_v37 }
 0x4ba   :  { %v1256_v38 = vpop.xlane.xlu2 %1255 }
 0x4bb   :  { %v1260_v30 = vsub.f32 %v1250_v55, %v1256_v38 }
 0x4bd   :  { %v1262_v54 = vmul.f32 1.442695, %v1260_v30 }
 0x4bf   :  { %9700 = vpow2.f32 %v1262_v54 }
 0x4c2   :  { %v1259_v43 = vpop.xlane.xlu2 %1258 }
 0x4c3   :  { %v1261_v45 = vsub.f32 %v1252_v61, %v1259_v43 }
 0x4c5   :  { %v9701_v14 = vpop.eup %9700  ;;  %v1264_v20 = vmul.f32 1.442695, %v1261_v45 }
 0x4c6   :  { %v1266_v53 = vsel %vm1027_vm5, %v9701_v14, 0.0 }
 0x4c7   :  { %9702 = vpow2.f32 %v1264_v20  ;;  %1267 = vadd.xlane.f32.xlu2 %v1266_v53 }
 0x4ca   :  { %v1042_v56 = vpop.xlane.xlu2 %1041 }
 0x4cb   :  { %9704 = vrcp.f32 %v1042_v56 }
 0x4cd   :  { %v9703_v57 = vpop.eup %9702 }
 0x4ce   :  { %v1269_v3 = vsel %vm1027_vm5, %v9703_v57, 0.0 }
 0x4cf   :  { %1270 = vadd.xlane.f32.xlu2 %v1269_v3 }
 0x4d1   :  { %v9705_v5 = vpop.eup %9704 }
 0x4d2   :  { %v1045_v4 = vpop.xlane.xlu2 %1044  ;;  %v1048_v1 = vmul.f32 %v9705_v5, %v9697_v26 }
 0x4d3   :  { %9706 = vrcp.f32 %v1045_v4 }
 0x4d9   :  { %v9707_v7 = vpop.eup %9706 }
 0x4da   :  { %v1049_v12 = vmul.f32 %v9707_v7, %v9699_v15 }
 0x4dc   :  { %v1052_v13 = vpack.c.bf16 %v1049_v12, %v1048_v1 }
 0x4de   :  { %7354 = vmatmul.msk.bf16.vlgmr.msra.gmra.mxu2 %vm1027_vm5, %v1052_v13  ;;  %7355 = vmatmul.msk.bf16.vlgmr.msrb.gmra.mxu3 %vm1027_vm5, %v1052_v13 }
 0x4df   :  { %1343 = vmatpush.bf16.msra.mxu2 %v10742_v8  ;;  %1416 = vmatpush.bf16.msrb.mxu3 %v10856_v22 }
 0x4e3   :  { %1344 = vmatpush.bf16.msra.mxu2 %v10749_v9 }
 0x4e7   :  { %1345 = vmatpush.bf16.msra.mxu2 %v10753_v17 }
 0x4eb   :  { %1346 = vmatpush.bf16.msra.mxu2 %v10759_v27 }
 0x4ef   :  { %1347 = vmatpush.bf16.msra.mxu2 %v10678_v29 }
 0x4f3   :  { %1348 = vmatpush.bf16.msra.mxu2 %v10676_v10 }
 0x4f7   :  { %1349 = vmatpush.bf16.msra.mxu2 %v10779_v47 }
 0x4fb   :  { %1350 = vmatpush.bf16.msra.mxu2 %v10787_v62 }
 0x53a   :  { %v1268_v23 = vpop.xlane.xlu2 %1267 }
 0x53b   :  { %9708 = vrcp.f32 %v1268_v23 }
 0x541   :  { %v9709_v19 = vpop.eup %9708 }
 0x542   :  { %v1271_v24 = vpop.xlane.xlu2 %1270  ;;  %v1274_v28 = vmul.f32 %v9709_v19, %v9701_v14 }
 0x543   :  { %9710 = vrcp.f32 %v1271_v24 }
 0x549   :  { %v9711_v22 = vpop.eup %9710 }
 0x54a   :  { %v1275_v31 = vmul.f32 %v9711_v22, %v9703_v57 }
 0x54c   :  { %v1278_v33 = vpack.c.bf16 %v1275_v31, %v1274_v28 }
 0x54e   :  { %7357 = vmatmul.msk.bf16.vlgmr.msrb.gmra.mxu2 %vm1027_vm5, %v1278_v33  ;;  %7358 = vmatmul.msk.bf16.vlgmr.msra.gmra.mxu3 %vm1027_vm5, %v1278_v33 }
 0x54f   :  { %1460 = vmatpush.bf16.msra.mxu3 %v10742_v8  ;;  %1547 = vmatpush.bf16.msrb.mxu2 %v10860_v25  ;;  %v10924_v8 = vpop.f32.mrf.mxu3 }
 0x553   :  { %1461 = vmatpush.bf16.msra.mxu3 %v10749_v9 }
 0x557   :  { %1462 = vmatpush.bf16.msra.mxu3 %v10753_v17 }
 0x55b   :  { %1463 = vmatpush.bf16.msra.mxu3 %v10759_v27 }
 0x55e   :  { %1351 = vmatmul.bf16.vlgmr.msra.gmra.mxu2 %v10656_v51 }
 0x55f   :  { %1464 = vmatpush.bf16.msra.mxu3 %v10678_v29 }
 0x561   :  { %v1188_v25 = vpop.f32.mrf.mxu2  ;;  %v1202_v44 = vpop.f32.mrf.mxu3 }
 0x562   :  { %v1189_v27 = vadd.f32 %v1188_v25, %v1147_v35  ;;  %v1203_v51 = vadd.f32 %v1202_v44, %v10889_v41 }
 0x563   :  { %1465 = vmatpush.bf16.msra.mxu3 %v10676_v10 }
 0x567   :  { %1466 = vmatpush.bf16.msra.mxu3 %v10779_v47 }
 0x569   :  { %v10926_v9 = vpop.f32.mrf.mxu2  ;;  %v10928_v17 = vpop.f32.mrf.mxu3 }
 0x56b   :  { %1467 = vmatpush.bf16.msra.mxu3 %v10787_v62  ;;  %v1366_v62 = vpop.f32.mrf.mxu1 }
 0x573   :  { %v1368_v49 = vpop.f32.mrf.mxu1 }
 0x57b   :  { %v1483_v7 = vpop.f32.mrf.mxu1 }
 0x583   :  { %v1485_v22 = vpop.f32.mrf.mxu1 }
 0x5d1   :  { %v1301_v32 = vpop.f32.mrf.mxu2  ;;  %v1315_v29 = vpop.f32.mrf.mxu3 }
 0x5d2   :  { %v1320_v34 = vadd.f32 %v1301_v32, %v1189_v27  ;;  %v10931_v10 = vadd.f32 %v1315_v29, %v1203_v51  ;;  %v7423_v29 = vld [vmem:[#allocation5 + $0x70] sm:$0xf] }
 0x5d9   :  { %v10933_v47 = vpop.f32.mrf.mxu2  ;;  %v10944_v57 = vpop.f32.mrf.mxu3 }
 0x5e1   :  { %v1352_v55 = vpop.f32.mrf.mxu2 }
 0x5e2   :  { %v1353_v16 = vadd.f32 %v1352_v55, %v10865_v18 }
 0x5e4   :  { %v1367_v58 = vadd.f32 %v1366_v62, %v1353_v16  ;;  %v9282_v62 = vld [vmem:[#allocation5 + $0x74] sm:$0xf]  ;;  %v7425_v16 = vld [vmem:[#allocation5 + $0x78] sm:$0xf0] }
 0x5e6   :  { %v1371_v39 = vsel %vm1027_vm5, %v1367_v58, -inf }
 0x5e7   :  { %1372 = vmax.xlane.f32.xlu2 %v1371_v39  ;;  %v9281_v39 = vld [vmem:[#allocation5 + $0x64] sm:$0xf0] }
 0x5e9   :  { %v1354_v11 = vpop.f32.mrf.mxu2 }
 0x5ea   :  { %v1355_v59 = vadd.f32 %v1354_v11, %v10872_v36  ;;  %v7428_v11 = vor.u32 %v9282_v62, %v7425_v16 }
 0x5ec   :  { %v1369_v41 = vadd.f32 %v1368_v49, %v1355_v59  ;;  %v9280_v59 = vld [vmem:[#allocation5 + $0x64] sm:$0xf]  ;;  %v7417_v49 = vld [vmem:[#allocation5 + $0x68] sm:$0xf0]  ;;  %1753 = vmatpush.bf16.msra.mxu2 %v7428_v11  ;;  %v9271_v11 = vld [vmem:[#allocation5 + $0x14] sm:$0xf0] }
 0x5ee   :  { %v1374_v60 = vsel %vm1027_vm5, %v1369_v41, -inf }
 0x5ef   :  { %1375 = vmax.xlane.f32.xlu2 %v1374_v60  ;;  %v7420_v60 = vor.u32 %v9280_v59, %v7417_v49  ;;  %v9270_v59 = vld [vmem:[#allocation5 + $0x14] sm:$0xf] }
 0x5f1   :  { %1754 = vmatpush.bf16.msra.mxu2 %v7420_v60 }
 0x65a   :  { %v1373_v61 = vpop.xlane.xlu2 %1372 }
 0x65b   :  { %v1377_v2 = vsub.f32 %v1367_v58, %v1373_v61  ;;  %v7415_v58 = vld [vmem:[#allocation5 + $0x60] sm:$0xf]  ;;  %v7407_v61 = vld [vmem:[#allocation5 + $0x50] sm:$0xf] }
 0x65d   :  { %v1379_v50 = vmul.f32 1.442695, %v1377_v2  ;;  %v9279_v2 = vld [vmem:[#allocation5 + $0x54] sm:$0xf0] }
 0x65f   :  { %9712 = vpow2.f32 %v1379_v50  ;;  %v9278_v50 = vld [vmem:[#allocation5 + $0x54] sm:$0xf] }
 0x662   :  { %v1376_v21 = vpop.xlane.xlu2 %1375 }
 0x663   :  { %v1378_v26 = vsub.f32 %v1369_v41, %v1376_v21  ;;  %v7416_v41 = vor.u32 %v9281_v39, %v7415_v58  ;;  %v7409_v21 = vld [vmem:[#allocation5 + $0x58] sm:$0xf0]  ;;  %v7375_v39 = vld [vmem:[#allocation5 + $0x10] sm:$0xf] }
 0x664   :  { %v7376_v49 = vor.u32 %v9271_v11, %v7375_v39 }
 0x665   :  { %v9713_v63 = vpop.eup %9712  ;;  %v1381_v15 = vmul.f32 1.442695, %v1378_v26  ;;  %v7408_v26 = vor.u32 %v9279_v2, %v7407_v61  ;;  %v7447_v61 = vld [vmem:[#allocation5 + $0xa0] sm:$0xf]  ;;  %v9289_v2 = vld [vmem:[#allocation5 + $0xa4] sm:$0xf0] }
 0x666   :  { %v1383_v37 = vsel %vm1027_vm5, %v9713_v63, 0.0 }
 0x667   :  { %9714 = vpow2.f32 %v1381_v15  ;;  %1384 = vadd.xlane.f32.xlu2 %v1383_v37  ;;  %v7399_v15 = vld [vmem:[#allocation5 + $0x40] sm:$0xf]  ;;  %v9277_v37 = vld [vmem:[#allocation5 + $0x44] sm:$0xf0] }
 0x66d   :  { %v9715_v38 = vpop.eup %9714 }
 0x66e   :  { %v1386_v30 = vsel %vm1027_vm5, %v9715_v38, 0.0 }
 0x66f   :  { %1387 = vadd.xlane.f32.xlu2 %v1386_v30  ;;  %v7401_v30 = vld [vmem:[#allocation5 + $0x48] sm:$0xf0] }
 0x6da   :  { %v1385_v54 = vpop.xlane.xlu2 %1384 }
 0x6db   :  { %9716 = vrcp.f32 %v1385_v54  ;;  %v7400_v54 = vor.u32 %v9277_v37, %v7399_v15  ;;  %v9269_v15 = vld [vmem:[#allocation5 + $0x4] sm:$0xf0] }
 0x6e1   :  { %v9717_v45 = vpop.eup %9716 }
 0x6e2   :  { %v1388_v43 = vpop.xlane.xlu2 %1387  ;;  %v1391_v20 = vmul.f32 %v9717_v45, %v9713_v63  ;;  %v7412_v63 = vor.u32 %v9278_v50, %v7409_v21  ;;  %v9288_v50 = vld [vmem:[#allocation5 + $0xa4] sm:$0xf]  ;;  %v7448_v21 = vor.u32 %v9289_v2, %v7447_v61 }
 0x6e3   :  { %9718 = vrcp.f32 %v1388_v43 }
 0x6e4   :  { %1755 = vmatpush.bf16.msra.mxu2 %v7412_v63  ;;  %v7367_v63 = vld [vmem:[#allocation5] sm:$0xf] }
 0x6e9   :  { %v9719_v14 = vpop.eup %9718 }
 0x6ea   :  { %v1392_v53 = vmul.f32 %v9719_v14, %v9715_v38  ;;  %v9276_v38 = vld [vmem:[#allocation5 + $0x44] sm:$0xf]  ;;  %v7391_v14 = vld [vmem:[#allocation5 + $0x30] sm:$0xf] }
 0x6eb   :  { %v7404_v45 = vor.u32 %v9276_v38, %v7401_v30  ;;  %v7368_v38 = vor.u32 %v9269_v15, %v7367_v63  ;;  %v9268_v30 = vld [vmem:[#allocation5 + $0x4] sm:$0xf] }
 0x6ec   :  { %v1395_v56 = vpack.c.bf16 %v1392_v53, %v1391_v20  ;;  %v9275_v20 = vld [vmem:[#allocation5 + $0x34] sm:$0xf0]  ;;  %v9274_v53 = vld [vmem:[#allocation5 + $0x34] sm:$0xf] }
 0x6ed   :  { %1756 = vmatpush.bf16.msra.mxu2 %v7404_v45 }
 0x6ee   :  { %7360 = vmatmul.msk.bf16.vlgmr.msrb.gmra.mxu3 %vm1027_vm5, %v1395_v56  ;;  %7361 = vmatmul.msk.bf16.vlgmr.msra.gmra.mxu0 %vm1027_vm5, %v1395_v56  ;;  %v7393_v56 = vld [vmem:[#allocation5 + $0x38] sm:$0xf0] }
 0x6fe   :  { %1468 = vmatmul.bf16.vlgmr.msra.gmra.mxu3 %v10658_v52 }
 0x76b   :  { %v1432_v45 = vpop.f32.mrf.mxu0 }
 0x771   :  { %v1418_v3 = vpop.f32.mrf.mxu3 }
 0x772   :  { %v10946_v4 = vadd.f32 %v1418_v3, %v1320_v34  ;;  %v9283_v34 = vld [vmem:[#allocation5 + $0x74] sm:$0xf0]  ;;  %v7392_v3 = vor.u32 %v9275_v20, %v7391_v14 }
 0x773   :  { %v7424_v55 = vor.u32 %v9283_v34, %v7423_v29  ;;  %v7457_v34 = vld [vmem:[#allocation5 + $0xb8] sm:$0xf0]  ;;  %v9287_v20 = vld [vmem:[#allocation5 + $0x94] sm:$0xf0] }
 0x775   :  { %1725 = vmatpush.bf16.msra.mxu0 %v7424_v55 }
 0x779   :  { %v10948_v5 = vpop.f32.mrf.mxu3  ;;  %1726 = vmatpush.bf16.msra.mxu0 %v7416_v41  ;;  %v7377_v41 = vld [vmem:[#allocation5 + $0x18] sm:$0xf0] }
 0x77a   :  { %v7380_v60 = vor.u32 %v9270_v59, %v7377_v41  ;;  %v9858_v59 = vld [vmem:[%s13328_s28 + $0x8] sm:$0xff]  ;;  %v9859_v41 = vld [vmem:[%s13328_s28] sm:$0xff] }
 0x77d   :  { %1727 = vmatpush.bf16.msra.mxu0 %v7408_v26  ;;  %v7449_v26 = vld [vmem:[#allocation5 + $0xa8] sm:$0xf0] }
 0x77e   :  { %v7452_v37 = vor.u32 %v9288_v50, %v7449_v26 }
 0x781   :  { %v1469_v1 = vpop.f32.mrf.mxu3  ;;  %1728 = vmatpush.bf16.msra.mxu0 %v7400_v54  ;;  %v7369_v54 = vld [vmem:[#allocation5 + $0x8] sm:$0xf0] }
 0x782   :  { %v1470_v12 = vadd.f32 %v1469_v1, %v10865_v18  ;;  %v7372_v14 = vor.u32 %v9268_v30, %v7369_v54  ;;  %v9860_v30 = vld [vmem:[%s13328_s28 + $0x18] sm:$0xff] }
 0x784   :  { %v1484_v13 = vadd.f32 %v1483_v7, %v1470_v12  ;;  %v7396_v7 = vor.u32 %v9274_v53, %v7393_v56  ;;  %v9286_v53 = vld [vmem:[#allocation5 + $0x94] sm:$0xf]  ;;  %v7441_v56 = vld [vmem:[#allocation5 + $0x98] sm:$0xf0] }
 0x785   :  { %1729 = vmatpush.bf16.msra.mxu0 %v7392_v3 }
 0x786   :  { %v1488_v23 = vsel %vm1027_vm5, %v1484_v13, -inf  ;;  %1757 = vmatpush.bf16.msra.mxu2 %v7396_v7  ;;  %v7444_v7 = vor.u32 %v9286_v53, %v7441_v56  ;;  %v10107_v53 = vmov 200.0  }
 0x787   :  { %1489 = vmax.xlane.f32.xlu2 %v1488_v23 }
 0x789   :  { %v1471_v24 = vpop.f32.mrf.mxu3 }
 0x78a   :  { %v1472_v19 = vadd.f32 %v1471_v24, %v10872_v36 }
 0x78c   :  { %v1486_v52 = vadd.f32 %v1485_v22, %v1472_v19  ;;  %v1584_v22 = vld [vmem:[#allocation5 + $0xc0] sm:$0xff] }
 0x78e   :  { %v1491_v28 = vsel %vm1027_vm5, %v1486_v52, -inf }
 0x78f   :  { %1492 = vmax.xlane.f32.xlu2 %v1491_v28  ;;  %v9273_v28 = vld [vmem:[#allocation5 + $0x24] sm:$0xf0] }
 0x7fa   :  { %v1490_v31 = vpop.xlane.xlu2 %1489 }
 0x7fb   :  { %v1494_v33 = vsub.f32 %v1484_v13, %v1490_v31  ;;  %v1664_v31 = vunpack.c.l.b16 %v1584_v22 }
 0x7fd   :  { %v1496_v35 = vmul.f32 1.442695, %v1494_v33  ;;  %v1665_v33 = vunpack.c.h.b16 %v1584_v22  ;;  %v1434_v22 = vpop.f32.mrf.mxu0 }
 0x7ff   :  { %9720 = vpow2.f32 %v1496_v35  ;;  %v1691_v29 = vpack.c.b16 %v1665_v33, %v1665_v33 }
 0x801   :  { %v1723_v55 = vsel %vm393_vm0, %v1691_v29, 0 }
 0x802   :  { %v1493_v25 = vpop.xlane.xlu2 %1492  ;;  %1770 = vmatpush.bf16.msrb.mxu3 %v1723_v55 }
 0x803   :  { %v1495_v44 = vsub.f32 %v1486_v52, %v1493_v25  ;;  %v7383_v52 = vld [vmem:[#allocation5 + $0x20] sm:$0xf]  ;;  %v9272_v25 = vld [vmem:[#allocation5 + $0x24] sm:$0xf] }
 0x804   :  { %v7384_v35 = vor.u32 %v9273_v28, %v7383_v52  ;;  %v1191_v28 = vadd.f32 %v10926_v9, %v10924_v8 }
 0x805   :  { %v9721_v27 = vpop.eup %9720  ;;  %v1498_v18 = vmul.f32 1.442695, %v1495_v44  ;;  %v7385_v44 = vld [vmem:[#allocation5 + $0x28] sm:$0xf0] }
 0x806   :  { %v1500_v51 = vsel %vm1027_vm5, %v9721_v27, 0.0  ;;  %1730 = vmatpush.bf16.msra.mxu0 %v7384_v35 }
 0x807   :  { %9722 = vpow2.f32 %v1498_v18  ;;  %1501 = vadd.xlane.f32.xlu2 %v1500_v51  ;;  %v7388_v18 = vor.u32 %v9272_v25, %v7385_v44  ;;  %v7455_v51 = vld [vmem:[#allocation5 + $0xb0] sm:$0xf]  ;;  %v1205_v44 = vadd.f32 %v10928_v17, %v10891_v6  ;;  %v1585_v6 = vld [vmem:[#allocation7] sm:$0x3] }
 0x809   :  { %1758 = vmatpush.bf16.msra.mxu2 %v7388_v18 }
 0x80a   :  { %1731 = vmatpush.bf16.msra.mxu0 %v7376_v49 }
 0x80d   :  { %v9723_v32 = vpop.eup %9722  ;;  %1759 = vmatpush.bf16.msra.mxu2 %v7380_v60 }
 0x80e   :  { %v1503_v36 = vsel %vm1027_vm5, %v9723_v32, 0.0  ;;  %1732 = vmatpush.bf16.msra.mxu0 %v7368_v38 }
 0x80f   :  { %1504 = vadd.xlane.f32.xlu2 %v1503_v36  ;;  %v1690_v36 = vpack.c.b16 %v1664_v31, %v1664_v31  ;;  %v1322_v31 = vadd.f32 %v10933_v47, %v1191_v28 }
 0x811   :  { %v1720_v62 = vsel %vm393_vm0, %v1690_v36, 0  ;;  %1760 = vmatpush.bf16.msra.mxu2 %v7372_v14  ;;  %v1439_v35 = vadd.f32 %v10948_v5, %v1322_v31  ;;  %v1323_v36 = vadd.f32 %v10944_v57, %v1205_v44  ;;  %v1588_v57 = vperm.slane %v1585_v6, 1 }
 0x812   :  { %1742 = vmatpush.bf16.msrb.mxu1 %v1720_v62 }
 0x87a   :  { %v1502_v43 = vpop.xlane.xlu2 %1501 }
 0x87b   :  { %9724 = vrcp.f32 %v1502_v43  ;;  %v7439_v43 = vld [vmem:[#allocation5 + $0x90] sm:$0xf] }
 0x87c   :  { %v7440_v3 = vor.u32 %v9287_v20, %v7439_v43  ;;  %v9861_v43 = vld [vmem:[%s13328_s28 + $0x10] sm:$0xff] }
 0x881   :  { %v9725_v12 = vpop.eup %9724 }
 0x882   :  { %v1505_v1 = vpop.xlane.xlu2 %1504  ;;  %v1508_v23 = vmul.f32 %v9725_v12, %v9721_v27  ;;  %v9291_v27 = vld [vmem:[#allocation5 + $0xb4] sm:$0xf0]  ;;  %v9285_v12 = vld [vmem:[#allocation5 + $0x84] sm:$0xf0] }
 0x883   :  { %9726 = vrcp.f32 %v1505_v1  ;;  %v7456_v16 = vor.u32 %v9291_v27, %v7455_v51  ;;  %v7431_v1 = vld [vmem:[#allocation5 + $0x80] sm:$0xf]  ;;  %v1438_v27 = vadd.f32 %v1432_v45, %v10931_v10 }
 0x884   :  { %9728 = vrcp.f32 %v10107_v53 }
 0x885   :  { %1743 = vmatpush.bf16.msrb.mxu1 %v7456_v16 }
 0x889   :  { %v9727_v13 = vpop.eup %9726  ;;  %1744 = vmatpush.bf16.msrb.mxu1 %v7448_v21 }
 0x88a   :  { %v1509_v24 = vmul.f32 %v9727_v13, %v9723_v32  ;;  %v9290_v32 = vld [vmem:[#allocation5 + $0xb4] sm:$0xf]  ;;  %v9284_v13 = vld [vmem:[#allocation5 + $0x84] sm:$0xf]  ;;  %v9729_v56 = vpop.eup %9728 }
 0x88b   :  { %v7460_v58 = vor.u32 %v9290_v32, %v7457_v34  ;;  %v1440_v32 = vadd.f32 %v1434_v22, %v1323_v36  ;;  %vm1800_vm8 = vweird.f32 %v9729_v56 }
 0x88c   :  { %v1512_v19 = vpack.c.bf16 %v1509_v24, %v1508_v23  ;;  %v7433_v23 = vld [vmem:[#allocation5 + $0x88] sm:$0xf0]  ;;  %v7432_v24 = vor.u32 %v9285_v12, %v7431_v1 }
 0x88d   :  { %1771 = vmatpush.bf16.msrb.mxu3 %v7460_v58  ;;  %1745 = vmatpush.bf16.msrb.mxu1 %v7440_v3  ;;  %v1796_v3 = vmul.f32 200.0, %v9729_v56 }
 0x88e   :  { %7363 = vmatmul.msk.bf16.vlgmr.msrb.gmra.mxu0 %vm1027_vm5, %v1512_v19  ;;  %7364 = vmatmul.msk.bf16.vlgmr.msrb.gmra.mxu2 %vm1027_vm5, %v1512_v19  ;;  %v7436_v19 = vor.u32 %v9284_v13, %v7433_v23 }
 0x891   :  { %1772 = vmatpush.bf16.msrb.mxu3 %v7452_v37  ;;  %1746 = vmatpush.bf16.msrb.mxu1 %v7432_v24 }
 0x895   :  { %1773 = vmatpush.bf16.msrb.mxu3 %v7444_v7  ;;  %v1797_v7 = vsub.f32 1.0, %v1796_v3  ;;  %v9298_v3 = vld [vmem:[#allocation11 + $0x34] sm:$0xf] }
 0x897   :  { %v1798_v1 = vmul.f32 %v9729_v56, %v1797_v7  ;;  %v7491_v7 = vld [vmem:[#allocation11 + $0x38] sm:$0xf0] }
 0x899   :  { %1774 = vmatpush.bf16.msrb.mxu3 %v7436_v19  ;;  %v1799_v12 = vadd.f32 %v9729_v56, %v1798_v1 }
 0x89b   :  { %v10985_v13 = vsel %vm1800_vm8, %v9729_v56, %v1799_v12  ;;  %vm2319_vm8 = vcmask 998400  }
 0x90b   :  { %v1535_v52 = vpop.f32.mrf.mxu0 }
 0x90c   :  { %v1554_v18 = vadd.f32 %v1535_v52, %v10946_v4  ;;  %v1587_v4 = vperm.slane %v1585_v6, 0 }
 0x911   :  { %v1549_v33 = vpop.f32.mrf.mxu2 }
 0x912   :  { %v1555_v9 = vadd.f32 %v1549_v33, %v1438_v27 }
 0x913   :  { %v1537_v25 = vpop.f32.mrf.mxu0 }
 0x914   :  { %v1556_v51 = vadd.f32 %v1537_v25, %v1439_v35 }
 0x916   :  { %v1558_v29 = vpack.c.bf16 %v1556_v51, %v1554_v18 }
 0x918   :  { %1733 = vmatmul.bf16.vlgmr.msra.gmra.mxu0 %v1558_v29  ;;  %1761 = vmatmul.bf16.vlgmr.msra.gmra.mxu2 %v1558_v29 }
 0x919   :  { %v1551_v8 = vpop.f32.mrf.mxu2 }
 0x91a   :  { %v1557_v47 = vadd.f32 %v1551_v8, %v1440_v32  ;;  %v7521_v32 = vld [vmem:[#allocation11 + $0x70] sm:$0xf]  ;;  %v9307_v8 = vld [vmem:[#allocation11 + $0x74] sm:$0xf0] }
 0x91c   :  { %v1559_v34 = vpack.c.bf16 %v1557_v47, %v1555_v9  ;;  %v9306_v9 = vld [vmem:[#allocation11 + $0x74] sm:$0xf]  ;;  %v7522_v47 = vor.u32 %v9307_v8, %v7521_v32  ;;  %v7547_v32 = vld [vmem:[#allocation11 + $0xa8] sm:$0xf0] }
 0x91e   :  { %7461 = vmatmul.msk.bf16.vlgmr.msrb.gmra.mxu1 %vm389_vm1, %v1559_v34  ;;  %7462 = vmatmul.msk.bf16.vlgmr.msrb.gmra.mxu3 %vm389_vm1, %v1559_v34  ;;  %v7523_v34 = vld [vmem:[#allocation11 + $0x78] sm:$0xf0] }
 0x91f   :  { %v7526_v6 = vor.u32 %v9306_v9, %v7523_v34  ;;  %2033 = vmatpush.bf16.msra.mxu1 %v7522_v47  ;;  %v7473_v34 = vld [vmem:[#allocation11 + $0x10] sm:$0xf] }
 0x921   :  { %2061 = vmatpush.bf16.msrb.mxu0 %v7526_v6  ;;  %v9295_v6 = vld [vmem:[#allocation11 + $0x14] sm:$0xf0] }
 0x995   :  { %v1734_v17 = vpop.f32.mrf.mxu0 }
 0x996   :  { %v1735_v55 = vadd.f32 %v1734_v17, %v1587_v4  ;;  %v7513_v17 = vld [vmem:[#allocation11 + $0x60] sm:$0xf] }
 0x99b   :  { %v1762_v5 = vpop.f32.mrf.mxu2  ;;  %v1748_v62 = vpop.f32.mrf.mxu1 }
 0x99c   :  { %v1763_v16 = vadd.f32 %v1762_v5, %v1588_v57  ;;  %v1749_v10 = vadd.f32 %v1748_v62, %v1735_v55  ;;  %v9304_v5 = vld [vmem:[#allocation11 + $0x64] sm:$0xf] }
 0x99d   :  { %v1736_v11 = vpop.f32.mrf.mxu0 }
 0x99e   :  { %v1781_v60 = vadd.f32 %v9859_v41, %v1749_v10  ;;  %v1737_v21 = vadd.f32 %v1736_v11, %v1587_v4  ;;  %v9305_v4 = vld [vmem:[#allocation11 + $0x64] sm:$0xf0]  ;;  %v9303_v10 = vld [vmem:[#allocation11 + $0x54] sm:$0xf0]  ;;  %v7507_v11 = vld [vmem:[#allocation11 + $0x58] sm:$0xf0] }
 0x99f   :  { %v7514_v62 = vor.u32 %v9305_v4, %v7513_v17  ;;  %v7537_v17 = vld [vmem:[#allocation11 + $0x90] sm:$0xf] }
 0x9a1   :  { %v1776_v58 = vpop.f32.mrf.mxu3  ;;  %2034 = vmatpush.bf16.msra.mxu1 %v7514_v62  ;;  %v9311_v62 = vld [vmem:[#allocation11 + $0x94] sm:$0xf0] }
 0x9a2   :  { %v1777_v39 = vadd.f32 %v1776_v58, %v1763_v16  ;;  %v7505_v16 = vld [vmem:[#allocation11 + $0x50] sm:$0xf]  ;;  %v9302_v58 = vld [vmem:[#allocation11 + $0x54] sm:$0xf] }
 0x9a3   :  { %v1764_v61 = vpop.f32.mrf.mxu2  ;;  %v1750_v2 = vpop.f32.mrf.mxu1  ;;  %v7510_v41 = vor.u32 %v9302_v58, %v7507_v11  ;;  %v9310_v58 = vld [vmem:[#allocation11 + $0x94] sm:$0xf] }
 0x9a4   :  { %v1782_v49 = vadd.f32 %v9858_v59, %v1777_v39  ;;  %v1765_v63 = vadd.f32 %v1764_v61, %v1588_v57  ;;  %v1751_v15 = vadd.f32 %v1750_v2, %v1737_v21  ;;  %v7515_v57 = vld [vmem:[#allocation11 + $0x68] sm:$0xf0]  ;;  %v7506_v39 = vor.u32 %v9303_v10, %v7505_v16  ;;  %v1892_v59 = vld [vmem:[#allocation11 + $0xc0] sm:$0xff]  ;;  %v9301_v21 = vld [vmem:[#allocation11 + $0x44] sm:$0xf0] }
 0x9a5   :  { %v7518_v55 = vor.u32 %v9304_v5, %v7515_v57  ;;  %v1973_v61 = vunpack.c.h.b16 %v1892_v59  ;;  %v9294_v57 = vld [vmem:[#allocation11 + $0x14] sm:$0xf] }
 0x9a6   :  { %v1787_v50 = vsel %vm389_vm1, %v1782_v49, 0.0  ;;  %v1783_v45 = vadd.f32 %v9861_v43, %v1751_v15  ;;  %2035 = vmatpush.bf16.msra.mxu1 %v7506_v39  ;;  %v7539_v39 = vld [vmem:[#allocation11 + $0x98] sm:$0xf0] }
 0x9a7   :  { %v1788_v26 = vadd.f32 %v1787_v50, %v1781_v60  ;;  %2062 = vmatpush.bf16.msrb.mxu0 %v7518_v55  ;;  %v7497_v50 = vld [vmem:[#allocation11 + $0x40] sm:$0xf]  ;;  %v7475_v55 = vld [vmem:[#allocation11 + $0x18] sm:$0xf0] }
 0x9a9   :  { %v1778_v37 = vpop.f32.mrf.mxu3  ;;  %1789 = vadd.xlane.f32.xlu2 %v1788_v26  ;;  %v9300_v26 = vld [vmem:[#allocation11 + $0x44] sm:$0xf] }
 0x9aa   :  { %v1779_v38 = vadd.f32 %v1778_v37, %v1765_v63  ;;  %v7498_v63 = vor.u32 %v9301_v21, %v7497_v50  ;;  %v7499_v37 = vld [vmem:[#allocation11 + $0x48] sm:$0xf0]  ;;  %v7542_v50 = vor.u32 %v9310_v58, %v7539_v39  ;;  %v7529_v21 = vld [vmem:[#allocation11 + $0x80] sm:$0xf]  ;;  %v7625_v39 = vld [vmem:[%s13309_s14 + $0x78] sm:$0xf0] }
 0x9ab   :  { %2063 = vmatpush.bf16.msrb.mxu0 %v7510_v41  ;;  %v7465_v41 = vld [vmem:[#allocation11] sm:$0xf] }
 0x9ac   :  { %v1784_v54 = vadd.f32 %v9860_v30, %v1779_v38  ;;  %v1999_v38 = vpack.c.b16 %v1973_v61, %v1973_v61  ;;  %v7489_v30 = vld [vmem:[#allocation11 + $0x30] sm:$0xf]  ;;  %2036 = vmatpush.bf16.msra.mxu1 %v7498_v63  ;;  %v9292_v63 = vld [vmem:[#allocation11 + $0x4] sm:$0xf] }
 0x9ae   :  { %v1791_v14 = vsel %vm389_vm1, %v1784_v54, 0.0  ;;  %v2031_v56 = vsel %vm393_vm0, %v1999_v38, 0  ;;  %v7531_v38 = vld [vmem:[#allocation11 + $0x88] sm:$0xf0] }
 0x9af   :  { %v1792_v20 = vadd.f32 %v1791_v14, %v1783_v45  ;;  %v7553_v14 = vld [vmem:[#allocation11 + $0xb0] sm:$0xf]  ;;  %2078 = vmatpush.bf16.msrb.mxu2 %v2031_v56 }
 0x9b1   :  { %1793 = vadd.xlane.f32.xlu2 %v1792_v20  ;;  %v9315_v20 = vld [vmem:[#allocation11 + $0xb4] sm:$0xf0] }
 0x9b2   :  { %v7554_v12 = vor.u32 %v9315_v20, %v7553_v14 }
 0xa1c   :  { %v1790_v23 = vpop.xlane.xlu2 %1789 }
 0xa1d   :  { %v1802_v24 = vmul.f32 %v10985_v13, %v1790_v23  ;;  %v9314_v23 = vld [vmem:[#allocation11 + $0xb4] sm:$0xf] }
 0xa1f   :  { %v10988_v19 = vsub.f32 %v1781_v60, %v1802_v24  ;;  %v10990_v22 = vsub.f32 %v1782_v49, %v1802_v24  ;;  %v1972_v60 = vunpack.c.l.b16 %v1892_v59  ;;  %v7555_v24 = vld [vmem:[#allocation11 + $0xb8] sm:$0xf0]  ;;  %v7474_v59 = vor.u32 %v9295_v6, %v7473_v34 }
 0xa21   :  { %v1808_v52 = vmul.f32 %v10988_v19, %v10988_v19  ;;  %v1809_v28 = vmul.f32 %v10990_v22, %v10990_v22  ;;  %v1998_v15 = vpack.c.b16 %v1972_v60, %v1972_v60  ;;  %v9293_v60 = vld [vmem:[#allocation11 + $0x4] sm:$0xf0] }
 0xa23   :  { %v1812_v31 = vsel %vm389_vm1, %v1809_v28, 0.0  ;;  %v2028_v53 = vsel %vm393_vm0, %v1998_v15, 0  ;;  %v7494_v28 = vor.u32 %v9298_v3, %v7491_v7  ;;  %v7467_v15 = vld [vmem:[#allocation11 + $0x8] sm:$0xf0] }
 0xa24   :  { %v1794_v33 = vpop.xlane.xlu2 %1793  ;;  %v1813_v35 = vadd.f32 %v1812_v31, %v1808_v52  ;;  %2050 = vmatpush.bf16.msra.mxu3 %v2028_v53  ;;  %v7481_v52 = vld [vmem:[#allocation11 + $0x20] sm:$0xf]  ;;  %v7558_v31 = vor.u32 %v9314_v23, %v7555_v24  ;;  %v7470_v20 = vor.u32 %v9292_v63, %v7467_v15 }
 0xa25   :  { %v1803_v25 = vmul.f32 %v10985_v13, %v1794_v33  ;;  %v9297_v33 = vld [vmem:[#allocation11 + $0x24] sm:$0xf0]  ;;  %v9328_v63 = vld [vmem:[%s13309_s14 + $0x64] sm:$0xf] }
 0xa26   :  { %1814 = vadd.xlane.f32.xlu2 %v1813_v35  ;;  %v7545_v35 = vld [vmem:[#allocation11 + $0xa0] sm:$0xf]  ;;  %v7482_v9 = vor.u32 %v9297_v33, %v7481_v52  ;;  %2079 = vmatpush.bf16.msrb.mxu2 %v7558_v31 }
 0xa27   :  { %v10998_v44 = vsub.f32 %v1783_v45, %v1803_v25  ;;  %v11000_v18 = vsub.f32 %v1784_v54, %v1803_v25  ;;  %v9299_v54 = vld [vmem:[#allocation11 + $0x34] sm:$0xf0]  ;;  %v7502_v45 = vor.u32 %v9300_v26, %v7499_v37  ;;  %v9313_v25 = vld [vmem:[#allocation11 + $0xa4] sm:$0xf0]  ;;  %v9308_v37 = vld [vmem:[#allocation11 + $0x84] sm:$0xf] }
 0xa28   :  { %v7490_v1 = vor.u32 %v9299_v54, %v7489_v30  ;;  %2051 = vmatpush.bf16.msra.mxu3 %v7554_v12  ;;  %v7546_v47 = vor.u32 %v9313_v25, %v7545_v35  ;;  %v9309_v26 = vld [vmem:[#allocation11 + $0x84] sm:$0xf0]  ;;  %v7466_v54 = vor.u32 %v9293_v60, %v7465_v41  ;;  %v7534_v53 = vor.u32 %v9308_v37, %v7531_v38  ;;  %v1785_v12 = vld [vmem:[#allocation8] sm:$0x3]  ;;  %v1786_v35 = vld [vmem:[#allocation10] sm:$0x3] }
 0xa29   :  { %v1810_v51 = vmul.f32 %v10998_v44, %v10998_v44  ;;  %v1811_v36 = vmul.f32 %v11000_v18, %v11000_v18  ;;  %2064 = vmatpush.bf16.msrb.mxu0 %v7502_v45  ;;  %v7530_v45 = vor.u32 %v9309_v26, %v7529_v21  ;;  %v1849_v25 = vperm.slane %v1785_v12, 0  ;;  %v7679_v21 = vld [vmem:[%s13309_s14 + $0xe0] sm:$0xf]  ;;  %v9345_v26 = vld [vmem:[%s13309_s14 + $0xe4] sm:$0xf0] }
 0xa2a   :  { %2037 = vmatpush.bf16.msra.mxu1 %v7490_v1  ;;  %v7680_v15 = vor.u32 %v9345_v26, %v7679_v21  ;;  %v7617_v37 = vld [vmem:[%s13309_s14 + $0x68] sm:$0xf0]  ;;  %v9344_v38 = vld [vmem:[%s13309_s14 + $0xe4] sm:$0xf]  ;;  %v7583_v21 = vld [vmem:[%s13309_s14 + $0x20] sm:$0xf] }
 0xa2b   :  { %v1816_v29 = vsel %vm389_vm1, %v1811_v36, 0.0  ;;  %v7483_v36 = vld [vmem:[#allocation11 + $0x28] sm:$0xf0] }
 0xa2c   :  { %v1817_v27 = vadd.f32 %v1816_v29, %v1810_v51  ;;  %v9296_v51 = vld [vmem:[#allocation11 + $0x24] sm:$0xf]  ;;  %2052 = vmatpush.bf16.msra.mxu3 %v7546_v47 }
 0xa2d   :  { %v9312_v29 = vld [vmem:[#allocation11 + $0xa4] sm:$0xf]  ;;  %2065 = vmatpush.bf16.msrb.mxu0 %v7494_v28  ;;  %v7486_v4 = vor.u32 %v9296_v51, %v7483_v36  ;;  %v1850_v28 = vperm.slane %v1785_v12, 1  ;;  %v1858_v36 = vperm.slane %v1786_v35, 0  ;;  %v7609_v12 = vld [vmem:[%s13309_s14 + $0x58] sm:$0xf0] }
 0xa2e   :  { %1818 = vadd.xlane.f32.xlu1 %v1817_v27  ;;  %v7550_v5 = vor.u32 %v9312_v29, %v7547_v32  ;;  %2038 = vmatpush.bf16.msra.mxu1 %v7482_v9  ;;  %v1859_v29 = vperm.slane %v1786_v35, 1 }
 0xa30   :  { %2080 = vmatpush.bf16.msrb.mxu2 %v7550_v5 }
 0xa31   :  { %2066 = vmatpush.bf16.msrb.mxu0 %v7486_v4 }
 0xa32   :  { %2039 = vmatpush.bf16.msra.mxu1 %v7474_v59 }
 0xa34   :  { %2081 = vmatpush.bf16.msrb.mxu2 %v7542_v50 }
 0xa36   :  { %2040 = vmatpush.bf16.msra.mxu1 %v7466_v54  ;;  %v11084_v54 = vld [vmem:[#allocation13] sm:$0x3] }
 0xa37   :  { %v1896_v35 = vperm.slane %v11084_v54, 1 }
 0xa38   :  { %2082 = vmatpush.bf16.msrb.mxu2 %v7534_v53  ;;  %v9327_v53 = vld [vmem:[%s13309_s14 + $0x54] sm:$0xf0] }
 0xa99   :  { %v1815_v49 = vpop.xlane.xlu2 %1814 }
 0xa9a   :  { %v1820_v2 = vmul.f32 %v1815_v49, %v10985_v13  ;;  %v7538_v49 = vor.u32 %v9311_v62, %v7537_v17  ;;  %v9346_v62 = vld [vmem:[%s13309_s14 + $0xf4] sm:$0xf] }
 0xa9c   :  { %v11008_v43 = vadd.f32 1e-05, %v1820_v2  ;;  %v7478_v2 = vor.u32 %v9294_v57, %v7475_v55  ;;  %2053 = vmatpush.bf16.msra.mxu3 %v7538_v49  ;;  %v7623_v57 = vld [vmem:[%s13309_s14 + $0x70] sm:$0xf]  ;;  %v9331_v55 = vld [vmem:[%s13309_s14 + $0x74] sm:$0xf0] }
 0xa9d   :  { %v7624_v58 = vor.u32 %v9331_v55, %v7623_v57  ;;  %v9323_v57 = vld [vmem:[%s13309_s14 + $0x34] sm:$0xf0]  ;;  %v7655_v55 = vld [vmem:[%s13309_s14 + $0xb0] sm:$0xf] }
 0xa9e   :  { %9730 = vrsqrt.f32 %v11008_v43  ;;  %2067 = vmatpush.bf16.msrb.mxu0 %v7478_v2  ;;  %vm1830_vm11 = vweird.f32 %v11008_v43  ;;  %v9329_v2 = vld [vmem:[%s13309_s14 + $0x64] sm:$0xf0] }
 0xaa0   :  { %2054 = vmatpush.bf16.msra.mxu3 %v7530_v45  ;;  %v7620_v45 = vor.u32 %v9328_v63, %v7617_v37  ;;  %v7647_v37 = vld [vmem:[%s13309_s14 + $0xa0] sm:$0xf] }
 0xaa1   :  { %v1819_v27 = vpop.xlane.xlu1 %1818 }
 0xaa2   :  { %v1821_v8 = vmul.f32 %v1819_v27, %v10985_v13  ;;  %2068 = vmatpush.bf16.msrb.mxu0 %v7470_v20  ;;  %v7607_v20 = vld [vmem:[%s13309_s14 + $0x50] sm:$0xf] }
 0xaa4   :  { %v9731_v16 = vpop.eup %9730  ;;  %v1823_v10 = vadd.f32 1e-05, %v1821_v8  ;;  %2330 = vmatpush.bf16.msrb.mxu3 %v7624_v58 }
 0xaa5   :  { %v1825_v11 = vmul.f32 %v9731_v16, %v11008_v43  ;;  %vm1831_vm9 = vweird.f32 %v9731_v16 }
 0xaa6   :  { %9732 = vrsqrt.f32 %v1823_v10  ;;  %vm1832_vm12 = vmor %vm1830_vm11, %vm1831_vm9  ;;  %vm1840_vm15 = vweird.f32 %v1823_v10 }
 0xaa7   :  { %v1826_v61 = vmul.f32 %v9731_v16, %v1825_v11  ;;  %v7689_v11 = vld [vmem:[%s13309_s14 + $0xf8] sm:$0x10] }
 0xaa8   :  { %v7692_v41 = vor.u32 %v9346_v62, %v7689_v11  ;;  %v7591_v62 = vld [vmem:[%s13309_s14 + $0x30] sm:$0xf]  ;;  %v9322_v11 = vld [vmem:[%s13309_s14 + $0x34] sm:$0xf] }
 0xaa9   :  { %v1827_v30 = vmul.f32 0.5, %v1826_v61  ;;  %v7615_v61 = vld [vmem:[%s13309_s14 + $0x60] sm:$0xf]  ;;  %v7592_v58 = vor.u32 %v9323_v57, %v7591_v62  ;;  %v9333_v57 = vld [vmem:[%s13309_s14 + $0x84] sm:$0xf0] }
 0xaaa   :  { %v2328_v60 = vsel %vm2323_vm3, %v7692_v41, 0  ;;  %v7616_v50 = vor.u32 %v9329_v2, %v7615_v61  ;;  %v9338_v2 = vld [vmem:[%s13309_s14 + $0xb4] sm:$0xf] }
 0xaab   :  { %v1828_v14 = vsub.f32 1.5, %v1827_v30  ;;  %2372 = vmatpush.bf16.msra.mxu0 %v2328_v60  ;;  %v7681_v30 = vld [vmem:[%s13309_s14 + $0xe8] sm:$0xf0] }
 0xaac   :  { %v9733_v56 = vpop.eup %9732  ;;  %2331 = vmatpush.bf16.msrb.mxu3 %v7616_v50  ;;  %v7657_v50 = vld [vmem:[%s13309_s14 + $0xb8] sm:$0xf0] }
 0xaad   :  { %v1829_v3 = vmul.f32 %v9731_v16, %v1828_v14  ;;  %v1835_v7 = vmul.f32 %v9733_v56, %v1823_v10  ;;  %vm1841_vm14 = vweird.f32 %v9733_v56  ;;  %v9330_v10 = vld [vmem:[%s13309_s14 + $0x74] sm:$0xf]  ;;  %v7684_v14 = vor.u32 %v9344_v38, %v7681_v30  ;;  %v9337_v38 = vld [vmem:[%s13309_s14 + $0xa4] sm:$0xf0] }
 0xaae   :  { %vm1842_vm2 = vmor %vm1840_vm15, %vm1841_vm14  ;;  %v7628_v49 = vor.u32 %v9330_v10, %v7625_v39  ;;  %v9339_v39 = vld [vmem:[%s13309_s14 + $0xb4] sm:$0xf0]  ;;  %v7660_v63 = vor.u32 %v9338_v2, %v7657_v50 }
 0xaaf   :  { %v1836_v1 = vmul.f32 %v9733_v56, %v1835_v7  ;;  %v1833_v23 = vsel %vm1832_vm12, %v9731_v16, %v1829_v3  ;;  %2373 = vmatpush.bf16.msra.mxu0 %v7684_v14  ;;  %v7608_v3 = vor.u32 %v9327_v53, %v7607_v20  ;;  %v9343_v7 = vld [vmem:[%s13309_s14 + $0xd4] sm:$0xf0]  ;;  %v7656_v60 = vor.u32 %v9339_v39, %v7655_v55  ;;  %v9320_v14 = vld [vmem:[%s13309_s14 + $0x24] sm:$0xf]  ;;  %v7585_v20 = vld [vmem:[%s13309_s14 + $0x28] sm:$0xf0] }
 0xab0   :  { %v1844_v31 = vmul.f32 %v1833_v23, %v10988_v19  ;;  %v1845_v33 = vmul.f32 %v1833_v23, %v10990_v22  ;;  %2358 = vmatpush.bf16.msra.mxu2 %v7628_v49  ;;  %v9316_v55 = vld [vmem:[%s13309_s14 + $0x4] sm:$0xf] }
 0xab1   :  { %v1837_v24 = vmul.f32 0.5, %v1836_v1  ;;  %v9326_v1 = vld [vmem:[%s13309_s14 + $0x54] sm:$0xf]  ;;  %2332 = vmatpush.bf16.msrb.mxu3 %v7608_v3  ;;  %v7648_v3 = vor.u32 %v9337_v38, %v7647_v37  ;;  %v9332_v39 = vld [vmem:[%s13309_s14 + $0x84] sm:$0xf] }
 0xab2   :  { %v1854_v27 = vmul.f32 %v1850_v28, %v1845_v33  ;;  %v1853_v9 = vmul.f32 %v1849_v25, %v1844_v31  ;;  %v1895_v31 = vperm.slane %v11084_v54, 0 }
 0xab3   :  { %v1838_v52 = vsub.f32 1.5, %v1837_v24  ;;  %v7612_v24 = vor.u32 %v9326_v1, %v7609_v12  ;;  %v7649_v1 = vld [vmem:[%s13309_s14 + $0xa8] sm:$0xf0] }
 0xab4   :  { %v11020_v6 = vadd.f32 %v1858_v36, %v1853_v9  ;;  %v11024_v22 = vadd.f32 %v1859_v29, %v1854_v27  ;;  %2359 = vmatpush.bf16.msra.mxu2 %v7620_v45  ;;  %v7601_v9 = vld [vmem:[%s13309_s14 + $0x48] sm:$0xf0] }
 0xab5   :  { %v1839_v51 = vmul.f32 %v9733_v56, %v1838_v52  ;;  %v9342_v52 = vld [vmem:[%s13309_s14 + $0xd4] sm:$0xf] }
 0xab7   :  { %v1843_v43 = vsel %vm1842_vm2, %v9733_v56, %v1839_v51  ;;  %v7671_v56 = vld [vmem:[%s13309_s14 + $0xd0] sm:$0xf] }
 0xab8   :  { %v1846_v32 = vmul.f32 %v1843_v43, %v10998_v44  ;;  %v1847_v8 = vmul.f32 %v1843_v43, %v11000_v18  ;;  %v7687_v44 = vld [vmem:[%s13309_s14 + $0xf0] sm:$0xf]  ;;  %v9347_v18 = vld [vmem:[%s13309_s14 + $0xf4] sm:$0x10]  ;;  %v7672_v23 = vor.u32 %v9343_v7, %v7671_v56  ;;  %v7599_v43 = vld [vmem:[%s13309_s14 + $0x40] sm:$0xf]  ;;  %2360 = vmatpush.bf16.msra.mxu2 %v7612_v24  ;;  %v7588_v24 = vor.u32 %v9320_v14, %v7585_v20 }
 0xab9   :  { %v7688_v16 = vor.u32 %v9347_v18, %v7687_v44  ;;  %v9336_v7 = vld [vmem:[%s13309_s14 + $0xa4] sm:$0xf] }
 0xaba   :  { %v1856_v47 = vmul.f32 %v1850_v28, %v1847_v8  ;;  %v1855_v34 = vmul.f32 %v1849_v25, %v1846_v32  ;;  %v7673_v28 = vld [vmem:[%s13309_s14 + $0xd8] sm:$0xf0]  ;;  %v9341_v32 = vld [vmem:[%s13309_s14 + $0xc4] sm:$0xf0]  ;;  %v9324_v8 = vld [vmem:[%s13309_s14 + $0x44] sm:$0xf] }
 0xabb   :  { %v2325_v59 = vsel %vm2323_vm3, %v7688_v16, 0  ;;  %v7676_v25 = vor.u32 %v9342_v52, %v7673_v28  ;;  %v7652_v52 = vor.u32 %v9336_v7, %v7649_v1  ;;  %v7575_v28 = vld [vmem:[%s13309_s14 + $0x10] sm:$0xf] }
 0xabc   :  { %v11022_v19 = vadd.f32 %v1858_v36, %v1855_v34  ;;  %v11026_v17 = vadd.f32 %v1859_v29, %v1856_v47  ;;  %2344 = vmatpush.bf16.msrb.mxu1 %v2325_v59  ;;  %v9325_v36 = vld [vmem:[%s13309_s14 + $0x44] sm:$0xf0]  ;;  %v7663_v29 = vld [vmem:[%s13309_s14 + $0xc0] sm:$0xf]  ;;  %v7604_v34 = vor.u32 %v9324_v8, %v7601_v9  ;;  %v7593_v59 = vld [vmem:[%s13309_s14 + $0x38] sm:$0xf0] }
 0xabd   :  { %2374 = vmatpush.bf16.msra.mxu0 %v7676_v25  ;;  %v7600_v27 = vor.u32 %v9325_v36, %v7599_v43  ;;  %v7664_v47 = vor.u32 %v9341_v32, %v7663_v29  ;;  %v7596_v61 = vor.u32 %v9322_v11, %v7593_v59  ;;  %v7639_v43 = vld [vmem:[%s13309_s14 + $0x90] sm:$0xf]  ;;  %v9335_v36 = vld [vmem:[%s13309_s14 + $0x94] sm:$0xf0]  ;;  %v9318_v32 = vld [vmem:[%s13309_s14 + $0x14] sm:$0xf] }
 0xabe   :  { %v1866_v4 = vpack.c.bf16 %v11022_v19, %v11020_v6  ;;  %v1867_v5 = vpack.c.bf16 %v11026_v17, %v11024_v22  ;;  %2361 = vmatpush.bf16.msra.mxu2 %v7604_v34  ;;  %v7577_v8 = vld [vmem:[%s13309_s14 + $0x18] sm:$0xf0]  ;;  %v9334_v9 = vld [vmem:[%s13309_s14 + $0x94] sm:$0xf]  ;;  %v7633_v11 = vld [vmem:[%s13309_s14 + $0x88] sm:$0xf0] }
 0xabf   :  { %2333 = vmatpush.bf16.msrb.mxu3 %v7600_v27  ;;  %v7640_v27 = vor.u32 %v9335_v36, %v7639_v43  ;;  %v7636_v2 = vor.u32 %v9332_v39, %v7633_v11 }
 0xac0   :  { %2041 = vmatmul.bf16.vlgmr.msra.gmra.mxu1 %v1866_v4  ;;  %7559 = vmatmul.msk.bf16.vlgmr.msra.gmra.mxu3 %vm389_vm1, %v1867_v5 }
 0xac1   :  { %2069 = vmatmul.bf16.vlgmr.msrb.gmra.mxu0 %v1866_v4  ;;  %7560 = vmatmul.msk.bf16.vlgmr.msrb.gmra.mxu2 %vm389_vm1, %v1867_v5  ;;  %v9340_v4 = vld [vmem:[%s13309_s14 + $0xc4] sm:$0xf]  ;;  %v7665_v5 = vld [vmem:[%s13309_s14 + $0xc8] sm:$0xf0] }
 0xac2   :  { %2345 = vmatpush.bf16.msrb.mxu1 %v7680_v15  ;;  %v7668_v44 = vor.u32 %v9340_v4, %v7665_v5  ;;  %v9321_v15 = vld [vmem:[%s13309_s14 + $0x24] sm:$0xf0]  ;;  %2362 = vmatpush.bf16.msra.mxu2 %v7596_v61  ;;  %v7641_v4 = vld [vmem:[%s13309_s14 + $0x98] sm:$0xf0]  ;;  %v7567_v5 = vld [vmem:[%s13309_s14] sm:$0xf] }
 0xac3   :  { %2334 = vmatpush.bf16.msrb.mxu3 %v7592_v58  ;;  %v7584_v45 = vor.u32 %v9321_v15, %v7583_v21  ;;  %v7644_v54 = vor.u32 %v9334_v9, %v7641_v4  ;;  %v7569_v58 = vld [vmem:[%s13309_s14 + $0x8] sm:$0xf0] }
 0xac4   :  { %2375 = vmatpush.bf16.msra.mxu0 %v7668_v44  ;;  %v9317_v44 = vld [vmem:[%s13309_s14 + $0x4] sm:$0xf0]  ;;  %v7572_v61 = vor.u32 %v9316_v55, %v7569_v58 }
 0xac6   :  { %2346 = vmatpush.bf16.msrb.mxu1 %v7672_v23  ;;  %2363 = vmatpush.bf16.msra.mxu2 %v7588_v24 }
 0xac7   :  { %2335 = vmatpush.bf16.msrb.mxu3 %v7584_v45 }
 0xac8   :  { %2376 = vmatpush.bf16.msra.mxu0 %v7660_v63 }
 0xaca   :  { %2347 = vmatpush.bf16.msrb.mxu1 %v7664_v47 }
 0xacc   :  { %2377 = vmatpush.bf16.msra.mxu0 %v7652_v52 }
 0xace   :  { %2348 = vmatpush.bf16.msrb.mxu1 %v7656_v60 }
 0xad0   :  { %2378 = vmatpush.bf16.msra.mxu0 %v7644_v54 }
 0xad2   :  { %2349 = vmatpush.bf16.msrb.mxu1 %v7648_v3 }
 0xad4   :  { %2379 = vmatpush.bf16.msra.mxu0 %v7636_v2 }
 0xad6   :  { %2350 = vmatpush.bf16.msrb.mxu1 %v7640_v27 }
 0xb3d   :  { %v2042_v33 = vpop.f32.mrf.mxu1 }
 0xb3e   :  { %v2070_v51 = vpop.f32.mrf.mxu0  ;;  %v2043_v18 = vadd.f32 %v2042_v33, %v1895_v31  ;;  %v9319_v33 = vld [vmem:[%s13309_s14 + $0x14] sm:$0xf0] }
 0xb3f   :  { %v2071_v16 = vadd.f32 %v2070_v51, %v1896_v35  ;;  %v7576_v51 = vor.u32 %v9319_v33, %v7575_v28 }
 0xb41   :  { %2336 = vmatpush.bf16.msrb.mxu3 %v7576_v51 }
 0xb43   :  { %v2056_v10 = vpop.f32.mrf.mxu3 }
 0xb44   :  { %v11158_v49 = vadd.f32 %v2056_v10, %v2043_v18  ;;  %v2084_v41 = vpop.f32.mrf.mxu2  ;;  %v7568_v10 = vor.u32 %v9317_v44, %v7567_v5 }
 0xb45   :  { %v11169_v26 = vadd.f32 %v2084_v41, %v2071_v16  ;;  %v2044_v56 = vpop.f32.mrf.mxu1 }
 0xb46   :  { %v2093_v30 = vmin.f32 %v11158_v49, 0.0  ;;  %v2072_v23 = vpop.f32.mrf.mxu0  ;;  %v2045_v29 = vadd.f32 %v2044_v56, %v1895_v31  ;;  %v7580_v31 = vor.u32 %v9318_v32, %v7577_v8  ;;  %2337 = vmatpush.bf16.msrb.mxu3 %v7568_v10 }
 0xb47   :  { %v2094_v53 = vmin.f32 %v11169_v26, 0.0  ;;  %v2073_v47 = vadd.f32 %v2072_v23, %v1896_v35  ;;  %v7631_v35 = vld [vmem:[%s13309_s14 + $0x80] sm:$0xf]  ;;  %v2090_v3 = vmax.f32 %v11169_v26, 0.0 }
 0xb48   :  { %v2097_v12 = vmul.f32 1.442695, %v2093_v30  ;;  %v7632_v41 = vor.u32 %v9333_v57, %v7631_v35  ;;  %2364 = vmatpush.bf16.msra.mxu2 %v7580_v31 }
 0xb49   :  { %v2099_v25 = vmul.f32 1.442695, %v2094_v53  ;;  %v2089_v53 = vmax.f32 %v11158_v49, 0.0  ;;  %v2155_v49 = vld [vmem:[%s13310_s15] sm:$0x3] }
 0xb4a   :  { %9734 = vpow2.f32 %v2097_v12  ;;  %2351 = vmatpush.bf16.msrb.mxu1 %v7632_v41  ;;  %v2157_v26 = vperm.slane %v2155_v49, 0  ;;  %v2158_v8 = vperm.slane %v2155_v49, 1 }
 0xb4b   :  { %9736 = vpow2.f32 %v2099_v25  ;;  %v2058_v34 = vpop.f32.mrf.mxu3 }
 0xb4c   :  { %v2059_v18 = vadd.f32 %v2058_v34, %v2045_v29  ;;  %v2086_v62 = vpop.f32.mrf.mxu2  ;;  %2365 = vmatpush.bf16.msra.mxu2 %v7572_v61 }
 0xb4d   :  { %v2087_v16 = vadd.f32 %v2086_v62, %v2073_v47 }
 0xb4e   :  { %v2095_v59 = vmin.f32 %v2059_v18, 0.0  ;;  %v2091_v12 = vmax.f32 %v2059_v18, 0.0 }
 0xb4f   :  { %v2096_v60 = vmin.f32 %v2087_v16, 0.0  ;;  %v2092_v52 = vmax.f32 %v2087_v16, 0.0 }
 0xb50   :  { %v9735_v50 = vpop.eup %9734  ;;  %v2101_v21 = vmul.f32 1.442695, %v2095_v59 }
 0xb51   :  { %v9737_v63 = vpop.eup %9736  ;;  %v2103_v15 = vmul.f32 1.442695, %v2096_v60  ;;  %v7561_v37 = vadd.f32 -1.0, %v9735_v50  ;;  %v9363_v50 = vld [vmem:[%s13326_s4 + $0x13c] sm:$0xf0] }
 0xb52   :  { %9738 = vpow2.f32 %v2101_v21  ;;  %v7562_v38 = vadd.f32 -1.0, %v9737_v63  ;;  %v9362_v21 = vld [vmem:[%s13326_s4 + $0x13c] sm:$0xf] }
 0xb53   :  { %9740 = vpow2.f32 %v2103_v15  ;;  %v2109_v30 = vmul.f32 1.6732632, %v7561_v37  ;;  %v9361_v15 = vld [vmem:[%s13326_s4 + $0x12c] sm:$0xf0] }
 0xb54   :  { %v2110_v14 = vmul.f32 1.6732632, %v7562_v38  ;;  %v9360_v38 = vld [vmem:[%s13326_s4 + $0x12c] sm:$0xf] }
 0xb55   :  { %v2113_v1 = vadd.f32 %v2109_v30, %v2089_v53  ;;  %v7773_v30 = vld [vmem:[%s13326_s4 + $0x130] sm:$0xf0] }
 0xb56   :  { %v2114_v24 = vadd.f32 %v2110_v14, %v2090_v3  ;;  %v7776_v14 = vor.u32 %v9360_v38, %v7773_v30 }
 0xb57   :  { %v2117_v51 = vmul.f32 1.050701, %v2113_v1 }
 0xb58   :  { %v9739_v45 = vpop.eup %9738  ;;  %v2118_v36 = vmul.f32 1.050701, %v2114_v24 }
 0xb59   :  { %v9741_v20 = vpop.eup %9740  ;;  %v7563_v56 = vadd.f32 -1.0, %v9739_v45 }
 0xb5a   :  { %v7564_v7 = vadd.f32 -1.0, %v9741_v20 }
 0xb5b   :  { %v2111_v23 = vmul.f32 1.6732632, %v7563_v56 }
 0xb5c   :  { %v2112_v28 = vmul.f32 1.6732632, %v7564_v7 }
 0xb5d   :  { %v2115_v33 = vadd.f32 %v2111_v23, %v2091_v12 }
 0xb5e   :  { %v2116_v25 = vadd.f32 %v2112_v28, %v2092_v52 }
 0xb5f   :  { %v2119_v43 = vmul.f32 1.050701, %v2115_v33 }
 0xb60   :  { %v2120_v29 = vmul.f32 1.050701, %v2116_v25 }
 0xb61   :  { %v2121_v27 = vpack.c.bf16 %v2119_v43, %v2117_v51 }
 0xb62   :  { %v2122_v32 = vpack.c.bf16 %v2120_v29, %v2118_v36  ;;  %v7763_v29 = vld [vmem:[%s13326_s4 + $0x118] sm:$0xf] }
 0xb63   :  { %2338 = vmatmul.bf16.vlgmr.msrb.gmra.mxu3 %v2121_v27  ;;  %2366 = vmatmul.bf16.vlgmr.msra.gmra.mxu2 %v2121_v27  ;;  %v9359_v27 = vld [vmem:[%s13326_s4 + $0x11c] sm:$0xf0] }
 0xb64   :  { %7693 = vmatmul.msk.bf16.vlgmr.msrb.gmra.mxu1 %vm2319_vm8, %v2122_v32  ;;  %7694 = vmatmul.msk.bf16.vlgmr.msra.gmra.mxu0 %vm2319_vm8, %v2122_v32  ;;  %v9358_v32 = vld [vmem:[%s13326_s4 + $0x11c] sm:$0xf]  ;;  %v7764_v49 = vor.u32 %v9359_v27, %v7763_v29  ;;  %v7797_v27 = vld [vmem:[%s13326_s4 + $0x160] sm:$0xf0] }
 0xb65   :  { %v9366_v29 = vld [vmem:[%s13326_s4 + $0x15c] sm:$0xf] }
 0xbe1   :  { %v2353_v9 = vpop.f32.mrf.mxu1  ;;  %v2381_v47 = vpop.f32.mrf.mxu0 }
 0xbe6   :  { %v2339_v34 = vpop.f32.mrf.mxu3  ;;  %v2367_v31 = vpop.f32.mrf.mxu2 }
 0xbe7   :  { %v2340_v4 = vadd.f32 %v2339_v34, %v2157_v26  ;;  %v2368_v5 = vadd.f32 %v2367_v31, %v2158_v8  ;;  %v7755_v31 = vld [vmem:[%s13326_s4 + $0x108] sm:$0xf] }
 0xbe9   :  { %v2354_v44 = vadd.f32 %v2353_v9, %v2340_v4  ;;  %v2382_v18 = vadd.f32 %v2381_v47, %v2368_v5  ;;  %v2355_v39 = vpop.f32.mrf.mxu1  ;;  %v2383_v11 = vpop.f32.mrf.mxu0  ;;  %v9357_v4 = vld [vmem:[%s13326_s4 + $0x10c] sm:$0xf0] }
 0xbeb   :  { %v2386_v62 = vadd.f32 %v2354_v44, %v11020_v6  ;;  %v2387_v54 = vadd.f32 %v2382_v18, %v11024_v22  ;;  %v7779_v22 = vld [vmem:[%s13326_s4 + $0x138] sm:$0xf]  ;;  %v9356_v44 = vld [vmem:[%s13326_s4 + $0x10c] sm:$0xf] }
 0xbec   :  { %v7780_v63 = vor.u32 %v9363_v50, %v7779_v22  ;;  %v7739_v50 = vld [vmem:[%s13326_s4 + $0xe8] sm:$0xf] }
 0xbed   :  { %v2392_v35 = vsel %vm389_vm1, %v2387_v54, 0.0 }
 0xbee   :  { %v2341_v57 = vpop.f32.mrf.mxu3  ;;  %v2369_v55 = vpop.f32.mrf.mxu2  ;;  %v2393_v16 = vadd.f32 %v2392_v35, %v2386_v62  ;;  %2633 = vmatpush.bf16.msra.mxu3 %v7780_v63  ;;  %v7803_v63 = vld [vmem:[%s13326_s4 + $0x168] sm:$0xf] }
 0xbef   :  { %v2342_v10 = vadd.f32 %v2341_v57, %v2157_v26  ;;  %v2370_v58 = vadd.f32 %v2369_v55, %v2158_v8  ;;  %v7765_v26 = vld [vmem:[%s13326_s4 + $0x120] sm:$0xf0]  ;;  %v7719_v8 = vld [vmem:[%s13326_s4 + $0x188] sm:$0xff] }
 0xbf0   :  { %2394 = vadd.xlane.f32.xlu2 %v2393_v16  ;;  %v7768_v9 = vor.u32 %v9358_v32, %v7765_v26  ;;  %v2572_v47 = vunpack.c.l.b16 %v7719_v8  ;;  %v2573_v34 = vunpack.c.h.b16 %v7719_v8  ;;  %v7747_v16 = vld [vmem:[%s13326_s4 + $0xf8] sm:$0xf]  ;;  %v7843_v32 = vld [vmem:[%s13327_s30 + $0x188] sm:$0xff]  ;;  %v7800_v26 = vor.u32 %v9366_v29, %v7797_v27 }
 0xbf1   :  { %v2356_v59 = vadd.f32 %v2355_v39, %v2342_v10  ;;  %v2384_v41 = vadd.f32 %v2383_v11, %v2370_v58  ;;  %v9355_v10 = vld [vmem:[%s13326_s4 + $0xfc] sm:$0xf0]  ;;  %v7811_v58 = vld [vmem:[%s13326_s4 + $0x178] sm:$0xf]  ;;  %v2795_v8 = vunpack.c.l.b16 %v7843_v32  ;;  %v9392_v27 = vld [vmem:[%s13327_s30 + $0x16c] sm:$0xf] }
 0xbf2   :  { %v2598_v5 = vpack.c.b16 %v2572_v47, %v2572_v47  ;;  %v2599_v18 = vpack.c.b16 %v2573_v34, %v2573_v34  ;;  %v7748_v39 = vor.u32 %v9355_v10, %v7747_v16  ;;  %v9371_v11 = vld [vmem:[%s13326_s4 + $0x17c] sm:$0xf0]  ;;  %v7723_v47 = vld [vmem:[%s13326_s4 + $0xc8] sm:$0xf]  ;;  %v9349_v34 = vld [vmem:[%s13326_s4 + $0xcc] sm:$0xf0] }
 0xbf3   :  { %v2388_v60 = vadd.f32 %v2356_v59, %v11022_v19  ;;  %v2389_v61 = vadd.f32 %v2384_v41, %v11026_v17  ;;  %v7781_v19 = vld [vmem:[%s13326_s4 + $0x140] sm:$0xf0]  ;;  %v7771_v17 = vld [vmem:[%s13326_s4 + $0x128] sm:$0xf]  ;;  %v9354_v59 = vld [vmem:[%s13326_s4 + $0xfc] sm:$0xf] }
 0xbf4   :  { %v7784_v37 = vor.u32 %v9362_v21, %v7781_v19  ;;  %v7772_v45 = vor.u32 %v9361_v15, %v7771_v17  ;;  %v2628_v35 = vsel %vm393_vm0, %v2598_v5, 0  ;;  %v2631_v55 = vsel %vm393_vm0, %v2599_v18, 0  ;;  %v7749_v41 = vld [vmem:[%s13326_s4 + $0x100] sm:$0xf0]  ;;  %v9353_v21 = vld [vmem:[%s13326_s4 + $0xec] sm:$0xf0] }
 0xbf5   :  { %v2396_v6 = vsel %vm389_vm1, %v2389_v61, 0.0  ;;  %2650 = vmatpush.bf16.msra.mxu1 %v2628_v35  ;;  %2678 = vmatpush.bf16.msrb.mxu0 %v2631_v55  ;;  %v7740_v19 = vor.u32 %v9353_v21, %v7739_v50  ;;  %v9369_v17 = vld [vmem:[%s13326_s4 + $0x16c] sm:$0xf0]  ;;  %v9352_v15 = vld [vmem:[%s13326_s4 + $0xec] sm:$0xf] }
 0xbf6   :  { %v2397_v2 = vadd.f32 %v2396_v6, %v2388_v60  ;;  %2661 = vmatpush.bf16.msrb.mxu2 %v7784_v37  ;;  %2634 = vmatpush.bf16.msra.mxu3 %v7772_v45  ;;  %v9370_v6 = vld [vmem:[%s13326_s4 + $0x17c] sm:$0xf]  ;;  %v7741_v37 = vld [vmem:[%s13326_s4 + $0xf0] sm:$0xf0]  ;;  %v7804_v38 = vor.u32 %v9369_v17, %v7803_v63  ;;  %v9368_v45 = vld [vmem:[%s13326_s4 + $0x16c] sm:$0xf] }
 0xbf7   :  { %v7744_v30 = vor.u32 %v9352_v15, %v7741_v37  ;;  %v9365_v5 = vld [vmem:[%s13326_s4 + $0x14c] sm:$0xf0]  ;;  %v7725_v18 = vld [vmem:[%s13326_s4 + $0xd0] sm:$0xf0]  ;;  %v7903_v16 = vld [vmem:[%s13327_s30 + $0x138] sm:$0xf] }
 0xbf8   :  { %2398 = vadd.xlane.f32.xlu1 %v2397_v2  ;;  %v7813_v2 = vld [vmem:[%s13326_s4 + $0x180] sm:$0xf0]  ;;  %v7789_v55 = vld [vmem:[%s13326_s4 + $0x150] sm:$0xf0]  ;;  %v9385_v21 = vld [vmem:[%s13327_s30 + $0x12c] sm:$0xf0] }
 0xbf9   :  { %v7816_v22 = vor.u32 %v9370_v6, %v7813_v2  ;;  %v7895_v2 = vld [vmem:[%s13327_s30 + $0x128] sm:$0xf]  ;;  %v7935_v63 = vld [vmem:[%s13327_s30 + $0x178] sm:$0xf]  ;;  %v9384_v37 = vld [vmem:[%s13327_s30 + $0x12c] sm:$0xf] }
 0xbfa   :  { %2662 = vmatpush.bf16.msrb.mxu2 %v7776_v14  ;;  %2635 = vmatpush.bf16.msra.mxu3 %v7764_v49  ;;  %v7805_v14 = vld [vmem:[%s13326_s4 + $0x170] sm:$0xf0]  ;;  %v7896_v17 = vor.u32 %v9385_v21, %v7895_v2  ;;  %v9388_v2 = vld [vmem:[%s13327_s30 + $0x14c] sm:$0xf]  ;;  %v2390_v21 = vld [vmem:[%s13311_s16] sm:$0x3] }
 0xbfb   :  { %2679 = vmatpush.bf16.msrb.mxu0 %v7816_v22 }
 0xbfe   :  { %2663 = vmatpush.bf16.msrb.mxu2 %v7768_v9  ;;  %v2796_v9 = vunpack.c.h.b16 %v7843_v32  ;;  %v7929_v32 = vld [vmem:[%s13327_s30 + $0x170] sm:$0xf0] }
 0xc00   :  { %v2822_v10 = vpack.c.b16 %v2796_v9, %v2796_v9  ;;  %v7932_v9 = vor.u32 %v9392_v27, %v7929_v32 }
 0xc02   :  { %v2851_v6 = vsel %vm393_vm0, %v2822_v10, 0  ;;  %v7911_v10 = vld [vmem:[%s13327_s30 + $0x148] sm:$0xf] }
 0xc63   :  { %v2395_v20 = vpop.xlane.xlu2 %2394 }
 0xc64   :  { %v2400_v53 = vmul.f32 %v2395_v20, %v10985_v13  ;;  %v7808_v20 = vor.u32 %v9368_v45, %v7805_v14 }
 0xc66   :  { %v11284_v56 = vsub.f32 %v2386_v62, %v2400_v53  ;;  %v11286_v3 = vsub.f32 %v2387_v54, %v2400_v53  ;;  %v7756_v62 = vor.u32 %v9357_v4, %v7755_v31  ;;  %v7757_v54 = vld [vmem:[%s13326_s4 + $0x110] sm:$0xf0]  ;;  %2680 = vmatpush.bf16.msrb.mxu0 %v7808_v20  ;;  %v7787_v31 = vld [vmem:[%s13326_s4 + $0x148] sm:$0xf]  ;;  %v7724_v4 = vor.u32 %v9349_v34, %v7723_v47  ;;  %v9381_v47 = vld [vmem:[%s13327_s30 + $0x10c] sm:$0xf0] }
 0xc67   :  { %v7760_v57 = vor.u32 %v9356_v44, %v7757_v54  ;;  %v9348_v44 = vld [vmem:[%s13326_s4 + $0xcc] sm:$0xf]  ;;  %v7788_v54 = vor.u32 %v9365_v5, %v7787_v31  ;;  %v7919_v34 = vld [vmem:[%s13327_s30 + $0x158] sm:$0xf]  ;;  %v9391_v31 = vld [vmem:[%s13327_s30 + $0x15c] sm:$0xf0] }
 0xc68   :  { %v2406_v7 = vmul.f32 %v11284_v56, %v11284_v56  ;;  %v2407_v1 = vmul.f32 %v11286_v3, %v11286_v3  ;;  %2636 = vmatpush.bf16.msra.mxu3 %v7756_v62  ;;  %v2821_v62 = vpack.c.b16 %v2795_v8, %v2795_v8  ;;  %v7728_v35 = vor.u32 %v9348_v44, %v7725_v18  ;;  %v9380_v5 = vld [vmem:[%s13327_s30 + $0x10c] sm:$0xf]  ;;  %v7881_v44 = vld [vmem:[%s13327_s30 + $0x110] sm:$0xf0] }
 0xc69   :  { %2664 = vmatpush.bf16.msrb.mxu2 %v7760_v57  ;;  %v9364_v57 = vld [vmem:[%s13326_s4 + $0x14c] sm:$0xf]  ;;  %v7920_v18 = vor.u32 %v9391_v31, %v7919_v34 }
 0xc6a   :  { %v2410_v12 = vsel %vm389_vm1, %v2407_v1, 0.0  ;;  %v9351_v1 = vld [vmem:[%s13326_s4 + $0xdc] sm:$0xf0]  ;;  %2681 = vmatpush.bf16.msrb.mxu0 %v7800_v26  ;;  %v7879_v26 = vld [vmem:[%s13327_s30 + $0x108] sm:$0xf] }
 0xc6b   :  { %v2399_v23 = vpop.xlane.xlu1 %2398  ;;  %v2411_v24 = vadd.f32 %v2410_v12, %v2406_v7  ;;  %v7731_v7 = vld [vmem:[%s13326_s4 + $0xd8] sm:$0xf] }
 0xc6c   :  { %v2401_v52 = vmul.f32 %v2399_v23, %v10985_v13  ;;  %2637 = vmatpush.bf16.msra.mxu3 %v7748_v39  ;;  %v7795_v12 = vld [vmem:[%s13326_s4 + $0x158] sm:$0xf]  ;;  %v9387_v39 = vld [vmem:[%s13327_s30 + $0x13c] sm:$0xf0] }
 0xc6d   :  { %2412 = vadd.xlane.f32.xlu2 %v2411_v24  ;;  %v7732_v24 = vor.u32 %v9351_v1, %v7731_v7  ;;  %v7887_v7 = vld [vmem:[%s13327_s30 + $0x118] sm:$0xf] }
 0xc6e   :  { %v11294_v28 = vsub.f32 %v2388_v60, %v2401_v52  ;;  %v11296_v33 = vsub.f32 %v2389_v61, %v2401_v52  ;;  %v7812_v60 = vor.u32 %v9371_v11, %v7811_v58  ;;  %v7752_v61 = vor.u32 %v9354_v59, %v7749_v41  ;;  %v9367_v52 = vld [vmem:[%s13326_s4 + $0x15c] sm:$0xf0]  ;;  %v9386_v59 = vld [vmem:[%s13327_s30 + $0x13c] sm:$0xf] }
 0xc6f   :  { %v7792_v58 = vor.u32 %v9364_v57, %v7789_v55  ;;  %v2848_v11 = vsel %vm393_vm0, %v2821_v62, 0  ;;  %v9390_v62 = vld [vmem:[%s13327_s30 + $0x15c] sm:$0xf]  ;;  %v7880_v57 = vor.u32 %v9381_v47, %v7879_v26 }
 0xc70   :  { %v2408_v25 = vmul.f32 %v11294_v28, %v11294_v28  ;;  %v2409_v51 = vmul.f32 %v11296_v33, %v11296_v33  ;;  %2651 = vmatpush.bf16.msra.mxu1 %v7812_v60  ;;  %2665 = vmatpush.bf16.msrb.mxu2 %v7752_v61  ;;  %v7904_v60 = vor.u32 %v9387_v39, %v7903_v16  ;;  %v7905_v61 = vld [vmem:[%s13327_s30 + $0x140] sm:$0xf0]  ;;  %v7871_v16 = vld [vmem:[%s13327_s30 + $0xf8] sm:$0xf] }
 0xc71   :  { %2638 = vmatpush.bf16.msra.mxu3 %v7740_v19  ;;  %2682 = vmatpush.bf16.msrb.mxu0 %v7792_v58  ;;  %v7908_v50 = vor.u32 %v9386_v59, %v7905_v61  ;;  %v9395_v19 = vld [vmem:[%s13327_s30 + $0x17c] sm:$0xf0]  ;;  %v7884_v39 = vor.u32 %v9380_v5, %v7881_v44  ;;  %v9389_v59 = vld [vmem:[%s13327_s30 + $0x14c] sm:$0xf0] }
 0xc72   :  { %v2414_v43 = vsel %vm389_vm1, %v2409_v51, 0.0  ;;  %v7733_v51 = vld [vmem:[%s13326_s4 + $0xe0] sm:$0xf0]  ;;  %v7936_v15 = vor.u32 %v9395_v19, %v7935_v63  ;;  %v9373_v5 = vld [vmem:[%s13327_s30 + $0xcc] sm:$0xf0] }
 0xc73   :  { %v2415_v36 = vadd.f32 %v2414_v43, %v2408_v25  ;;  %v9350_v25 = vld [vmem:[%s13326_s4 + $0xdc] sm:$0xf]  ;;  %v7796_v43 = vor.u32 %v9367_v52, %v7795_v12  ;;  %v9393_v52 = vld [vmem:[%s13327_s30 + $0x16c] sm:$0xf0] }
 0xc74   :  { %2652 = vmatpush.bf16.msra.mxu1 %v7804_v38  ;;  %2666 = vmatpush.bf16.msrb.mxu2 %v7744_v30  ;;  %v7897_v38 = vld [vmem:[%s13327_s30 + $0x130] sm:$0xf0]  ;;  %v9394_v30 = vld [vmem:[%s13327_s30 + $0x17c] sm:$0xf] }
 0xc75   :  { %2416 = vadd.xlane.f32.xlu1 %v2415_v36  ;;  %v7736_v36 = vor.u32 %v9350_v25, %v7733_v51  ;;  %2639 = vmatpush.bf16.msra.mxu3 %v7732_v24  ;;  %v7900_v20 = vor.u32 %v9384_v37, %v7897_v38  ;;  %v7927_v24 = vld [vmem:[%s13327_s30 + $0x168] sm:$0xf]  ;;  %v9382_v51 = vld [vmem:[%s13327_s30 + $0x11c] sm:$0xf]  ;;  %v9377_v38 = vld [vmem:[%s13327_s30 + $0xec] sm:$0xf0] }
 0xc76   :  { %2881 = vmatpush.bf16.msra.mxu0 %v7908_v50  ;;  %v7928_v25 = vor.u32 %v9393_v52, %v7927_v24  ;;  %v7912_v50 = vor.u32 %v9389_v59, %v7911_v10  ;;  %v7849_v59 = vld [vmem:[%s13327_s30 + $0xd0] sm:$0xf0] }
 0xc78   :  { %2653 = vmatpush.bf16.msra.mxu1 %v7796_v43  ;;  %2667 = vmatpush.bf16.msrb.mxu2 %v7736_v36  ;;  %v7889_v43 = vld [vmem:[%s13327_s30 + $0x120] sm:$0xf0] }
 0xc79   :  { %2640 = vmatpush.bf16.msra.mxu3 %v7724_v4  ;;  %v7892_v8 = vor.u32 %v9382_v51, %v7889_v43  ;;  %v7855_v51 = vld [vmem:[%s13327_s30 + $0xd8] sm:$0xf]  ;;  %v9375_v43 = vld [vmem:[%s13327_s30 + $0xdc] sm:$0xf0] }
 0xc7a   :  { %2882 = vmatpush.bf16.msra.mxu0 %v7900_v20  ;;  %v9376_v20 = vld [vmem:[%s13327_s30 + $0xec] sm:$0xf]  ;;  %v7856_v47 = vor.u32 %v9375_v43, %v7855_v51  ;;  %v9417_v51 = vld [vmem:[#allocation2 + $0x16c] sm:$0xf0] }
 0xc7b   :  { %v9416_v43 = vld [vmem:[#allocation2 + $0x16c] sm:$0xf] }
 0xc7c   :  { %2654 = vmatpush.bf16.msra.mxu1 %v7788_v54  ;;  %2668 = vmatpush.bf16.msrb.mxu2 %v7728_v35  ;;  %v7921_v54 = vld [vmem:[%s13327_s30 + $0x160] sm:$0xf0] }
 0xc7d   :  { %2870 = vmatpush.bf16.msrb.mxu3 %v2848_v11  ;;  %v7924_v55 = vor.u32 %v9390_v62, %v7921_v54  ;;  %v9379_v11 = vld [vmem:[%s13327_s30 + $0xfc] sm:$0xf0] }
 0xc7e   :  { %2883 = vmatpush.bf16.msra.mxu0 %v7892_v8  ;;  %v7872_v19 = vor.u32 %v9379_v11, %v7871_v16  ;;  %v9372_v11 = vld [vmem:[%s13327_s30 + $0xcc] sm:$0xf] }
 0xc80   :  { %2853 = vmatpush.bf16.msrb.mxu1 %v7904_v60  ;;  %2898 = vmatpush.bf16.msra.mxu2 %v2851_v6  ;;  %v7873_v6 = vld [vmem:[%s13327_s30 + $0x100] sm:$0xf0] }
 0xc81   :  { %2871 = vmatpush.bf16.msrb.mxu3 %v7936_v15 }
 0xc82   :  { %2884 = vmatpush.bf16.msra.mxu0 %v7884_v39 }
 0xc84   :  { %2854 = vmatpush.bf16.msrb.mxu1 %v7896_v17 }
 0xc85   :  { %2872 = vmatpush.bf16.msrb.mxu3 %v7928_v25 }
 0xc89   :  { %2873 = vmatpush.bf16.msrb.mxu3 %v7920_v18 }
 0xc8d   :  { %2874 = vmatpush.bf16.msrb.mxu3 %v7912_v50  ;;  %v7994_v50 = vld [vmem:[#allocation2 + $0x128] sm:$0xf] }
 0xce0   :  { %v2413_v53 = vpop.xlane.xlu2 %2412 }
 0xce1   :  { %v2418_v23 = vmul.f32 %v2413_v53, %v10985_v13  ;;  %v7937_v53 = vld [vmem:[%s13327_s30 + $0x180] sm:$0xf0] }
 0xce2   :  { %v7940_v12 = vor.u32 %v9394_v30, %v7937_v53  ;;  %v7865_v53 = vld [vmem:[%s13327_s30 + $0xf0] sm:$0xf0] }
 0xce3   :  { %v11408_v49 = vadd.f32 1e-05, %v2418_v23  ;;  %v9383_v23 = vld [vmem:[%s13327_s30 + $0x11c] sm:$0xf0]  ;;  %v7868_v25 = vor.u32 %v9376_v20, %v7865_v53  ;;  %v8036_v20 = vld [vmem:[#allocation2 + $0x180] sm:$0xf0] }
 0xce4   :  { %2899 = vmatpush.bf16.msra.mxu2 %v7940_v12  ;;  %v7888_v29 = vor.u32 %v9383_v23, %v7887_v7  ;;  %v2448_v7 = vperm.slane %v2390_v21, 1 }
 0xce5   :  { %9742 = vrsqrt.f32 %v11408_v49  ;;  %vm2428_vm11 = vweird.f32 %v11408_v49 }
 0xce6   :  { %2855 = vmatpush.bf16.msrb.mxu1 %v7888_v29  ;;  %v2934_v29 = vld [vmem:[#allocation2 + $0x188] sm:$0xff] }
 0xce7   :  { %v3015_v44 = vunpack.c.l.b16 %v2934_v29  ;;  %v3016_v18 = vunpack.c.h.b16 %v2934_v29  ;;  %v7978_v29 = vld [vmem:[#allocation2 + $0x108] sm:$0xf] }
 0xce8   :  { %v2417_v41 = vpop.xlane.xlu1 %2416  ;;  %2900 = vmatpush.bf16.msra.mxu2 %v7932_v9 }
 0xce9   :  { %v2419_v22 = vmul.f32 %v2417_v41, %v10985_v13  ;;  %v9378_v41 = vld [vmem:[%s13327_s30 + $0xfc] sm:$0xf] }
 0xcea   :  { %2856 = vmatpush.bf16.msrb.mxu1 %v7880_v57  ;;  %v7876_v37 = vor.u32 %v9378_v41, %v7873_v6  ;;  %v3041_v41 = vpack.c.b16 %v3015_v44, %v3015_v44  ;;  %v9402_v44 = vld [vmem:[#allocation2 + $0xfc] sm:$0xf] }
 0xceb   :  { %v11471_v45 = vpop.eup %9742  ;;  %v11473_v14 = vadd.f32 1e-05, %v2419_v22  ;;  %v7913_v22 = vld [vmem:[%s13327_s30 + $0x150] sm:$0xf0] }
 0xcec   :  { %v2423_v1 = vmul.f32 %v11471_v45, %v11408_v49  ;;  %vm2429_vm9 = vweird.f32 %v11471_v45  ;;  %2901 = vmatpush.bf16.msra.mxu2 %v7924_v55  ;;  %v7916_v17 = vor.u32 %v9388_v2, %v7913_v22  ;;  %v7863_v49 = vld [vmem:[%s13327_s30 + $0xe8] sm:$0xf]  ;;  %2885 = vmatpush.bf16.msra.mxu0 %v7876_v37  ;;  %v9410_v55 = vld [vmem:[#allocation2 + $0x13c] sm:$0xf]  ;;  %v8034_v37 = vld [vmem:[#allocation2 + $0x178] sm:$0xf] }
 0xced   :  { %9744 = vrsqrt.f32 %v11473_v14  ;;  %vm2430_vm12 = vmor %vm2428_vm11, %vm2429_vm9  ;;  %v7864_v52 = vor.u32 %v9377_v38, %v7863_v49  ;;  %vm2438_vm15 = vweird.f32 %v11473_v14  ;;  %v9419_v49 = vld [vmem:[#allocation2 + $0x17c] sm:$0xf0] }
 0xcee   :  { %v2424_v36 = vmul.f32 %v11471_v45, %v2423_v1  ;;  %v2391_v1 = vld [vmem:[#allocation14] sm:$0x3]  ;;  %2857 = vmatpush.bf16.msrb.mxu1 %v7872_v19  ;;  %v7996_v19 = vld [vmem:[#allocation2 + $0x130] sm:$0xf0] }
 0xcef   :  { %v2456_v27 = vperm.slane %v2391_v1, 0  ;;  %v2457_v32 = vperm.slane %v2391_v1, 1  ;;  %v9407_v1 = vld [vmem:[#allocation2 + $0x11c] sm:$0xf0] }
 0xcf0   :  { %v2425_v4 = vmul.f32 0.5, %v2424_v36  ;;  %2902 = vmatpush.bf16.msra.mxu2 %v7916_v17  ;;  %2886 = vmatpush.bf16.msra.mxu0 %v7868_v25  ;;  %v7852_v17 = vor.u32 %v9372_v11, %v7849_v59  ;;  %v8026_v25 = vld [vmem:[#allocation2 + $0x168] sm:$0xf]  ;;  %v9401_v59 = vld [vmem:[#allocation2 + $0xec] sm:$0xf0] }
 0xcf1   :  { %v7962_v11 = vld [vmem:[#allocation2 + $0xe8] sm:$0xf] }
 0xcf2   :  { %v2426_v35 = vsub.f32 1.5, %v2425_v4  ;;  %2858 = vmatpush.bf16.msrb.mxu1 %v7864_v52  ;;  %v7847_v4 = vld [vmem:[%s13327_s30 + $0xc8] sm:$0xf] }
 0xcf3   :  { %v9745_v58 = vpop.eup %9744  ;;  %v7848_v16 = vor.u32 %v9373_v5, %v7847_v4  ;;  %v7970_v4 = vld [vmem:[#allocation2 + $0xf8] sm:$0xf]  ;;  %v9403_v5 = vld [vmem:[#allocation2 + $0xfc] sm:$0xf0] }
 0xcf4   :  { %v2427_v60 = vmul.f32 %v11471_v45, %v2426_v35  ;;  %v2433_v61 = vmul.f32 %v9745_v58, %v11473_v14  ;;  %vm2439_vm14 = vweird.f32 %v9745_v58  ;;  %v8002_v35 = vld [vmem:[#allocation2 + $0x138] sm:$0xf] }
 0xcf5   :  { %vm2440_vm2 = vmor %vm2438_vm15, %vm2439_vm14 }
 0xcf6   :  { %v2434_v63 = vmul.f32 %v9745_v58, %v2433_v61  ;;  %v2431_v15 = vsel %vm2430_vm12, %v11471_v45, %v2427_v60  ;;  %v2447_v45 = vperm.slane %v2390_v21, 0  ;;  %2859 = vmatpush.bf16.msrb.mxu1 %v7856_v47  ;;  %v3042_v60 = vpack.c.b16 %v3016_v18, %v3016_v18  ;;  %v9409_v21 = vld [vmem:[#allocation2 + $0x12c] sm:$0xf0]  ;;  %v8018_v47 = vld [vmem:[#allocation2 + $0x158] sm:$0xf] }
 0xcf7   :  { %v2442_v12 = vmul.f32 %v2431_v15, %v11284_v56  ;;  %v2443_v23 = vmul.f32 %v2431_v15, %v11286_v3  ;;  %v9374_v56 = vld [vmem:[%s13327_s30 + $0xdc] sm:$0xf]  ;;  %v7857_v3 = vld [vmem:[%s13327_s30 + $0xe0] sm:$0xf0]  ;;  %v3068_v15 = vsel %vm393_vm0, %v3041_v41, 0  ;;  %v7995_v53 = vor.u32 %v9409_v21, %v7994_v50 }
 0xcf8   :  { %v2435_v30 = vmul.f32 0.5, %v2434_v63  ;;  %v7860_v31 = vor.u32 %v9374_v56, %v7857_v3  ;;  %v9408_v63 = vld [vmem:[#allocation2 + $0x12c] sm:$0xf]  ;;  %v3071_v38 = vsel %vm393_vm0, %v3042_v60, 0  ;;  %v7972_v18 = vld [vmem:[#allocation2 + $0x100] sm:$0xf0] }
 0xcf9   :  { %v2451_v26 = vmul.f32 %v2447_v45, %v2442_v12  ;;  %v2452_v8 = vmul.f32 %v2448_v7, %v2443_v23  ;;  %v9406_v12 = vld [vmem:[#allocation2 + $0x11c] sm:$0xf]  ;;  %v7988_v23 = vld [vmem:[#allocation2 + $0x120] sm:$0xf0]  ;;  %v9400_v41 = vld [vmem:[#allocation2 + $0xec] sm:$0xf] }
 0xcfa   :  { %v2436_v24 = vsub.f32 1.5, %v2435_v30  ;;  %2887 = vmatpush.bf16.msra.mxu0 %v7860_v31  ;;  %2860 = vmatpush.bf16.msrb.mxu1 %v7848_v16  ;;  %v9418_v30 = vld [vmem:[#allocation2 + $0x17c] sm:$0xf]  ;;  %v7991_v3 = vor.u32 %v9406_v12, %v7988_v23  ;;  %v7975_v16 = vor.u32 %v9402_v44, %v7972_v18  ;;  %v7964_v60 = vld [vmem:[#allocation2 + $0xf0] sm:$0xf0] }
 0xcfb   :  { %v11600_v57 = vadd.f32 %v2456_v27, %v2451_v26  ;;  %v11602_v10 = vadd.f32 %v2457_v32, %v2452_v8  ;;  %v8039_v52 = vor.u32 %v9418_v30, %v8036_v20  ;;  %v7980_v26 = vld [vmem:[#allocation2 + $0x110] sm:$0xf0]  ;;  %v8027_v8 = vor.u32 %v9417_v51, %v8026_v25  ;;  %v9412_v50 = vld [vmem:[#allocation2 + $0x14c] sm:$0xf] }
 0xcfc   :  { %v2437_v36 = vmul.f32 %v9745_v58, %v2436_v24  ;;  %v8035_v24 = vor.u32 %v9419_v49, %v8034_v37  ;;  %v8012_v21 = vld [vmem:[#allocation2 + $0x150] sm:$0xf0]  ;;  %v9398_v37 = vld [vmem:[#allocation2 + $0xdc] sm:$0xf]  ;;  %v7956_v49 = vld [vmem:[#allocation2 + $0xe0] sm:$0xf0] }
 0xcfd   :  { %v7959_v20 = vor.u32 %v9398_v37, %v7956_v49 }
 0xcfe   :  { %v2441_v9 = vsel %vm2440_vm2, %v9745_v58, %v2437_v36  ;;  %2888 = vmatpush.bf16.msra.mxu0 %v7852_v17  ;;  %v8028_v36 = vld [vmem:[#allocation2 + $0x170] sm:$0xf0]  ;;  %v7954_v17 = vld [vmem:[#allocation2 + $0xd8] sm:$0xf] }
 0xcff   :  { %v2444_v14 = vmul.f32 %v2441_v9, %v11294_v28  ;;  %v2445_v34 = vmul.f32 %v2441_v9, %v11296_v33  ;;  %v9411_v28 = vld [vmem:[#allocation2 + $0x13c] sm:$0xf0]  ;;  %v8004_v33 = vld [vmem:[#allocation2 + $0x140] sm:$0xf0]  ;;  %v8031_v9 = vor.u32 %v9416_v43, %v8028_v36 }
 0xd00   :  { %v8003_v2 = vor.u32 %v9411_v28, %v8002_v35  ;;  %v8007_v22 = vor.u32 %v9410_v55, %v8004_v33  ;;  %v8020_v35 = vld [vmem:[#allocation2 + $0x160] sm:$0xf0]  ;;  %v8010_v28 = vld [vmem:[#allocation2 + $0x148] sm:$0xf]  ;;  %v9413_v55 = vld [vmem:[#allocation2 + $0x14c] sm:$0xf0]  ;;  %v7971_v33 = vor.u32 %v9403_v5, %v7970_v4 }
 0xd01   :  { %v2453_v62 = vmul.f32 %v2447_v45, %v2444_v14  ;;  %v2454_v54 = vmul.f32 %v2448_v7, %v2445_v34  ;;  %v7999_v45 = vor.u32 %v9408_v63, %v7996_v19  ;;  %v7986_v7 = vld [vmem:[#allocation2 + $0x118] sm:$0xf]  ;;  %v9415_v14 = vld [vmem:[#allocation2 + $0x15c] sm:$0xf0]  ;;  %v7963_v63 = vor.u32 %v9401_v59, %v7962_v11 }
 0xd02   :  { %v7987_v56 = vor.u32 %v9407_v1, %v7986_v7  ;;  %v7967_v19 = vor.u32 %v9400_v41, %v7964_v60  ;;  %v9396_v7 = vld [vmem:[#allocation2 + $0xcc] sm:$0xf]  ;;  %v7948_v1 = vld [vmem:[#allocation2 + $0xd0] sm:$0xf0] }
 0xd03   :  { %v11604_v58 = vadd.f32 %v2456_v27, %v2453_v62  ;;  %v11606_v39 = vadd.f32 %v2457_v32, %v2454_v54  ;;  %v9405_v27 = vld [vmem:[#allocation2 + $0x10c] sm:$0xf0]  ;;  %v9404_v32 = vld [vmem:[#allocation2 + $0x10c] sm:$0xf]  ;;  %v8019_v62 = vor.u32 %v9415_v14, %v8018_v47  ;;  %v9414_v54 = vld [vmem:[#allocation2 + $0x15c] sm:$0xf]  ;;  %v7951_v23 = vor.u32 %v9396_v7, %v7948_v1 }
 0xd04   :  { %v7979_v34 = vor.u32 %v9405_v27, %v7978_v29  ;;  %v7983_v31 = vor.u32 %v9404_v32, %v7980_v26  ;;  %v7844_v14 = vld [vmem:[%s13300_s5 + $0x2] sm:$0x3] }
 0xd05   :  { %v11616_v61 = vpack.c.bf16 %v11604_v58, %v11600_v57  ;;  %v11620_v6 = vpack.c.bf16 %v11606_v39, %v11602_v10  ;;  %v2718_v18 = vperm.slane %v7844_v14, 0 }
 0xd07   :  { %2641 = vmatmul.bf16.vlgmr.msra.gmra.mxu3 %v11616_v61  ;;  %7817 = vmatmul.msk.bf16.vlgmr.msra.gmra.mxu1 %vm389_vm1, %v11620_v6 }
 0xd08   :  { %2669 = vmatmul.bf16.vlgmr.msrb.gmra.mxu2 %v11616_v61  ;;  %7818 = vmatmul.msk.bf16.vlgmr.msrb.gmra.mxu0 %vm389_vm1, %v11620_v6 }
 0xd09   :  { %3073 = vmatpush.bf16.msra.mxu3 %v8003_v2  ;;  %3101 = vmatpush.bf16.msrb.mxu2 %v8007_v22  ;;  %v8023_v2 = vor.u32 %v9414_v54, %v8020_v35  ;;  %v8011_v22 = vor.u32 %v9413_v55, %v8010_v28  ;;  %v2719_v35 = vperm.slane %v7844_v14, 1 }
 0xd0a   :  { %3090 = vmatpush.bf16.msra.mxu1 %v3068_v15  ;;  %3118 = vmatpush.bf16.msrb.mxu0 %v3071_v38  ;;  %v9399_v15 = vld [vmem:[#allocation2 + $0xdc] sm:$0xf0]  ;;  %v8015_v38 = vor.u32 %v9412_v50, %v8012_v21 }
 0xd0b   :  { %v7955_v30 = vor.u32 %v9399_v15, %v7954_v17 }
 0xd0d   :  { %3074 = vmatpush.bf16.msra.mxu3 %v7995_v53  ;;  %3102 = vmatpush.bf16.msrb.mxu2 %v7999_v45  ;;  %v7946_v53 = vld [vmem:[#allocation2 + $0xc8] sm:$0xf]  ;;  %v9397_v45 = vld [vmem:[#allocation2 + $0xcc] sm:$0xf0] }
 0xd0e   :  { %3091 = vmatpush.bf16.msra.mxu1 %v8035_v24  ;;  %3119 = vmatpush.bf16.msrb.mxu0 %v8039_v52  ;;  %v7947_v12 = vor.u32 %v9397_v45, %v7946_v53  ;;  %v7720_v52 = vld [vmem:[%s13331_s13 + $0x2] sm:$0x3] }
 0xd0f   :  { %v2495_v51 = vperm.slane %v7720_v52, 0  ;;  %v2496_v43 = vperm.slane %v7720_v52, 1 }
 0xd11   :  { %3075 = vmatpush.bf16.msra.mxu3 %v7987_v56  ;;  %3103 = vmatpush.bf16.msrb.mxu2 %v7991_v3 }
 0xd12   :  { %3092 = vmatpush.bf16.msra.mxu1 %v8027_v8  ;;  %3120 = vmatpush.bf16.msrb.mxu0 %v8031_v9 }
 0xd15   :  { %3076 = vmatpush.bf16.msra.mxu3 %v7979_v34  ;;  %3104 = vmatpush.bf16.msrb.mxu2 %v7983_v31 }
 0xd16   :  { %3093 = vmatpush.bf16.msra.mxu1 %v8019_v62  ;;  %3121 = vmatpush.bf16.msrb.mxu0 %v8023_v2 }
 0xd17   :  { %2861 = vmatmul.bf16.vlgmr.msrb.gmra.mxu1 %v11616_v61  ;;  %7941 = vmatmul.msk.bf16.vlgmr.msrb.gmra.mxu3 %vm389_vm1, %v11620_v6 }
 0xd18   :  { %2889 = vmatmul.bf16.vlgmr.msra.gmra.mxu0 %v11616_v61  ;;  %7942 = vmatmul.msk.bf16.vlgmr.msra.gmra.mxu2 %vm389_vm1, %v11620_v6 }
 0xd19   :  { %3077 = vmatpush.bf16.msra.mxu3 %v7971_v33  ;;  %3105 = vmatpush.bf16.msrb.mxu2 %v7975_v16 }
 0xd1a   :  { %3094 = vmatpush.bf16.msra.mxu1 %v8011_v22  ;;  %3122 = vmatpush.bf16.msrb.mxu0 %v8015_v38 }
 0xd1d   :  { %3078 = vmatpush.bf16.msra.mxu3 %v7963_v63  ;;  %3106 = vmatpush.bf16.msrb.mxu2 %v7967_v19 }
 0xd21   :  { %3079 = vmatpush.bf16.msra.mxu3 %v7955_v30  ;;  %3107 = vmatpush.bf16.msrb.mxu2 %v7959_v20 }
 0xd25   :  { %3080 = vmatpush.bf16.msra.mxu3 %v7947_v12  ;;  %3108 = vmatpush.bf16.msrb.mxu2 %v7951_v23 }
 0xd27   :  { %8040 = vmatmul.msk.bf16.vlgmr.msra.gmra.mxu1 %vm389_vm1, %v11620_v6 }
 0xd28   :  { %3081 = vmatmul.bf16.vlgmr.msra.gmra.mxu3 %v11616_v61  ;;  %3109 = vmatmul.bf16.vlgmr.msrb.gmra.mxu2 %v11616_v61 }
 0xd29   :  { %8041 = vmatmul.msk.bf16.vlgmr.msrb.gmra.mxu0 %vm389_vm1, %v11620_v6 }
 0xd84   :  { %v2656_v24 = vpop.f32.mrf.mxu1 }
 0xd85   :  { %v2684_v25 = vpop.f32.mrf.mxu0 }
 0xd8a   :  { %v2642_v36 = vpop.f32.mrf.mxu3 }
 0xd8b   :  { %v2643_v56 = vadd.f32 %v2642_v36, %v2495_v51  ;;  %v2670_v3 = vpop.f32.mrf.mxu2 }
 0xd8c   :  { %v2671_v29 = vadd.f32 %v2670_v3, %v2496_v43  ;;  %v2658_v27 = vpop.f32.mrf.mxu1 }
 0xd8d   :  { %v2657_v32 = vadd.f32 %v2656_v24, %v2643_v56  ;;  %v2686_v26 = vpop.f32.mrf.mxu0 }
 0xd8e   :  { %v2685_v8 = vadd.f32 %v2684_v25, %v2671_v29 }
 0xd8f   :  { %v3129_v61 = vmul.f32 0.15811388, %v2657_v32 }
 0xd90   :  { %v3130_v9 = vmul.f32 0.15811388, %v2685_v8 }
 0xd92   :  { %v11645_v47 = vpack.c.bf16 %v3130_v9, %v3129_v61  ;;  %v2644_v6 = vpop.f32.mrf.mxu3  ;;  %v7943_v9 = vld [vmem:[%s13302_s7 + $0x2] sm:$0x3] }
 0xd93   :  { %v2645_v34 = vadd.f32 %v2644_v6, %v2495_v51  ;;  %v2672_v31 = vpop.f32.mrf.mxu2  ;;  %v2938_v6 = vperm.slane %v7943_v9, 0  ;;  %v2939_v14 = vperm.slane %v7943_v9, 1 }
 0xd94   :  { %v2673_v4 = vadd.f32 %v2672_v31, %v2496_v43  ;;  %v2862_v5 = vpop.f32.mrf.mxu1  ;;  %v3433_v2 = vsel %vm10589_vm6, %v11645_v47, 0  ;;  %v3545_v21 = vsel %vm10623_vm13, %v11645_v47, 0  ;;  %v3657_v63 = vsel %vm10599_vm10, %v11645_v47, 0 }
 0xd95   :  { %v2659_v44 = vadd.f32 %v2658_v27, %v2645_v34  ;;  %v2890_v62 = vpop.f32.mrf.mxu0  ;;  %v2863_v33 = vadd.f32 %v2862_v5, %v2718_v18  ;;  %v3437_v17 = vunpack.c.l.b16 %v3433_v2  ;;  %v3438_v15 = vunpack.c.h.b16 %v3433_v2 }
 0xd96   :  { %v2687_v54 = vadd.f32 %v2686_v26, %v2673_v4  ;;  %v2891_v11 = vadd.f32 %v2890_v62, %v2719_v35  ;;  %v3549_v20 = vunpack.c.l.b16 %v3545_v21  ;;  %v3550_v53 = vunpack.c.h.b16 %v3545_v21 }
 0xd97   :  { %v3131_v28 = vmul.f32 0.15811388, %v2659_v44  ;;  %v3661_v12 = vunpack.c.l.b16 %v3657_v63  ;;  %v3662_v25 = vunpack.c.h.b16 %v3657_v63 }
 0xd98   :  { %v3132_v55 = vmul.f32 0.15811388, %v2687_v54 }
 0xd9a   :  { %v11650_v16 = vpack.c.bf16 %v3132_v55, %v3131_v28  ;;  %v2876_v59 = vpop.f32.mrf.mxu3 }
 0xd9b   :  { %v2877_v41 = vadd.f32 %v2876_v59, %v2863_v33  ;;  %v2904_v60 = vpop.f32.mrf.mxu2 }
 0xd9c   :  { %v2905_v22 = vadd.f32 %v2904_v60, %v2891_v11  ;;  %v3434_v50 = vsel %vm10589_vm6, %v11650_v16, 0  ;;  %v2864_v19 = vpop.f32.mrf.mxu1  ;;  %v3546_v30 = vsel %vm10623_vm13, %v11650_v16, 0  ;;  %v3658_v52 = vsel %vm10599_vm10, %v11650_v16, 0 }
 0xd9d   :  { %3135 = vxpose.xlu2.b32.start [1/2] (short) %v2877_v41, 128  ;;  %v3439_v37 = vunpack.c.l.b16 %v3434_v50  ;;  %v3440_v49 = vunpack.c.h.b16 %v3434_v50  ;;  %v2892_v38 = vpop.f32.mrf.mxu0  ;;  %v3551_v1 = vunpack.c.l.b16 %v3546_v30  ;;  %v2865_v23 = vadd.f32 %v2864_v19, %v2718_v18 }
 0xd9e   :  { %3167 = vxpose.xlu1.b32.start [1/2] (short) (narrow) %v2905_v22, 72  ;;  %v3552_v24 = vunpack.c.h.b16 %v3546_v30  ;;  %v2893_v51 = vadd.f32 %v2892_v38, %v2719_v35  ;;  %v3663_v56 = vunpack.c.l.b16 %v3658_v52  ;;  %v3664_v3 = vunpack.c.h.b16 %v3658_v52 }
 0xd9f   :  { %v11667_v45 = vpack.c.b16 %v3439_v37, %v3437_v17  ;;  %v11669_v7 = vpack.c.b16 %v3440_v49, %v3438_v15  ;;  %v11674_v36 = vpack.c.b16 %v3551_v1, %v3549_v20 }
 0xda0   :  { %v11676_v32 = vpack.c.b16 %v3552_v24, %v3550_v53  ;;  %v11678_v8 = vpack.c.b16 %v3663_v56, %v3661_v12  ;;  %v11680_v61 = vpack.c.b16 %v3664_v3, %v3662_v25 }
 0xda2   :  { %v2878_v43 = vpop.f32.mrf.mxu3 }
 0xda3   :  { %v2879_v29 = vadd.f32 %v2878_v43, %v2865_v23  ;;  %v2906_v27 = vpop.f32.mrf.mxu2 }
 0xda4   :  { %v2907_v26 = vadd.f32 %v2906_v27, %v2893_v51  ;;  %v3096_v34 = vpop.f32.mrf.mxu1 }
 0xda5   :  { %3136 = vxpose.xlu2.b32.end [2/2] (short) %v2879_v29, 128 }
 0xda6   :  { %3168 = vxpose.xlu1.b32.end [2/2] (short) (narrow) %v2907_v26, 72  ;;  %v3124_v31 = vpop.f32.mrf.mxu0 }
 0xdab   :  { %v3082_v4 = vpop.f32.mrf.mxu3  ;;  %v3110_v5 = vpop.f32.mrf.mxu2 }
 0xdac   :  { %v3083_v44 = vadd.f32 %v3082_v4, %v2938_v6  ;;  %v3111_v18 = vadd.f32 %v3110_v5, %v2939_v14  ;;  %v3098_v59 = vpop.f32.mrf.mxu1 }
 0xdae   :  { %v3097_v62 = vadd.f32 %v3096_v34, %v3083_v44  ;;  %v3125_v54 = vadd.f32 %v3124_v31, %v3111_v18  ;;  %v3126_v41 = vpop.f32.mrf.mxu0 }
 0xdb0   :  { %v11685_v11 = vpack.c.bf16 %v3125_v54, %v3097_v62 }
 0xdb2   :  { %v3609_v50 = vsel %vm10623_vm13, %v11685_v11, 0  ;;  %v3721_v63 = vsel %vm10599_vm10, %v11685_v11, 0 }
 0xdb3   :  { %v3084_v35 = vpop.f32.mrf.mxu3  ;;  %v3112_v28 = vpop.f32.mrf.mxu2  ;;  %v3615_v19 = vunpack.c.h.b16 %v3609_v50  ;;  %v3726_v49 = vunpack.c.l.b16 %v3721_v63  ;;  %v3727_v30 = vunpack.c.h.b16 %v3721_v63  ;;  %v3614_v53 = vunpack.c.l.b16 %v3609_v50 }
 0xdb4   :  { %v3085_v55 = vadd.f32 %v3084_v35, %v2938_v6  ;;  %v3113_v33 = vadd.f32 %v3112_v28, %v2939_v14 }
 0xdb6   :  { %v3099_v60 = vadd.f32 %v3098_v59, %v3085_v55  ;;  %v3127_v2 = vadd.f32 %v3126_v41, %v3113_v33 }
 0xdb8   :  { %v3213_v22 = vpack.c.bf16 %v3127_v2, %v3099_v60 }
 0xdba   :  { %v3610_v21 = vsel %vm10623_vm13, %v3213_v22, 0  ;;  %v3722_v15 = vsel %vm10599_vm10, %v3213_v22, 0  ;;  %v11734_v63 = vsel %vm10706_vm7, %v3213_v22, 0 }
 0xdbb   :  { %v3617_v17 = vunpack.c.h.b16 %v3610_v21  ;;  %v3728_v38 = vunpack.c.l.b16 %v3722_v15  ;;  %v3729_v20 = vunpack.c.h.b16 %v3722_v15  ;;  %v3616_v1 = vunpack.c.l.b16 %v3610_v21 }
 0xdbc   :  { %v11748_v15 = vsel %vm10706_vm7, %v11650_v16, 0 }
 0xdbd   :  { %v11697_v37 = vpack.c.b16 %v3617_v17, %v3615_v19  ;;  %v11699_v12 = vpack.c.b16 %v3728_v38, %v3726_v49  ;;  %v11701_v23 = vpack.c.b16 %v3729_v20, %v3727_v30  ;;  %v11703_v24 = vpack.c.b16 %v3616_v1, %v3614_v53 }
 0xdbe   :  { %v11738_v19 = vsel %vm10701_vm4, %v3213_v22, 0  ;;  %v11743_v17 = vsel %vm10701_vm4, %v11650_v16, 0  ;;  %v11755_v38 = vsel %vm10706_vm7, %v11685_v11, 0  ;;  %v11760_v30 = vsel %vm10701_vm4, %v11685_v11, 0 }
 0xdbf   :  { %v3355_v20 = vunpack.c.l.b16 %v11734_v63  ;;  %v3396_v53 = vunpack.c.l.b16 %v11738_v19  ;;  %v11766_v16 = vsel %vm10589_vm6, %v3213_v22, 0  ;;  %v11771_v1 = vsel %vm10701_vm4, %v11645_v47, 0 }
 0xdc0   :  { %v3394_v22 = vunpack.c.l.b16 %v11760_v30 }
 0xe36   :  { %v3151_v52 = vpop.trf.xlu2 }
 0xe3e   :  { %v3152_v25 = vpop.trf.xlu2 }
 0xe3f   :  { %v11705_v51 = vpack.c.bf16 %v3152_v25, %v3151_v52  ;;  %v11776_v52 = vsel %vm10706_vm7, %v11645_v47, 0  ;;  %v3221_v25 = vunpack.c.h.b16 %v11743_v17  ;;  %v3504_v47 = vunpack.c.l.b16 %v11766_v16 }
 0xe42   :  { %v3183_v43 = vpop.trf.xlu1 }
 0xe46   :  { %v3153_v56 = vpop.trf.xlu2 }
 0xe4a   :  { %v3184_v3 = vpop.trf.xlu1 }
 0xe4b   :  { %v11707_v29 = vpack.c.bf16 %v3184_v3, %v3183_v43  ;;  %v3353_v43 = vunpack.c.l.b16 %v11755_v38  ;;  %v11787_v3 = vsel %vm10589_vm6, %v11685_v11, 0 }
 0xe4e   :  { %v3154_v27 = vpop.trf.xlu2 }
 0xe4f   :  { %v11709_v26 = vpack.c.bf16 %v3154_v27, %v3153_v56  ;;  %v3291_v56 = vunpack.c.h.b16 %v11748_v15  ;;  %v3219_v27 = vunpack.c.h.b16 %v11771_v1 }
 0xe52   :  { %v3185_v9 = vpop.trf.xlu1 }
 0xe56   :  { %v3155_v6 = vpop.trf.xlu2 }
 0xe5a   :  { %v3186_v14 = vpop.trf.xlu1 }
 0xe5b   :  { %v11750_v49 = vpack.c.bf16 %v3186_v14, %v3185_v9  ;;  %v3289_v9 = vunpack.c.h.b16 %v11776_v52  ;;  %v3398_v14 = vpack.c.b16 %v3396_v53, %v3394_v22  ;;  %v3505_v22 = vunpack.c.h.b16 %v11766_v16 }
 0xe5d   :  { %v3293_v11 = vpack.c.b16 %v3291_v56, %v3289_v9 }
 0xe5e   :  { %v3156_v34 = vpop.trf.xlu2 }
 0xe5f   :  { %v11711_v31 = vpack.c.bf16 %v3156_v34, %v3155_v6  ;;  %v3357_v6 = vpack.c.b16 %v3355_v20, %v3353_v43  ;;  %v3395_v43 = vunpack.c.h.b16 %v11760_v30 }
 0xe62   :  { %v3187_v4 = vpop.trf.xlu1 }
 0xe66   :  { %v3157_v5 = vpop.trf.xlu2 }
 0xe6a   :  { %v3188_v44 = vpop.trf.xlu1 }
 0xe6b   :  { %v11726_v50 = vpack.c.bf16 %v3188_v44, %v3187_v4  ;;  %v3502_v4 = vunpack.c.l.b16 %v11787_v3 }
 0xe6d   :  { %v3506_v44 = vpack.c.b16 %v3504_v47, %v3502_v4  ;;  %v3288_v47 = vunpack.c.l.b16 %v11776_v52 }
 0xe6e   :  { %v3158_v18 = vpop.trf.xlu2 }
 0xe6f   :  { %v11713_v62 = vpack.c.bf16 %v3158_v18, %v3157_v5  ;;  %v3223_v5 = vpack.c.b16 %v3221_v25, %v3219_v27  ;;  %v3290_v25 = vunpack.c.l.b16 %v11748_v15 }
 0xe71   :  { %v3292_v15 = vpack.c.b16 %v3290_v25, %v3288_v47 }
 0xe72   :  { %v3189_v54 = vpop.trf.xlu1 }
 0xe76   :  { %v11715_v35 = vpop.trf.xlu2 }
 0xe7a   :  { %v3190_v28 = vpop.trf.xlu1 }
 0xe7b   :  { %v11722_v60 = vpack.c.bf16 %v3190_v28, %v3189_v54 }
 0xe7e   :  { %v11717_v55 = vpop.trf.xlu2 }
 0xe7f   :  { %v11814_v53 = vpack.c.bf16 %v11717_v55, %v11715_v35  ;;  %v3356_v35 = vunpack.c.h.b16 %v11734_v63  ;;  %v3397_v55 = vunpack.c.h.b16 %v11738_v19  ;;  %v3218_v63 = vunpack.c.l.b16 %v11771_v1 }
 0xe81   :  { %v3399_v19 = vpack.c.b16 %v3397_v55, %v3395_v43 }
 0xe82   :  { %v3191_v33 = vpop.trf.xlu1 }
 0xe83   :  { %v3211_v59 = vpack.c.bf16 %v3191_v33, %v3191_v33 }
 0xe85   :  { %v11720_v41 = vsel %vm393_vm0, %v3211_v59, 0 }
 0xe86   :  { %3248 = vmatpush.bf16.msrb.mxu3 %v11720_v41  ;;  %3315 = vmatpush.bf16.msra.mxu2 %v11720_v41  ;;  %v3161_v2 = vpop.trf.xlu2 }
 0xe8a   :  { %3249 = vmatpush.bf16.msrb.mxu3 %v11722_v60  ;;  %3316 = vmatpush.bf16.msra.mxu2 %v11722_v60 }
 0xe8e   :  { %3250 = vmatpush.bf16.msrb.mxu3 %v11726_v50  ;;  %3317 = vmatpush.bf16.msra.mxu2 %v11726_v50  ;;  %v3162_v21 = vpop.trf.xlu2 }
 0xe8f   :  { %v11807_v20 = vpack.c.bf16 %v3162_v21, %v3161_v2  ;;  %v3354_v2 = vunpack.c.h.b16 %v11755_v38  ;;  %v3220_v21 = vunpack.c.l.b16 %v11743_v17  ;;  %v3503_v38 = vunpack.c.h.b16 %v11787_v3  ;;  %v11849_v3 = vld [vmem:[%s13340_s22] sm:$0xff] }
 0xe91   :  { %v3358_v56 = vpack.c.b16 %v3356_v35, %v3354_v2  ;;  %v3222_v17 = vpack.c.b16 %v3220_v21, %v3218_v63  ;;  %v3507_v30 = vpack.c.b16 %v3505_v22, %v3503_v38 }
 0xe92   :  { %3251 = vmatpush.bf16.msrb.mxu3 %v11750_v49  ;;  %3318 = vmatpush.bf16.msra.mxu2 %v11750_v49 }
 0xe96   :  { %3252 = vmatpush.bf16.msrb.mxu3 %v11707_v29  ;;  %3319 = vmatpush.bf16.msra.mxu2 %v11707_v29  ;;  %v3163_v34 = vpop.trf.xlu2 }
 0xe99   :  { %8042 = vmatmul.msk.bf16.vlgmr.msrb.gmra.mxu3 %vm389_vm1, %v3223_v5  ;;  %8043 = vmatmul.msk.bf16.vlgmr.msra.gmra.mxu2 %vm389_vm1, %v3293_v11 }
 0xe9a   :  { %3371 = vmatpush.bf16.msra.mxu3 %v3357_v6  ;;  %3412 = vmatpush.bf16.msrb.mxu2 %v3398_v14 }
 0xe9e   :  { %3520 = vmatpush.bf16.msra.mxu2 %v3506_v44  ;;  %v3164_v18 = vpop.trf.xlu2  ;;  %v11861_v44 = vld [vmem:[%s13340_s22 + $0x8] sm:$0xff] }
 0xe9f   :  { %v11802_v59 = vpack.c.bf16 %v3164_v18, %v3163_v34 }
 0xea6   :  { %v3165_v54 = vpop.trf.xlu2 }
 0xeae   :  { %v3166_v28 = vpop.trf.xlu2 }
 0xeaf   :  { %v11797_v33 = vpack.c.bf16 %v3166_v28, %v3165_v54 }
 0xeb1   :  { %3231 = vmatpush.bf16.msrb.mxu1 %v11797_v33  ;;  %3298 = vmatpush.bf16.msra.mxu0 %v11797_v33 }
 0xeb2   :  { %3447 = vmatpush.bf16.msrb.mxu3 %v11797_v33 }
 0xeb5   :  { %3232 = vmatpush.bf16.msrb.mxu1 %v11802_v59  ;;  %3299 = vmatpush.bf16.msra.mxu0 %v11802_v59 }
 0xeb6   :  { %3448 = vmatpush.bf16.msrb.mxu3 %v11802_v59 }
 0xeb9   :  { %3233 = vmatpush.bf16.msrb.mxu1 %v11807_v20  ;;  %3300 = vmatpush.bf16.msra.mxu0 %v11807_v20 }
 0xeba   :  { %3449 = vmatpush.bf16.msrb.mxu3 %v11807_v20 }
 0xebd   :  { %3234 = vmatpush.bf16.msrb.mxu1 %v11814_v53  ;;  %3301 = vmatpush.bf16.msra.mxu0 %v11814_v53 }
 0xebe   :  { %3450 = vmatpush.bf16.msrb.mxu3 %v11814_v53 }
 0xec1   :  { %3235 = vmatpush.bf16.msrb.mxu1 %v11713_v62  ;;  %3302 = vmatpush.bf16.msra.mxu0 %v11713_v62 }
 0xec2   :  { %3451 = vmatpush.bf16.msrb.mxu3 %v11713_v62 }
 0xec5   :  { %3236 = vmatpush.bf16.msrb.mxu1 %v11711_v31  ;;  %3303 = vmatpush.bf16.msra.mxu0 %v11711_v31 }
 0xec6   :  { %3452 = vmatpush.bf16.msrb.mxu3 %v11711_v31 }
 0xec9   :  { %3237 = vmatpush.bf16.msrb.mxu1 %v11709_v26  ;;  %3304 = vmatpush.bf16.msra.mxu0 %v11709_v26 }
 0xeca   :  { %3453 = vmatpush.bf16.msrb.mxu3 %v11709_v26 }
 0xecd   :  { %3238 = vmatpush.bf16.msrb.mxu1 %v11705_v51  ;;  %3305 = vmatpush.bf16.msra.mxu0 %v11705_v51 }
 0xece   :  { %3454 = vmatpush.bf16.msrb.mxu3 %v11705_v51 }
 0xed0   :  { %3239 = vmatmul.bf16.vlgmr.msrb.gmra.mxu1 %v3222_v17  ;;  %3306 = vmatmul.bf16.vlgmr.msra.gmra.mxu0 %v3292_v15 }
 0xed1   :  { %3385 = vmatpush.bf16.msra.mxu1 %v3358_v56  ;;  %3426 = vmatpush.bf16.msrb.mxu0 %v3399_v19 }
 0xed5   :  { %3464 = vmatpush.bf16.msrb.mxu1 %v11720_v41  ;;  %3534 = vmatpush.bf16.msra.mxu0 %v3507_v30 }
 0xed9   :  { %3465 = vmatpush.bf16.msrb.mxu1 %v11722_v60 }
 0xedd   :  { %3466 = vmatpush.bf16.msrb.mxu1 %v11726_v50 }
 0xee1   :  { %3467 = vmatpush.bf16.msrb.mxu1 %v11750_v49 }
 0xee5   :  { %3468 = vmatpush.bf16.msrb.mxu1 %v11707_v29 }
 0xf1c   :  { %v3321_v16 = vpop.f32.mrf.mxu2  ;;  %v3254_v6 = vpop.f32.mrf.mxu3 }
 0xf24   :  { %v3323_v54 = vpop.f32.mrf.mxu2  ;;  %v3256_v15 = vpop.f32.mrf.mxu3 }
 0xf4d   :  { %v3240_v1 = vpop.f32.mrf.mxu1  ;;  %v3307_v52 = vpop.f32.mrf.mxu0 }
 0xf4e   :  { %v3241_v27 = vadd.f32 %v11849_v3, %v3240_v1  ;;  %v3308_v9 = vadd.f32 %v11849_v3, %v3307_v52 }
 0xf50   :  { %v3322_v14 = vadd.f32 %v3321_v16, %v3308_v9  ;;  %v11853_v34 = vadd.f32 %v3254_v6, %v3241_v27 }
 0xf52   :  { %v3326_v4 = vsel %vm1027_vm5, %v3322_v14, -inf  ;;  %v3259_v5 = vsel %vm1027_vm5, %v11853_v34, -inf }
 0xf53   :  { %3327 = vmax.xlane.f32.xlu2 %v3326_v4  ;;  %3260 = vmax.xlane.f32.xlu1 %v3259_v5 }
 0xf55   :  { %v3309_v11 = vpop.f32.mrf.mxu0  ;;  %v3242_v47 = vpop.f32.mrf.mxu1 }
 0xf56   :  { %v3310_v18 = vadd.f32 %v11861_v44, %v3309_v11  ;;  %v3243_v38 = vadd.f32 %v11861_v44, %v3242_v47 }
 0xf58   :  { %v3324_v28 = vadd.f32 %v3323_v54, %v3310_v18  ;;  %v3257_v30 = vadd.f32 %v3256_v15, %v3243_v38 }
 0xf5a   :  { %v3329_v35 = vsel %vm1027_vm5, %v3324_v28, -inf  ;;  %v3262_v16 = vsel %vm1027_vm5, %v3257_v30, -inf }
 0xf5b   :  { %3330 = vmax.xlane.f32.xlu0 %v3329_v35 }
 0xfc6   :  { %v3328_v55 = vpop.xlane.xlu2 %3327  ;;  %v3261_v18 = vpop.xlane.xlu1 %3260 }
 0xfc7   :  { %v3332_v2 = vsub.f32 %v3322_v14, %v3328_v55  ;;  %v3265_v35 = vsub.f32 %v11853_v34, %v3261_v18 }
 0xfc9   :  { %v3334_v21 = vmul.f32 1.442695, %v3332_v2 }
 0xfcb   :  { %9746 = vpow2.f32 %v3334_v21 }
 0xfce   :  { %v3331_v25 = vpop.xlane.xlu0 %3330 }
 0xfcf   :  { %v3333_v43 = vsub.f32 %v3324_v28, %v3331_v25 }
 0xfd1   :  { %v9747_v22 = vpop.eup %9746  ;;  %v3336_v56 = vmul.f32 1.442695, %v3333_v43 }
 0xfd2   :  { %v3338_v63 = vsel %vm1027_vm5, %v9747_v22, 0.0 }
 0xfd3   :  { %9748 = vpow2.f32 %v3336_v56  ;;  %3339 = vadd.xlane.f32.xlu0 %v3338_v63 }
 0xfd9   :  { %v9749_v19 = vpop.eup %9748 }
 0xfda   :  { %v3341_v17 = vsel %vm1027_vm5, %v9749_v19, 0.0 }
 0xfdb   :  { %3342 = vadd.xlane.f32.xlu0 %v3341_v17 }
 0xfe3   :  { %3263 = vmax.xlane.f32.xlu0 %v3262_v16 }
0x1046   :  { %v3340_v1 = vpop.xlane.xlu0 %3339 }
0x1047   :  { %9750 = vrcp.f32 %v3340_v1 }
0x104d   :  { %v9751_v27 = vpop.eup %9750 }
0x104e   :  { %v3343_v52 = vpop.xlane.xlu0 %3342  ;;  %v3346_v6 = vmul.f32 %v9751_v27, %v9747_v22 }
0x104f   :  { %9752 = vrcp.f32 %v3343_v52 }
0x1055   :  { %v9753_v9 = vpop.eup %9752 }
0x1056   :  { %v3347_v14 = vmul.f32 %v9753_v9, %v9749_v19  ;;  %v3264_v2 = vpop.xlane.xlu0 %3263 }
0x1057   :  { %v3266_v22 = vsub.f32 %v3257_v30, %v3264_v2 }
0x1058   :  { %v3350_v4 = vpack.c.bf16 %v3347_v14, %v3346_v6 }
0x1059   :  { %v3269_v63 = vmul.f32 1.442695, %v3266_v22 }
0x105a   :  { %8044 = vmatmul.msk.bf16.vlgmr.msra.gmra.mxu3 %vm1027_vm5, %v3350_v4  ;;  %8045 = vmatmul.msk.bf16.vlgmr.msra.gmra.mxu1 %vm1027_vm5, %v3350_v4 }
0x105b   :  { %3559 = vmatpush.bf16.msra.mxu1 %v11797_v33  ;;  %3646 = vmatpush.bf16.msra.mxu3 %v11697_v37 }
0x105f   :  { %3560 = vmatpush.bf16.msra.mxu1 %v11802_v59 }
0x1063   :  { %3561 = vmatpush.bf16.msra.mxu1 %v11807_v20 }
0x1067   :  { %3562 = vmatpush.bf16.msra.mxu1 %v11814_v53 }
0x106a   :  { %3455 = vmatmul.bf16.vlgmr.msrb.gmra.mxu3 %v11667_v45  ;;  %8048 = vmatmul.msk.bf16.vlgmr.msrb.gmra.mxu1 %vm389_vm1, %v11669_v7 }
0x106b   :  { %3563 = vmatpush.bf16.msra.mxu1 %v11713_v62  ;;  %3744 = vmatpush.bf16.msrb.mxu3 %v11699_v12 }
0x106f   :  { %3564 = vmatpush.bf16.msra.mxu1 %v11711_v31 }
0x1073   :  { %3565 = vmatpush.bf16.msra.mxu1 %v11709_v26 }
0x1077   :  { %3566 = vmatpush.bf16.msra.mxu1 %v11705_v51 }
0x107a   :  { %3567 = vmatmul.bf16.vlgmr.msra.gmra.mxu1 %v11674_v36  ;;  %v3267_v36 = vmul.f32 1.442695, %v3265_v35 }
0x107b   :  { %3758 = vmatpush.bf16.msrb.mxu1 %v11701_v23 }
0x107c   :  { %9754 = vpow2.f32 %v3267_v36 }
0x107d   :  { %9756 = vpow2.f32 %v3269_v63 }
0x1082   :  { %v9755_v47 = vpop.eup %9754 }
0x1083   :  { %v3271_v34 = vsel %vm1027_vm5, %v9755_v47, 0.0  ;;  %v9757_v19 = vpop.eup %9756 }
0x1084   :  { %v3274_v38 = vsel %vm1027_vm5, %v9757_v19, 0.0 }
0x10d7   :  { %v11886_v37 = vpop.f32.mrf.mxu1 }
0x10dd   :  { %v11888_v45 = vpop.f32.mrf.mxu3 }
0x10df   :  { %v11890_v5 = vpop.f32.mrf.mxu1 }
0x10e5   :  { %v11892_v7 = vpop.f32.mrf.mxu3 }
0x10e7   :  { %v3470_v11 = vpop.f32.mrf.mxu1 }
0x10ed   :  { %v3456_v12 = vpop.f32.mrf.mxu3 }
0x10ee   :  { %v3457_v54 = vadd.f32 %v11849_v3, %v3456_v12 }
0x10ef   :  { %v3472_v25 = vpop.f32.mrf.mxu1 }
0x10f0   :  { %v3471_v28 = vadd.f32 %v3470_v11, %v3457_v54 }
0x10f2   :  { %v3475_v23 = vsel %vm1027_vm5, %v3471_v28, -inf }
0x10f3   :  { %3476 = vmax.xlane.f32.xlu0 %v3475_v23 }
0x10f5   :  { %v3458_v55 = vpop.f32.mrf.mxu3 }
0x10f6   :  { %v3459_v21 = vadd.f32 %v11861_v44, %v3458_v55 }
0x10f8   :  { %v3473_v43 = vadd.f32 %v3472_v25, %v3459_v21 }
0x10fa   :  { %v3478_v56 = vsel %vm1027_vm5, %v3473_v43, -inf }
0x10fb   :  { %3479 = vmax.xlane.f32.xlu0 %v3478_v56 }
0x1103   :  { %3272 = vadd.xlane.f32.xlu0 %v3271_v34 }
0x110b   :  { %3275 = vadd.xlane.f32.xlu0 %v3274_v38 }
0x1166   :  { %v3477_v17 = vpop.xlane.xlu0 %3476 }
0x1167   :  { %v3481_v15 = vsub.f32 %v3471_v28, %v3477_v17 }
0x1169   :  { %v3483_v16 = vmul.f32 1.442695, %v3481_v15 }
0x116b   :  { %9758 = vpow2.f32 %v3483_v16 }
0x116e   :  { %v3480_v1 = vpop.xlane.xlu0 %3479 }
0x116f   :  { %v3482_v52 = vsub.f32 %v3473_v43, %v3480_v1 }
0x1171   :  { %v9759_v30 = vpop.eup %9758  ;;  %v3485_v27 = vmul.f32 1.442695, %v3482_v52 }
0x1172   :  { %v3487_v9 = vsel %vm1027_vm5, %v9759_v30, 0.0 }
0x1173   :  { %9760 = vpow2.f32 %v3485_v27  ;;  %3488 = vadd.xlane.f32.xlu0 %v3487_v9 }
0x1176   :  { %v3273_v6 = vpop.xlane.xlu0 %3272 }
0x1177   :  { %9762 = vrcp.f32 %v3273_v6 }
0x1179   :  { %v9761_v14 = vpop.eup %9760 }
0x117a   :  { %v3490_v4 = vsel %vm1027_vm5, %v9761_v14, 0.0 }
0x117b   :  { %3491 = vadd.xlane.f32.xlu0 %v3490_v4 }
0x117d   :  { %v9763_v12 = vpop.eup %9762 }
0x117e   :  { %v3276_v11 = vpop.xlane.xlu0 %3275  ;;  %v3279_v54 = vmul.f32 %v9763_v12, %v9755_v47 }
0x117f   :  { %9764 = vrcp.f32 %v3276_v11 }
0x1185   :  { %v9765_v18 = vpop.eup %9764 }
0x1186   :  { %v3280_v28 = vmul.f32 %v9765_v18, %v9757_v19 }
0x1188   :  { %v3283_v35 = vpack.c.bf16 %v3280_v28, %v3279_v54 }
0x118a   :  { %8046 = vmatmul.msk.bf16.vlgmr.msrb.gmra.mxu2 %vm1027_vm5, %v3283_v35  ;;  %8047 = vmatmul.msk.bf16.vlgmr.msrb.gmra.mxu0 %vm1027_vm5, %v3283_v35 }
0x118b   :  { %3576 = vmatpush.bf16.msrb.mxu2 %v11720_v41  ;;  %3632 = vmatpush.bf16.msrb.mxu0 %v11703_v24 }
0x118f   :  { %3577 = vmatpush.bf16.msrb.mxu2 %v11722_v60 }
0x1193   :  { %3578 = vmatpush.bf16.msrb.mxu2 %v11726_v50 }
0x1197   :  { %3579 = vmatpush.bf16.msrb.mxu2 %v11750_v49 }
0x119b   :  { %3580 = vmatpush.bf16.msrb.mxu2 %v11707_v29 }
0x11e6   :  { %v3489_v23 = vpop.xlane.xlu0 %3488 }
0x11e7   :  { %9766 = vrcp.f32 %v3489_v23 }
0x11ed   :  { %v9767_v55 = vpop.eup %9766 }
0x11ee   :  { %v3492_v36 = vpop.xlane.xlu0 %3491  ;;  %v3495_v21 = vmul.f32 %v9767_v55, %v9759_v30 }
0x11ef   :  { %9768 = vrcp.f32 %v3492_v36 }
0x11f5   :  { %v9769_v2 = vpop.eup %9768 }
0x11f6   :  { %v3496_v25 = vmul.f32 %v9769_v2, %v9761_v14 }
0x11f8   :  { %v3499_v43 = vpack.c.bf16 %v3496_v25, %v3495_v21 }
0x11fa   :  { %8049 = vmatmul.msk.bf16.vlgmr.msra.gmra.mxu2 %vm1027_vm5, %v3499_v43  ;;  %8050 = vmatmul.msk.bf16.vlgmr.msra.gmra.mxu0 %vm1027_vm5, %v3499_v43 }
0x11fb   :  { %3671 = vmatpush.bf16.msra.mxu2 %v11797_v33  ;;  %3688 = vmatpush.bf16.msra.mxu0 %v11720_v41 }
0x11ff   :  { %3672 = vmatpush.bf16.msra.mxu2 %v11802_v59  ;;  %3689 = vmatpush.bf16.msra.mxu0 %v11722_v60 }
0x1203   :  { %3673 = vmatpush.bf16.msra.mxu2 %v11807_v20  ;;  %3690 = vmatpush.bf16.msra.mxu0 %v11726_v50 }
0x1207   :  { %3674 = vmatpush.bf16.msra.mxu2 %v11814_v53  ;;  %3691 = vmatpush.bf16.msra.mxu0 %v11750_v49  ;;  %v3428_v24 = vpop.f32.mrf.mxu0 }
0x120a   :  { %8051 = vmatmul.msk.bf16.vlgmr.msrb.gmra.mxu2 %vm389_vm1, %v11676_v32  ;;  %v3429_v32 = vadd.f32 %v3428_v24, %v11886_v37 }
0x120b   :  { %3675 = vmatpush.bf16.msra.mxu2 %v11713_v62  ;;  %3692 = vmatpush.bf16.msra.mxu0 %v11707_v29 }
0x120d   :  { %v3414_v41 = vpop.f32.mrf.mxu2 }
0x120e   :  { %v3415_v29 = vadd.f32 %v3414_v41, %v11888_v45 }
0x120f   :  { %3676 = vmatpush.bf16.msra.mxu2 %v11711_v31  ;;  %v11929_v60 = vpop.f32.mrf.mxu0 }
0x1213   :  { %3677 = vmatpush.bf16.msra.mxu2 %v11709_v26 }
0x1215   :  { %v11931_v50 = vpop.f32.mrf.mxu2 }
0x1217   :  { %3678 = vmatpush.bf16.msra.mxu2 %v11705_v51  ;;  %v3568_v51 = vpop.f32.mrf.mxu1 }
0x121a   :  { %3679 = vmatmul.bf16.vlgmr.msra.gmra.mxu2 %v11678_v8  ;;  %v3569_v8 = vadd.f32 %v11849_v3, %v3568_v51 }
0x121f   :  { %v3570_v22 = vpop.f32.mrf.mxu1 }
0x1220   :  { %v3571_v37 = vadd.f32 %v11861_v44, %v3570_v22  ;;  %v9434_v22 = vld [vmem:[#allocation5 + $0x13c] sm:$0xf] }
0x1277   :  { %v3536_v49 = vpop.f32.mrf.mxu0 }
0x1278   :  { %v11934_v62 = vadd.f32 %v3536_v49, %v3429_v32 }
0x127d   :  { %v3522_v31 = vpop.f32.mrf.mxu2 }
0x127e   :  { %v3541_v33 = vadd.f32 %v3522_v31, %v3415_v29 }
0x127f   :  { %v11949_v18 = vpop.f32.mrf.mxu0 }
0x1285   :  { %v11937_v26 = vpop.f32.mrf.mxu2 }
0x128d   :  { %v3582_v59 = vpop.f32.mrf.mxu2 }
0x128e   :  { %v3583_v20 = vadd.f32 %v3582_v59, %v3569_v8 }
0x1290   :  { %v3587_v53 = vsel %vm1027_vm5, %v3583_v20, -inf }
0x1291   :  { %3588 = vmax.xlane.f32.xlu0 %v3587_v53  ;;  %v9435_v53 = vld [vmem:[#allocation5 + $0x13c] sm:$0xf0] }
0x1295   :  { %v3584_v56 = vpop.f32.mrf.mxu2 }
0x1296   :  { %v3585_v63 = vadd.f32 %v3584_v56, %v3571_v37  ;;  %v8117_v56 = vld [vmem:[#allocation5 + $0x140] sm:$0xf0] }
0x1298   :  { %v3590_v47 = vsel %vm1027_vm5, %v3585_v63, -inf }
0x1299   :  { %3591 = vmax.xlane.f32.xlu0 %v3590_v47  ;;  %v9433_v47 = vld [vmem:[#allocation5 + $0x12c] sm:$0xf0] }
0x129d   :  { %v3680_v23 = vpop.f32.mrf.mxu2 }
0x129e   :  { %v3681_v36 = vadd.f32 %v11849_v3, %v3680_v23 }
0x12a5   :  { %v3682_v25 = vpop.f32.mrf.mxu2 }
0x12a6   :  { %v3683_v43 = vadd.f32 %v11861_v44, %v3682_v25 }
0x1304   :  { %v3589_v45 = vpop.xlane.xlu0 %3588 }
0x1305   :  { %v3593_v34 = vsub.f32 %v3583_v20, %v3589_v45  ;;  %v8115_v20 = vld [vmem:[#allocation5 + $0x138] sm:$0xf]  ;;  %v8120_v45 = vor.u32 %v9434_v22, %v8117_v56  ;;  %v9440_v56 = vld [vmem:[#allocation5 + $0x16c] sm:$0xf] }
0x1306   :  { %v8116_v37 = vor.u32 %v9435_v53, %v8115_v20  ;;  %v8139_v20 = vld [vmem:[#allocation5 + $0x168] sm:$0xf]  ;;  %v9441_v53 = vld [vmem:[#allocation5 + $0x16c] sm:$0xf0] }
0x1307   :  { %v3595_v19 = vmul.f32 1.442695, %v3593_v34  ;;  %v9432_v34 = vld [vmem:[#allocation5 + $0x12c] sm:$0xf]  ;;  %3966 = vmatpush.bf16.msra.mxu1 %v8120_v45  ;;  %v9426_v45 = vld [vmem:[#allocation5 + $0xfc] sm:$0xf] }
0x1309   :  { %9770 = vpow2.f32 %v3595_v19  ;;  %v8109_v19 = vld [vmem:[#allocation5 + $0x130] sm:$0xf0] }
0x130c   :  { %v3592_v38 = vpop.xlane.xlu0 %3591 }
0x130d   :  { %v3594_v17 = vsub.f32 %v3585_v63, %v3592_v38  ;;  %v8107_v63 = vld [vmem:[#allocation5 + $0x128] sm:$0xf] }
0x130e   :  { %v3796_v38 = vld [vmem:[#allocation5 + $0x188] sm:$0xff] }
0x130f   :  { %v9771_v15 = vpop.eup %9770  ;;  %v3597_v16 = vmul.f32 1.442695, %v3594_v17  ;;  %v8108_v17 = vor.u32 %v9433_v47, %v8107_v63  ;;  %v8141_v63 = vld [vmem:[#allocation5 + $0x170] sm:$0xf0]  ;;  %v8083_v47 = vld [vmem:[#allocation5 + $0xf8] sm:$0xf] }
0x1310   :  { %v3599_v1 = vsel %vm1027_vm5, %v9771_v15, 0.0 }
0x1311   :  { %9772 = vpow2.f32 %v3597_v16  ;;  %3600 = vadd.xlane.f32.xlu0 %v3599_v1  ;;  %v3878_v16 = vunpack.c.h.b16 %v3796_v38  ;;  %v8112_v1 = vor.u32 %v9432_v34, %v8109_v19  ;;  %v8085_v34 = vld [vmem:[#allocation5 + $0x100] sm:$0xf0] }
0x1313   :  { %3967 = vmatpush.bf16.msra.mxu1 %v8112_v1 }
0x1317   :  { %v9773_v52 = vpop.eup %9772 }
0x1318   :  { %v3602_v30 = vsel %vm1027_vm5, %v9773_v52, 0.0 }
0x1319   :  { %3603 = vadd.xlane.f32.xlu0 %v3602_v30  ;;  %v9431_v30 = vld [vmem:[#allocation5 + $0x11c] sm:$0xf0] }
0x1384   :  { %v3601_v27 = vpop.xlane.xlu0 %3600 }
0x1385   :  { %9774 = vrcp.f32 %v3601_v27  ;;  %v9430_v27 = vld [vmem:[#allocation5 + $0x11c] sm:$0xf] }
0x138b   :  { %v9775_v6 = vpop.eup %9774 }
0x138c   :  { %v3604_v9 = vpop.xlane.xlu0 %3603  ;;  %v3607_v4 = vmul.f32 %v9775_v6, %v9771_v15  ;;  %v3877_v15 = vunpack.c.l.b16 %v3796_v38  ;;  %v3904_v6 = vpack.c.b16 %v3878_v16, %v3878_v16  ;;  %v8088_v38 = vor.u32 %v9426_v45, %v8085_v34  ;;  %v9438_v16 = vld [vmem:[#allocation5 + $0x15c] sm:$0xf] }
0x138d   :  { %9776 = vrcp.f32 %v3604_v9 }
0x138e   :  { %v3903_v9 = vpack.c.b16 %v3877_v15, %v3877_v15  ;;  %v9439_v15 = vld [vmem:[#allocation5 + $0x15c] sm:$0xf0] }
0x1390   :  { %v3933_v23 = vsel %vm393_vm0, %v3903_v9, 0  ;;  %v9425_v9 = vld [vmem:[#allocation5 + $0xec] sm:$0xf0] }
0x1393   :  { %v9777_v14 = vpop.eup %9776 }
0x1394   :  { %v3608_v11 = vmul.f32 %v9777_v14, %v9773_v52  ;;  %v8099_v52 = vld [vmem:[#allocation5 + $0x118] sm:$0xf]  ;;  %v8101_v14 = vld [vmem:[#allocation5 + $0x120] sm:$0xf0] }
0x1396   :  { %v3611_v12 = vpack.c.bf16 %v3608_v11, %v3607_v4  ;;  %v8147_v4 = vld [vmem:[#allocation5 + $0x178] sm:$0xf]  ;;  %v9443_v11 = vld [vmem:[#allocation5 + $0x17c] sm:$0xf0] }
0x1398   :  { %8052 = vmatmul.msk.bf16.vlgmr.msrb.gmra.mxu0 %vm1027_vm5, %v3611_v12  ;;  %8053 = vmatmul.msk.bf16.vlgmr.msra.gmra.mxu3 %vm1027_vm5, %v3611_v12  ;;  %v9442_v12 = vld [vmem:[#allocation5 + $0x17c] sm:$0xf] }
0x1399   :  { %3938 = vmatpush.bf16.msra.mxu3 %v8116_v37  ;;  %3955 = vmatpush.bf16.msrb.mxu0 %v3933_v23  ;;  %v8140_v37 = vor.u32 %v9441_v53, %v8139_v20  ;;  %v3431_v53 = vadd.f32 %v11929_v60, %v11890_v5 }
0x139d   :  { %3939 = vmatpush.bf16.msra.mxu3 %v8108_v17  ;;  %v8131_v17 = vld [vmem:[#allocation5 + $0x158] sm:$0xf] }
0x139e   :  { %v8132_v1 = vor.u32 %v9439_v15, %v8131_v17  ;;  %v3798_v17 = vld [vmem:[#allocation7 + $0x2] sm:$0x3] }
0x13a8   :  { %8054 = vmatmul.msk.bf16.vlgmr.msra.gmra.mxu0 %vm389_vm1, %v11680_v61 }
0x1415   :  { %v3634_v54 = vpop.f32.mrf.mxu0 }
0x1416   :  { %v11951_v28 = vadd.f32 %v3634_v54, %v3541_v33  ;;  %v8149_v54 = vld [vmem:[#allocation5 + $0x180] sm:$0xf0] }
0x1417   :  { %v8152_v25 = vor.u32 %v9442_v12, %v8149_v54  ;;  %v9437_v12 = vld [vmem:[#allocation5 + $0x14c] sm:$0xf0] }
0x141d   :  { %v11953_v35 = vpop.f32.mrf.mxu0 }
0x1425   :  { %v3694_v55 = vpop.f32.mrf.mxu0 }
0x1426   :  { %v3695_v2 = vadd.f32 %v3694_v55, %v3681_v36  ;;  %v3936_v36 = vsel %vm393_vm0, %v3904_v6, 0  ;;  %v8100_v55 = vor.u32 %v9431_v30, %v8099_v52  ;;  %v8133_v52 = vld [vmem:[#allocation5 + $0x160] sm:$0xf0]  ;;  %v9424_v6 = vld [vmem:[#allocation5 + $0xec] sm:$0xf] }
0x1427   :  { %3983 = vmatpush.bf16.msrb.mxu2 %v3936_v36  ;;  %v8136_v30 = vor.u32 %v9438_v16, %v8133_v52  ;;  %v9436_v36 = vld [vmem:[#allocation5 + $0x14c] sm:$0xf] }
0x1428   :  { %v3699_v21 = vsel %vm1027_vm5, %v3695_v2, -inf  ;;  %3940 = vmatpush.bf16.msra.mxu3 %v8100_v55  ;;  %v8125_v55 = vld [vmem:[#allocation5 + $0x150] sm:$0xf0] }
0x1429   :  { %3700 = vmax.xlane.f32.xlu0 %v3699_v21  ;;  %v8148_v21 = vor.u32 %v9443_v11, %v8147_v4  ;;  %v8077_v4 = vld [vmem:[#allocation5 + $0xf0] sm:$0xf0]  ;;  %v8123_v11 = vld [vmem:[#allocation5 + $0x148] sm:$0xf] }
0x142a   :  { %v8080_v54 = vor.u32 %v9424_v6, %v8077_v4  ;;  %v8124_v23 = vor.u32 %v9437_v12, %v8123_v11 }
0x142b   :  { %3956 = vmatpush.bf16.msrb.mxu0 %v8148_v21  ;;  %3984 = vmatpush.bf16.msrb.mxu2 %v8152_v25  ;;  %v8128_v21 = vor.u32 %v9436_v36, %v8125_v55  ;;  %v9423_v25 = vld [vmem:[#allocation5 + $0xdc] sm:$0xf0] }
0x142d   :  { %v3696_v24 = vpop.f32.mrf.mxu0 }
0x142e   :  { %v3697_v61 = vadd.f32 %v3696_v24, %v3683_v43 }
0x142f   :  { %3957 = vmatpush.bf16.msrb.mxu0 %v8140_v37 }
0x1430   :  { %v3702_v41 = vsel %vm1027_vm5, %v3697_v61, -inf }
0x1431   :  { %3703 = vmax.xlane.f32.xlu0 %v3702_v41 }
0x1433   :  { %3958 = vmatpush.bf16.msrb.mxu0 %v8132_v1 }
0x1437   :  { %3959 = vmatpush.bf16.msrb.mxu0 %v8124_v23 }
0x149c   :  { %v3701_v32 = vpop.xlane.xlu0 %3700 }
0x149d   :  { %v3705_v49 = vsub.f32 %v3695_v2, %v3701_v32  ;;  %v8104_v2 = vor.u32 %v9430_v27, %v8101_v14  ;;  %v8075_v27 = vld [vmem:[#allocation5 + $0xe8] sm:$0xf] }
0x149e   :  { %v8076_v14 = vor.u32 %v9425_v9, %v8075_v27 }
0x149f   :  { %v3707_v29 = vmul.f32 1.442695, %v3705_v49  ;;  %3968 = vmatpush.bf16.msra.mxu1 %v8104_v2  ;;  %v8067_v2 = vld [vmem:[#allocation5 + $0xd8] sm:$0xf] }
0x14a1   :  { %9778 = vpow2.f32 %v3707_v29 }
0x14a4   :  { %v3704_v31 = vpop.xlane.xlu0 %3703 }
0x14a5   :  { %v3706_v33 = vsub.f32 %v3697_v61, %v3704_v31  ;;  %v8091_v31 = vld [vmem:[#allocation5 + $0x108] sm:$0xf] }
0x14a7   :  { %v9779_v3 = vpop.eup %9778  ;;  %v3709_v51 = vmul.f32 1.442695, %v3706_v33  ;;  %v9429_v33 = vld [vmem:[#allocation5 + $0x10c] sm:$0xf0] }
0x14a8   :  { %v3711_v8 = vsel %vm1027_vm5, %v9779_v3, 0.0 }
0x14a9   :  { %9780 = vpow2.f32 %v3709_v51  ;;  %3712 = vadd.xlane.f32.xlu0 %v3711_v8  ;;  %v9428_v51 = vld [vmem:[#allocation5 + $0x10c] sm:$0xf]  ;;  %v8092_v8 = vor.u32 %v9429_v33, %v8091_v31  ;;  %v8061_v33 = vld [vmem:[#allocation5 + $0xd0] sm:$0xf0] }
0x14ab   :  { %3941 = vmatpush.bf16.msra.mxu3 %v8092_v8  ;;  %v3648_v8 = vpop.f32.mrf.mxu3 }
0x14af   :  { %v9781_v59 = vpop.eup %9780 }
0x14b0   :  { %v3714_v44 = vsel %vm1027_vm5, %v9781_v59, 0.0 }
0x14b1   :  { %3715 = vadd.xlane.f32.xlu0 %v3714_v44  ;;  %v8093_v44 = vld [vmem:[#allocation5 + $0x110] sm:$0xf0] }
0x14b2   :  { %v8096_v22 = vor.u32 %v9428_v51, %v8093_v44 }
0x14b3   :  { %v3650_v44 = vpop.f32.mrf.mxu3 }
0x14b4   :  { %3969 = vmatpush.bf16.msra.mxu1 %v8096_v22  ;;  %v3544_v22 = vadd.f32 %v11949_v18, %v3431_v53 }
0x14b8   :  { %3970 = vmatpush.bf16.msra.mxu1 %v8088_v38 }
0x14bc   :  { %3971 = vmatpush.bf16.msra.mxu1 %v8080_v54 }
0x151c   :  { %v3713_v43 = vpop.xlane.xlu0 %3712 }
0x151d   :  { %9782 = vrcp.f32 %v3713_v43  ;;  %v9422_v43 = vld [vmem:[#allocation5 + $0xdc] sm:$0xf] }
0x1523   :  { %v9783_v61 = vpop.eup %9782 }
0x1524   :  { %v3716_v24 = vpop.xlane.xlu0 %3715  ;;  %v3719_v32 = vmul.f32 %v9783_v61, %v9779_v3  ;;  %v8144_v3 = vor.u32 %v9440_v56, %v8141_v63  ;;  %v8068_v61 = vor.u32 %v9423_v25, %v8067_v2  ;;  %v3654_v56 = vadd.f32 %v3648_v8, %v11934_v62 }
0x1525   :  { %9784 = vrcp.f32 %v3716_v24  ;;  %v8069_v24 = vld [vmem:[#allocation5 + $0xe0] sm:$0xf0]  ;;  %v3656_v63 = vadd.f32 %v3650_v44, %v3544_v22 }
0x1526   :  { %3985 = vmatpush.bf16.msrb.mxu2 %v8144_v3  ;;  %v3417_v3 = vadd.f32 %v11931_v50, %v11892_v7  ;;  %v3801_v7 = vperm.slane %v3798_v17, 1  ;;  %v8213_v22 = vld [vmem:[#allocation11 + $0x138] sm:$0xf] }
0x1528   :  { %v3543_v34 = vadd.f32 %v11937_v26, %v3417_v3  ;;  %v3800_v26 = vperm.slane %v3798_v17, 0 }
0x152a   :  { %3986 = vmatpush.bf16.msrb.mxu2 %v8136_v30  ;;  %v3655_v38 = vadd.f32 %v11953_v35, %v3543_v34  ;;  %v9456_v34 = vld [vmem:[#allocation11 + $0x12c] sm:$0xf] }
0x152b   :  { %v9785_v41 = vpop.eup %9784 }
0x152c   :  { %v3720_v49 = vmul.f32 %v9785_v41, %v9781_v59  ;;  %v9427_v59 = vld [vmem:[#allocation5 + $0xfc] sm:$0xf0]  ;;  %v8072_v41 = vor.u32 %v9422_v43, %v8069_v24 }
0x152d   :  { %v8084_v19 = vor.u32 %v9427_v59, %v8083_v47 }
0x152e   :  { %v3723_v29 = vpack.c.bf16 %v3720_v49, %v3719_v32  ;;  %3987 = vmatpush.bf16.msrb.mxu2 %v8128_v21  ;;  %v8059_v32 = vld [vmem:[#allocation5 + $0xc8] sm:$0xf]  ;;  %v9421_v49 = vld [vmem:[#allocation5 + $0xcc] sm:$0xf0]  ;;  %3972 = vmatpush.bf16.msra.mxu1 %v8072_v41 }
0x152f   :  { %3942 = vmatpush.bf16.msra.mxu3 %v8084_v19  ;;  %v8060_v31 = vor.u32 %v9421_v49, %v8059_v32 }
0x1530   :  { %8055 = vmatmul.msk.bf16.vlgmr.msrb.gmra.mxu3 %vm1027_vm5, %v3723_v29  ;;  %8056 = vmatmul.msk.bf16.vlgmr.msrb.gmra.mxu1 %vm1027_vm5, %v3723_v29  ;;  %v9420_v29 = vld [vmem:[#allocation5 + $0xcc] sm:$0xf] }
0x1531   :  { %v8064_v51 = vor.u32 %v9420_v29, %v8061_v33 }
0x1533   :  { %3943 = vmatpush.bf16.msra.mxu3 %v8076_v14  ;;  %3973 = vmatpush.bf16.msra.mxu1 %v8064_v51 }
0x1537   :  { %3944 = vmatpush.bf16.msra.mxu3 %v8068_v61 }
0x153b   :  { %3945 = vmatpush.bf16.msra.mxu3 %v8060_v31 }
0x15ad   :  { %v3760_v20 = vpop.f32.mrf.mxu1 }
0x15ae   :  { %v3766_v59 = vadd.f32 %v3760_v20, %v3654_v56  ;;  %v9458_v56 = vld [vmem:[#allocation11 + $0x13c] sm:$0xf] }
0x15b3   :  { %v3746_v37 = vpop.f32.mrf.mxu3 }
0x15b4   :  { %v3765_v60 = vadd.f32 %v3746_v37, %v11951_v28  ;;  %v9459_v37 = vld [vmem:[#allocation11 + $0x13c] sm:$0xf0] }
0x15b5   :  { %v3762_v47 = vpop.f32.mrf.mxu1 }
0x15b6   :  { %v3768_v45 = vadd.f32 %v3762_v47, %v3656_v63  ;;  %v8214_v63 = vor.u32 %v9459_v37, %v8213_v22  ;;  %v8215_v47 = vld [vmem:[#allocation11 + $0x140] sm:$0xf0]  ;;  %v9448_v22 = vld [vmem:[#allocation11 + $0xec] sm:$0xf]  ;;  %v8175_v37 = vld [vmem:[#allocation11 + $0xf0] sm:$0xf0] }
0x15b7   :  { %v8218_v3 = vor.u32 %v9458_v56, %v8215_v47  ;;  %v9464_v56 = vld [vmem:[#allocation11 + $0x16c] sm:$0xf]  ;;  %v8239_v47 = vld [vmem:[#allocation11 + $0x170] sm:$0xf0] }
0x15b8   :  { %v3770_v19 = vpack.c.bf16 %v3768_v45, %v3766_v59  ;;  %4243 = vmatpush.bf16.msra.mxu0 %v8214_v63  ;;  %v8205_v59 = vld [vmem:[#allocation11 + $0x128] sm:$0xf]  ;;  %v9457_v45 = vld [vmem:[#allocation11 + $0x12c] sm:$0xf0]  ;;  %v8178_v63 = vor.u32 %v9448_v22, %v8175_v37 }
0x15b9   :  { %4271 = vmatpush.bf16.msrb.mxu3 %v8218_v3  ;;  %v8165_v3 = vld [vmem:[#allocation11 + $0xd8] sm:$0xf] }
0x15ba   :  { %8153 = vmatmul.msk.bf16.vlgmr.msrb.gmra.mxu0 %vm389_vm1, %v3770_v19  ;;  %8154 = vmatmul.msk.bf16.vlgmr.msrb.gmra.mxu2 %vm389_vm1, %v3770_v19  ;;  %v8206_v19 = vor.u32 %v9457_v45, %v8205_v59  ;;  %v9447_v59 = vld [vmem:[#allocation11 + $0xdc] sm:$0xf0] }
0x15bb   :  { %v3748_v5 = vpop.f32.mrf.mxu3 }
0x15bc   :  { %v3767_v62 = vadd.f32 %v3748_v5, %v3655_v38  ;;  %v8207_v38 = vld [vmem:[#allocation11 + $0x130] sm:$0xf0]  ;;  %4244 = vmatpush.bf16.msra.mxu0 %v8206_v19  ;;  %v8242_v19 = vor.u32 %v9464_v56, %v8239_v47 }
0x15bd   :  { %v8210_v5 = vor.u32 %v9456_v34, %v8207_v38  ;;  %v8229_v38 = vld [vmem:[#allocation11 + $0x158] sm:$0xf] }
0x15be   :  { %v3769_v18 = vpack.c.bf16 %v3767_v62, %v3765_v60  ;;  %v8197_v60 = vld [vmem:[#allocation11 + $0x118] sm:$0xf]  ;;  %v9455_v62 = vld [vmem:[#allocation11 + $0x11c] sm:$0xf0] }
0x15bf   :  { %4272 = vmatpush.bf16.msrb.mxu3 %v8210_v5  ;;  %v8198_v17 = vor.u32 %v9455_v62, %v8197_v60  ;;  %v9463_v5 = vld [vmem:[#allocation11 + $0x15c] sm:$0xf0]  ;;  %v9446_v62 = vld [vmem:[#allocation11 + $0xdc] sm:$0xf] }
0x15c0   :  { %3946 = vmatmul.bf16.vlgmr.msra.gmra.mxu3 %v3769_v18  ;;  %3974 = vmatmul.bf16.vlgmr.msra.gmra.mxu1 %v3769_v18  ;;  %v9454_v18 = vld [vmem:[#allocation11 + $0x11c] sm:$0xf] }
0x15c1   :  { %4245 = vmatpush.bf16.msra.mxu0 %v8198_v17  ;;  %v9462_v17 = vld [vmem:[#allocation11 + $0x15c] sm:$0xf] }
0x1637   :  { %v3961_v52 = vpop.f32.mrf.mxu0 }
0x163d   :  { %v3975_v50 = vpop.f32.mrf.mxu1  ;;  %v3989_v16 = vpop.f32.mrf.mxu2 }
0x163e   :  { %v3976_v15 = vadd.f32 %v3975_v50, %v3801_v7  ;;  %v4101_v50 = vld [vmem:[#allocation11 + $0x188] sm:$0xff] }
0x163f   :  { %v3963_v55 = vpop.f32.mrf.mxu0 }
0x1640   :  { %v3990_v1 = vadd.f32 %v3989_v16, %v3976_v15 }
0x1642   :  { %v3995_v27 = vadd.f32 %v3990_v1, %v11602_v10  ;;  %v4183_v1 = vunpack.c.h.b16 %v4101_v50 }
0x1643   :  { %v3947_v35 = vpop.f32.mrf.mxu3 }
0x1644   :  { %v3948_v30 = vadd.f32 %v3947_v35, %v3800_v26  ;;  %v4002_v12 = vsel %vm389_vm1, %v3995_v27, 0.0  ;;  %v8189_v35 = vld [vmem:[#allocation11 + $0x108] sm:$0xf] }
0x1645   :  { %v3977_v9 = vpop.f32.mrf.mxu1  ;;  %v3991_v28 = vpop.f32.mrf.mxu2 }
0x1646   :  { %v3962_v6 = vadd.f32 %v3961_v52, %v3948_v30  ;;  %v3978_v14 = vadd.f32 %v3977_v9, %v3801_v7  ;;  %v8199_v7 = vld [vmem:[#allocation11 + $0x120] sm:$0xf0]  ;;  %v9453_v30 = vld [vmem:[#allocation11 + $0x10c] sm:$0xf0]  ;;  %v9452_v9 = vld [vmem:[#allocation11 + $0x10c] sm:$0xf] }
0x1647   :  { %v8202_v16 = vor.u32 %v9454_v18, %v8199_v7  ;;  %v8167_v18 = vld [vmem:[#allocation11 + $0xe0] sm:$0xf0]  ;;  %v8166_v7 = vor.u32 %v9447_v59, %v8165_v3 }
0x1648   :  { %v3994_v4 = vadd.f32 %v3962_v6, %v11600_v57  ;;  %v3992_v11 = vadd.f32 %v3991_v28, %v3978_v14  ;;  %v4209_v6 = vpack.c.b16 %v4183_v1, %v4183_v1  ;;  %v8190_v28 = vor.u32 %v9453_v30, %v8189_v35  ;;  %v9445_v35 = vld [vmem:[#allocation11 + $0xcc] sm:$0xf0]  ;;  %v8221_v30 = vld [vmem:[#allocation11 + $0x148] sm:$0xf] }
0x1649   :  { %4273 = vmatpush.bf16.msrb.mxu3 %v8202_v16  ;;  %v8157_v16 = vld [vmem:[#allocation11 + $0xc8] sm:$0xf]  ;;  %v8170_v1 = vor.u32 %v9446_v62, %v8167_v18  ;;  %v9499_v18 = vld [vmem:[%s13309_s14 + $0x1f4] sm:$0x10] }
0x164a   :  { %v4003_v54 = vadd.f32 %v4002_v12, %v3994_v4  ;;  %v3997_v2 = vadd.f32 %v3992_v11, %v11606_v39  ;;  %4246 = vmatpush.bf16.msra.mxu0 %v8190_v28  ;;  %v9460_v28 = vld [vmem:[#allocation11 + $0x14c] sm:$0xf] }
0x164b   :  { %v3949_v23 = vpop.f32.mrf.mxu3 }
0x164c   :  { %v3950_v36 = vadd.f32 %v3949_v23, %v3800_v26  ;;  %4004 = vadd.xlane.f32.xlu0 %v4003_v54  ;;  %v4006_v10 = vsel %vm389_vm1, %v3997_v2, 0.0  ;;  %v4182_v26 = vunpack.c.l.b16 %v4101_v50  ;;  %v4241_v54 = vsel %vm393_vm0, %v4209_v6, 0  ;;  %v8181_v23 = vld [vmem:[#allocation11 + $0xf8] sm:$0xf]  ;;  %v8159_v6 = vld [vmem:[#allocation11 + $0xd0] sm:$0xf0] }
0x164d   :  { %4288 = vmatpush.bf16.msrb.mxu1 %v4241_v54  ;;  %v8230_v50 = vor.u32 %v9463_v5, %v8229_v38  ;;  %v8350_v5 = vld [vmem:[%s13309_s14 + $0x178] sm:$0xf0] }
0x164e   :  { %v3964_v21 = vadd.f32 %v3963_v55, %v3950_v36  ;;  %v9451_v36 = vld [vmem:[#allocation11 + $0xfc] sm:$0xf0]  ;;  %v8245_v55 = vld [vmem:[#allocation11 + $0x178] sm:$0xf] }
0x1650   :  { %v3996_v25 = vadd.f32 %v3964_v21, %v11604_v58  ;;  %v9467_v21 = vld [vmem:[#allocation11 + $0x17c] sm:$0xf0] }
0x1652   :  { %v4007_v43 = vadd.f32 %v4006_v10, %v3996_v25  ;;  %v8183_v10 = vld [vmem:[#allocation11 + $0x100] sm:$0xf0] }
0x1654   :  { %4008 = vadd.xlane.f32.xlu0 %v4007_v43  ;;  %v8246_v43 = vor.u32 %v9467_v21, %v8245_v55 }
0x16bf   :  { %v4005_v24 = vpop.xlane.xlu0 %4004 }
0x16c0   :  { %v4010_v57 = vmul.f32 %v4005_v24, %v10985_v13 }
0x16c2   :  { %v11983_v61 = vsub.f32 %v3994_v4, %v4010_v57  ;;  %v11985_v41 = vsub.f32 %v3995_v27, %v4010_v57  ;;  %v4208_v27 = vpack.c.b16 %v4182_v26, %v4182_v26  ;;  %v8191_v4 = vld [vmem:[#allocation11 + $0x110] sm:$0xf0]  ;;  %v9466_v57 = vld [vmem:[#allocation11 + $0x17c] sm:$0xf] }
0x16c3   :  { %v8194_v12 = vor.u32 %v9452_v9, %v8191_v4  ;;  %v9444_v9 = vld [vmem:[#allocation11 + $0xcc] sm:$0xf] }
0x16c4   :  { %v4016_v32 = vmul.f32 %v11983_v61, %v11983_v61  ;;  %v4017_v39 = vmul.f32 %v11985_v41, %v11985_v41  ;;  %v4238_v11 = vsel %vm393_vm0, %v4208_v27, 0  ;;  %v9461_v27 = vld [vmem:[#allocation11 + $0x14c] sm:$0xf0] }
0x16c5   :  { %4260 = vmatpush.bf16.msra.mxu2 %v4238_v11  ;;  %4274 = vmatpush.bf16.msrb.mxu3 %v8194_v12  ;;  %v8223_v11 = vld [vmem:[#allocation11 + $0x150] sm:$0xf0]  ;;  %v8158_v12 = vor.u32 %v9445_v35, %v8157_v16  ;;  %v8222_v54 = vor.u32 %v9461_v27, %v8221_v30  ;;  %v8340_v16 = vld [vmem:[%s13309_s14 + $0x160] sm:$0xf]  ;;  %v8342_v27 = vld [vmem:[%s13309_s14 + $0x168] sm:$0xf0] }
0x16c6   :  { %v4020_v49 = vsel %vm389_vm1, %v4017_v39, 0.0  ;;  %v8173_v39 = vld [vmem:[#allocation11 + $0xe8] sm:$0xf]  ;;  %v8226_v55 = vor.u32 %v9460_v28, %v8223_v11  ;;  %v12076_v11 = vld [vmem:[#allocation13 + $0x2] sm:$0x3] }
0x16c7   :  { %v4009_v58 = vpop.xlane.xlu0 %4008  ;;  %v4021_v29 = vadd.f32 %v4020_v49, %v4016_v32  ;;  %v8247_v32 = vld [vmem:[#allocation11 + $0x180] sm:$0xf0] }
0x16c8   :  { %v4011_v31 = vmul.f32 %v4009_v58, %v10985_v13  ;;  %v8250_v58 = vor.u32 %v9466_v57, %v8247_v32  ;;  %v9497_v28 = vld [vmem:[%s13309_s14 + $0x1e4] sm:$0xf0] }
0x16c9   :  { %4022 = vadd.xlane.f32.xlu0 %v4021_v29  ;;  %v9449_v29 = vld [vmem:[#allocation11 + $0xec] sm:$0xf0]  ;;  %4261 = vmatpush.bf16.msra.mxu2 %v8246_v43  ;;  %v3999_v43 = vld [vmem:[#allocation8 + $0x2] sm:$0x3] }
0x16ca   :  { %v11993_v33 = vsub.f32 %v3996_v25, %v4011_v31  ;;  %v11995_v51 = vsub.f32 %v3997_v2, %v4011_v31  ;;  %v8182_v2 = vor.u32 %v9451_v36, %v8181_v23  ;;  %v9450_v25 = vld [vmem:[#allocation11 + $0xfc] sm:$0xf]  ;;  %v8237_v31 = vld [vmem:[#allocation11 + $0x168] sm:$0xf]  ;;  %4289 = vmatpush.bf16.msrb.mxu1 %v8250_v58  ;;  %v8162_v36 = vor.u32 %v9444_v9, %v8159_v6 }
0x16cb   :  { %v8186_v24 = vor.u32 %v9450_v25, %v8183_v10  ;;  %v4058_v58 = vperm.slane %v3999_v43, 1  ;;  %v8404_v6 = vld [vmem:[%s13309_s14 + $0x1e0] sm:$0xf] }
0x16cc   :  { %v4018_v8 = vmul.f32 %v11993_v33, %v11993_v33  ;;  %v4019_v44 = vmul.f32 %v11995_v51, %v11995_v51  ;;  %4247 = vmatpush.bf16.msra.mxu0 %v8182_v2 }
0x16cd   :  { %4275 = vmatpush.bf16.msrb.mxu3 %v8186_v24 }
0x16ce   :  { %v4024_v20 = vsel %vm389_vm1, %v4019_v44, 0.0  ;;  %4290 = vmatpush.bf16.msrb.mxu1 %v8242_v19  ;;  %v9482_v19 = vld [vmem:[%s13309_s14 + $0x174] sm:$0xf] }
0x16cf   :  { %v4025_v53 = vadd.f32 %v4024_v20, %v4018_v8  ;;  %v9465_v8 = vld [vmem:[#allocation11 + $0x16c] sm:$0xf0]  ;;  %v8174_v20 = vor.u32 %v9449_v29, %v8173_v39  ;;  %v4001_v39 = vld [vmem:[#allocation10 + $0x2] sm:$0x3]  ;;  %v8353_v62 = vor.u32 %v9482_v19, %v8350_v5  ;;  %v9475_v19 = vld [vmem:[%s13309_s14 + $0x134] sm:$0xf0] }
0x16d1   :  { %4026 = vadd.xlane.f32.xlu0 %v4025_v53  ;;  %v8238_v53 = vor.u32 %v9465_v8, %v8237_v31  ;;  %4248 = vmatpush.bf16.msra.mxu0 %v8174_v20 }
0x16d2   :  { %4276 = vmatpush.bf16.msrb.mxu3 %v8178_v63 }
0x16d3   :  { %4262 = vmatpush.bf16.msra.mxu2 %v8238_v53 }
0x16d5   :  { %4249 = vmatpush.bf16.msra.mxu0 %v8166_v7  ;;  %v8414_v7 = vld [vmem:[%s13309_s14 + $0x1f8] sm:$0x10] }
0x16d6   :  { %4277 = vmatpush.bf16.msrb.mxu3 %v8170_v1  ;;  %v9480_v1 = vld [vmem:[%s13309_s14 + $0x164] sm:$0xf] }
0x16d7   :  { %4263 = vmatpush.bf16.msra.mxu2 %v8230_v50  ;;  %v8345_v9 = vor.u32 %v9480_v1, %v8342_v27  ;;  %v9473_v27 = vld [vmem:[%s13309_s14 + $0x124] sm:$0xf0] }
0x16d9   :  { %4250 = vmatpush.bf16.msra.mxu0 %v8158_v12  ;;  %v8405_v12 = vor.u32 %v9497_v28, %v8404_v6  ;;  %v9472_v28 = vld [vmem:[%s13309_s14 + $0x124] sm:$0xf] }
0x16da   :  { %4278 = vmatpush.bf16.msrb.mxu3 %v8162_v36  ;;  %v8332_v36 = vld [vmem:[%s13309_s14 + $0x150] sm:$0xf] }
0x16db   :  { %4264 = vmatpush.bf16.msra.mxu2 %v8222_v54  ;;  %v8406_v54 = vld [vmem:[%s13309_s14 + $0x1e8] sm:$0xf0] }
0x173c   :  { %v4023_v15 = vpop.xlane.xlu0 %4022 }
0x173d   :  { %v4028_v52 = vmul.f32 %v4023_v15, %v10985_v13  ;;  %v8231_v15 = vld [vmem:[#allocation11 + $0x160] sm:$0xf0] }
0x173f   :  { %v12003_v14 = vadd.f32 1e-05, %v4028_v52  ;;  %v8234_v52 = vor.u32 %v9462_v17, %v8231_v15  ;;  %v9498_v17 = vld [vmem:[%s13309_s14 + $0x1f4] sm:$0xf] }
0x1740   :  { %v8417_v15 = vor.u32 %v9498_v17, %v8414_v7 }
0x1741   :  { %9786 = vrsqrt.f32 %v12003_v14  ;;  %4291 = vmatpush.bf16.msrb.mxu1 %v8234_v52  ;;  %vm4038_vm11 = vweird.f32 %v12003_v14 }
0x1742   :  { %v4538_v35 = vsel %vm2323_vm3, %v8417_v15, 0  ;;  %v8380_v15 = vld [vmem:[%s13309_s14 + $0x1b0] sm:$0xf] }
0x1743   :  { %4582 = vmatpush.bf16.msra.mxu3 %v4538_v35  ;;  %v8382_v35 = vld [vmem:[%s13309_s14 + $0x1b8] sm:$0xf0] }
0x1744   :  { %v4027_v49 = vpop.xlane.xlu0 %4026 }
0x1745   :  { %v4029_v44 = vmul.f32 %v4027_v49, %v10985_v13  ;;  %4292 = vmatpush.bf16.msrb.mxu1 %v8226_v55  ;;  %v4057_v49 = vperm.slane %v3999_v43, 0  ;;  %v9479_v55 = vld [vmem:[%s13309_s14 + $0x154] sm:$0xf0]  ;;  %v8396_v43 = vld [vmem:[%s13309_s14 + $0x1d0] sm:$0xf] }
0x1747   :  { %v9787_v45 = vpop.eup %9786  ;;  %v4031_v34 = vadd.f32 1e-05, %v4029_v44  ;;  %v4067_v44 = vperm.slane %v4001_v39, 1 }
0x1748   :  { %v4033_v60 = vmul.f32 %v9787_v45, %v12003_v14  ;;  %vm4039_vm9 = vweird.f32 %v9787_v45  ;;  %v4066_v14 = vperm.slane %v4001_v39, 0 }
0x1749   :  { %9788 = vrsqrt.f32 %v4031_v34  ;;  %vm4040_vm12 = vmor %vm4038_vm11, %vm4039_vm9  ;;  %vm4048_vm15 = vweird.f32 %v4031_v34  ;;  %4568 = vmatpush.bf16.msra.mxu1 %v8353_v62  ;;  %v8318_v62 = vld [vmem:[%s13309_s14 + $0x138] sm:$0xf0] }
0x174a   :  { %v4034_v26 = vmul.f32 %v9787_v45, %v4033_v60  ;;  %v8412_v60 = vld [vmem:[%s13309_s14 + $0x1f0] sm:$0xf] }
0x174b   :  { %v8413_v50 = vor.u32 %v9499_v18, %v8412_v60 }
0x174c   :  { %v4035_v4 = vmul.f32 0.5, %v4034_v26  ;;  %v9481_v26 = vld [vmem:[%s13309_s14 + $0x164] sm:$0xf0] }
0x174d   :  { %v4535_v52 = vsel %vm2323_vm3, %v8413_v50, 0  ;;  %v8341_v30 = vor.u32 %v9481_v26, %v8340_v16  ;;  %4569 = vmatpush.bf16.msra.mxu1 %v8345_v9  ;;  %v9491_v16 = vld [vmem:[%s13309_s14 + $0x1b4] sm:$0xf0]  ;;  %v9490_v26 = vld [vmem:[%s13309_s14 + $0x1b4] sm:$0xf] }
0x174e   :  { %v4036_v23 = vsub.f32 1.5, %v4035_v4  ;;  %4554 = vmatpush.bf16.msrb.mxu0 %v4535_v52  ;;  %v9496_v4 = vld [vmem:[%s13309_s14 + $0x1e4] sm:$0xf]  ;;  %v8381_v52 = vor.u32 %v9491_v16, %v8380_v15  ;;  %v8385_v6 = vor.u32 %v9490_v26, %v8382_v35 }
0x174f   :  { %v9789_v2 = vpop.eup %9788 }
0x1750   :  { %v4037_v21 = vmul.f32 %v9787_v45, %v4036_v23  ;;  %v4043_v25 = vmul.f32 %v9789_v2, %v4031_v34  ;;  %vm4049_vm14 = vweird.f32 %v9789_v2  ;;  %v8409_v23 = vor.u32 %v9496_v4, %v8406_v54  ;;  %v8310_v4 = vld [vmem:[%s13309_s14 + $0x128] sm:$0xf0] }
0x1751   :  { %vm4050_vm2 = vmor %vm4048_vm15, %vm4049_vm14 }
0x1752   :  { %v4044_v10 = vmul.f32 %v9789_v2, %v4043_v25  ;;  %v4041_v24 = vsel %vm4040_vm12, %v9787_v45, %v4037_v21  ;;  %v8333_v21 = vor.u32 %v9479_v55, %v8332_v36  ;;  %v8334_v25 = vld [vmem:[%s13309_s14 + $0x158] sm:$0xf0]  ;;  %4555 = vmatpush.bf16.msrb.mxu0 %v8405_v12  ;;  %4583 = vmatpush.bf16.msra.mxu3 %v8409_v23  ;;  %v8372_v55 = vld [vmem:[%s13309_s14 + $0x1a0] sm:$0xf] }
0x1753   :  { %v4052_v29 = vmul.f32 %v4041_v24, %v11983_v61  ;;  %v4053_v31 = vmul.f32 %v4041_v24, %v11985_v41  ;;  %v9495_v24 = vld [vmem:[%s13309_s14 + $0x1d4] sm:$0xf0]  ;;  %v8313_v36 = vor.u32 %v9472_v28, %v8310_v4 }
0x1754   :  { %v4045_v57 = vmul.f32 0.5, %v4044_v10 }
0x1755   :  { %v4061_v53 = vmul.f32 %v4057_v49, %v4052_v29  ;;  %v4062_v22 = vmul.f32 %v4058_v58, %v4053_v31  ;;  %v8324_v31 = vld [vmem:[%s13309_s14 + $0x140] sm:$0xf] }
0x1756   :  { %v4046_v32 = vsub.f32 1.5, %v4045_v57  ;;  %v9494_v57 = vld [vmem:[%s13309_s14 + $0x1d4] sm:$0xf] }
0x1757   :  { %v12015_v3 = vadd.f32 %v4066_v14, %v4061_v53  ;;  %v12017_v59 = vadd.f32 %v4067_v44, %v4062_v22  ;;  %v8388_v22 = vld [vmem:[%s13309_s14 + $0x1c0] sm:$0xf] }
0x1758   :  { %v4047_v8 = vmul.f32 %v9789_v2, %v4046_v32  ;;  %v4105_v32 = vperm.slane %v12076_v11, 0 }
0x175a   :  { %v4051_v20 = vsel %vm4050_vm2, %v9789_v2, %v4047_v8  ;;  %v9478_v2 = vld [vmem:[%s13309_s14 + $0x154] sm:$0xf]  ;;  %v9477_v8 = vld [vmem:[%s13309_s14 + $0x144] sm:$0xf0] }
0x175b   :  { %v4054_v37 = vmul.f32 %v4051_v20, %v11993_v33  ;;  %v4055_v56 = vmul.f32 %v4051_v20, %v11995_v51  ;;  %v8348_v33 = vld [vmem:[%s13309_s14 + $0x170] sm:$0xf]  ;;  %v9483_v51 = vld [vmem:[%s13309_s14 + $0x174] sm:$0xf0]  ;;  %v8337_v10 = vor.u32 %v9478_v2, %v8334_v25  ;;  %v8326_v20 = vld [vmem:[%s13309_s14 + $0x148] sm:$0xf0] }
0x175c   :  { %v8349_v38 = vor.u32 %v9483_v51, %v8348_v33  ;;  %v8316_v51 = vld [vmem:[%s13309_s14 + $0x130] sm:$0xf]  ;;  %v9489_v2 = vld [vmem:[%s13309_s14 + $0x1a4] sm:$0xf0] }
0x175d   :  { %v4063_v63 = vmul.f32 %v4057_v49, %v4054_v37  ;;  %v4064_v47 = vmul.f32 %v4058_v58, %v4055_v56  ;;  %v8397_v49 = vor.u32 %v9495_v24, %v8396_v43  ;;  %v8398_v58 = vld [vmem:[%s13309_s14 + $0x1d8] sm:$0xf0]  ;;  %4570 = vmatpush.bf16.msra.mxu1 %v8337_v10  ;;  %v9493_v37 = vld [vmem:[%s13309_s14 + $0x1c4] sm:$0xf0]  ;;  %v9492_v56 = vld [vmem:[%s13309_s14 + $0x1c4] sm:$0xf]  ;;  %v8317_v60 = vor.u32 %v9475_v19, %v8316_v51 }
0x175e   :  { %4540 = vmatpush.bf16.msrb.mxu2 %v8349_v38  ;;  %v8401_v29 = vor.u32 %v9494_v57, %v8398_v58  ;;  %v9474_v38 = vld [vmem:[%s13309_s14 + $0x134] sm:$0xf]  ;;  %v8373_v10 = vor.u32 %v9489_v2, %v8372_v55  ;;  %v8374_v43 = vld [vmem:[%s13309_s14 + $0x1a8] sm:$0xf0]  ;;  %v8300_v24 = vld [vmem:[%s13309_s14 + $0x110] sm:$0xf] }
0x175f   :  { %v12019_v61 = vadd.f32 %v4066_v14, %v4063_v63  ;;  %v12021_v41 = vadd.f32 %v4067_v44, %v4064_v47  ;;  %v9476_v14 = vld [vmem:[%s13309_s14 + $0x144] sm:$0xf]  ;;  %v8325_v44 = vor.u32 %v9477_v8, %v8324_v31  ;;  %4556 = vmatpush.bf16.msrb.mxu0 %v8397_v49  ;;  %v4106_v63 = vperm.slane %v12076_v11, 1  ;;  %v9471_v49 = vld [vmem:[%s13309_s14 + $0x114] sm:$0xf0] }
0x1760   :  { %4584 = vmatpush.bf16.msra.mxu3 %v8401_v29  ;;  %v8329_v53 = vor.u32 %v9476_v14, %v8326_v20  ;;  %v8389_v47 = vor.u32 %v9493_v37, %v8388_v22  ;;  %v8321_v50 = vor.u32 %v9474_v38, %v8318_v62  ;;  %v9470_v58 = vld [vmem:[%s13309_s14 + $0x114] sm:$0xf]  ;;  %v8301_v31 = vor.u32 %v9471_v49, %v8300_v24  ;;  %v8302_v8 = vld [vmem:[%s13309_s14 + $0x118] sm:$0xf0]  ;;  %v8364_v14 = vld [vmem:[%s13309_s14 + $0x190] sm:$0xf] }
0x1761   :  { %v4075_v45 = vpack.c.bf16 %v12021_v41, %v12017_v59  ;;  %v4074_v34 = vpack.c.bf16 %v12019_v61, %v12015_v3  ;;  %v8305_v22 = vor.u32 %v9470_v58, %v8302_v8  ;;  %v8366_v37 = vld [vmem:[%s13309_s14 + $0x198] sm:$0xf0]  ;;  %v9469_v51 = vld [vmem:[%s13309_s14 + $0x104] sm:$0xf0]  ;;  %v9468_v19 = vld [vmem:[%s13309_s14 + $0x104] sm:$0xf] }
0x1762   :  { %4541 = vmatpush.bf16.msrb.mxu2 %v8341_v30  ;;  %4571 = vmatpush.bf16.msra.mxu1 %v8329_v53  ;;  %v8308_v30 = vld [vmem:[%s13309_s14 + $0x120] sm:$0xf]  ;;  %v9484_v11 = vld [vmem:[%s13309_s14 + $0x184] sm:$0xf] }
0x1763   :  { %4251 = vmatmul.bf16.vlgmr.msra.gmra.mxu0 %v4074_v34  ;;  %8251 = vmatmul.msk.bf16.vlgmr.msra.gmra.mxu2 %vm389_vm1, %v4075_v45  ;;  %v8309_v23 = vor.u32 %v9473_v27, %v8308_v30  ;;  %v8356_v62 = vld [vmem:[%s13309_s14 + $0x180] sm:$0xf] }
0x1764   :  { %4279 = vmatmul.bf16.vlgmr.msrb.gmra.mxu3 %v4074_v34  ;;  %8252 = vmatmul.msk.bf16.vlgmr.msrb.gmra.mxu1 %vm389_vm1, %v4075_v45  ;;  %v8390_v45 = vld [vmem:[%s13309_s14 + $0x1c8] sm:$0xf0] }
0x1765   :  { %v8393_v33 = vor.u32 %v9492_v56, %v8390_v45  ;;  %4557 = vmatpush.bf16.msrb.mxu0 %v8389_v47 }
0x1766   :  { %4542 = vmatpush.bf16.msrb.mxu2 %v8333_v21  ;;  %4572 = vmatpush.bf16.msra.mxu1 %v8321_v50  ;;  %v9488_v21 = vld [vmem:[%s13309_s14 + $0x1a4] sm:$0xf] }
0x1767   :  { %4585 = vmatpush.bf16.msra.mxu3 %v8393_v33  ;;  %v8292_v33 = vld [vmem:[%s13309_s14 + $0x100] sm:$0xf] }
0x1769   :  { %4558 = vmatpush.bf16.msrb.mxu0 %v8381_v52 }
0x176a   :  { %4543 = vmatpush.bf16.msrb.mxu2 %v8325_v44  ;;  %4573 = vmatpush.bf16.msra.mxu1 %v8313_v36  ;;  %v9487_v44 = vld [vmem:[%s13309_s14 + $0x194] sm:$0xf0] }
0x176b   :  { %4586 = vmatpush.bf16.msra.mxu3 %v8385_v6  ;;  %v8365_v45 = vor.u32 %v9487_v44, %v8364_v14 }
0x176d   :  { %4559 = vmatpush.bf16.msrb.mxu0 %v8373_v10 }
0x176e   :  { %4544 = vmatpush.bf16.msrb.mxu2 %v8317_v60  ;;  %v8294_v60 = vld [vmem:[%s13309_s14 + $0x108] sm:$0xf0]  ;;  %4574 = vmatpush.bf16.msra.mxu1 %v8305_v22 }
0x176f   :  { %v8297_v15 = vor.u32 %v9468_v19, %v8294_v60 }
0x1771   :  { %4560 = vmatpush.bf16.msrb.mxu0 %v8365_v45 }
0x1772   :  { %4545 = vmatpush.bf16.msrb.mxu2 %v8309_v23  ;;  %4575 = vmatpush.bf16.msra.mxu1 %v8297_v15 }
0x1776   :  { %4546 = vmatpush.bf16.msrb.mxu2 %v8301_v31 }
0x17e0   :  { %v4252_v39 = vpop.f32.mrf.mxu0 }
0x17e1   :  { %v4253_v34 = vadd.f32 %v4252_v39, %v4105_v32  ;;  %v4294_v18 = vpop.f32.mrf.mxu1  ;;  %v8377_v39 = vor.u32 %v9488_v21, %v8374_v43 }
0x17e3   :  { %4587 = vmatpush.bf16.msra.mxu3 %v8377_v39 }
0x17e6   :  { %v4266_v5 = vpop.f32.mrf.mxu2 }
0x17e7   :  { %v12145_v17 = vadd.f32 %v4266_v5, %v4253_v34  ;;  %v4280_v7 = vpop.f32.mrf.mxu3  ;;  %v8293_v5 = vor.u32 %v9469_v51, %v8292_v33 }
0x17e8   :  { %v4281_v1 = vadd.f32 %v4280_v7, %v4106_v63  ;;  %v4254_v54 = vpop.f32.mrf.mxu0 }
0x17e9   :  { %v4303_v9 = vmin.f32 %v12145_v17, 0.0  ;;  %v4255_v29 = vadd.f32 %v4254_v54, %v4105_v32  ;;  %v9486_v32 = vld [vmem:[%s13309_s14 + $0x194] sm:$0xf]  ;;  %v4296_v7 = vpop.f32.mrf.mxu1  ;;  %4547 = vmatpush.bf16.msrb.mxu2 %v8293_v5  ;;  %v4299_v23 = vmax.f32 %v12145_v17, 0.0 }
0x17ea   :  { %v12174_v12 = vadd.f32 %v4294_v18, %v4281_v1  ;;  %v8369_v34 = vor.u32 %v9486_v32, %v8366_v37  ;;  %v9485_v18 = vld [vmem:[%s13309_s14 + $0x184] sm:$0xf0] }
0x17eb   :  { %v4307_v25 = vmul.f32 1.442695, %v4303_v9  ;;  %v8357_v52 = vor.u32 %v9485_v18, %v8356_v62 }
0x17ec   :  { %v4304_v57 = vmin.f32 %v12174_v12, 0.0  ;;  %4588 = vmatpush.bf16.msra.mxu3 %v8369_v34  ;;  %v4300_v43 = vmax.f32 %v12174_v12, 0.0  ;;  %v8289_v12 = vld [vmem:[%s13310_s15 + $0x2] sm:$0x3] }
0x17ed   :  { %9790 = vpow2.f32 %v4307_v25  ;;  %4561 = vmatpush.bf16.msrb.mxu0 %v8357_v52  ;;  %v4369_v22 = vperm.slane %v8289_v12, 0  ;;  %v4370_v32 = vperm.slane %v8289_v12, 1 }
0x17ee   :  { %v4309_v20 = vmul.f32 1.442695, %v4304_v57  ;;  %v4268_v53 = vpop.f32.mrf.mxu2 }
0x17ef   :  { %v4269_v56 = vadd.f32 %v4268_v53, %v4255_v29  ;;  %v4282_v47 = vpop.f32.mrf.mxu3 }
0x17f0   :  { %9792 = vpow2.f32 %v4309_v20  ;;  %v4283_v38 = vadd.f32 %v4282_v47, %v4106_v63  ;;  %v8358_v63 = vld [vmem:[%s13309_s14 + $0x188] sm:$0xf0] }
0x17f1   :  { %v4305_v50 = vmin.f32 %v4269_v56, 0.0  ;;  %v8361_v35 = vor.u32 %v9484_v11, %v8358_v63  ;;  %v4301_v25 = vmax.f32 %v4269_v56, 0.0 }
0x17f2   :  { %v4297_v16 = vadd.f32 %v4296_v7, %v4283_v38 }
0x17f3   :  { %v9791_v26 = vpop.eup %9790  ;;  %v4311_v1 = vmul.f32 1.442695, %v4305_v50  ;;  %4589 = vmatpush.bf16.msra.mxu3 %v8361_v35  ;;  %v9515_v35 = vld [vmem:[%s13326_s4 + $0x204] sm:$0xf0] }
0x17f4   :  { %v4306_v30 = vmin.f32 %v4297_v16, 0.0  ;;  %v8253_v9 = vadd.f32 -1.0, %v9791_v26  ;;  %v4302_v49 = vmax.f32 %v4297_v16, 0.0 }
0x17f5   :  { %9794 = vpow2.f32 %v4311_v1 }
0x17f6   :  { %v9793_v27 = vpop.eup %9792  ;;  %v4313_v6 = vmul.f32 1.442695, %v4306_v30  ;;  %v4319_v4 = vmul.f32 1.6732632, %v8253_v9  ;;  %v9514_v30 = vld [vmem:[%s13326_s4 + $0x204] sm:$0xf] }
0x17f7   :  { %v8254_v28 = vadd.f32 -1.0, %v9793_v27  ;;  %v9513_v9 = vld [vmem:[%s13326_s4 + $0x1f4] sm:$0xf0] }
0x17f8   :  { %9796 = vpow2.f32 %v4313_v6  ;;  %v4323_v21 = vadd.f32 %v4319_v4, %v4299_v23  ;;  %v8499_v4 = vld [vmem:[%s13326_s4 + $0x1f8] sm:$0xf0] }
0x17f9   :  { %v4320_v55 = vmul.f32 1.6732632, %v8254_v28  ;;  %v9512_v28 = vld [vmem:[%s13326_s4 + $0x1f4] sm:$0xf] }
0x17fa   :  { %v4327_v29 = vmul.f32 1.050701, %v4323_v21  ;;  %v8502_v23 = vor.u32 %v9512_v28, %v8499_v4 }
0x17fb   :  { %v9795_v54 = vpop.eup %9794  ;;  %v4324_v39 = vadd.f32 %v4320_v55, %v4300_v43 }
0x17fc   :  { %v8255_v36 = vadd.f32 -1.0, %v9795_v54 }
0x17fd   :  { %v4328_v44 = vmul.f32 1.050701, %v4324_v39 }
0x17fe   :  { %v9797_v2 = vpop.eup %9796  ;;  %v4321_v10 = vmul.f32 1.6732632, %v8255_v36 }
0x17ff   :  { %v8256_v24 = vadd.f32 -1.0, %v9797_v2 }
0x1800   :  { %v4325_v57 = vadd.f32 %v4321_v10, %v4301_v25 }
0x1801   :  { %v4322_v58 = vmul.f32 1.6732632, %v8256_v24 }
0x1802   :  { %v4329_v31 = vmul.f32 1.050701, %v4325_v57 }
0x1803   :  { %v4326_v8 = vadd.f32 %v4322_v58, %v4302_v49 }
0x1804   :  { %v4331_v14 = vpack.c.bf16 %v4329_v31, %v4327_v29 }
0x1805   :  { %v4330_v20 = vmul.f32 1.050701, %v4326_v8 }
0x1806   :  { %4548 = vmatmul.bf16.vlgmr.msrb.gmra.mxu2 %v4331_v14  ;;  %4576 = vmatmul.bf16.vlgmr.msra.gmra.mxu1 %v4331_v14 }
0x1807   :  { %v4332_v17 = vpack.c.bf16 %v4330_v20, %v4328_v44  ;;  %v8489_v44 = vld [vmem:[%s13326_s4 + $0x1e0] sm:$0xf]  ;;  %v9511_v20 = vld [vmem:[%s13326_s4 + $0x1e4] sm:$0xf0] }
0x1808   :  { %v8490_v12 = vor.u32 %v9511_v20, %v8489_v44  ;;  %v9518_v44 = vld [vmem:[%s13326_s4 + $0x224] sm:$0xf]  ;;  %v8523_v20 = vld [vmem:[%s13326_s4 + $0x228] sm:$0xf0] }
0x1809   :  { %8418 = vmatmul.msk.bf16.vlgmr.msrb.gmra.mxu0 %vm2319_vm8, %v4332_v17  ;;  %8419 = vmatmul.msk.bf16.vlgmr.msra.gmra.mxu3 %vm2319_vm8, %v4332_v17  ;;  %v9510_v17 = vld [vmem:[%s13326_s4 + $0x1e4] sm:$0xf] }
0x1883   :  { %v4577_v53 = vpop.f32.mrf.mxu1 }
0x1884   :  { %v4578_v45 = vadd.f32 %v4577_v53, %v4370_v32  ;;  %v8491_v53 = vld [vmem:[%s13326_s4 + $0x1e8] sm:$0xf0] }
0x1886   :  { %v4563_v37 = vpop.f32.mrf.mxu0 }
0x1889   :  { %v4549_v56 = vpop.f32.mrf.mxu2 }
0x188a   :  { %v4550_v47 = vadd.f32 %v4549_v56, %v4369_v22 }
0x188b   :  { %v4579_v5 = vpop.f32.mrf.mxu1 }
0x188c   :  { %v4564_v34 = vadd.f32 %v4563_v37, %v4550_v47  ;;  %v4591_v33 = vpop.f32.mrf.mxu3  ;;  %v4580_v50 = vadd.f32 %v4579_v5, %v4370_v32  ;;  %v8494_v32 = vor.u32 %v9510_v17, %v8491_v53  ;;  %v8481_v47 = vld [vmem:[%s13326_s4 + $0x1d0] sm:$0xf] }
0x188d   :  { %v4592_v51 = vadd.f32 %v4591_v33, %v4578_v45  ;;  %v9509_v45 = vld [vmem:[%s13326_s4 + $0x1d4] sm:$0xf0]  ;;  %v9508_v33 = vld [vmem:[%s13326_s4 + $0x1d4] sm:$0xf] }
0x188e   :  { %v4596_v19 = vadd.f32 %v4564_v34, %v12015_v3  ;;  %v4565_v15 = vpop.f32.mrf.mxu0  ;;  %v8569_v17 = vld [vmem:[%s13327_s30 + $0x250] sm:$0xff] }
0x188f   :  { %v4597_v38 = vadd.f32 %v4592_v51, %v12017_v59  ;;  %v8505_v59 = vld [vmem:[%s13326_s4 + $0x200] sm:$0xf]  ;;  %v5007_v53 = vunpack.c.l.b16 %v8569_v17 }
0x1890   :  { %v8506_v27 = vor.u32 %v9515_v35, %v8505_v59  ;;  %v8465_v35 = vld [vmem:[%s13326_s4 + $0x1b0] sm:$0xf] }
0x1891   :  { %v4551_v60 = vpop.f32.mrf.mxu2  ;;  %v4604_v62 = vsel %vm389_vm1, %v4597_v38, 0.0 }
0x1892   :  { %v4552_v18 = vadd.f32 %v4551_v60, %v4369_v22  ;;  %v4605_v7 = vadd.f32 %v4604_v62, %v4596_v19  ;;  %4845 = vmatpush.bf16.msra.mxu2 %v8506_v27  ;;  %v8445_v22 = vld [vmem:[%s13326_s4 + $0x250] sm:$0xff] }
0x1893   :  { %v4784_v37 = vunpack.c.l.b16 %v8445_v22  ;;  %v4785_v56 = vunpack.c.h.b16 %v8445_v22  ;;  %v8529_v27 = vld [vmem:[%s13326_s4 + $0x230] sm:$0xf]  ;;  %v5008_v22 = vunpack.c.h.b16 %v8569_v17 }
0x1894   :  { %v4566_v11 = vadd.f32 %v4565_v15, %v4552_v18  ;;  %v4593_v63 = vpop.f32.mrf.mxu3  ;;  %4606 = vadd.xlane.f32.xlu1 %v4605_v7  ;;  %v8473_v18 = vld [vmem:[%s13326_s4 + $0x1c0] sm:$0xf]  ;;  %v9507_v7 = vld [vmem:[%s13326_s4 + $0x1c4] sm:$0xf0]  ;;  %v8605_v17 = vld [vmem:[%s13327_s30 + $0x1d0] sm:$0xf] }
0x1895   :  { %v4594_v16 = vadd.f32 %v4593_v63, %v4580_v50  ;;  %v4810_v34 = vpack.c.b16 %v4784_v37, %v4784_v37  ;;  %v4811_v51 = vpack.c.b16 %v4785_v56, %v4785_v56  ;;  %v8537_v50 = vld [vmem:[%s13326_s4 + $0x240] sm:$0xf]  ;;  %v8474_v15 = vor.u32 %v9507_v7, %v8473_v18  ;;  %v9506_v63 = vld [vmem:[%s13326_s4 + $0x1c4] sm:$0xf]  ;;  %v8449_v37 = vld [vmem:[%s13326_s4 + $0x190] sm:$0xf] }
0x1896   :  { %v4598_v26 = vadd.f32 %v4566_v11, %v12019_v61  ;;  %v8507_v61 = vld [vmem:[%s13326_s4 + $0x208] sm:$0xf0]  ;;  %v9523_v11 = vld [vmem:[%s13326_s4 + $0x244] sm:$0xf0]  ;;  %v9501_v56 = vld [vmem:[%s13326_s4 + $0x194] sm:$0xf0] }
0x1897   :  { %v4599_v1 = vadd.f32 %v4594_v16, %v12021_v41  ;;  %v8497_v41 = vld [vmem:[%s13326_s4 + $0x1f0] sm:$0xf]  ;;  %v8510_v6 = vor.u32 %v9514_v30, %v8507_v61  ;;  %v4840_v5 = vsel %vm393_vm0, %v4810_v34, 0  ;;  %v4843_v62 = vsel %vm393_vm0, %v4811_v51, 0  ;;  %v8475_v16 = vld [vmem:[%s13326_s4 + $0x1c8] sm:$0xf0] }
0x1898   :  { %v8498_v54 = vor.u32 %v9513_v9, %v8497_v41  ;;  %4862 = vmatpush.bf16.msra.mxu0 %v4840_v5  ;;  %4890 = vmatpush.bf16.msrb.mxu3 %v4843_v62  ;;  %v9505_v30 = vld [vmem:[%s13326_s4 + $0x1b4] sm:$0xf0]  ;;  %v9504_v9 = vld [vmem:[%s13326_s4 + $0x1b4] sm:$0xf]  ;;  %v5033_v51 = vpack.c.b16 %v5007_v53, %v5007_v53  ;;  %v8451_v5 = vld [vmem:[%s13326_s4 + $0x198] sm:$0xf0] }
0x1899   :  { %v4608_v3 = vsel %vm389_vm1, %v4599_v1, 0.0  ;;  %4873 = vmatpush.bf16.msrb.mxu1 %v8510_v6  ;;  %v8466_v61 = vor.u32 %v9505_v30, %v8465_v35  ;;  %v9521_v41 = vld [vmem:[%s13326_s4 + $0x234] sm:$0xf0]  ;;  %v8467_v6 = vld [vmem:[%s13326_s4 + $0x1b8] sm:$0xf0] }
0x189a   :  { %v4609_v52 = vadd.f32 %v4608_v3, %v4598_v26  ;;  %4846 = vmatpush.bf16.msra.mxu2 %v8498_v54  ;;  %v9522_v3 = vld [vmem:[%s13326_s4 + $0x244] sm:$0xf]  ;;  %v8530_v28 = vor.u32 %v9521_v41, %v8529_v27  ;;  %v8470_v4 = vor.u32 %v9504_v9, %v8467_v6  ;;  %v9520_v54 = vld [vmem:[%s13326_s4 + $0x234] sm:$0xf]  ;;  %v9517_v34 = vld [vmem:[%s13326_s4 + $0x214] sm:$0xf0] }
0x189b   :  { %v8515_v62 = vld [vmem:[%s13326_s4 + $0x218] sm:$0xf0]  ;;  %v9537_v35 = vld [vmem:[%s13327_s30 + $0x1f4] sm:$0xf0]  ;;  %v8661_v30 = vld [vmem:[%s13327_s30 + $0x240] sm:$0xf] }
0x189c   :  { %4610 = vadd.xlane.f32.xlu0 %v4609_v52  ;;  %v8539_v52 = vld [vmem:[%s13326_s4 + $0x248] sm:$0xf0]  ;;  %v9547_v27 = vld [vmem:[%s13327_s30 + $0x244] sm:$0xf0]  ;;  %v9536_v6 = vld [vmem:[%s13327_s30 + $0x1f4] sm:$0xf] }
0x189d   :  { %4874 = vmatpush.bf16.msrb.mxu1 %v8502_v23  ;;  %v8542_v59 = vor.u32 %v9522_v3, %v8539_v52  ;;  %v8531_v23 = vld [vmem:[%s13326_s4 + $0x238] sm:$0xf0]  ;;  %v8621_v3 = vld [vmem:[%s13327_s30 + $0x1f0] sm:$0xf]  ;;  %v8662_v9 = vor.u32 %v9547_v27, %v8661_v30 }
0x189e   :  { %4847 = vmatpush.bf16.msra.mxu2 %v8490_v12  ;;  %v8526_v12 = vor.u32 %v9518_v44, %v8523_v20  ;;  %v8622_v41 = vor.u32 %v9537_v35, %v8621_v3  ;;  %v8655_v20 = vld [vmem:[%s13327_s30 + $0x238] sm:$0xf0]  ;;  %v9540_v3 = vld [vmem:[%s13327_s30 + $0x214] sm:$0xf] }
0x189f   :  { %4891 = vmatpush.bf16.msrb.mxu3 %v8542_v59 }
0x18a1   :  { %4875 = vmatpush.bf16.msrb.mxu1 %v8494_v32 }
0x1907   :  { %v4607_v36 = vpop.xlane.xlu1 %4606 }
0x1908   :  { %v4612_v55 = vmul.f32 %v4607_v36, %v10985_v13  ;;  %v8534_v36 = vor.u32 %v9520_v54, %v8531_v23  ;;  %v8663_v23 = vld [vmem:[%s13327_s30 + $0x248] sm:$0xf0] }
0x190a   :  { %v12279_v2 = vsub.f32 %v4596_v19, %v4612_v55  ;;  %v12281_v21 = vsub.f32 %v4597_v38, %v4612_v55  ;;  %v8482_v19 = vor.u32 %v9509_v45, %v8481_v47  ;;  %v8483_v38 = vld [vmem:[%s13326_s4 + $0x1d8] sm:$0xf0]  ;;  %v8457_v55 = vld [vmem:[%s13326_s4 + $0x1a0] sm:$0xf]  ;;  %4892 = vmatpush.bf16.msrb.mxu3 %v8534_v36  ;;  %v8450_v47 = vor.u32 %v9501_v56, %v8449_v37  ;;  %v8513_v45 = vld [vmem:[%s13326_s4 + $0x210] sm:$0xf] }
0x190b   :  { %v8486_v60 = vor.u32 %v9508_v33, %v8483_v38  ;;  %v9500_v33 = vld [vmem:[%s13326_s4 + $0x194] sm:$0xf]  ;;  %v8514_v38 = vor.u32 %v9517_v34, %v8513_v45  ;;  %v8613_v36 = vld [vmem:[%s13327_s30 + $0x1e0] sm:$0xf]  ;;  %v9533_v37 = vld [vmem:[%s13327_s30 + $0x1d4] sm:$0xf0] }
0x190c   :  { %v4618_v25 = vmul.f32 %v12279_v2, %v12279_v2  ;;  %v4619_v10 = vmul.f32 %v12281_v21, %v12281_v21  ;;  %4848 = vmatpush.bf16.msra.mxu2 %v8482_v19  ;;  %v5034_v19 = vpack.c.b16 %v5008_v22, %v5008_v22  ;;  %v8454_v18 = vor.u32 %v9500_v33, %v8451_v5  ;;  %v8645_v56 = vld [vmem:[%s13327_s30 + $0x220] sm:$0xf]  ;;  %v9532_v34 = vld [vmem:[%s13327_s30 + $0x1d4] sm:$0xf]  ;;  %v8607_v33 = vld [vmem:[%s13327_s30 + $0x1d8] sm:$0xf0] }
0x190d   :  { %4876 = vmatpush.bf16.msrb.mxu1 %v8486_v60  ;;  %v9516_v60 = vld [vmem:[%s13326_s4 + $0x214] sm:$0xf]  ;;  %v8606_v5 = vor.u32 %v9533_v37, %v8605_v17  ;;  %v8573_v37 = vld [vmem:[%s13327_s30 + $0x190] sm:$0xf] }
0x190e   :  { %v4622_v43 = vsel %vm389_vm1, %v4619_v10, 0.0  ;;  %v8521_v10 = vld [vmem:[%s13326_s4 + $0x220] sm:$0xf]  ;;  %4893 = vmatpush.bf16.msrb.mxu3 %v8526_v12  ;;  %v8518_v7 = vor.u32 %v9516_v60, %v8515_v62 }
0x190f   :  { %v4611_v24 = vpop.xlane.xlu0 %4610  ;;  %v4623_v57 = vadd.f32 %v4622_v43, %v4618_v25  ;;  %v9503_v25 = vld [vmem:[%s13326_s4 + $0x1a4] sm:$0xf0]  ;;  %v8597_v62 = vld [vmem:[%s13327_s30 + $0x1c0] sm:$0xf] }
0x1910   :  { %v4613_v39 = vmul.f32 %v4611_v24, %v10985_v13  ;;  %4849 = vmatpush.bf16.msra.mxu2 %v8474_v15  ;;  %v8458_v24 = vor.u32 %v9503_v25, %v8457_v55  ;;  %v9539_v15 = vld [vmem:[%s13327_s30 + $0x204] sm:$0xf0] }
0x1911   :  { %4624 = vadd.xlane.f32.xlu1 %v4623_v57  ;;  %v9519_v57 = vld [vmem:[%s13326_s4 + $0x224] sm:$0xf0] }
0x1912   :  { %v12289_v49 = vsub.f32 %v4598_v26, %v4613_v39  ;;  %v12291_v58 = vsub.f32 %v4599_v1, %v4613_v39  ;;  %v8538_v26 = vor.u32 %v9523_v11, %v8537_v50  ;;  %v8478_v1 = vor.u32 %v9506_v63, %v8475_v16  ;;  %v9502_v39 = vld [vmem:[%s13326_s4 + $0x1a4] sm:$0xf]  ;;  %v8629_v50 = vld [vmem:[%s13327_s30 + $0x200] sm:$0xf]  ;;  %4894 = vmatpush.bf16.msrb.mxu3 %v8518_v7  ;;  %v9535_v55 = vld [vmem:[%s13327_s30 + $0x1e4] sm:$0xf0] }
0x1913   :  { %v5060_v11 = vsel %vm393_vm0, %v5033_v51, 0  ;;  %v5063_v63 = vsel %vm393_vm0, %v5034_v19, 0  ;;  %v8630_v16 = vor.u32 %v9539_v15, %v8629_v50  ;;  %v8614_v44 = vor.u32 %v9535_v55, %v8613_v36  ;;  %v9542_v51 = vld [vmem:[%s13327_s30 + $0x224] sm:$0xf]  ;;  %v9541_v7 = vld [vmem:[%s13327_s30 + $0x214] sm:$0xf0] }
0x1914   :  { %v4620_v29 = vmul.f32 %v12289_v49, %v12289_v49  ;;  %v4621_v31 = vmul.f32 %v12291_v58, %v12291_v58  ;;  %4863 = vmatpush.bf16.msra.mxu0 %v8538_v26  ;;  %4877 = vmatpush.bf16.msrb.mxu1 %v8478_v1  ;;  %v9538_v26 = vld [vmem:[%s13327_s30 + $0x204] sm:$0xf]  ;;  %v8631_v1 = vld [vmem:[%s13327_s30 + $0x208] sm:$0xf0]  ;;  %v8610_v15 = vor.u32 %v9532_v34, %v8607_v33  ;;  %v4603_v36 = vld [vmem:[#allocation14 + $0x2] sm:$0x3] }
0x1915   :  { %4850 = vmatpush.bf16.msra.mxu2 %v8466_v61  ;;  %v8634_v59 = vor.u32 %v9538_v26, %v8631_v1  ;;  %v8599_v1 = vld [vmem:[%s13327_s30 + $0x1c8] sm:$0xf0] }
0x1916   :  { %v4626_v8 = vsel %vm389_vm1, %v4621_v31, 0.0 }
0x1917   :  { %v4627_v14 = vadd.f32 %v4626_v8, %v4620_v29  ;;  %v8459_v29 = vld [vmem:[%s13326_s4 + $0x1a8] sm:$0xf0]  ;;  %v8522_v8 = vor.u32 %v9519_v57, %v8521_v10  ;;  %5093 = vmatpush.bf16.msra.mxu3 %v8634_v59  ;;  %v9545_v57 = vld [vmem:[%s13327_s30 + $0x234] sm:$0xf0] }
0x1918   :  { %4864 = vmatpush.bf16.msra.mxu0 %v8530_v28  ;;  %4878 = vmatpush.bf16.msrb.mxu1 %v8470_v4  ;;  %v8623_v28 = vld [vmem:[%s13327_s30 + $0x1f8] sm:$0xf0]  ;;  %v9546_v4 = vld [vmem:[%s13327_s30 + $0x244] sm:$0xf] }
0x1919   :  { %4628 = vadd.xlane.f32.xlu0 %v4627_v14  ;;  %v8462_v14 = vor.u32 %v9502_v39, %v8459_v29  ;;  %4851 = vmatpush.bf16.msra.mxu2 %v8458_v24  ;;  %v8626_v54 = vor.u32 %v9536_v6, %v8623_v28  ;;  %v8653_v24 = vld [vmem:[%s13327_s30 + $0x230] sm:$0xf]  ;;  %v9529_v28 = vld [vmem:[%s13327_s30 + $0x1b4] sm:$0xf0] }
0x191a   :  { %v8654_v29 = vor.u32 %v9545_v57, %v8653_v24  ;;  %v8589_v6 = vld [vmem:[%s13327_s30 + $0x1b0] sm:$0xf] }
0x191b   :  { %5094 = vmatpush.bf16.msra.mxu3 %v8626_v54  ;;  %v8590_v55 = vor.u32 %v9529_v28, %v8589_v6  ;;  %v8760_v28 = vld [vmem:[#allocation2 + $0x240] sm:$0xf] }
0x191c   :  { %4865 = vmatpush.bf16.msra.mxu0 %v8522_v8  ;;  %4879 = vmatpush.bf16.msrb.mxu1 %v8462_v14  ;;  %v8615_v8 = vld [vmem:[%s13327_s30 + $0x1e8] sm:$0xf0]  ;;  %v9544_v14 = vld [vmem:[%s13327_s30 + $0x234] sm:$0xf] }
0x191d   :  { %4852 = vmatpush.bf16.msra.mxu2 %v8450_v47  ;;  %v8658_v22 = vor.u32 %v9544_v14, %v8655_v20  ;;  %v9543_v47 = vld [vmem:[%s13327_s30 + $0x224] sm:$0xf0]  ;;  %v9526_v14 = vld [vmem:[%s13327_s30 + $0x1a4] sm:$0xf]  ;;  %v5146_v20 = vld [vmem:[#allocation2 + $0x250] sm:$0xff] }
0x191e   :  { %v8646_v45 = vor.u32 %v9543_v47, %v8645_v56  ;;  %v9525_v56 = vld [vmem:[%s13327_s30 + $0x194] sm:$0xf0]  ;;  %v5227_v47 = vunpack.c.l.b16 %v5146_v20 }
0x1920   :  { %4866 = vmatpush.bf16.msra.mxu0 %v8514_v38  ;;  %4880 = vmatpush.bf16.msrb.mxu1 %v8454_v18  ;;  %v8647_v38 = vld [vmem:[%s13327_s30 + $0x228] sm:$0xf0]  ;;  %v8637_v18 = vld [vmem:[%s13327_s30 + $0x210] sm:$0xf] }
0x1921   :  { %5082 = vmatpush.bf16.msrb.mxu2 %v5060_v11  ;;  %v8650_v60 = vor.u32 %v9542_v51, %v8647_v38  ;;  %v9531_v11 = vld [vmem:[%s13327_s30 + $0x1c4] sm:$0xf0]  ;;  %v8638_v26 = vor.u32 %v9541_v7, %v8637_v18  ;;  %v8575_v38 = vld [vmem:[%s13327_s30 + $0x198] sm:$0xf0]  ;;  %v8574_v18 = vor.u32 %v9525_v56, %v8573_v37  ;;  %v8744_v37 = vld [vmem:[#allocation2 + $0x220] sm:$0xf] }
0x1922   :  { %v8598_v30 = vor.u32 %v9531_v11, %v8597_v62  ;;  %v8728_v62 = vld [vmem:[#allocation2 + $0x200] sm:$0xf]  ;;  %v9563_v7 = vld [vmem:[#allocation2 + $0x204] sm:$0xf0]  ;;  %v5253_v11 = vpack.c.b16 %v5227_v47, %v5227_v47  ;;  %v9566_v47 = vld [vmem:[#allocation2 + $0x224] sm:$0xf] }
0x1923   :  { %v9567_v56 = vld [vmem:[#allocation2 + $0x224] sm:$0xf0] }
0x1924   :  { %5065 = vmatpush.bf16.msrb.mxu0 %v8630_v16  ;;  %5110 = vmatpush.bf16.msra.mxu1 %v5063_v63  ;;  %v9530_v63 = vld [vmem:[%s13327_s30 + $0x1c4] sm:$0xf] }
0x1925   :  { %5083 = vmatpush.bf16.msrb.mxu2 %v8662_v9  ;;  %v8602_v9 = vor.u32 %v9530_v63, %v8599_v1 }
0x1928   :  { %5066 = vmatpush.bf16.msrb.mxu0 %v8622_v41 }
0x1929   :  { %5084 = vmatpush.bf16.msrb.mxu2 %v8654_v29  ;;  %v9527_v29 = vld [vmem:[%s13327_s30 + $0x1a4] sm:$0xf0] }
0x192c   :  { %5067 = vmatpush.bf16.msrb.mxu0 %v8614_v44  ;;  %v8583_v44 = vld [vmem:[%s13327_s30 + $0x1a8] sm:$0xf0] }
0x192d   :  { %5085 = vmatpush.bf16.msrb.mxu2 %v8646_v45  ;;  %v5228_v45 = vunpack.c.h.b16 %v5146_v20 }
0x1930   :  { %5068 = vmatpush.bf16.msrb.mxu0 %v8606_v5 }
0x1931   :  { %5086 = vmatpush.bf16.msrb.mxu2 %v8638_v26 }
0x1934   :  { %5069 = vmatpush.bf16.msrb.mxu0 %v8598_v30  ;;  %v8720_v30 = vld [vmem:[#allocation2 + $0x1f0] sm:$0xf] }
0x1938   :  { %5070 = vmatpush.bf16.msrb.mxu0 %v8590_v55  ;;  %v8712_v55 = vld [vmem:[#allocation2 + $0x1e0] sm:$0xf] }
0x1984   :  { %v4625_v43 = vpop.xlane.xlu1 %4624 }
0x1985   :  { %v4630_v31 = vmul.f32 %v4625_v43, %v10985_v13  ;;  %v8666_v43 = vor.u32 %v9546_v4, %v8663_v23  ;;  %v9528_v4 = vld [vmem:[%s13327_s30 + $0x1b4] sm:$0xf] }
0x1987   :  { %v12403_v32 = vadd.f32 1e-05, %v4630_v31  ;;  %v9534_v31 = vld [vmem:[%s13327_s30 + $0x1e4] sm:$0xf]  ;;  %5111 = vmatpush.bf16.msra.mxu1 %v8666_v43 }
0x1988   :  { %v8618_v53 = vor.u32 %v9534_v31, %v8615_v8 }
0x1989   :  { %9798 = vrsqrt.f32 %v12403_v32  ;;  %vm4640_vm11 = vweird.f32 %v12403_v32 }
0x198a   :  { %5095 = vmatpush.bf16.msra.mxu3 %v8618_v53  ;;  %v4669_v53 = vperm.slane %v4603_v36, 1 }
0x198b   :  { %5112 = vmatpush.bf16.msra.mxu1 %v8658_v22 }
0x198c   :  { %v4629_v52 = vpop.xlane.xlu0 %4628 }
0x198d   :  { %v4631_v61 = vmul.f32 %v4629_v52, %v10985_v13  ;;  %v8639_v52 = vld [vmem:[%s13327_s30 + $0x218] sm:$0xf0] }
0x198e   :  { %v8642_v27 = vor.u32 %v9540_v3, %v8639_v52  ;;  %5096 = vmatpush.bf16.msra.mxu3 %v8610_v15  ;;  %v8730_v15 = vld [vmem:[#allocation2 + $0x208] sm:$0xf0] }
0x198f   :  { %v12475_v25 = vpop.eup %9798  ;;  %v12477_v10 = vadd.f32 1e-05, %v4631_v61  ;;  %5113 = vmatpush.bf16.msra.mxu1 %v8650_v60  ;;  %v8420_v61 = vld [vmem:[%s13311_s16 + $0x2] sm:$0x3] }
0x1990   :  { %v4635_v39 = vmul.f32 %v12475_v25, %v12403_v32  ;;  %vm4641_vm9 = vweird.f32 %v12475_v25  ;;  %v8591_v32 = vld [vmem:[%s13327_s30 + $0x1b8] sm:$0xf0]  ;;  %v4659_v43 = vperm.slane %v8420_v61, 0  ;;  %v4660_v31 = vperm.slane %v8420_v61, 1  ;;  %v9560_v61 = vld [vmem:[#allocation2 + $0x1f4] sm:$0xf] }
0x1991   :  { %9800 = vrsqrt.f32 %v12477_v10  ;;  %vm4642_vm12 = vmor %vm4640_vm11, %vm4641_vm9  ;;  %v8594_v57 = vor.u32 %v9528_v4, %v8591_v32  ;;  %vm4650_vm15 = vweird.f32 %v12477_v10  ;;  %v9571_v4 = vld [vmem:[#allocation2 + $0x244] sm:$0xf0]  ;;  %v9570_v32 = vld [vmem:[#allocation2 + $0x244] sm:$0xf] }
0x1992   :  { %v4636_v12 = vmul.f32 %v12475_v25, %v4635_v39  ;;  %5097 = vmatpush.bf16.msra.mxu3 %v8602_v9  ;;  %v8581_v39 = vld [vmem:[%s13327_s30 + $0x1a0] sm:$0xf]  ;;  %v5280_v9 = vsel %vm393_vm0, %v5253_v11, 0  ;;  %v8688_v11 = vld [vmem:[#allocation2 + $0x1b0] sm:$0xf] }
0x1993   :  { %5114 = vmatpush.bf16.msra.mxu1 %v8642_v27  ;;  %v9561_v27 = vld [vmem:[#allocation2 + $0x1f4] sm:$0xf0] }
0x1994   :  { %v4637_v19 = vmul.f32 0.5, %v4636_v12  ;;  %v4668_v12 = vperm.slane %v4603_v36, 0 }
0x1996   :  { %v4638_v50 = vsub.f32 1.5, %v4637_v19  ;;  %5098 = vmatpush.bf16.msra.mxu3 %v8594_v57  ;;  %v9524_v19 = vld [vmem:[%s13327_s30 + $0x194] sm:$0xf]  ;;  %v8714_v57 = vld [vmem:[#allocation2 + $0x1e8] sm:$0xf0] }
0x1997   :  { %v9801_v16 = vpop.eup %9800 }
0x1998   :  { %v4639_v59 = vmul.f32 %v12475_v25, %v4638_v50  ;;  %v4645_v35 = vmul.f32 %v9801_v16, %v12477_v10  ;;  %vm4651_vm14 = vweird.f32 %v9801_v16  ;;  %v9562_v50 = vld [vmem:[#allocation2 + $0x204] sm:$0xf] }
0x1999   :  { %vm4652_vm2 = vmor %vm4650_vm15, %vm4651_vm14 }
0x199a   :  { %v4646_v41 = vmul.f32 %v9801_v16, %v4645_v35  ;;  %v4643_v54 = vsel %vm4642_vm12, %v12475_v25, %v4639_v59  ;;  %v8729_v59 = vor.u32 %v9563_v7, %v8728_v62  ;;  %v8733_v35 = vor.u32 %v9562_v50, %v8730_v15  ;;  %v8736_v62 = vld [vmem:[#allocation2 + $0x210] sm:$0xf]  ;;  %v9564_v7 = vld [vmem:[#allocation2 + $0x214] sm:$0xf]  ;;  %v8738_v50 = vld [vmem:[#allocation2 + $0x218] sm:$0xf0] }
0x199b   :  { %v4654_v25 = vmul.f32 %v4643_v54, %v12279_v2  ;;  %v4655_v8 = vmul.f32 %v4643_v54, %v12281_v21  ;;  %v8582_v2 = vor.u32 %v9527_v29, %v8581_v39  ;;  %v8586_v21 = vor.u32 %v9526_v14, %v8583_v44  ;;  %v8762_v54 = vld [vmem:[#allocation2 + $0x248] sm:$0xf0]  ;;  %v8754_v14 = vld [vmem:[#allocation2 + $0x238] sm:$0xf0] }
0x199c   :  { %v4647_v23 = vmul.f32 0.5, %v4646_v41  ;;  %v8722_v41 = vld [vmem:[#allocation2 + $0x1f8] sm:$0xf0]  ;;  %v8761_v39 = vor.u32 %v9571_v4, %v8760_v28  ;;  %v8765_v29 = vor.u32 %v9570_v32, %v8762_v54  ;;  %v9550_v28 = vld [vmem:[#allocation2 + $0x1a4] sm:$0xf] }
0x199d   :  { %v4663_v10 = vmul.f32 %v4659_v43, %v4654_v25  ;;  %v4664_v34 = vmul.f32 %v4660_v31, %v4655_v8  ;;  %5071 = vmatpush.bf16.msrb.mxu0 %v8582_v2  ;;  %5099 = vmatpush.bf16.msra.mxu3 %v8586_v21  ;;  %v8725_v36 = vor.u32 %v9560_v61, %v8722_v41  ;;  %v9569_v25 = vld [vmem:[#allocation2 + $0x234] sm:$0xf0]  ;;  %v9568_v8 = vld [vmem:[#allocation2 + $0x234] sm:$0xf]  ;;  %v8706_v2 = vld [vmem:[#allocation2 + $0x1d8] sm:$0xf0] }
0x199e   :  { %v4648_v24 = vsub.f32 1.5, %v4647_v23  ;;  %v8721_v23 = vor.u32 %v9561_v27, %v8720_v30  ;;  %v8757_v21 = vor.u32 %v9568_v8, %v8754_v14  ;;  %v8741_v27 = vor.u32 %v9564_v7, %v8738_v50  ;;  %v8682_v4 = vld [vmem:[#allocation2 + $0x1a8] sm:$0xf0] }
0x199f   :  { %v12599_v63 = vadd.f32 %v4668_v12, %v4663_v10  ;;  %v8685_v54 = vor.u32 %v9550_v28, %v8682_v4 }
0x19a0   :  { %v4649_v17 = vmul.f32 %v9801_v16, %v4648_v24  ;;  %v9558_v24 = vld [vmem:[#allocation2 + $0x1e4] sm:$0xf] }
0x19a1   :  { %5072 = vmatpush.bf16.msrb.mxu0 %v8574_v18  ;;  %v8717_v20 = vor.u32 %v9558_v24, %v8714_v57  ;;  %v9565_v18 = vld [vmem:[#allocation2 + $0x214] sm:$0xf0] }
0x19a2   :  { %v4653_v22 = vsel %vm4652_vm2, %v9801_v16, %v4649_v17  ;;  %v12601_v16 = vadd.f32 %v4669_v53, %v4664_v34  ;;  %v8704_v17 = vld [vmem:[#allocation2 + $0x1d0] sm:$0xf]  ;;  %v8737_v30 = vor.u32 %v9565_v18, %v8736_v62 }
0x19a3   :  { %v4656_v33 = vmul.f32 %v4653_v22, %v12289_v49  ;;  %v4657_v51 = vmul.f32 %v4653_v22, %v12291_v58  ;;  %v8578_v49 = vor.u32 %v9524_v19, %v8575_v38  ;;  %v5254_v58 = vpack.c.b16 %v5228_v45, %v5228_v45  ;;  %v8746_v45 = vld [vmem:[#allocation2 + $0x228] sm:$0xf0]  ;;  %v9554_v19 = vld [vmem:[#allocation2 + $0x1c4] sm:$0xf] }
0x19a4   :  { %v8698_v38 = vld [vmem:[#allocation2 + $0x1c8] sm:$0xf0] }
0x19a5   :  { %v4665_v5 = vmul.f32 %v4659_v43, %v4656_v33  ;;  %v4666_v60 = vmul.f32 %v4660_v31, %v4657_v51  ;;  %5100 = vmatpush.bf16.msra.mxu3 %v8578_v49  ;;  %v5283_v6 = vsel %vm393_vm0, %v5254_v58, 0  ;;  %v9559_v43 = vld [vmem:[#allocation2 + $0x1e4] sm:$0xf0]  ;;  %v8752_v31 = vld [vmem:[#allocation2 + $0x230] sm:$0xf]  ;;  %v8701_v49 = vor.u32 %v9554_v19, %v8698_v38 }
0x19a6   :  { %v8713_v44 = vor.u32 %v9559_v43, %v8712_v55  ;;  %v8753_v22 = vor.u32 %v9569_v25, %v8752_v31  ;;  %v8696_v33 = vld [vmem:[#allocation2 + $0x1c0] sm:$0xf]  ;;  %v9555_v51 = vld [vmem:[#allocation2 + $0x1c4] sm:$0xf0]  ;;  %v9553_v58 = vld [vmem:[#allocation2 + $0x1b4] sm:$0xf0] }
0x19a7   :  { %v12603_v26 = vadd.f32 %v4668_v12, %v4665_v5  ;;  %v12605_v1 = vadd.f32 %v4669_v53, %v4666_v60  ;;  %v9557_v12 = vld [vmem:[#allocation2 + $0x1d4] sm:$0xf0]  ;;  %v9556_v53 = vld [vmem:[#allocation2 + $0x1d4] sm:$0xf]  ;;  %v8745_v5 = vor.u32 %v9567_v56, %v8744_v37  ;;  %v8749_v60 = vor.u32 %v9566_v47, %v8746_v45  ;;  %v8674_v43 = vld [vmem:[#allocation2 + $0x198] sm:$0xf0] }
0x19a8   :  { %v8705_v10 = vor.u32 %v9557_v12, %v8704_v17  ;;  %v8709_v34 = vor.u32 %v9556_v53, %v8706_v2  ;;  %v8697_v15 = vor.u32 %v9555_v51, %v8696_v33  ;;  %v8689_v61 = vor.u32 %v9553_v58, %v8688_v11  ;;  %v9548_v55 = vld [vmem:[#allocation2 + $0x194] sm:$0xf]  ;;  %v12641_v47 = vld [vmem:[%s13300_s5 + $0x4] sm:$0x3] }
0x19a9   :  { %v12609_v3 = vpack.c.bf16 %v12603_v26, %v12599_v63  ;;  %v12613_v52 = vpack.c.bf16 %v12605_v1, %v12601_v16  ;;  %v8677_v57 = vor.u32 %v9548_v55, %v8674_v43  ;;  %v4931_v11 = vperm.slane %v12641_v47, 1 }
0x19ab   :  { %4853 = vmatmul.bf16.vlgmr.msra.gmra.mxu2 %v12609_v3  ;;  %8543 = vmatmul.msk.bf16.vlgmr.msra.gmra.mxu0 %vm389_vm1, %v12613_v52 }
0x19ac   :  { %4881 = vmatmul.bf16.vlgmr.msrb.gmra.mxu1 %v12609_v3  ;;  %8544 = vmatmul.msk.bf16.vlgmr.msrb.gmra.mxu3 %vm389_vm1, %v12613_v52 }
0x19ad   :  { %5285 = vmatpush.bf16.msra.mxu2 %v8729_v59  ;;  %5313 = vmatpush.bf16.msrb.mxu1 %v8733_v35  ;;  %v9552_v59 = vld [vmem:[#allocation2 + $0x1b4] sm:$0xf]  ;;  %v8690_v35 = vld [vmem:[#allocation2 + $0x1b8] sm:$0xf0] }
0x19ae   :  { %5302 = vmatpush.bf16.msra.mxu0 %v5280_v9  ;;  %5330 = vmatpush.bf16.msrb.mxu3 %v5283_v6  ;;  %v8693_v41 = vor.u32 %v9552_v59, %v8690_v35  ;;  %v8680_v9 = vld [vmem:[#allocation2 + $0x1a0] sm:$0xf]  ;;  %v9551_v6 = vld [vmem:[#allocation2 + $0x1a4] sm:$0xf0] }
0x19af   :  { %v8681_v32 = vor.u32 %v9551_v6, %v8680_v9 }
0x19b1   :  { %5286 = vmatpush.bf16.msra.mxu2 %v8721_v23  ;;  %5314 = vmatpush.bf16.msrb.mxu1 %v8725_v36  ;;  %v8672_v23 = vld [vmem:[#allocation2 + $0x190] sm:$0xf]  ;;  %v9549_v36 = vld [vmem:[#allocation2 + $0x194] sm:$0xf0] }
0x19b2   :  { %5303 = vmatpush.bf16.msra.mxu0 %v8761_v39  ;;  %5331 = vmatpush.bf16.msrb.mxu3 %v8765_v29  ;;  %v8673_v24 = vor.u32 %v9549_v36, %v8672_v23  ;;  %v8446_v39 = vld [vmem:[%s13331_s13 + $0x4] sm:$0x3] }
0x19b3   :  { %v4708_v25 = vperm.slane %v8446_v39, 1  ;;  %v4707_v8 = vperm.slane %v8446_v39, 0 }
0x19b5   :  { %5287 = vmatpush.bf16.msra.mxu2 %v8713_v44  ;;  %5315 = vmatpush.bf16.msrb.mxu1 %v8717_v20 }
0x19b6   :  { %5304 = vmatpush.bf16.msra.mxu0 %v8753_v22  ;;  %5332 = vmatpush.bf16.msrb.mxu3 %v8757_v21 }
0x19b9   :  { %5288 = vmatpush.bf16.msra.mxu2 %v8705_v10  ;;  %5316 = vmatpush.bf16.msrb.mxu1 %v8709_v34 }
0x19ba   :  { %5305 = vmatpush.bf16.msra.mxu0 %v8745_v5  ;;  %5333 = vmatpush.bf16.msrb.mxu3 %v8749_v60  ;;  %v4930_v5 = vperm.slane %v12641_v47, 0 }
0x19bb   :  { %5073 = vmatmul.bf16.vlgmr.msrb.gmra.mxu0 %v12609_v3  ;;  %8667 = vmatmul.msk.bf16.vlgmr.msrb.gmra.mxu2 %vm389_vm1, %v12613_v52 }
0x19bc   :  { %5101 = vmatmul.bf16.vlgmr.msra.gmra.mxu3 %v12609_v3  ;;  %8668 = vmatmul.msk.bf16.vlgmr.msra.gmra.mxu1 %vm389_vm1, %v12613_v52 }
0x19bd   :  { %5289 = vmatpush.bf16.msra.mxu2 %v8697_v15  ;;  %5317 = vmatpush.bf16.msrb.mxu1 %v8701_v49 }
0x19be   :  { %5306 = vmatpush.bf16.msra.mxu0 %v8737_v30  ;;  %5334 = vmatpush.bf16.msrb.mxu3 %v8741_v27 }
0x19c1   :  { %5290 = vmatpush.bf16.msra.mxu2 %v8689_v61  ;;  %5318 = vmatpush.bf16.msrb.mxu1 %v8693_v41 }
0x19c5   :  { %5291 = vmatpush.bf16.msra.mxu2 %v8681_v32  ;;  %5319 = vmatpush.bf16.msrb.mxu1 %v8685_v54 }
0x19c9   :  { %5292 = vmatpush.bf16.msra.mxu2 %v8673_v24  ;;  %5320 = vmatpush.bf16.msrb.mxu1 %v8677_v57 }
0x19cb   :  { %8766 = vmatmul.msk.bf16.vlgmr.msra.gmra.mxu0 %vm389_vm1, %v12613_v52 }
0x19cc   :  { %5293 = vmatmul.bf16.vlgmr.msra.gmra.mxu2 %v12609_v3  ;;  %5321 = vmatmul.bf16.vlgmr.msrb.gmra.mxu1 %v12609_v3 }
0x19cd   :  { %8767 = vmatmul.msk.bf16.vlgmr.msrb.gmra.mxu3 %vm389_vm1, %v12613_v52 }
0x1a28   :  { %v4868_v29 = vpop.f32.mrf.mxu0 }
0x1a29   :  { %v4882_v31 = vpop.f32.mrf.mxu1 }
0x1a2a   :  { %v4883_v14 = vadd.f32 %v4882_v31, %v4708_v25 }
0x1a2e   :  { %v4854_v44 = vpop.f32.mrf.mxu2 }
0x1a2f   :  { %v4855_v20 = vadd.f32 %v4854_v44, %v4707_v8  ;;  %v4896_v17 = vpop.f32.mrf.mxu3 }
0x1a30   :  { %v4897_v12 = vadd.f32 %v4896_v17, %v4883_v14  ;;  %v4870_v53 = vpop.f32.mrf.mxu0 }
0x1a31   :  { %v4869_v2 = vadd.f32 %v4868_v29, %v4855_v20  ;;  %v4884_v22 = vpop.f32.mrf.mxu1 }
0x1a32   :  { %v5342_v21 = vmul.f32 0.15811388, %v4897_v12  ;;  %v4885_v52 = vadd.f32 %v4884_v22, %v4708_v25 }
0x1a33   :  { %v5341_v3 = vmul.f32 0.15811388, %v4869_v2 }
0x1a35   :  { %v5345_v37 = vpack.c.bf16 %v5342_v21, %v5341_v3 }
0x1a36   :  { %v4856_v56 = vpop.f32.mrf.mxu2 }
0x1a37   :  { %v4857_v45 = vadd.f32 %v4856_v56, %v4707_v8  ;;  %v4898_v10 = vpop.f32.mrf.mxu3  ;;  %v5426_v51 = vsel %vm10701_vm4, %v5345_v37, 0  ;;  %v5496_v19 = vsel %vm10706_vm7, %v5345_v37, 0  ;;  %v5645_v7 = vsel %vm10589_vm6, %v5345_v37, 0 }
0x1a38   :  { %v4899_v34 = vadd.f32 %v4898_v10, %v4885_v52  ;;  %v5074_v33 = vpop.f32.mrf.mxu0  ;;  %v5757_v50 = vsel %vm10623_vm13, %v5345_v37, 0  ;;  %v5431_v15 = vunpack.c.h.b16 %v5426_v51  ;;  %v5501_v49 = vunpack.c.h.b16 %v5496_v19 }
0x1a39   :  { %v4871_v38 = vadd.f32 %v4870_v53, %v4857_v45  ;;  %v5116_v60 = vpop.f32.mrf.mxu1  ;;  %v5075_v59 = vadd.f32 %v5074_v33, %v4930_v5  ;;  %v5430_v35 = vunpack.c.l.b16 %v5426_v51  ;;  %v5500_v30 = vunpack.c.l.b16 %v5496_v19 }
0x1a3a   :  { %v5344_v18 = vmul.f32 0.15811388, %v4899_v34  ;;  %v5649_v61 = vunpack.c.l.b16 %v5645_v7  ;;  %v5650_v41 = vunpack.c.h.b16 %v5645_v7  ;;  %v5761_v9 = vunpack.c.l.b16 %v5757_v50 }
0x1a3b   :  { %v5343_v62 = vmul.f32 0.15811388, %v4871_v38  ;;  %v5869_v6 = vsel %vm10599_vm10, %v5345_v37, 0  ;;  %v5762_v25 = vunpack.c.h.b16 %v5757_v50 }
0x1a3c   :  { %v5873_v52 = vunpack.c.l.b16 %v5869_v6  ;;  %v5874_v47 = vunpack.c.h.b16 %v5869_v6 }
0x1a3d   :  { %v5346_v58 = vpack.c.bf16 %v5344_v18, %v5343_v62 }
0x1a3e   :  { %v5088_v27 = vpop.f32.mrf.mxu2 }
0x1a3f   :  { %v5427_v28 = vsel %vm10701_vm4, %v5346_v58, 0  ;;  %v5497_v4 = vsel %vm10706_vm7, %v5346_v58, 0  ;;  %v5089_v32 = vadd.f32 %v5088_v27, %v5075_v59  ;;  %v5102_v54 = vpop.f32.mrf.mxu3  ;;  %v5646_v23 = vsel %vm10589_vm6, %v5346_v58, 0 }
0x1a40   :  { %v5433_v36 = vunpack.c.h.b16 %v5427_v28  ;;  %v5503_v55 = vunpack.c.h.b16 %v5497_v4  ;;  %v5103_v43 = vadd.f32 %v5102_v54, %v4931_v11  ;;  %v5432_v24 = vunpack.c.l.b16 %v5427_v28  ;;  %v5076_v14 = vpop.f32.mrf.mxu0 }
0x1a41   :  { %v5118_v57 = vpop.f32.mrf.mxu1  ;;  %5347 = vxpose.xlu1.b32.start [1/2] (short) %v5089_v32, 128  ;;  %v5502_v39 = vunpack.c.l.b16 %v5497_v4  ;;  %v5651_v29 = vunpack.c.l.b16 %v5646_v23  ;;  %v5652_v31 = vunpack.c.h.b16 %v5646_v23  ;;  %v5758_v22 = vsel %vm10623_vm13, %v5346_v58, 0 }
0x1a42   :  { %v5117_v8 = vadd.f32 %v5116_v60, %v5103_v43  ;;  %v12661_v44 = vpack.c.b16 %v5433_v36, %v5431_v15  ;;  %v12663_v20 = vpack.c.b16 %v5503_v55, %v5501_v49  ;;  %v12665_v17 = vpack.c.b16 %v5432_v24, %v5430_v35 }
0x1a43   :  { %v12667_v12 = vpack.c.b16 %v5502_v39, %v5500_v30  ;;  %v12669_v53 = vpack.c.b16 %v5651_v29, %v5649_v61  ;;  %v12671_v2 = vpack.c.b16 %v5652_v31, %v5650_v41  ;;  %v5763_v3 = vunpack.c.l.b16 %v5758_v22 }
0x1a44   :  { %5379 = vxpose.xlu0.b32.start [1/2] (short) (narrow) %v5117_v8, 72  ;;  %v5764_v21 = vunpack.c.h.b16 %v5758_v22  ;;  %v5870_v37 = vsel %vm10599_vm10, %v5346_v58, 0  ;;  %v5077_v56 = vadd.f32 %v5076_v14, %v4930_v5  ;;  %v8669_v5 = vld [vmem:[%s13302_s7 + $0x4] sm:$0x3] }
0x1a45   :  { %v5875_v45 = vunpack.c.l.b16 %v5870_v37  ;;  %v5876_v10 = vunpack.c.h.b16 %v5870_v37  ;;  %v12677_v33 = vpack.c.b16 %v5763_v3, %v5761_v9  ;;  %v5150_v15 = vperm.slane %v8669_v5, 0 }
0x1a46   :  { %v5090_v34 = vpop.f32.mrf.mxu2  ;;  %v12679_v51 = vpack.c.b16 %v5764_v21, %v5762_v25  ;;  %v5151_v49 = vperm.slane %v8669_v5, 1 }
0x1a47   :  { %v5091_v19 = vadd.f32 %v5090_v34, %v5077_v56  ;;  %v5104_v38 = vpop.f32.mrf.mxu3  ;;  %v12681_v60 = vpack.c.b16 %v5875_v45, %v5873_v52  ;;  %v12683_v62 = vpack.c.b16 %v5876_v10, %v5874_v47 }
0x1a48   :  { %v5105_v18 = vadd.f32 %v5104_v38, %v4931_v11  ;;  %v5308_v58 = vpop.f32.mrf.mxu0 }
0x1a49   :  { %5348 = vxpose.xlu1.b32.end [2/2] (short) %v5091_v19, 128  ;;  %v5322_v50 = vpop.f32.mrf.mxu1 }
0x1a4a   :  { %v5119_v7 = vadd.f32 %v5118_v57, %v5105_v18  ;;  %v5323_v27 = vadd.f32 %v5322_v50, %v5151_v49 }
0x1a4c   :  { %5380 = vxpose.xlu0.b32.end [2/2] (short) (narrow) %v5119_v7, 72 }
0x1a4f   :  { %v5294_v59 = vpop.f32.mrf.mxu2 }
0x1a50   :  { %v5295_v35 = vadd.f32 %v5294_v59, %v5150_v15  ;;  %v5336_v30 = vpop.f32.mrf.mxu3  ;;  %v5310_v54 = vpop.f32.mrf.mxu0 }
0x1a51   :  { %v5337_v41 = vadd.f32 %v5336_v30, %v5323_v27  ;;  %v5324_v9 = vpop.f32.mrf.mxu1 }
0x1a52   :  { %v5309_v61 = vadd.f32 %v5308_v58, %v5295_v35  ;;  %v5325_v28 = vadd.f32 %v5324_v9, %v5151_v49 }
0x1a54   :  { %v5424_v6 = vpack.c.bf16 %v5337_v41, %v5309_v61 }
0x1a56   :  { %v12690_v55 = vsel %vm10706_vm7, %v5424_v6, 0  ;;  %v12694_v24 = vsel %vm10701_vm4, %v5424_v6, 0  ;;  %v12698_v57 = vsel %vm10589_vm6, %v5424_v6, 0  ;;  %v5821_v39 = vsel %vm10623_vm13, %v5424_v6, 0 }
0x1a57   :  { %v5296_v11 = vpop.f32.mrf.mxu2  ;;  %v5566_v29 = vunpack.c.h.b16 %v12690_v55  ;;  %v5933_v31 = vsel %vm10599_vm10, %v5424_v6, 0  ;;  %v5607_v21 = vunpack.c.h.b16 %v12694_v24  ;;  %v5715_v37 = vunpack.c.h.b16 %v12698_v57 }
0x1a58   :  { %v5297_v4 = vadd.f32 %v5296_v11, %v5150_v15  ;;  %v5338_v32 = vpop.f32.mrf.mxu3  ;;  %v5827_v48 = vunpack.c.h.b16 %v5821_v39  ;;  %v5938_v45 = vunpack.c.l.b16 %v5933_v31  ;;  %v5939_v38 = vunpack.c.h.b16 %v5933_v31 }
0x1a59   :  { %v5339_v36 = vadd.f32 %v5338_v32, %v5325_v28  ;;  %v5826_v7 = vunpack.c.l.b16 %v5821_v39 }
0x1a5a   :  { %v5311_v23 = vadd.f32 %v5310_v54, %v5297_v4 }
0x1a5c   :  { %v5425_v43 = vpack.c.bf16 %v5339_v36, %v5311_v23 }
0x1a5e   :  { %v12707_v25 = vsel %vm10706_vm7, %v5425_v43, 0  ;;  %v12711_v8 = vsel %vm10701_vm4, %v5425_v43, 0  ;;  %v12715_v14 = vsel %vm10589_vm6, %v5425_v43, 0  ;;  %v5822_v22 = vsel %vm10623_vm13, %v5425_v43, 0 }
0x1a5f   :  { %v5568_v3 = vunpack.c.h.b16 %v12707_v25  ;;  %v5609_v52 = vunpack.c.h.b16 %v12711_v8  ;;  %v5717_v46 = vunpack.c.h.b16 %v12715_v14  ;;  %v5829_v56 = vunpack.c.h.b16 %v5822_v22 }
0x1a60   :  { %v5934_v40 = vsel %vm10599_vm10, %v5425_v43, 0  ;;  %v5828_v5 = vunpack.c.l.b16 %v5822_v22 }
0x1a61   :  { %v12726_v47 = vpack.c.b16 %v5568_v3, %v5566_v29  ;;  %v12728_v0 = vpack.c.b16 %v5609_v52, %v5607_v21  ;;  %v12730_v10 = vpack.c.b16 %v5717_v46, %v5715_v37  ;;  %v12732_v34 = vpack.c.b16 %v5829_v56, %v5827_v48 }
0x1a62   :  { %v5940_v19 = vunpack.c.l.b16 %v5934_v40  ;;  %v5941_v18 = vunpack.c.h.b16 %v5934_v40  ;;  %v12738_v42 = vpack.c.b16 %v5828_v5, %v5826_v7  ;;  %v5716_v7 = vunpack.c.l.b16 %v12715_v14 }
0x1a64   :  { %v12734_v50 = vpack.c.b16 %v5940_v19, %v5938_v45  ;;  %v12736_v15 = vpack.c.b16 %v5941_v18, %v5939_v38  ;;  %v5567_v45 = vunpack.c.l.b16 %v12707_v25  ;;  %v5608_v19 = vunpack.c.l.b16 %v12711_v8 }
0x1a65   :  { %v5565_v38 = vunpack.c.l.b16 %v12690_v55  ;;  %v5606_v18 = vunpack.c.l.b16 %v12694_v24  ;;  %v5714_v25 = vunpack.c.l.b16 %v12698_v57 }
0x1a67   :  { %v5569_v5 = vpack.c.b16 %v5567_v45, %v5565_v38 }
0x1ae5   :  { %v5363_v49 = vpop.trf.xlu1 }
0x1ae8   :  { %v5395_v58 = vpop.trf.xlu0 }
0x1aed   :  { %v5364_v59 = vpop.trf.xlu1 }
0x1aee   :  { %v12740_v35 = vpack.c.bf16 %v5364_v59, %v5363_v49  ;;  %v5610_v49 = vpack.c.b16 %v5608_v19, %v5606_v18 }
0x1af0   :  { %v5396_v30 = vpop.trf.xlu0 }
0x1af1   :  { %v12742_v27 = vpack.c.bf16 %v5396_v30, %v5395_v58  ;;  %v5718_v58 = vpack.c.b16 %v5716_v7, %v5714_v25 }
0x1af5   :  { %v5365_v61 = vpop.trf.xlu1 }
0x1af8   :  { %v5397_v41 = vpop.trf.xlu0 }
0x1afd   :  { %v5366_v9 = vpop.trf.xlu1 }
0x1afe   :  { %v12744_v6 = vpack.c.bf16 %v5366_v9, %v5365_v61  ;;  %v12831_v9 = vld [vmem:[%s13340_s22 + $0x8] sm:$0xff] }
0x1b00   :  { %v5398_v11 = vpop.trf.xlu0 }
0x1b01   :  { %v12761_v56 = vpack.c.bf16 %v5398_v11, %v5397_v41 }
0x1b05   :  { %v5367_v28 = vpop.trf.xlu1 }
0x1b08   :  { %v5399_v4 = vpop.trf.xlu0 }
0x1b0d   :  { %v5368_v32 = vpop.trf.xlu1 }
0x1b0e   :  { %v12746_v54 = vpack.c.bf16 %v5368_v32, %v5367_v28 }
0x1b10   :  { %v5400_v23 = vpop.trf.xlu0 }
0x1b11   :  { %v12757_v46 = vpack.c.bf16 %v5400_v23, %v5399_v4 }
0x1b15   :  { %v5369_v36 = vpop.trf.xlu1 }
0x1b18   :  { %v5401_v43 = vpop.trf.xlu0 }
0x1b1d   :  { %v5370_v39 = vpop.trf.xlu1 }
0x1b1e   :  { %v12748_v29 = vpack.c.bf16 %v5370_v39, %v5369_v36 }
0x1b20   :  { %v5402_v31 = vpop.trf.xlu0 }
0x1b21   :  { %v12753_v48 = vpack.c.bf16 %v5402_v31, %v5401_v43 }
0x1b25   :  { %v5371_v22 = vpop.trf.xlu1 }
0x1b28   :  { %v5403_v3 = vpop.trf.xlu0 }
0x1b29   :  { %v5423_v21 = vpack.c.bf16 %v5403_v3, %v5403_v3 }
0x1b2b   :  { %v12751_v37 = vsel %vm393_vm0, %v5423_v21, 0 }
0x1b2c   :  { %5460 = vmatpush.bf16.msrb.mxu2 %v12751_v37  ;;  %5527 = vmatpush.bf16.msra.mxu1 %v12751_v37 }
0x1b2d   :  { %v5372_v52 = vpop.trf.xlu1 }
0x1b30   :  { %5461 = vmatpush.bf16.msrb.mxu2 %v12753_v48  ;;  %5528 = vmatpush.bf16.msra.mxu1 %v12753_v48 }
0x1b34   :  { %5462 = vmatpush.bf16.msrb.mxu2 %v12757_v46  ;;  %5529 = vmatpush.bf16.msra.mxu1 %v12757_v46 }
0x1b35   :  { %v5373_v40 = vpop.trf.xlu1 }
0x1b38   :  { %5463 = vmatpush.bf16.msrb.mxu2 %v12761_v56  ;;  %5530 = vmatpush.bf16.msra.mxu1 %v12761_v56 }
0x1b3c   :  { %5464 = vmatpush.bf16.msrb.mxu2 %v12742_v27  ;;  %5531 = vmatpush.bf16.msra.mxu1 %v12742_v27 }
0x1b3d   :  { %v5374_v8 = vpop.trf.xlu1 }
0x1b3f   :  { %8768 = vmatmul.msk.bf16.vlgmr.msrb.gmra.mxu2 %vm389_vm1, %v12661_v44  ;;  %8769 = vmatmul.msk.bf16.vlgmr.msra.gmra.mxu1 %vm389_vm1, %v12663_v20  ;;  %v12789_v44 = vpack.c.bf16 %v5374_v8, %v5373_v40  ;;  %v12794_v20 = vpack.c.bf16 %v5372_v52, %v5371_v22 }
0x1b40   :  { %5583 = vmatpush.bf16.msra.mxu2 %v5569_v5  ;;  %5624 = vmatpush.bf16.msrb.mxu1 %v5610_v49 }
0x1b44   :  { %5732 = vmatpush.bf16.msra.mxu1 %v5718_v58 }
0x1b45   :  { %v5375_v55 = vpop.trf.xlu1 }
0x1b4d   :  { %v5376_v24 = vpop.trf.xlu1 }
0x1b4e   :  { %v12784_v57 = vpack.c.bf16 %v5376_v24, %v5375_v55 }
0x1b55   :  { %v5377_v14 = vpop.trf.xlu1 }
0x1b5d   :  { %v5378_v59 = vpop.trf.xlu1 }
0x1b5e   :  { %v12779_v30 = vpack.c.bf16 %v5378_v59, %v5377_v14 }
0x1b60   :  { %5443 = vmatpush.bf16.msrb.mxu0 %v12779_v30  ;;  %5510 = vmatpush.bf16.msra.mxu3 %v12779_v30 }
0x1b61   :  { %5659 = vmatpush.bf16.msrb.mxu2 %v12779_v30 }
0x1b64   :  { %5444 = vmatpush.bf16.msrb.mxu0 %v12784_v57  ;;  %5511 = vmatpush.bf16.msra.mxu3 %v12784_v57 }
0x1b65   :  { %5660 = vmatpush.bf16.msrb.mxu2 %v12784_v57 }
0x1b68   :  { %5445 = vmatpush.bf16.msrb.mxu0 %v12789_v44  ;;  %5512 = vmatpush.bf16.msra.mxu3 %v12789_v44 }
0x1b69   :  { %5661 = vmatpush.bf16.msrb.mxu2 %v12789_v44 }
0x1b6c   :  { %5446 = vmatpush.bf16.msrb.mxu0 %v12794_v20  ;;  %5513 = vmatpush.bf16.msra.mxu3 %v12794_v20 }
0x1b6d   :  { %5662 = vmatpush.bf16.msrb.mxu2 %v12794_v20 }
0x1b70   :  { %5447 = vmatpush.bf16.msrb.mxu0 %v12748_v29  ;;  %5514 = vmatpush.bf16.msra.mxu3 %v12748_v29 }
0x1b71   :  { %5663 = vmatpush.bf16.msrb.mxu2 %v12748_v29 }
0x1b74   :  { %5448 = vmatpush.bf16.msrb.mxu0 %v12746_v54  ;;  %5515 = vmatpush.bf16.msra.mxu3 %v12746_v54 }
0x1b75   :  { %5664 = vmatpush.bf16.msrb.mxu2 %v12746_v54 }
0x1b78   :  { %5449 = vmatpush.bf16.msrb.mxu0 %v12744_v6  ;;  %5516 = vmatpush.bf16.msra.mxu3 %v12744_v6 }
0x1b79   :  { %5665 = vmatpush.bf16.msrb.mxu2 %v12744_v6 }
0x1b7c   :  { %5450 = vmatpush.bf16.msrb.mxu0 %v12740_v35  ;;  %5517 = vmatpush.bf16.msra.mxu3 %v12740_v35 }
0x1b7d   :  { %5666 = vmatpush.bf16.msrb.mxu2 %v12740_v35 }
0x1b7f   :  { %5451 = vmatmul.bf16.vlgmr.msrb.gmra.mxu0 %v12665_v17  ;;  %5518 = vmatmul.bf16.vlgmr.msra.gmra.mxu3 %v12667_v12  ;;  %v12824_v17 = vld [vmem:[%s13340_s22] sm:$0xff] }
0x1b80   :  { %5597 = vmatpush.bf16.msra.mxu0 %v12726_v47  ;;  %5638 = vmatpush.bf16.msrb.mxu3 %v12728_v0 }
0x1b84   :  { %5676 = vmatpush.bf16.msrb.mxu0 %v12751_v37  ;;  %5746 = vmatpush.bf16.msra.mxu3 %v12730_v10 }
0x1b88   :  { %5677 = vmatpush.bf16.msrb.mxu0 %v12753_v48 }
0x1b8c   :  { %5678 = vmatpush.bf16.msrb.mxu0 %v12757_v46 }
0x1b90   :  { %5679 = vmatpush.bf16.msrb.mxu0 %v12761_v56 }
0x1b94   :  { %5680 = vmatpush.bf16.msrb.mxu0 %v12742_v27 }
0x1bbc   :  { %v5533_v61 = vpop.f32.mrf.mxu1 }
0x1bc2   :  { %v5466_v45 = vpop.f32.mrf.mxu2 }
0x1bc4   :  { %v5535_v28 = vpop.f32.mrf.mxu1 }
0x1bca   :  { %v5468_v25 = vpop.f32.mrf.mxu2 }
0x1bfc   :  { %v5452_v39 = vpop.f32.mrf.mxu0 }
0x1bfd   :  { %v5453_v52 = vadd.f32 %v12824_v17, %v5452_v39 }
0x1bff   :  { %v5467_v19 = vadd.f32 %v5466_v45, %v5453_v52 }
0x1c01   :  { %v5471_v49 = vsel %vm1027_vm5, %v5467_v19, -inf }
0x1c02   :  { %v5519_v47 = vpop.f32.mrf.mxu3 }
0x1c03   :  { %v5520_v12 = vadd.f32 %v12824_v17, %v5519_v47 }
0x1c04   :  { %v5454_v38 = vpop.f32.mrf.mxu0 }
0x1c05   :  { %v5534_v0 = vadd.f32 %v5533_v61, %v5520_v12  ;;  %v5455_v7 = vadd.f32 %v12831_v9, %v5454_v38 }
0x1c07   :  { %v5538_v10 = vsel %vm1027_vm5, %v5534_v0, -inf  ;;  %v5469_v8 = vadd.f32 %v5468_v25, %v5455_v7 }
0x1c08   :  { %5539 = vmax.xlane.f32.xlu2 %v5538_v10 }
0x1c09   :  { %v5474_v58 = vsel %vm1027_vm5, %v5469_v8, -inf }
0x1c0a   :  { %v5521_v41 = vpop.f32.mrf.mxu3 }
0x1c0b   :  { %v5522_v11 = vadd.f32 %v12831_v9, %v5521_v41 }
0x1c0d   :  { %v5536_v4 = vadd.f32 %v5535_v28, %v5522_v11 }
0x1c0f   :  { %v5541_v32 = vsel %vm1027_vm5, %v5536_v4, -inf }
0x1c10   :  { %5542 = vmax.xlane.f32.xlu2 %v5541_v32 }
0x1c7b   :  { %v5540_v23 = vpop.xlane.xlu2 %5539 }
0x1c7c   :  { %v5544_v36 = vsub.f32 %v5534_v0, %v5540_v23 }
0x1c7e   :  { %v5546_v43 = vmul.f32 1.442695, %v5544_v36 }
0x1c80   :  { %9802 = vpow2.f32 %v5546_v43 }
0x1c83   :  { %v5543_v31 = vpop.xlane.xlu2 %5542 }
0x1c84   :  { %v5545_v22 = vsub.f32 %v5536_v4, %v5543_v31 }
0x1c86   :  { %v9803_v3 = vpop.eup %9802  ;;  %v5548_v21 = vmul.f32 1.442695, %v5545_v22 }
0x1c87   :  { %v5550_v40 = vsel %vm1027_vm5, %v9803_v3, 0.0 }
0x1c88   :  { %9804 = vpow2.f32 %v5548_v21  ;;  %5551 = vadd.xlane.f32.xlu2 %v5550_v40 }
0x1c8e   :  { %v9805_v18 = vpop.eup %9804 }
0x1c8f   :  { %v5553_v5 = vsel %vm1027_vm5, %v9805_v18, 0.0 }
0x1c90   :  { %5554 = vadd.xlane.f32.xlu0 %v5553_v5  ;;  %5472 = vmax.xlane.f32.xlu2 %v5471_v49 }
0x1c98   :  { %5475 = vmax.xlane.f32.xlu2 %v5474_v58 }
0x1cfb   :  { %v5552_v55 = vpop.xlane.xlu2 %5551 }
0x1cfc   :  { %9806 = vrcp.f32 %v5552_v55 }
0x1d02   :  { %v9807_v14 = vpop.eup %9806 }
0x1d03   :  { %v5555_v24 = vpop.xlane.xlu0 %5554  ;;  %v5558_v61 = vmul.f32 %v9807_v14, %v9803_v3  ;;  %v5473_v10 = vpop.xlane.xlu2 %5472 }
0x1d04   :  { %9808 = vrcp.f32 %v5555_v24  ;;  %v5477_v4 = vsub.f32 %v5467_v19, %v5473_v10 }
0x1d0a   :  { %v9809_v59 = vpop.eup %9808 }
0x1d0b   :  { %v5559_v47 = vmul.f32 %v9809_v59, %v9805_v18  ;;  %v5476_v23 = vpop.xlane.xlu2 %5475 }
0x1d0c   :  { %v5478_v31 = vsub.f32 %v5469_v8, %v5476_v23 }
0x1d0d   :  { %v5562_v12 = vpack.c.bf16 %v5559_v47, %v5558_v61 }
0x1d0e   :  { %v5481_v3 = vmul.f32 1.442695, %v5478_v31 }
0x1d0f   :  { %8770 = vmatmul.msk.bf16.vlgmr.msra.gmra.mxu2 %vm1027_vm5, %v5562_v12  ;;  %8771 = vmatmul.msk.bf16.vlgmr.msra.gmra.mxu0 %vm1027_vm5, %v5562_v12 }
0x1d10   :  { %5771 = vmatpush.bf16.msra.mxu0 %v12779_v30  ;;  %5858 = vmatpush.bf16.msra.mxu2 %v12732_v34 }
0x1d14   :  { %5772 = vmatpush.bf16.msra.mxu0 %v12784_v57 }
0x1d18   :  { %5773 = vmatpush.bf16.msra.mxu0 %v12789_v44 }
0x1d1c   :  { %5774 = vmatpush.bf16.msra.mxu0 %v12794_v20 }
0x1d1f   :  { %5667 = vmatmul.bf16.vlgmr.msrb.gmra.mxu2 %v12669_v53  ;;  %8774 = vmatmul.msk.bf16.vlgmr.msrb.gmra.mxu0 %vm389_vm1, %v12671_v2 }
0x1d20   :  { %5775 = vmatpush.bf16.msra.mxu0 %v12748_v29  ;;  %5956 = vmatpush.bf16.msrb.mxu2 %v12734_v50 }
0x1d24   :  { %5776 = vmatpush.bf16.msra.mxu0 %v12746_v54 }
0x1d28   :  { %5777 = vmatpush.bf16.msra.mxu0 %v12744_v6 }
0x1d2c   :  { %5778 = vmatpush.bf16.msra.mxu0 %v12740_v35 }
0x1d2f   :  { %5779 = vmatmul.bf16.vlgmr.msra.gmra.mxu0 %v12677_v33 }
0x1d30   :  { %5970 = vmatpush.bf16.msrb.mxu0 %v12736_v15  ;;  %v5479_v15 = vmul.f32 1.442695, %v5477_v4 }
0x1d32   :  { %9810 = vpow2.f32 %v5479_v15 }
0x1d33   :  { %9812 = vpow2.f32 %v5481_v3 }
0x1d38   :  { %v9811_v21 = vpop.eup %9810 }
0x1d39   :  { %v5483_v52 = vsel %vm1027_vm5, %v9811_v21, 0.0  ;;  %v9813_v40 = vpop.eup %9812 }
0x1d3a   :  { %v5486_v45 = vsel %vm1027_vm5, %v9813_v40, 0.0 }
0x1d8c   :  { %v12858_v34 = vpop.f32.mrf.mxu0 }
0x1d92   :  { %v12860_v53 = vpop.f32.mrf.mxu2 }
0x1d94   :  { %v12862_v0 = vpop.f32.mrf.mxu0 }
0x1d9a   :  { %v12864_v2 = vpop.f32.mrf.mxu2 }
0x1d9c   :  { %v5682_v50 = vpop.f32.mrf.mxu0 }
0x1da2   :  { %v5668_v41 = vpop.f32.mrf.mxu2 }
0x1da3   :  { %v5669_v11 = vadd.f32 %v12824_v17, %v5668_v41 }
0x1da4   :  { %v5684_v43 = vpop.f32.mrf.mxu0 }
0x1da5   :  { %v5683_v28 = vadd.f32 %v5682_v50, %v5669_v11 }
0x1da7   :  { %v5687_v32 = vsel %vm1027_vm5, %v5683_v28, -inf }
0x1da8   :  { %5688 = vmax.xlane.f32.xlu1 %v5687_v32 }
0x1daa   :  { %v5670_v33 = vpop.f32.mrf.mxu2 }
0x1dab   :  { %v5671_v36 = vadd.f32 %v12831_v9, %v5670_v33 }
0x1dad   :  { %v5685_v39 = vadd.f32 %v5684_v43, %v5671_v36 }
0x1daf   :  { %v5690_v22 = vsel %vm1027_vm5, %v5685_v39, -inf }
0x1db0   :  { %5691 = vmax.xlane.f32.xlu2 %v5690_v22 }
0x1db8   :  { %5484 = vadd.xlane.f32.xlu2 %v5483_v52 }
0x1dc0   :  { %5487 = vadd.xlane.f32.xlu2 %v5486_v45 }
0x1e1b   :  { %v5689_v19 = vpop.xlane.xlu1 %5688 }
0x1e1c   :  { %v5693_v38 = vsub.f32 %v5683_v28, %v5689_v19 }
0x1e1e   :  { %v5695_v18 = vmul.f32 1.442695, %v5693_v38 }
0x1e20   :  { %9814 = vpow2.f32 %v5695_v18 }
0x1e23   :  { %v5692_v7 = vpop.xlane.xlu2 %5691 }
0x1e24   :  { %v5694_v5 = vsub.f32 %v5685_v39, %v5692_v7 }
0x1e26   :  { %v9815_v49 = vpop.eup %9814  ;;  %v5697_v25 = vmul.f32 1.442695, %v5694_v5 }
0x1e27   :  { %v5699_v8 = vsel %vm1027_vm5, %v9815_v49, 0.0 }
0x1e28   :  { %9816 = vpow2.f32 %v5697_v25  ;;  %5700 = vadd.xlane.f32.xlu2 %v5699_v8 }
0x1e2b   :  { %v5485_v58 = vpop.xlane.xlu2 %5484 }
0x1e2c   :  { %9818 = vrcp.f32 %v5485_v58 }
0x1e2e   :  { %v9817_v55 = vpop.eup %9816 }
0x1e2f   :  { %v5702_v24 = vsel %vm1027_vm5, %v9817_v55, 0.0 }
0x1e30   :  { %5703 = vadd.xlane.f32.xlu2 %v5702_v24 }
0x1e32   :  { %v9819_v59 = vpop.eup %9818 }
0x1e33   :  { %v5488_v14 = vpop.xlane.xlu2 %5487  ;;  %v5491_v47 = vmul.f32 %v9819_v59, %v9811_v21 }
0x1e34   :  { %9820 = vrcp.f32 %v5488_v14 }
0x1e3a   :  { %v9821_v61 = vpop.eup %9820 }
0x1e3b   :  { %v5492_v12 = vmul.f32 %v9821_v61, %v9813_v40 }
0x1e3d   :  { %v5495_v10 = vpack.c.bf16 %v5492_v12, %v5491_v47 }
0x1e3f   :  { %8772 = vmatmul.msk.bf16.vlgmr.msrb.gmra.mxu1 %vm1027_vm5, %v5495_v10  ;;  %8773 = vmatmul.msk.bf16.vlgmr.msrb.gmra.mxu3 %vm1027_vm5, %v5495_v10 }
0x1e40   :  { %5788 = vmatpush.bf16.msrb.mxu1 %v12751_v37  ;;  %5844 = vmatpush.bf16.msrb.mxu3 %v12738_v42 }
0x1e44   :  { %5789 = vmatpush.bf16.msrb.mxu1 %v12753_v48 }
0x1e48   :  { %5790 = vmatpush.bf16.msrb.mxu1 %v12757_v46 }
0x1e4c   :  { %5791 = vmatpush.bf16.msrb.mxu1 %v12761_v56 }
0x1e50   :  { %5792 = vmatpush.bf16.msrb.mxu1 %v12742_v27 }
0x1e9b   :  { %v5701_v50 = vpop.xlane.xlu2 %5700 }
0x1e9c   :  { %9822 = vrcp.f32 %v5701_v50 }
0x1ea2   :  { %v9823_v11 = vpop.eup %9822 }
0x1ea3   :  { %v5704_v41 = vpop.xlane.xlu2 %5703  ;;  %v5707_v4 = vmul.f32 %v9823_v11, %v9815_v49 }
0x1ea4   :  { %9824 = vrcp.f32 %v5704_v41 }
0x1eaa   :  { %v9825_v28 = vpop.eup %9824 }
0x1eab   :  { %v5708_v32 = vmul.f32 %v9825_v28, %v9817_v55 }
0x1ead   :  { %v5711_v15 = vpack.c.bf16 %v5708_v32, %v5707_v4 }
0x1eaf   :  { %8775 = vmatmul.msk.bf16.vlgmr.msra.gmra.mxu1 %vm1027_vm5, %v5711_v15  ;;  %8776 = vmatmul.msk.bf16.vlgmr.msra.gmra.mxu3 %vm1027_vm5, %v5711_v15 }
0x1eb0   :  { %5883 = vmatpush.bf16.msra.mxu1 %v12779_v30  ;;  %5900 = vmatpush.bf16.msra.mxu3 %v12751_v37 }
0x1eb4   :  { %5884 = vmatpush.bf16.msra.mxu1 %v12784_v57  ;;  %5901 = vmatpush.bf16.msra.mxu3 %v12753_v48 }
0x1eb8   :  { %5885 = vmatpush.bf16.msra.mxu1 %v12789_v44  ;;  %5902 = vmatpush.bf16.msra.mxu3 %v12757_v46 }
0x1ebc   :  { %5886 = vmatpush.bf16.msra.mxu1 %v12794_v20  ;;  %5903 = vmatpush.bf16.msra.mxu3 %v12761_v56  ;;  %v5626_v42 = vpop.f32.mrf.mxu1 }
0x1ebd   :  { %v5627_v56 = vadd.f32 %v5626_v42, %v12860_v53 }
0x1ebf   :  { %8777 = vmatmul.msk.bf16.vlgmr.msrb.gmra.mxu1 %vm389_vm1, %v12679_v51 }
0x1ec0   :  { %5887 = vmatpush.bf16.msra.mxu1 %v12748_v29  ;;  %5904 = vmatpush.bf16.msra.mxu3 %v12742_v27 }
0x1ec2   :  { %v5640_v37 = vpop.f32.mrf.mxu3 }
0x1ec3   :  { %v5641_v29 = vadd.f32 %v5640_v37, %v12858_v34 }
0x1ec4   :  { %5888 = vmatpush.bf16.msra.mxu1 %v12746_v54  ;;  %v5628_v48 = vpop.f32.mrf.mxu1 }
0x1ec5   :  { %v5629_v14 = vadd.f32 %v5628_v48, %v12864_v2 }
0x1ec8   :  { %5889 = vmatpush.bf16.msra.mxu1 %v12744_v6  ;;  %v5780_v6 = vpop.f32.mrf.mxu0 }
0x1eca   :  { %v12900_v46 = vpop.f32.mrf.mxu3 }
0x1ecc   :  { %5890 = vmatpush.bf16.msra.mxu1 %v12740_v35  ;;  %v5781_v35 = vadd.f32 %v12824_v17, %v5780_v6  ;;  %v9586_v6 = vld [vmem:[#allocation5 + $0x204] sm:$0xf] }
0x1ecf   :  { %5891 = vmatmul.bf16.vlgmr.msra.gmra.mxu1 %v12681_v60 }
0x1ed0   :  { %v5782_v33 = vpop.f32.mrf.mxu0 }
0x1ed1   :  { %v5783_v23 = vadd.f32 %v12831_v9, %v5782_v33 }
0x1f2c   :  { %v5734_v51 = vpop.f32.mrf.mxu1 }
0x1f2d   :  { %v5753_v30 = vadd.f32 %v5734_v51, %v5627_v56 }
0x1f32   :  { %v5748_v27 = vpop.f32.mrf.mxu3 }
0x1f33   :  { %v12904_v57 = vadd.f32 %v5748_v27, %v5641_v29  ;;  %v8841_v27 = vld [vmem:[#allocation5 + $0x200] sm:$0xf] }
0x1f34   :  { %v5736_v54 = vpop.f32.mrf.mxu1 }
0x1f35   :  { %v5755_v59 = vadd.f32 %v5736_v54, %v5629_v14  ;;  %v9587_v54 = vld [vmem:[#allocation5 + $0x204] sm:$0xf0] }
0x1f3a   :  { %v12916_v58 = vpop.f32.mrf.mxu3 }
0x1f3c   :  { %v5794_v44 = vpop.f32.mrf.mxu1 }
0x1f3d   :  { %v5795_v60 = vadd.f32 %v5794_v44, %v5781_v35  ;;  %v8842_v35 = vor.u32 %v9587_v54, %v8841_v27  ;;  %v8843_v44 = vld [vmem:[#allocation5 + $0x208] sm:$0xf0] }
0x1f3e   :  { %v8846_v33 = vor.u32 %v9586_v6, %v8843_v44  ;;  %v8811_v27 = vld [vmem:[#allocation5 + $0x1c8] sm:$0xf0]  ;;  %v9591_v44 = vld [vmem:[#allocation5 + $0x224] sm:$0xf0] }
0x1f3f   :  { %v5799_v20 = vsel %vm1027_vm5, %v5795_v60, -inf }
0x1f40   :  { %5800 = vmax.xlane.f32.xlu2 %v5799_v20  ;;  %v9585_v20 = vld [vmem:[#allocation5 + $0x1f4] sm:$0xf0]  ;;  %6178 = vmatpush.bf16.msra.mxu0 %v8846_v33  ;;  %v8859_v33 = vld [vmem:[#allocation5 + $0x228] sm:$0xf0] }
0x1f44   :  { %v5796_v53 = vpop.f32.mrf.mxu1 }
0x1f45   :  { %v5797_v36 = vadd.f32 %v5796_v53, %v5783_v23  ;;  %v9584_v23 = vld [vmem:[#allocation5 + $0x1f4] sm:$0xf]  ;;  %v8835_v53 = vld [vmem:[#allocation5 + $0x1f8] sm:$0xf0] }
0x1f47   :  { %v5802_v43 = vsel %vm1027_vm5, %v5797_v36, -inf }
0x1f48   :  { %5803 = vmax.xlane.f32.xlu2 %v5802_v43 }
0x1f4c   :  { %v5892_v12 = vpop.f32.mrf.mxu1 }
0x1f4d   :  { %v5893_v10 = vadd.f32 %v12824_v17, %v5892_v12 }
0x1f54   :  { %v5894_v28 = vpop.f32.mrf.mxu1 }
0x1fb3   :  { %v5801_v34 = vpop.xlane.xlu2 %5800 }
0x1fb4   :  { %v5805_v39 = vsub.f32 %v5795_v60, %v5801_v34  ;;  %v8833_v60 = vld [vmem:[#allocation5 + $0x1f0] sm:$0xf] }
0x1fb5   :  { %v8834_v43 = vor.u32 %v9585_v20, %v8833_v60  ;;  %v9590_v60 = vld [vmem:[#allocation5 + $0x224] sm:$0xf] }
0x1fb6   :  { %v5807_v31 = vmul.f32 1.442695, %v5805_v39 }
0x1fb8   :  { %9826 = vpow2.f32 %v5807_v31  ;;  %v8838_v31 = vor.u32 %v9584_v23, %v8835_v53  ;;  %v8862_v23 = vor.u32 %v9590_v60, %v8859_v33  ;;  %v8801_v53 = vld [vmem:[#allocation5 + $0x1b0] sm:$0xf] }
0x1fba   :  { %6179 = vmatpush.bf16.msra.mxu0 %v8838_v31  ;;  %v8849_v31 = vld [vmem:[#allocation5 + $0x210] sm:$0xf] }
0x1fbb   :  { %v5804_v22 = vpop.xlane.xlu2 %5803 }
0x1fbc   :  { %v5806_v3 = vsub.f32 %v5797_v36, %v5804_v22  ;;  %v6008_v36 = vld [vmem:[#allocation5 + $0x250] sm:$0xff]  ;;  %v8825_v22 = vld [vmem:[#allocation5 + $0x1e0] sm:$0xf] }
0x1fbd   :  { %v6089_v34 = vunpack.c.l.b16 %v6008_v36  ;;  %v6090_v39 = vunpack.c.h.b16 %v6008_v36  ;;  %v9577_v36 = vld [vmem:[#allocation5 + $0x1b4] sm:$0xf0] }
0x1fbe   :  { %v9827_v21 = vpop.eup %9826  ;;  %v5809_v52 = vmul.f32 1.442695, %v5806_v3  ;;  %v9583_v3 = vld [vmem:[#allocation5 + $0x1e4] sm:$0xf0] }
0x1fbf   :  { %v5811_v40 = vsel %vm1027_vm5, %v9827_v21, 0.0 }
0x1fc0   :  { %9828 = vpow2.f32 %v5809_v52  ;;  %5812 = vadd.xlane.f32.xlu2 %v5811_v40  ;;  %v6115_v52 = vpack.c.b16 %v6089_v34, %v6089_v34  ;;  %v6116_v40 = vpack.c.b16 %v6090_v39, %v6090_v39  ;;  %v8802_v34 = vor.u32 %v9577_v36, %v8801_v53  ;;  %v8803_v39 = vld [vmem:[#allocation5 + $0x1b8] sm:$0xf0] }
0x1fc6   :  { %v9829_v45 = vpop.eup %9828 }
0x1fc7   :  { %v5814_v19 = vsel %vm1027_vm5, %v9829_v45, 0.0 }
0x1fc8   :  { %5815 = vadd.xlane.f32.xlu2 %v5814_v19  ;;  %v8873_v19 = vld [vmem:[#allocation5 + $0x240] sm:$0xf] }
0x2033   :  { %v5813_v38 = vpop.xlane.xlu2 %5812 }
0x2034   :  { %9830 = vrcp.f32 %v5813_v38  ;;  %v9595_v38 = vld [vmem:[#allocation5 + $0x244] sm:$0xf0] }
0x203a   :  { %v9831_v7 = vpop.eup %9830 }
0x203b   :  { %v5816_v18 = vpop.xlane.xlu2 %5815  ;;  %v5819_v49 = vmul.f32 %v9831_v7, %v9827_v21  ;;  %v9582_v21 = vld [vmem:[#allocation5 + $0x1e4] sm:$0xf]  ;;  %v8875_v7 = vld [vmem:[#allocation5 + $0x248] sm:$0xf0] }
0x203c   :  { %9832 = vrcp.f32 %v5816_v18  ;;  %v9594_v18 = vld [vmem:[#allocation5 + $0x244] sm:$0xf] }
0x203d   :  { %v8878_v14 = vor.u32 %v9594_v18, %v8875_v7  ;;  %v9574_v18 = vld [vmem:[#allocation5 + $0x1a4] sm:$0xf]  ;;  %v8795_v7 = vld [vmem:[#allocation5 + $0x1a8] sm:$0xf0] }
0x2042   :  { %v9833_v5 = vpop.eup %9832 }
0x2043   :  { %v5820_v25 = vmul.f32 %v9833_v5, %v9829_v45  ;;  %v8827_v45 = vld [vmem:[#allocation5 + $0x1e8] sm:$0xf0]  ;;  %v6145_v5 = vsel %vm393_vm0, %v6115_v52, 0  ;;  %v9588_v52 = vld [vmem:[#allocation5 + $0x214] sm:$0xf] }
0x2045   :  { %v5823_v8 = vpack.c.bf16 %v5820_v25, %v5819_v49  ;;  %v6148_v49 = vsel %vm393_vm0, %v6116_v40, 0  ;;  %v8826_v25 = vor.u32 %v9583_v3, %v8825_v22  ;;  %v9589_v22 = vld [vmem:[#allocation5 + $0x214] sm:$0xf0]  ;;  %v8851_v40 = vld [vmem:[#allocation5 + $0x218] sm:$0xf0] }
0x2046   :  { %6195 = vmatpush.bf16.msrb.mxu1 %v6148_v49  ;;  %v8798_v49 = vor.u32 %v9574_v18, %v8795_v7 }
0x2047   :  { %8778 = vmatmul.msk.bf16.vlgmr.msrb.gmra.mxu3 %vm1027_vm5, %v5823_v8  ;;  %8779 = vmatmul.msk.bf16.vlgmr.msra.gmra.mxu2 %vm1027_vm5, %v5823_v8  ;;  %v8830_v8 = vor.u32 %v9582_v21, %v8827_v45  ;;  %v8850_v21 = vor.u32 %v9589_v22, %v8849_v31  ;;  %v8793_v45 = vld [vmem:[#allocation5 + $0x1a0] sm:$0xf] }
0x2048   :  { %6150 = vmatpush.bf16.msra.mxu2 %v8842_v35  ;;  %6167 = vmatpush.bf16.msrb.mxu3 %v6145_v5  ;;  %v8857_v35 = vld [vmem:[#allocation5 + $0x220] sm:$0xf] }
0x2049   :  { %6180 = vmatpush.bf16.msra.mxu0 %v8830_v8  ;;  %v8858_v20 = vor.u32 %v9591_v44, %v8857_v35  ;;  %v9573_v8 = vld [vmem:[#allocation5 + $0x194] sm:$0xf0] }
0x204a   :  { %6196 = vmatpush.bf16.msrb.mxu1 %v8878_v14 }
0x204c   :  { %6151 = vmatpush.bf16.msra.mxu2 %v8834_v43  ;;  %v9576_v43 = vld [vmem:[#allocation5 + $0x1b4] sm:$0xf] }
0x204d   :  { %v8806_v3 = vor.u32 %v9576_v43, %v8803_v39 }
0x2050   :  { %6152 = vmatpush.bf16.msra.mxu2 %v8826_v25  ;;  %v8785_v25 = vld [vmem:[#allocation5 + $0x190] sm:$0xf] }
0x2051   :  { %v8786_v14 = vor.u32 %v9573_v8, %v8785_v25 }
0x2057   :  { %8780 = vmatmul.msk.bf16.vlgmr.msra.gmra.mxu3 %vm389_vm1, %v12683_v62  ;;  %v5895_v62 = vadd.f32 %v12831_v9, %v5894_v28  ;;  %v8817_v28 = vld [vmem:[#allocation5 + $0x1d0] sm:$0xf] }
0x20ca   :  { %v5846_v55 = vpop.f32.mrf.mxu3 }
0x20cb   :  { %v12918_v24 = vadd.f32 %v5846_v55, %v5753_v30  ;;  %v8874_v55 = vor.u32 %v9595_v38, %v8873_v19  ;;  %v8854_v19 = vor.u32 %v9588_v52, %v8851_v40  ;;  %v9575_v38 = vld [vmem:[#allocation5 + $0x1a4] sm:$0xf0] }
0x20cc   :  { %v8794_v5 = vor.u32 %v9575_v38, %v8793_v45 }
0x20cd   :  { %6168 = vmatpush.bf16.msrb.mxu3 %v8874_v55  ;;  %v9572_v55 = vld [vmem:[#allocation5 + $0x194] sm:$0xf] }
0x20d2   :  { %v5848_v61 = vpop.f32.mrf.mxu3 }
0x20d3   :  { %v12921_v47 = vadd.f32 %v5848_v61, %v5755_v59 }
0x20da   :  { %v5906_v50 = vpop.f32.mrf.mxu3 }
0x20db   :  { %v5907_v41 = vadd.f32 %v5906_v50, %v5893_v10 }
0x20dd   :  { %v5911_v11 = vsel %vm1027_vm5, %v5907_v41, -inf }
0x20de   :  { %5912 = vmax.xlane.f32.xlu2 %v5911_v11 }
0x20e2   :  { %v5908_v4 = vpop.f32.mrf.mxu3 }
0x20e3   :  { %v5909_v32 = vadd.f32 %v5908_v4, %v5895_v62  ;;  %v9581_v62 = vld [vmem:[#allocation5 + $0x1d4] sm:$0xf0]  ;;  %v9580_v4 = vld [vmem:[#allocation5 + $0x1d4] sm:$0xf] }
0x20e5   :  { %v5914_v15 = vsel %vm1027_vm5, %v5909_v32, -inf }
0x20e6   :  { %5915 = vmax.xlane.f32.xlu2 %v5914_v15  ;;  %v8819_v15 = vld [vmem:[#allocation5 + $0x1d8] sm:$0xf0] }
0x2151   :  { %v5913_v2 = vpop.xlane.xlu2 %5912 }
0x2152   :  { %v5917_v42 = vsub.f32 %v5907_v41, %v5913_v2  ;;  %v8865_v2 = vld [vmem:[#allocation5 + $0x230] sm:$0xf] }
0x2154   :  { %v5919_v37 = vmul.f32 1.442695, %v5917_v42  ;;  %v9593_v42 = vld [vmem:[#allocation5 + $0x234] sm:$0xf0] }
0x2156   :  { %9834 = vpow2.f32 %v5919_v37  ;;  %v8822_v37 = vor.u32 %v9580_v4, %v8819_v15 }
0x2158   :  { %6181 = vmatpush.bf16.msra.mxu0 %v8822_v37 }
0x2159   :  { %v5916_v48 = vpop.xlane.xlu2 %5915 }
0x215a   :  { %v5918_v56 = vsub.f32 %v5909_v32, %v5916_v48  ;;  %v8818_v32 = vor.u32 %v9581_v62, %v8817_v28  ;;  %v8866_v48 = vor.u32 %v9593_v42, %v8865_v2 }
0x215c   :  { %v9835_v17 = vpop.eup %9834  ;;  %v5921_v51 = vmul.f32 1.442695, %v5918_v56  ;;  %v9592_v56 = vld [vmem:[#allocation5 + $0x234] sm:$0xf]  ;;  %6153 = vmatpush.bf16.msra.mxu2 %v8818_v32  ;;  %6169 = vmatpush.bf16.msrb.mxu3 %v8866_v48 }
0x215d   :  { %v5923_v30 = vsel %vm1027_vm5, %v9835_v17, 0.0 }
0x215e   :  { %9836 = vpow2.f32 %v5921_v51  ;;  %5924 = vadd.xlane.f32.xlu2 %v5923_v30  ;;  %v8867_v51 = vld [vmem:[#allocation5 + $0x238] sm:$0xf0]  ;;  %v8809_v30 = vld [vmem:[#allocation5 + $0x1c0] sm:$0xf] }
0x2160   :  { %6170 = vmatpush.bf16.msrb.mxu3 %v8858_v20 }
0x2164   :  { %v9837_v29 = vpop.eup %9836  ;;  %6171 = vmatpush.bf16.msrb.mxu3 %v8850_v21 }
0x2165   :  { %v5926_v9 = vsel %vm1027_vm5, %v9837_v29, 0.0 }
0x2166   :  { %5927 = vadd.xlane.f32.xlu2 %v5926_v9  ;;  %v9578_v9 = vld [vmem:[#allocation5 + $0x1c4] sm:$0xf] }
0x2167   :  { %v8814_v6 = vor.u32 %v9578_v9, %v8811_v27 }
0x2169   :  { %6182 = vmatpush.bf16.msra.mxu0 %v8814_v6 }
0x216d   :  { %6183 = vmatpush.bf16.msra.mxu0 %v8806_v3 }
0x2171   :  { %6184 = vmatpush.bf16.msra.mxu0 %v8798_v49 }
0x21d1   :  { %v5925_v59 = vpop.xlane.xlu2 %5924 }
0x21d2   :  { %9838 = vrcp.f32 %v5925_v59  ;;  %v8787_v59 = vld [vmem:[#allocation5 + $0x198] sm:$0xf0] }
0x21d8   :  { %v9839_v12 = vpop.eup %9838 }
0x21d9   :  { %v5928_v61 = vpop.xlane.xlu2 %5927  ;;  %v5931_v50 = vmul.f32 %v9839_v12, %v9835_v17  ;;  %v8870_v17 = vor.u32 %v9592_v56, %v8867_v51  ;;  %v5860_v12 = vpop.f32.mrf.mxu2 }
0x21da   :  { %9840 = vrcp.f32 %v5928_v61  ;;  %v8790_v61 = vor.u32 %v9572_v55, %v8787_v59  ;;  %v5866_v62 = vadd.f32 %v5860_v12, %v12904_v57  ;;  %v8939_v55 = vld [vmem:[#allocation11 + $0x200] sm:$0xf]  ;;  %v9610_v59 = vld [vmem:[#allocation11 + $0x204] sm:$0xf]  ;;  %v8941_v12 = vld [vmem:[#allocation11 + $0x208] sm:$0xf0] }
0x21db   :  { %6197 = vmatpush.bf16.msrb.mxu1 %v8870_v17 }
0x21dc   :  { %6185 = vmatpush.bf16.msra.mxu0 %v8790_v61 }
0x21df   :  { %6198 = vmatpush.bf16.msrb.mxu1 %v8862_v23 }
0x21e0   :  { %v9841_v10 = vpop.eup %9840 }
0x21e1   :  { %v5932_v41 = vmul.f32 %v9841_v10, %v9837_v29  ;;  %v9579_v29 = vld [vmem:[#allocation5 + $0x1c4] sm:$0xf0]  ;;  %v5862_v10 = vpop.f32.mrf.mxu2 }
0x21e2   :  { %v8810_v54 = vor.u32 %v9579_v29, %v8809_v30 }
0x21e3   :  { %v5935_v11 = vpack.c.bf16 %v5932_v41, %v5931_v50  ;;  %6199 = vmatpush.bf16.msrb.mxu1 %v8854_v19  ;;  %v5643_v41 = vadd.f32 %v12900_v46, %v12862_v0  ;;  %v6010_v46 = vld [vmem:[#allocation7 + $0x4] sm:$0x3] }
0x21e4   :  { %6154 = vmatpush.bf16.msra.mxu2 %v8810_v54  ;;  %v6012_v17 = vperm.slane %v6010_v46, 0 }
0x21e5   :  { %8781 = vmatmul.msk.bf16.vlgmr.msrb.gmra.mxu2 %vm1027_vm5, %v5935_v11  ;;  %8782 = vmatmul.msk.bf16.vlgmr.msrb.gmra.mxu0 %vm1027_vm5, %v5935_v11  ;;  %v5756_v11 = vadd.f32 %v12916_v58, %v5643_v41  ;;  %v6013_v58 = vperm.slane %v6010_v46, 1  ;;  %v9609_v41 = vld [vmem:[#allocation11 + $0x1f4] sm:$0xf0] }
0x21e7   :  { %v5868_v4 = vadd.f32 %v5862_v10, %v5756_v11  ;;  %v8944_v10 = vor.u32 %v9610_v59, %v8941_v12  ;;  %v9608_v11 = vld [vmem:[#allocation11 + $0x1f4] sm:$0xf] }
0x21e8   :  { %6155 = vmatpush.bf16.msra.mxu2 %v8802_v34 }
0x21ec   :  { %6156 = vmatpush.bf16.msra.mxu2 %v8794_v5 }
0x21f0   :  { %6157 = vmatpush.bf16.msra.mxu2 %v8786_v14  ;;  %v9611_v14 = vld [vmem:[#allocation11 + $0x204] sm:$0xf0] }
0x21f1   :  { %v8940_v61 = vor.u32 %v9611_v14, %v8939_v55  ;;  %v8891_v55 = vld [vmem:[#allocation11 + $0x1a0] sm:$0xf]  ;;  %v9599_v14 = vld [vmem:[#allocation11 + $0x1a4] sm:$0xf0] }
0x21f3   :  { %6455 = vmatpush.bf16.msra.mxu3 %v8940_v61 }
0x21f4   :  { %6483 = vmatpush.bf16.msrb.mxu2 %v8944_v10  ;;  %v8955_v10 = vld [vmem:[#allocation11 + $0x220] sm:$0xf] }
0x2262   :  { %v5972_v50 = vpop.f32.mrf.mxu0 }
0x2263   :  { %v5978_v15 = vadd.f32 %v5972_v50, %v5866_v62  ;;  %v8931_v50 = vld [vmem:[#allocation11 + $0x1f0] sm:$0xf]  ;;  %v8933_v62 = vld [vmem:[#allocation11 + $0x1f8] sm:$0xf0] }
0x2268   :  { %v5958_v28 = vpop.f32.mrf.mxu2 }
0x2269   :  { %v5977_v48 = vadd.f32 %v5958_v28, %v12918_v24  ;;  %v8932_v28 = vor.u32 %v9609_v41, %v8931_v50  ;;  %v9615_v50 = vld [vmem:[#allocation11 + $0x224] sm:$0xf0] }
0x226a   :  { %v5974_v32 = vpop.f32.mrf.mxu0 }
0x226b   :  { %v5980_v2 = vadd.f32 %v5974_v32, %v5868_v4  ;;  %v8936_v4 = vor.u32 %v9608_v11, %v8933_v62  ;;  %6456 = vmatpush.bf16.msra.mxu3 %v8932_v28  ;;  %v8923_v32 = vld [vmem:[#allocation11 + $0x1e0] sm:$0xf]  ;;  %v8892_v11 = vor.u32 %v9599_v14, %v8891_v55  ;;  %v9598_v28 = vld [vmem:[#allocation11 + $0x1a4] sm:$0xf]  ;;  %v8893_v62 = vld [vmem:[#allocation11 + $0x1a8] sm:$0xf0] }
0x226c   :  { %v9635_v55 = vld [vmem:[%s13309_s14 + $0x274] sm:$0xf0] }
0x226d   :  { %v5982_v42 = vpack.c.bf16 %v5980_v2, %v5978_v15  ;;  %6484 = vmatpush.bf16.msrb.mxu2 %v8936_v4  ;;  %v9607_v15 = vld [vmem:[#allocation11 + $0x1e4] sm:$0xf0]  ;;  %v9606_v2 = vld [vmem:[#allocation11 + $0x1e4] sm:$0xf] }
0x226e   :  { %v9614_v4 = vld [vmem:[#allocation11 + $0x224] sm:$0xf] }
0x226f   :  { %8879 = vmatmul.msk.bf16.vlgmr.msrb.gmra.mxu3 %vm389_vm1, %v5982_v42  ;;  %8880 = vmatmul.msk.bf16.vlgmr.msrb.gmra.mxu1 %vm389_vm1, %v5982_v42  ;;  %v8924_v42 = vor.u32 %v9607_v15, %v8923_v32  ;;  %v8956_v32 = vor.u32 %v9615_v50, %v8955_v10  ;;  %v8896_v15 = vor.u32 %v9598_v28, %v8893_v62  ;;  %v9650_v10 = vld [vmem:[%s13309_s14 + $0x2f4] sm:$0xf]  ;;  %v9140_v50 = vld [vmem:[%s13309_s14 + $0x2f8] sm:$0x10] }
0x2270   :  { %v5960_v37 = vpop.f32.mrf.mxu2  ;;  %v9143_v28 = vor.u32 %v9650_v10, %v9140_v50  ;;  %v9642_v50 = vld [vmem:[%s13309_s14 + $0x2b4] sm:$0xf] }
0x2271   :  { %v5979_v56 = vadd.f32 %v5960_v37, %v12921_v47  ;;  %v8925_v37 = vld [vmem:[#allocation11 + $0x1e8] sm:$0xf0]  ;;  %6457 = vmatpush.bf16.msra.mxu3 %v8924_v42  ;;  %v8883_v42 = vld [vmem:[#allocation11 + $0x190] sm:$0xf] }
0x2272   :  { %v6750_v62 = vsel %vm2323_vm3, %v9143_v28, 0 }
0x2273   :  { %v5981_v0 = vpack.c.bf16 %v5979_v56, %v5977_v48  ;;  %v6313_v48 = vld [vmem:[#allocation11 + $0x250] sm:$0xff]  ;;  %v8928_v56 = vor.u32 %v9606_v2, %v8925_v37  ;;  %v8957_v2 = vld [vmem:[#allocation11 + $0x228] sm:$0xf0] }
0x2274   :  { %v6395_v46 = vunpack.c.h.b16 %v6313_v48 }
0x2275   :  { %6158 = vmatmul.bf16.vlgmr.msra.gmra.mxu2 %v5981_v0  ;;  %6186 = vmatmul.bf16.vlgmr.msra.gmra.mxu0 %v5981_v0  ;;  %v6394_v0 = vunpack.c.l.b16 %v6313_v48  ;;  %v8960_v48 = vor.u32 %v9614_v4, %v8957_v2  ;;  %v9066_v4 = vld [vmem:[%s13309_s14 + $0x260] sm:$0xf] }
0x2276   :  { %6485 = vmatpush.bf16.msrb.mxu2 %v8928_v56  ;;  %v9597_v56 = vld [vmem:[#allocation11 + $0x194] sm:$0xf0]  ;;  %v9130_v2 = vld [vmem:[%s13309_s14 + $0x2e0] sm:$0xf] }
0x22ec   :  { %v6201_v51 = vpop.f32.mrf.mxu1 }
0x22f2   :  { %v6187_v57 = vpop.f32.mrf.mxu0  ;;  %v6173_v9 = vpop.f32.mrf.mxu3 }
0x22f3   :  { %v6188_v30 = vadd.f32 %v6187_v57, %v6013_v58 }
0x22f4   :  { %v6203_v60 = vpop.f32.mrf.mxu1 }
0x22f5   :  { %v6202_v29 = vadd.f32 %v6201_v51, %v6188_v30  ;;  %v8915_v51 = vld [vmem:[#allocation11 + $0x1d0] sm:$0xf]  ;;  %v9605_v30 = vld [vmem:[#allocation11 + $0x1d4] sm:$0xf0] }
0x22f7   :  { %v6207_v6 = vadd.f32 %v6202_v29, %v12601_v16  ;;  %v9604_v29 = vld [vmem:[#allocation11 + $0x1d4] sm:$0xf] }
0x22f8   :  { %v6159_v27 = vpop.f32.mrf.mxu2 }
0x22f9   :  { %v6160_v54 = vadd.f32 %v6159_v27, %v6012_v17  ;;  %v6214_v33 = vsel %vm389_vm1, %v6207_v6, 0.0  ;;  %v8916_v27 = vor.u32 %v9605_v30, %v8915_v51  ;;  %v9612_v51 = vld [vmem:[#allocation11 + $0x214] sm:$0xf] }
0x22fa   :  { %v6189_v35 = vpop.f32.mrf.mxu0  ;;  %v6175_v43 = vpop.f32.mrf.mxu3 }
0x22fb   :  { %v6174_v44 = vadd.f32 %v6173_v9, %v6160_v54  ;;  %v6190_v24 = vadd.f32 %v6189_v35, %v6013_v58  ;;  %v6421_v9 = vpack.c.b16 %v6395_v46, %v6395_v46  ;;  %v8917_v54 = vld [vmem:[#allocation11 + $0x1d8] sm:$0xf0]  ;;  %6458 = vmatpush.bf16.msra.mxu3 %v8916_v27  ;;  %v9613_v46 = vld [vmem:[#allocation11 + $0x214] sm:$0xf0] }
0x22fd   :  { %v6206_v47 = vadd.f32 %v6174_v44, %v12599_v63  ;;  %v6204_v20 = vadd.f32 %v6203_v60, %v6190_v24  ;;  %v8920_v44 = vor.u32 %v9604_v29, %v8917_v54  ;;  %v6453_v24 = vsel %vm393_vm0, %v6421_v9, 0  ;;  %v8907_v60 = vld [vmem:[#allocation11 + $0x1c0] sm:$0xf]  ;;  %v8949_v29 = vld [vmem:[#allocation11 + $0x218] sm:$0xf0] }
0x22fe   :  { %6500 = vmatpush.bf16.msrb.mxu0 %v6453_v24 }
0x22ff   :  { %v6215_v23 = vadd.f32 %v6214_v33, %v6206_v47  ;;  %v6209_v34 = vadd.f32 %v6204_v20, %v12605_v1  ;;  %6486 = vmatpush.bf16.msrb.mxu2 %v8920_v44  ;;  %v8971_v20 = vld [vmem:[#allocation11 + $0x240] sm:$0xf] }
0x2300   :  { %v6161_v53 = vpop.f32.mrf.mxu2 }
0x2301   :  { %v6162_v36 = vadd.f32 %v6161_v53, %v6012_v17  ;;  %6216 = vadd.xlane.f32.xlu2 %v6215_v23  ;;  %v6218_v16 = vsel %vm389_vm1, %v6209_v34, 0.0  ;;  %v6420_v17 = vpack.c.b16 %v6394_v0, %v6394_v0  ;;  %v9619_v23 = vld [vmem:[#allocation11 + $0x244] sm:$0xf0]  ;;  %v9602_v53 = vld [vmem:[#allocation11 + $0x1c4] sm:$0xf] }
0x2302   :  { %v8947_v0 = vld [vmem:[#allocation11 + $0x210] sm:$0xf] }
0x2303   :  { %v6176_v39 = vadd.f32 %v6175_v43, %v6162_v36  ;;  %v6450_v35 = vsel %vm393_vm0, %v6420_v17, 0  ;;  %v8909_v36 = vld [vmem:[#allocation11 + $0x1c8] sm:$0xf0]  ;;  %v8972_v43 = vor.u32 %v9619_v23, %v8971_v20  ;;  %v8884_v17 = vor.u32 %v9597_v56, %v8883_v42  ;;  %v6211_v20 = vld [vmem:[#allocation8 + $0x4] sm:$0x3] }
0x2304   :  { %6472 = vmatpush.bf16.msra.mxu1 %v6450_v35  ;;  %v8948_v9 = vor.u32 %v9613_v46, %v8947_v0  ;;  %v8952_v35 = vor.u32 %v9612_v51, %v8949_v29  ;;  %v9649_v42 = vld [vmem:[%s13309_s14 + $0x2e4] sm:$0xf0]  ;;  %v9068_v56 = vld [vmem:[%s13309_s14 + $0x268] sm:$0xf0]  ;;  %v9648_v0 = vld [vmem:[%s13309_s14 + $0x2e4] sm:$0xf] }
0x2305   :  { %v6208_v31 = vadd.f32 %v6176_v39, %v12603_v26  ;;  %v9618_v39 = vld [vmem:[#allocation11 + $0x244] sm:$0xf]  ;;  %v9132_v46 = vld [vmem:[%s13309_s14 + $0x2e8] sm:$0xf0]  ;;  %v9122_v29 = vld [vmem:[%s13309_s14 + $0x2d0] sm:$0xf] }
0x2306   :  { %v9135_v51 = vor.u32 %v9648_v0, %v9132_v46  ;;  %v9640_v0 = vld [vmem:[%s13309_s14 + $0x2a4] sm:$0xf] }
0x2307   :  { %v6219_v22 = vadd.f32 %v6218_v16, %v6208_v31  ;;  %v8899_v16 = vld [vmem:[#allocation11 + $0x1b0] sm:$0xf] }
0x2308   :  { %6473 = vmatpush.bf16.msra.mxu1 %v8972_v43  ;;  %v6269_v43 = vperm.slane %v6211_v20, 0 }
0x2309   :  { %6220 = vadd.xlane.f32.xlu2 %v6219_v22 }
0x2374   :  { %v6217_v3 = vpop.xlane.xlu2 %6216 }
0x2375   :  { %v6222_v63 = vmul.f32 %v6217_v3, %v10985_v13 }
0x2377   :  { %v12948_v21 = vsub.f32 %v6206_v47, %v6222_v63  ;;  %v12950_v52 = vsub.f32 %v6207_v6, %v6222_v63  ;;  %v9603_v47 = vld [vmem:[#allocation11 + $0x1c4] sm:$0xf0]  ;;  %v9601_v63 = vld [vmem:[#allocation11 + $0x1b4] sm:$0xf0] }
0x2378   :  { %v8908_v33 = vor.u32 %v9603_v47, %v8907_v60 }
0x2379   :  { %v6228_v40 = vmul.f32 %v12948_v21, %v12948_v21  ;;  %v6229_v1 = vmul.f32 %v12950_v52, %v12950_v52 }
0x237a   :  { %6459 = vmatpush.bf16.msra.mxu3 %v8908_v33 }
0x237b   :  { %v6232_v45 = vsel %vm389_vm1, %v6229_v1, 0.0  ;;  %v9617_v1 = vld [vmem:[#allocation11 + $0x234] sm:$0xf0] }
0x237c   :  { %v6221_v26 = vpop.xlane.xlu2 %6220  ;;  %v6233_v19 = vadd.f32 %v6232_v45, %v6228_v40  ;;  %v8963_v40 = vld [vmem:[#allocation11 + $0x230] sm:$0xf] }
0x237d   :  { %v6223_v38 = vmul.f32 %v6221_v26, %v10985_v13  ;;  %v8900_v26 = vor.u32 %v9601_v63, %v8899_v16 }
0x237e   :  { %6234 = vadd.xlane.f32.xlu2 %v6233_v19  ;;  %v8964_v19 = vor.u32 %v9617_v1, %v8963_v40 }
0x237f   :  { %v12958_v18 = vsub.f32 %v6208_v31, %v6223_v38  ;;  %v12960_v7 = vsub.f32 %v6209_v34, %v6223_v38  ;;  %v8912_v34 = vor.u32 %v9602_v53, %v8909_v36  ;;  %v8973_v31 = vld [vmem:[#allocation11 + $0x248] sm:$0xf0]  ;;  %v9600_v38 = vld [vmem:[#allocation11 + $0x1b4] sm:$0xf]  ;;  %6460 = vmatpush.bf16.msra.mxu3 %v8900_v26  ;;  %v6213_v36 = vld [vmem:[#allocation10 + $0x4] sm:$0x3] }
0x2380   :  { %v8976_v3 = vor.u32 %v9618_v39, %v8973_v31  ;;  %6474 = vmatpush.bf16.msra.mxu1 %v8964_v19 }
0x2381   :  { %v6230_v5 = vmul.f32 %v12958_v18, %v12958_v18  ;;  %v6231_v49 = vmul.f32 %v12960_v7, %v12960_v7  ;;  %6487 = vmatpush.bf16.msrb.mxu2 %v8912_v34  ;;  %v6270_v34 = vperm.slane %v6211_v20, 1 }
0x2382   :  { %6501 = vmatpush.bf16.msrb.mxu0 %v8976_v3 }
0x2383   :  { %v6236_v25 = vsel %vm389_vm1, %v6231_v49, 0.0  ;;  %v9616_v49 = vld [vmem:[#allocation11 + $0x234] sm:$0xf]  ;;  %6461 = vmatpush.bf16.msra.mxu3 %v8892_v11 }
0x2384   :  { %v6237_v8 = vadd.f32 %v6236_v25, %v6230_v5  ;;  %v8901_v5 = vld [vmem:[#allocation11 + $0x1b8] sm:$0xf0]  ;;  %6475 = vmatpush.bf16.msra.mxu1 %v8956_v32  ;;  %v9633_v32 = vld [vmem:[%s13309_s14 + $0x264] sm:$0xf0] }
0x2385   :  { %v8904_v25 = vor.u32 %v9600_v38, %v8901_v5 }
0x2386   :  { %6238 = vadd.xlane.f32.xlu2 %v6237_v8  ;;  %v8965_v8 = vld [vmem:[#allocation11 + $0x238] sm:$0xf0] }
0x2387   :  { %v8968_v12 = vor.u32 %v9616_v49, %v8965_v8  ;;  %6488 = vmatpush.bf16.msrb.mxu2 %v8904_v25  ;;  %6462 = vmatpush.bf16.msra.mxu3 %v8884_v17  ;;  %v9074_v8 = vld [vmem:[%s13309_s14 + $0x270] sm:$0xf]  ;;  %v9631_v17 = vld [vmem:[%s13309_s14 + $0x254] sm:$0xf0] }
0x2388   :  { %6476 = vmatpush.bf16.msra.mxu1 %v8948_v9 }
0x2389   :  { %6502 = vmatpush.bf16.msrb.mxu0 %v8968_v12  ;;  %v9076_v12 = vld [vmem:[%s13309_s14 + $0x278] sm:$0xf0] }
0x238b   :  { %6489 = vmatpush.bf16.msrb.mxu2 %v8896_v15  ;;  %v9067_v15 = vor.u32 %v9633_v32, %v9066_v4  ;;  %v9625_v4 = vld [vmem:[%s13309_s14 + $0x224] sm:$0xf0]  ;;  %v9098_v32 = vld [vmem:[%s13309_s14 + $0x2a0] sm:$0xf] }
0x238d   :  { %6503 = vmatpush.bf16.msrb.mxu0 %v8960_v48  ;;  %v9131_v48 = vor.u32 %v9649_v42, %v9130_v2 }
0x2391   :  { %6504 = vmatpush.bf16.msrb.mxu0 %v8952_v35  ;;  %v9060_v35 = vld [vmem:[%s13309_s14 + $0x258] sm:$0xf0] }
0x23f1   :  { %v6235_v58 = vpop.xlane.xlu2 %6234 }
0x23f2   :  { %v6240_v57 = vmul.f32 %v6235_v58, %v10985_v13  ;;  %v9596_v58 = vld [vmem:[#allocation11 + $0x194] sm:$0xf] }
0x23f4   :  { %v12968_v6 = vadd.f32 1e-05, %v6240_v57  ;;  %v8885_v57 = vld [vmem:[#allocation11 + $0x198] sm:$0xf0] }
0x23f5   :  { %v8888_v27 = vor.u32 %v9596_v58, %v8885_v57  ;;  %v13044_v58 = vld [vmem:[#allocation13 + $0x4] sm:$0x3] }
0x23f6   :  { %9842 = vrsqrt.f32 %v12968_v6  ;;  %vm6250_vm10 = vweird.f32 %v12968_v6  ;;  %v6317_v20 = vperm.slane %v13044_v58, 0 }
0x23f7   :  { %6490 = vmatpush.bf16.msrb.mxu2 %v8888_v27  ;;  %v9647_v27 = vld [vmem:[%s13309_s14 + $0x2d4] sm:$0xf0] }
0x23f9   :  { %v6239_v22 = vpop.xlane.xlu2 %6238 }
0x23fa   :  { %v6241_v45 = vmul.f32 %v6239_v22, %v10985_v13  ;;  %v6278_v22 = vperm.slane %v6213_v36, 0 }
0x23fb   :  { %6794 = vmatpush.bf16.msra.mxu2 %v6750_v62 }
0x23fc   :  { %v9843_v59 = vpop.eup %9842  ;;  %v6243_v61 = vadd.f32 1e-05, %v6241_v45 }
0x23fd   :  { %v6245_v41 = vmul.f32 %v9843_v59, %v12968_v6  ;;  %vm6251_vm6 = vweird.f32 %v9843_v59  ;;  %v6279_v6 = vperm.slane %v6213_v36, 1  ;;  %v9114_v36 = vld [vmem:[%s13309_s14 + $0x2c0] sm:$0xf] }
0x23fe   :  { %9844 = vrsqrt.f32 %v6243_v61  ;;  %vm6252_vm13 = vmor %vm6250_vm10, %vm6251_vm6  ;;  %vm6260_vm7 = vweird.f32 %v6243_v61 }
0x23ff   :  { %v6246_v37 = vmul.f32 %v9843_v59, %v6245_v41  ;;  %6795 = vmatpush.bf16.msra.mxu2 %v9135_v51  ;;  %v9100_v51 = vld [vmem:[%s13309_s14 + $0x2a8] sm:$0xf0] }
0x2401   :  { %v6247_v30 = vmul.f32 0.5, %v6246_v37  ;;  %v9632_v37 = vld [vmem:[%s13309_s14 + $0x264] sm:$0xf] }
0x2402   :  { %v9071_v57 = vor.u32 %v9632_v37, %v9068_v56  ;;  %v9036_v56 = vld [vmem:[%s13309_s14 + $0x228] sm:$0xf0] }
0x2403   :  { %v6248_v54 = vsub.f32 1.5, %v6247_v30  ;;  %v9058_v30 = vld [vmem:[%s13309_s14 + $0x250] sm:$0xf] }
0x2404   :  { %v9845_v44 = vpop.eup %9844  ;;  %v9059_v9 = vor.u32 %v9631_v17, %v9058_v30  ;;  %v9026_v30 = vld [vmem:[%s13309_s14 + $0x210] sm:$0xf] }
0x2405   :  { %v6249_v24 = vmul.f32 %v9843_v59, %v6248_v54  ;;  %v6255_v60 = vmul.f32 %v9845_v44, %v6243_v61  ;;  %vm6261_vm4 = vweird.f32 %v9845_v44  ;;  %v9075_v61 = vor.u32 %v9635_v55, %v9074_v8  ;;  %v9630_v54 = vld [vmem:[%s13309_s14 + $0x254] sm:$0xf]  ;;  %v9643_v55 = vld [vmem:[%s13309_s14 + $0x2b4] sm:$0xf0] }
0x2406   :  { %vm6262_vm5 = vmor %vm6260_vm7, %vm6261_vm4 }
0x2407   :  { %v6256_v47 = vmul.f32 %v9845_v44, %v6255_v60  ;;  %v6253_v33 = vsel %vm6252_vm13, %v9843_v59, %v6249_v24  ;;  %v9634_v59 = vld [vmem:[%s13309_s14 + $0x274] sm:$0xf]  ;;  %6752 = vmatpush.bf16.msrb.mxu1 %v9075_v61  ;;  %v9063_v24 = vor.u32 %v9630_v54, %v9060_v35 }
0x2408   :  { %v6264_v39 = vmul.f32 %v6253_v33, %v12948_v21  ;;  %v6265_v31 = vmul.f32 %v6253_v33, %v12950_v52  ;;  %v9079_v11 = vor.u32 %v9634_v59, %v9076_v12  ;;  %v9646_v60 = vld [vmem:[%s13309_s14 + $0x2d4] sm:$0xf]  ;;  %v9044_v59 = vld [vmem:[%s13309_s14 + $0x238] sm:$0xf0] }
0x2409   :  { %v6257_v23 = vmul.f32 0.5, %v6256_v47  ;;  %v9124_v47 = vld [vmem:[%s13309_s14 + $0x2d8] sm:$0xf0] }
0x240a   :  { %v6273_v63 = vmul.f32 %v6269_v43, %v6264_v39  ;;  %v6274_v40 = vmul.f32 %v6270_v34, %v6265_v31  ;;  %6780 = vmatpush.bf16.msra.mxu0 %v9079_v11  ;;  %v9127_v33 = vor.u32 %v9646_v60, %v9124_v47  ;;  %v9628_v39 = vld [vmem:[%s13309_s14 + $0x244] sm:$0xf]  ;;  %v9052_v31 = vld [vmem:[%s13309_s14 + $0x248] sm:$0xf0]  ;;  %v9034_v11 = vld [vmem:[%s13309_s14 + $0x220] sm:$0xf] }
0x240b   :  { %v6258_v53 = vsub.f32 1.5, %v6257_v23  ;;  %6753 = vmatpush.bf16.msrb.mxu1 %v9067_v15  ;;  %v9050_v23 = vld [vmem:[%s13309_s14 + $0x240] sm:$0xf]  ;;  %v9641_v15 = vld [vmem:[%s13309_s14 + $0x2a4] sm:$0xf0]  ;;  %v9035_v42 = vor.u32 %v9625_v4, %v9034_v11 }
0x240c   :  { %v12980_v38 = vadd.f32 %v6278_v22, %v6273_v63  ;;  %v12982_v5 = vadd.f32 %v6279_v6, %v6274_v40  ;;  %6796 = vmatpush.bf16.msra.mxu2 %v9127_v33  ;;  %v9116_v63 = vld [vmem:[%s13309_s14 + $0x2c8] sm:$0xf0]  ;;  %v9099_v37 = vor.u32 %v9641_v15, %v9098_v32 }
0x240d   :  { %v6259_v16 = vmul.f32 %v9845_v44, %v6258_v53  ;;  %v9629_v53 = vld [vmem:[%s13309_s14 + $0x244] sm:$0xf0] }
0x240e   :  { %6781 = vmatpush.bf16.msra.mxu0 %v9071_v57 }
0x240f   :  { %v6263_v3 = vsel %vm6262_vm5, %v9845_v44, %v6259_v16  ;;  %v9123_v44 = vor.u32 %v9647_v27, %v9122_v29  ;;  %6754 = vmatpush.bf16.msrb.mxu1 %v9059_v9  ;;  %v6318_v16 = vperm.slane %v13044_v58, 1  ;;  %v9103_v29 = vor.u32 %v9640_v0, %v9100_v51  ;;  %v9623_v9 = vld [vmem:[%s13309_s14 + $0x214] sm:$0xf0]  ;;  %v9090_v27 = vld [vmem:[%s13309_s14 + $0x290] sm:$0xf] }
0x2410   :  { %v6266_v1 = vmul.f32 %v6263_v3, %v12958_v18  ;;  %v6267_v45 = vmul.f32 %v6263_v3, %v12960_v7  ;;  %v9138_v18 = vld [vmem:[%s13309_s14 + $0x2f0] sm:$0xf]  ;;  %v9651_v7 = vld [vmem:[%s13309_s14 + $0x2f4] sm:$0x10]  ;;  %v9644_v3 = vld [vmem:[%s13309_s14 + $0x2c4] sm:$0xf]  ;;  %v9027_v35 = vor.u32 %v9623_v9, %v9026_v30 }
0x2411   :  { %v9139_v14 = vor.u32 %v9651_v7, %v9138_v18  ;;  %v9119_v40 = vor.u32 %v9644_v3, %v9116_v63  ;;  %v9082_v63 = vld [vmem:[%s13309_s14 + $0x280] sm:$0xf]  ;;  %v9020_v58 = vld [vmem:[%s13309_s14 + $0x208] sm:$0xf0] }
0x2412   :  { %v6275_v26 = vmul.f32 %v6269_v43, %v6266_v1  ;;  %v6276_v19 = vmul.f32 %v6270_v34, %v6267_v45  ;;  %6782 = vmatpush.bf16.msra.mxu0 %v9063_v24  ;;  %v9051_v43 = vor.u32 %v9629_v53, %v9050_v23  ;;  %v9645_v34 = vld [vmem:[%s13309_s14 + $0x2c4] sm:$0xf0]  ;;  %v9622_v24 = vld [vmem:[%s13309_s14 + $0x214] sm:$0xf]  ;;  %v9028_v23 = vld [vmem:[%s13309_s14 + $0x218] sm:$0xf0] }
0x2413   :  { %v6747_v41 = vsel %vm2323_vm3, %v9139_v14, 0  ;;  %6797 = vmatpush.bf16.msra.mxu2 %v9119_v40  ;;  %v9626_v14 = vld [vmem:[%s13309_s14 + $0x234] sm:$0xf]  ;;  %v9637_v40 = vld [vmem:[%s13309_s14 + $0x284] sm:$0xf0] }
0x2414   :  { %v12984_v21 = vadd.f32 %v6278_v22, %v6275_v26  ;;  %v12986_v52 = vadd.f32 %v6279_v6, %v6276_v19  ;;  %6766 = vmatpush.bf16.msrb.mxu3 %v6747_v41  ;;  %v9115_v22 = vor.u32 %v9645_v34, %v9114_v36  ;;  %v9055_v6 = vor.u32 %v9628_v39, %v9052_v31  ;;  %v9042_v26 = vld [vmem:[%s13309_s14 + $0x230] sm:$0xf]  ;;  %v9627_v19 = vld [vmem:[%s13309_s14 + $0x234] sm:$0xf0]  ;;  %v9108_v41 = vld [vmem:[%s13309_s14 + $0x2b8] sm:$0xf0] }
0x2415   :  { %6755 = vmatpush.bf16.msrb.mxu1 %v9051_v43  ;;  %v9043_v8 = vor.u32 %v9627_v19, %v9042_v26  ;;  %v9047_v10 = vor.u32 %v9626_v14, %v9044_v59  ;;  %v9111_v62 = vor.u32 %v9642_v50, %v9108_v41  ;;  %v9638_v53 = vld [vmem:[%s13309_s14 + $0x294] sm:$0xf]  ;;  %v9031_v34 = vor.u32 %v9622_v24, %v9028_v23  ;;  %v9092_v39 = vld [vmem:[%s13309_s14 + $0x298] sm:$0xf0]  ;;  %v9018_v31 = vld [vmem:[%s13309_s14 + $0x200] sm:$0xf] }
0x2416   :  { %v6287_v49 = vpack.c.bf16 %v12986_v52, %v12982_v5  ;;  %v6286_v25 = vpack.c.bf16 %v12984_v21, %v12980_v38  ;;  %6783 = vmatpush.bf16.msra.mxu0 %v9055_v6  ;;  %v9095_v3 = vor.u32 %v9638_v53, %v9092_v39 }
0x2417   :  { %6798 = vmatpush.bf16.msra.mxu2 %v9111_v62 }
0x2418   :  { %6463 = vmatmul.bf16.vlgmr.msra.gmra.mxu3 %v6286_v25  ;;  %8977 = vmatmul.msk.bf16.vlgmr.msra.gmra.mxu1 %vm389_vm1, %v6287_v49 }
0x2419   :  { %6491 = vmatmul.bf16.vlgmr.msrb.gmra.mxu2 %v6286_v25  ;;  %8978 = vmatmul.msk.bf16.vlgmr.msrb.gmra.mxu0 %vm389_vm1, %v6287_v49  ;;  %v9106_v49 = vld [vmem:[%s13309_s14 + $0x2b0] sm:$0xf] }
0x241a   :  { %6767 = vmatpush.bf16.msrb.mxu3 %v9131_v48  ;;  %v9107_v12 = vor.u32 %v9643_v55, %v9106_v49  ;;  %6756 = vmatpush.bf16.msrb.mxu1 %v9043_v8  ;;  %v9624_v48 = vld [vmem:[%s13309_s14 + $0x224] sm:$0xf]  ;;  %v9084_v49 = vld [vmem:[%s13309_s14 + $0x288] sm:$0xf0] }
0x241b   :  { %6784 = vmatpush.bf16.msra.mxu0 %v9047_v10  ;;  %v9039_v57 = vor.u32 %v9624_v48, %v9036_v56  ;;  %6799 = vmatpush.bf16.msra.mxu2 %v9103_v29 }
0x241e   :  { %6768 = vmatpush.bf16.msrb.mxu3 %v9123_v44  ;;  %6757 = vmatpush.bf16.msrb.mxu1 %v9035_v42  ;;  %v9639_v44 = vld [vmem:[%s13309_s14 + $0x294] sm:$0xf0] }
0x241f   :  { %v9091_v33 = vor.u32 %v9639_v44, %v9090_v27  ;;  %6785 = vmatpush.bf16.msra.mxu0 %v9039_v57  ;;  %6800 = vmatpush.bf16.msra.mxu2 %v9095_v3 }
0x2422   :  { %6769 = vmatpush.bf16.msrb.mxu3 %v9115_v22  ;;  %v9621_v22 = vld [vmem:[%s13309_s14 + $0x204] sm:$0xf0]  ;;  %6758 = vmatpush.bf16.msrb.mxu1 %v9027_v35 }
0x2423   :  { %v9019_v19 = vor.u32 %v9621_v22, %v9018_v31  ;;  %6786 = vmatpush.bf16.msra.mxu0 %v9031_v34 }
0x2426   :  { %6770 = vmatpush.bf16.msrb.mxu3 %v9107_v12  ;;  %6759 = vmatpush.bf16.msrb.mxu1 %v9019_v19 }
0x242a   :  { %6771 = vmatpush.bf16.msrb.mxu3 %v9099_v37 }
0x242e   :  { %6772 = vmatpush.bf16.msrb.mxu3 %v9091_v33 }
0x2495   :  { %v6478_v1 = vpop.f32.mrf.mxu1 }
0x2496   :  { %v6506_v25 = vpop.f32.mrf.mxu0 }
0x249b   :  { %v6464_v45 = vpop.f32.mrf.mxu3 }
0x249c   :  { %v6465_v18 = vadd.f32 %v6464_v45, %v6317_v20  ;;  %v6492_v7 = vpop.f32.mrf.mxu2 }
0x249d   :  { %v6493_v61 = vadd.f32 %v6492_v7, %v6318_v16  ;;  %v6480_v6 = vpop.f32.mrf.mxu1 }
0x249e   :  { %v13127_v28 = vadd.f32 %v6478_v1, %v6465_v18  ;;  %v9620_v1 = vld [vmem:[%s13309_s14 + $0x204] sm:$0xf]  ;;  %v6508_v45 = vpop.f32.mrf.mxu0  ;;  %v9083_v18 = vor.u32 %v9637_v40, %v9082_v63 }
0x249f   :  { %v13138_v2 = vadd.f32 %v6506_v25, %v6493_v61  ;;  %v9023_v8 = vor.u32 %v9620_v1, %v9020_v58 }
0x24a0   :  { %v6515_v46 = vmin.f32 %v13127_v28, 0.0  ;;  %6773 = vmatpush.bf16.msrb.mxu3 %v9083_v18  ;;  %v6511_v15 = vmax.f32 %v13127_v28, 0.0  ;;  %v9015_v28 = vld [vmem:[%s13310_s15 + $0x4] sm:$0x3] }
0x24a1   :  { %v6516_v17 = vmin.f32 %v13138_v2, 0.0  ;;  %6787 = vmatpush.bf16.msra.mxu0 %v9023_v8  ;;  %v6512_v37 = vmax.f32 %v13138_v2, 0.0  ;;  %v6582_v33 = vperm.slane %v9015_v28, 1 }
0x24a2   :  { %v6519_v54 = vmul.f32 1.442695, %v6515_v46 }
0x24a3   :  { %v6521_v60 = vmul.f32 1.442695, %v6516_v17  ;;  %v6466_v47 = vpop.f32.mrf.mxu3 }
0x24a4   :  { %9846 = vpow2.f32 %v6519_v54  ;;  %v6467_v36 = vadd.f32 %v6466_v47, %v6317_v20  ;;  %v6494_v43 = vpop.f32.mrf.mxu2  ;;  %v6581_v47 = vperm.slane %v9015_v28, 0  ;;  %v9661_v28 = vld [vmem:[%s13313_s18 + $0x48] sm:$0xff] }
0x24a5   :  { %9848 = vpow2.f32 %v6521_v60  ;;  %v6495_v20 = vadd.f32 %v6494_v43, %v6318_v16  ;;  %v9636_v16 = vld [vmem:[%s13309_s14 + $0x284] sm:$0xf] }
0x24a6   :  { %v6481_v26 = vadd.f32 %v6480_v6, %v6467_v36  ;;  %v9087_v55 = vor.u32 %v9636_v16, %v9084_v49 }
0x24a7   :  { %v6509_v25 = vadd.f32 %v6508_v45, %v6495_v20 }
0x24a8   :  { %v6517_v7 = vmin.f32 %v6481_v26, 0.0  ;;  %6801 = vmatpush.bf16.msra.mxu2 %v9087_v55  ;;  %v6513_v0 = vmax.f32 %v6481_v26, 0.0 }
0x24a9   :  { %v6518_v14 = vmin.f32 %v6509_v25, 0.0  ;;  %v6514_v51 = vmax.f32 %v6509_v25, 0.0 }
0x24aa   :  { %v9847_v59 = vpop.eup %9846  ;;  %v6523_v61 = vmul.f32 1.442695, %v6517_v7 }
0x24ab   :  { %v9849_v12 = vpop.eup %9848  ;;  %v6525_v10 = vmul.f32 1.442695, %v6518_v14  ;;  %v8979_v50 = vadd.f32 -1.0, %v9847_v59 }
0x24ac   :  { %9850 = vpow2.f32 %v6523_v61  ;;  %v8980_v41 = vadd.f32 -1.0, %v9849_v12 }
0x24ad   :  { %9852 = vpow2.f32 %v6525_v10  ;;  %v6531_v11 = vmul.f32 1.6732632, %v8979_v50 }
0x24ae   :  { %v6532_v4 = vmul.f32 1.6732632, %v8980_v41 }
0x24af   :  { %v6535_v56 = vadd.f32 %v6531_v11, %v6511_v15  ;;  %v9657_v15 = vld [vmem:[%s13313_s18 + $0x28] sm:$0xff] }
0x24b0   :  { %v6536_v57 = vadd.f32 %v6532_v4, %v6512_v37  ;;  %v9659_v4 = vld [vmem:[%s13313_s18 + $0x38] sm:$0xff] }
0x24b1   :  { %v6539_v9 = vmul.f32 1.050701, %v6535_v56  ;;  %7000 = vmatpush.bf16.msra.mxu1 %v9659_v4 }
0x24b2   :  { %v9851_v62 = vpop.eup %9850  ;;  %v6540_v54 = vmul.f32 1.050701, %v6536_v57 }
0x24b3   :  { %v9853_v32 = vpop.eup %9852  ;;  %v8981_v42 = vadd.f32 -1.0, %v9851_v62 }
0x24b4   :  { %v8982_v48 = vadd.f32 -1.0, %v9853_v32  ;;  %v9658_v32 = vld [vmem:[%s13313_s18 + $0x30] sm:$0xff] }
0x24b5   :  { %v6533_v46 = vmul.f32 1.6732632, %v8981_v42  ;;  %7001 = vmatpush.bf16.msra.mxu1 %v9658_v32  ;;  %v6914_v42 = vld [vmem:[%s13313_s18 + $0x60] sm:$0xf] }
0x24b6   :  { %v6534_v30 = vmul.f32 1.6732632, %v8982_v48  ;;  %v6968_v37 = vunpack.c.l.b16 %v6914_v42 }
0x24b7   :  { %v6537_v17 = vadd.f32 %v6533_v46, %v6513_v0  ;;  %v9656_v46 = vld [vmem:[%s13313_s18 + $0x20] sm:$0xff] }
0x24b8   :  { %v6538_v29 = vadd.f32 %v6534_v30, %v6514_v51  ;;  %v6981_v56 = vpack.c.b16 %v6968_v37, %v6968_v37  ;;  %v9655_v30 = vld [vmem:[%s13313_s18 + $0x18] sm:$0xff] }
0x24b9   :  { %v6541_v27 = vmul.f32 1.050701, %v6537_v17  ;;  %7002 = vmatpush.bf16.msra.mxu1 %v9657_v15  ;;  %v9663_v17 = vld [vmem:[%s13313_s18 + $0x58] sm:$0xff] }
0x24ba   :  { %v6542_v35 = vmul.f32 1.050701, %v6538_v29  ;;  %v6998_v57 = vsel %vm393_vm0, %v6981_v56, 0  ;;  %v9654_v29 = vld [vmem:[%s13313_s18 + $0x10] sm:$0xff] }
0x24bb   :  { %v6543_v44 = vpack.c.bf16 %v6541_v27, %v6539_v9  ;;  %7017 = vmatpush.bf16.msra.mxu3 %v6998_v57  ;;  %v9662_v9 = vld [vmem:[%s13313_s18 + $0x50] sm:$0xff] }
0x24bc   :  { %v6544_v24 = vpack.c.bf16 %v6542_v35, %v6540_v54 }
0x24bd   :  { %6760 = vmatmul.bf16.vlgmr.msrb.gmra.mxu1 %v6543_v44  ;;  %6788 = vmatmul.bf16.vlgmr.msra.gmra.mxu0 %v6543_v44 }
0x24be   :  { %9144 = vmatmul.msk.bf16.vlgmr.msrb.gmra.mxu3 %vm2319_vm8, %v6544_v24  ;;  %9145 = vmatmul.msk.bf16.vlgmr.msra.gmra.mxu2 %vm2319_vm8, %v6544_v24  ;;  %v9653_v24 = vld [vmem:[%s13313_s18 + $0x8] sm:$0xff] }
0x24bf   :  { %7003 = vmatpush.bf16.msra.mxu1 %v9656_v46  ;;  %7018 = vmatpush.bf16.msra.mxu3 %v9663_v17 }
0x24c3   :  { %7004 = vmatpush.bf16.msra.mxu1 %v9655_v30  ;;  %7019 = vmatpush.bf16.msra.mxu3 %v9662_v9 }
0x24c7   :  { %7005 = vmatpush.bf16.msra.mxu1 %v9654_v29  ;;  %7020 = vmatpush.bf16.msra.mxu3 %v9661_v28 }
0x24cb   :  { %7006 = vmatpush.bf16.msra.mxu1 %v9653_v24 }
0x253a   :  { %v6761_v2 = vpop.f32.mrf.mxu1  ;;  %v6789_v60 = vpop.f32.mrf.mxu0 }
0x253b   :  { %v6762_v23 = vadd.f32 %v6761_v2, %v6581_v47  ;;  %v6790_v53 = vadd.f32 %v6789_v60, %v6582_v33 }
0x2541   :  { %v6775_v36 = vpop.f32.mrf.mxu3  ;;  %v6803_v43 = vpop.f32.mrf.mxu2 }
0x2542   :  { %v6776_v34 = vadd.f32 %v6775_v36, %v6762_v23  ;;  %v6804_v39 = vadd.f32 %v6803_v43, %v6790_v53  ;;  %v6763_v6 = vpop.f32.mrf.mxu1  ;;  %v6791_v20 = vpop.f32.mrf.mxu0 }
0x2543   :  { %v6764_v40 = vadd.f32 %v6763_v6, %v6581_v47  ;;  %v6792_v1 = vadd.f32 %v6791_v20, %v6582_v33  ;;  %v9660_v47 = vld [vmem:[%s13313_s18 + $0x40] sm:$0xff] }
0x2544   :  { %v6808_v31 = vadd.f32 %v6776_v34, %v12980_v38  ;;  %v6809_v22 = vadd.f32 %v6804_v39, %v12982_v5  ;;  %7021 = vmatpush.bf16.msra.mxu3 %v9660_v47  ;;  %v9146_v39 = vld [vmem:[%s13311_s16 + $0x4] sm:$0x3] }
0x2545   :  { %v6815_v20 = vld [vmem:[#allocation14 + $0x4] sm:$0x3] }
0x2546   :  { %v6816_v3 = vsel %vm389_vm1, %v6809_v22, 0.0 }
0x2547   :  { %v6817_v63 = vadd.f32 %v6816_v3, %v6808_v31  ;;  %v6871_v3 = vperm.slane %v9146_v39, 0 }
0x2549   :  { %v6777_v45 = vpop.f32.mrf.mxu3  ;;  %v6805_v26 = vpop.f32.mrf.mxu2  ;;  %6818 = vadd.xlane.f32.xlu2 %v6817_v63  ;;  %v6872_v63 = vperm.slane %v9146_v39, 1 }
0x254a   :  { %v6778_v19 = vadd.f32 %v6777_v45, %v6764_v40  ;;  %v6806_v58 = vadd.f32 %v6805_v26, %v6792_v1  ;;  %v6880_v26 = vperm.slane %v6815_v20, 0 }
0x254c   :  { %v6810_v16 = vadd.f32 %v6778_v19, %v12984_v21  ;;  %v6811_v49 = vadd.f32 %v6806_v58, %v12986_v52  ;;  %v6881_v19 = vperm.slane %v6815_v20, 1 }
0x254e   :  { %v6820_v38 = vsel %vm389_vm1, %v6811_v49, 0.0 }
0x254f   :  { %v6821_v25 = vadd.f32 %v6820_v38, %v6810_v16 }
0x2551   :  { %6822 = vadd.xlane.f32.xlu2 %v6821_v25 }
0x25bc   :  { %v6819_v5 = vpop.xlane.xlu2 %6818 }
0x25bd   :  { %v6824_v18 = vmul.f32 %v6819_v5, %v10985_v13 }
0x25bf   :  { %v13220_v7 = vsub.f32 %v6808_v31, %v6824_v18  ;;  %v13222_v8 = vsub.f32 %v6809_v22, %v6824_v18 }
0x25c1   :  { %v6830_v55 = vmul.f32 %v13220_v7, %v13220_v7  ;;  %v6831_v14 = vmul.f32 %v13222_v8, %v13222_v8 }
0x25c3   :  { %v6834_v21 = vsel %vm389_vm1, %v6831_v14, 0.0 }
0x25c4   :  { %v6823_v52 = vpop.xlane.xlu2 %6822  ;;  %v6835_v59 = vadd.f32 %v6834_v21, %v6830_v55 }
0x25c5   :  { %v6825_v61 = vmul.f32 %v6823_v52, %v10985_v13 }
0x25c6   :  { %6836 = vadd.xlane.f32.xlu2 %v6835_v59 }
0x25c7   :  { %v13230_v12 = vsub.f32 %v6810_v16, %v6825_v61  ;;  %v13232_v10 = vsub.f32 %v6811_v49, %v6825_v61 }
0x25c9   :  { %v6832_v50 = vmul.f32 %v13230_v12, %v13230_v12  ;;  %v6833_v41 = vmul.f32 %v13232_v10, %v13232_v10 }
0x25cb   :  { %v6838_v11 = vsel %vm389_vm1, %v6833_v41, 0.0 }
0x25cc   :  { %v6839_v62 = vadd.f32 %v6838_v11, %v6832_v50  ;;  %v9687_v50 = vld [vmem:[%s13314_s19] ss:$0 sm:$0xff] }
0x25ce   :  { %6840 = vadd.xlane.f32.xlu0 %v6839_v62 }
0x2639   :  { %v6837_v48 = vpop.xlane.xlu2 %6836 }
0x263a   :  { %v6842_v0 = vmul.f32 %v6837_v48, %v10985_v13 }
0x263c   :  { %v6844_v51 = vadd.f32 1e-05, %v6842_v0 }
0x263e   :  { %9854 = vrsqrt.f32 %v6844_v51  ;;  %vm6852_vm3 = vweird.f32 %v6844_v51 }
0x2641   :  { %v6841_v27 = vpop.xlane.xlu0 %6840 }
0x2642   :  { %v6843_v54 = vmul.f32 %v6841_v27, %v10985_v13  ;;  %v9652_v13 = vld [vmem:[%s13313_s18] sm:$0xff] }
0x2643   :  { %7007 = vmatpush.bf16.msra.mxu1 %v9652_v13 }
0x2644   :  { %v9855_v35 = vpop.eup %9854  ;;  %v6845_v44 = vadd.f32 1e-05, %v6843_v54 }
0x2645   :  { %v6847_v2 = vmul.f32 %v9855_v35, %v6844_v51  ;;  %vm6853_vm0 = vweird.f32 %v9855_v35 }
0x2646   :  { %9856 = vrsqrt.f32 %v6845_v44  ;;  %vm6854_vm8 = vmor %vm6852_vm3, %vm6853_vm0  ;;  %vm6862_vm11 = vweird.f32 %v6845_v44 }
0x2647   :  { %v6848_v60 = vmul.f32 %v9855_v35, %v6847_v2 }
0x2649   :  { %v6849_v33 = vmul.f32 0.5, %v6848_v60 }
0x264b   :  { %v6850_v23 = vsub.f32 1.5, %v6849_v33 }
0x264c   :  { %v9857_v53 = vpop.eup %9856 }
0x264d   :  { %v6851_v36 = vmul.f32 %v9855_v35, %v6850_v23  ;;  %v6857_v43 = vmul.f32 %v9857_v53, %v6845_v44  ;;  %vm6863_vm9 = vweird.f32 %v9857_v53 }
0x264e   :  { %vm6864_vm12 = vmor %vm6862_vm11, %vm6863_vm9 }
0x264f   :  { %v6858_v34 = vmul.f32 %v9857_v53, %v6857_v43  ;;  %v6855_v31 = vsel %vm6854_vm8, %v9855_v35, %v6851_v36 }
0x2650   :  { %v6866_v40 = vmul.f32 %v6855_v31, %v13220_v7  ;;  %v6867_v1 = vmul.f32 %v6855_v31, %v13222_v8 }
0x2651   :  { %v6859_v22 = vmul.f32 0.5, %v6858_v34 }
0x2652   :  { %v6875_v16 = vmul.f32 %v6871_v3, %v6866_v40  ;;  %v6876_v49 = vmul.f32 %v6872_v63, %v6867_v1 }
0x2653   :  { %v6860_v6 = vsub.f32 1.5, %v6859_v22 }
0x2654   :  { %v6884_v55 = vadd.f32 %v6880_v26, %v6875_v16  ;;  %v6885_v14 = vadd.f32 %v6881_v19, %v6876_v49 }
0x2655   :  { %v6861_v45 = vmul.f32 %v9857_v53, %v6860_v6 }
0x2657   :  { %v6865_v58 = vsel %vm6864_vm12, %v9857_v53, %v6861_v45 }
0x2658   :  { %v6868_v38 = vmul.f32 %v6865_v58, %v13230_v12  ;;  %v6869_v25 = vmul.f32 %v6865_v58, %v13232_v10 }
0x265a   :  { %v6877_v5 = vmul.f32 %v6871_v3, %v6868_v38  ;;  %v6878_v18 = vmul.f32 %v6872_v63, %v6869_v25 }
0x265c   :  { %v6886_v21 = vadd.f32 %v6880_v26, %v6877_v5  ;;  %v6887_v7 = vadd.f32 %v6881_v19, %v6878_v18 }
0x265e   :  { %v6889_v52 = vpack.c.bf16 %v6887_v7, %v6885_v14  ;;  %v6888_v8 = vpack.c.bf16 %v6886_v21, %v6884_v55 }
0x2660   :  { %7008 = vmatmul.bf16.vlgmr.msra.gmra.mxu1 %v6888_v8  ;;  %9195 = vmatmul.msk.bf16.vlgmr.msra.gmra.mxu3 %vm389_vm1, %v6889_v52 }
0x26dd   :  { %v7009_v59 = vpop.f32.mrf.mxu1 }
0x26de   :  { %v7010_v41 = vadd.f32 %v9687_v50, %v7009_v59 }
0x26e3   :  { %v7023_v61 = vpop.f32.mrf.mxu3 }
0x26e4   :  { %v7024_v62 = vadd.f32 %v7023_v61, %v7010_v41 }
0x26e5   :  { %v7011_v12 = vpop.f32.mrf.mxu1 }
0x26e6   :  { %v7012_v10 = vadd.f32 %v9687_v50, %v7011_v12 }
0x26eb   :  { %v7025_v11 = vpop.f32.mrf.mxu3 }
0x26ec   :  { %v7026_v4 = vadd.f32 %v7025_v11, %v7012_v10 }
0x26ee   :  { %v9667_v32 = vpack.c.bf16 %v7026_v4, %v7024_v62 }
0x26f0   :  { %9668 = vst [vmem:[#allocation16] sm:$0xff] %v9667_v32  }
0x26f1   :  { %7045 = dma.vmem_to_hbm [thread:$0]  %s7038_s0, 128, %s7040_s29, [#allocation4], %s10109_s6, %s10109_s6, %s10110_s21  }
0x26f2   :  { %10092 = dma.done.wait [#allocation4], 128  }
0x26f3   :  { %10093 = vsyncadd [#allocation4], 4294967168 }
0x26f4   :  { %7050 = vsyncpa [#allocation3], 1 }
0x26f5   :  { %7051 = vsyncpa [#allocation6], 1 }
0x26f6   :  { %7052 = vsyncpa [#allocation9], 1 }
0x26f7   :  { %7053 = vsyncpa [#allocation12], 1 }
0x26f8   :  { %7054 = vsyncpa [#allocation15], 1 }
0x26f9   :  { %7055 = vsyncpa [#allocation4], 1 }

</bundles_post_ra>
